<compile_context>
chip_gen: v6e
topology: v6e:2x2x1
jax: 0.10.0
libtpu: 0.0.40
codegen_flags: <defaults>
</compile_context>

<pallas_src>
import jax
import jax.numpy as jnp
from jax.experimental import pallas as pl
from jax.experimental.pallas import tpu as pltpu


_BT_CAP = 8   # samples per grid step (see VMEM accounting above)


def _head_kernel(x_ref, feats_ref, w1_ref, b1_ref, w2_ref, b2_ref,
                 wc_img_ref, wc_meta_ref, bc_ref, out_ref):
    # ---- image branch: pool-first global average over HW (lane axis), f32 accum ----
    inv_hw = jnp.float32(1.0 / x_ref.shape[-1])
    pooled = jnp.sum(x_ref[...], axis=-1) * inv_hw                          # (Bt, C) f32
    # classifier image half: lane-dense (1, C) weight -> VPU mul + XLU lane reduce
    logit_img = jnp.sum(pooled * wc_img_ref[...], axis=-1, keepdims=True)   # (Bt, 1)

    # ---- meta MLP, batched over Bt (MXU, f32 accumulation; dropout = identity) ----
    f = feats_ref[...]                                                      # (Bt, F)
    h1 = jnp.maximum(
        jnp.dot(f, w1_ref[...], preferred_element_type=jnp.float32) + b1_ref[...], 0.0)
    h2 = jnp.maximum(
        jnp.dot(h1, w2_ref[...], preferred_element_type=jnp.float32) + b2_ref[...], 0.0)
    logit_meta = jnp.sum(h2 * wc_meta_ref[...], axis=-1, keepdims=True)     # (Bt, 1)

    # ---- classifier on concat([pooled, h2]) == split-weight sum, then Softplus ----
    logit = logit_img + logit_meta + bc_ref[...]                            # (Bt, 1)
    out_ref[...] = jnp.maximum(logit, 0.0) + jnp.log(1.0 + jnp.exp(-jnp.abs(logit)))


@jax.jit
def model_head(x_feat_map, features, params):
    """x_feat_map: (B, C, H, W) float32 backbone features (NCHW, consumed directly).
       features  : (B, F) float32 tabular features."""
    B, C, H, W = x_feat_map.shape
    HW = H * W
    F_ = features.shape[1]
    H1 = params["w1"].shape[1]
    H2 = params["w2"].shape[1]

    # Free reshape only -- NO transpose, NO dtype repack (kernel reads NCHW f32 once).
    x3 = x_feat_map.reshape(B, C, HW).astype(jnp.float32)
    feats = features.astype(jnp.float32)

    # Pick per-step sample tile Bt (== B for small batches; multiple of 8 otherwise
    # so the (Bt, F)/(Bt, 1) blocks satisfy the sublane constraint).
    if B <= _BT_CAP:
        bt, bp = B, B
    else:
        bt = max(8, (_BT_CAP // 8) * 8)
        bp = -(-B // bt) * bt
    if bp != B:
        x3 = jnp.pad(x3, ((0, bp - B), (0, 0), (0, 0)))
        feats = jnp.pad(feats, ((0, bp - B), (0, 0)))

    def const_spec(shape):  # VMEM-resident weights (constant index map)
        return pl.BlockSpec(shape, lambda i, _s=shape: (0,) * len(_s))

    out = pl.pallas_call(
        _head_kernel,
        out_shape=jax.ShapeDtypeStruct((bp, 1), jnp.float32),
        grid=(bp // bt,),
        in_specs=[
            pl.BlockSpec((bt, C, HW), lambda i: (i, 0, 0)),   # x: per-tile, pipelined
            pl.BlockSpec((bt, F_), lambda i: (i, 0)),         # features: per-tile
            const_spec((F_, H1)), const_spec((1, H1)),        # fc1
            const_spec((H1, H2)), const_spec((1, H2)),        # fc2
            const_spec((1, C)),                               # classifier (image half, lane-dense)
            const_spec((1, H2)),                              # classifier (meta half, lane-dense)
            const_spec((1, 1)),                               # classifier bias
        ],
        out_specs=pl.BlockSpec((bt, 1), lambda i: (i, 0)),
        compiler_params=pltpu.CompilerParams(
            dimension_semantics=("parallel",)),
    )(
        x3, feats,
        params["w1"], params["b1"],
        params["w2"], params["b2"],
        params["wc_img"], params["wc_meta"], params["bc"],
    )
    return out[:B]


def reference_head(x_feat_map, features, p):
    """Pure-JAX f32 reference of the same forward pass (correctness check)."""
    pooled = jnp.mean(x_feat_map, axis=(2, 3))                         # (B, C)
    h1 = jax.nn.relu(features @ p["w1"] + p["b1"])
    h2 = jax.nn.relu(h1 @ p["w2"] + p["b2"])
    z = jnp.concatenate([pooled, h2], axis=1)
    wc = jnp.concatenate([p["wc_img"], p["wc_meta"]], axis=1)          # (1, C+H2)
    return jax.nn.softplus(z @ wc.T + p["bc"])


def init_params(key, n_feats, n_channels, hidden1=256, hidden2=256):
    ks = jax.random.split(key, 6)
    # classifier weight over concat([img_feats(C), meta(H2)]) split into two lane-dense rows
    return {
        "w1": jax.random.normal(ks[0], (n_feats, hidden1), jnp.float32) * 0.05,
        "b1": jax.random.normal(ks[1], (1, hidden1), jnp.float32) * 0.01,
        "w2": jax.random.normal(ks[2], (hidden1, hidden2), jnp.float32) * 0.05,
        "b2": jax.random.normal(ks[3], (1, hidden2), jnp.float32) * 0.01,
        "wc_img": jax.random.normal(ks[4], (1, n_channels), jnp.float32) * 0.02,
        "wc_meta": jax.random.normal(ks[5], (1, hidden2), jnp.float32) * 0.02,
        "bc": jnp.zeros((1, 1), jnp.float32),
    }


if __name__ == "__main__":
    key = jax.random.PRNGKey(0)
    k_x, k_f, k_p = jax.random.split(key, 3)

    B = 2
    C = 1536          # efficientnet-b3 feature channels
    Hs = Ws = 8       # small spatial extent of backbone feature map
    N_FEATS = 44      # tabular columns (bloods + age + gender + ethnicity + onset + vitals)

    x_feat_map = jax.random.normal(k_x, (B, C, Hs, Ws), jnp.float32)   # NCHW backbone output
    features = jax.random.normal(k_f, (B, N_FEATS), jnp.float32)
    params = init_params(k_p, N_FEATS, C)

    out = jax.block_until_ready(model_head(x_feat_map, features, params))
    ref = reference_head(x_feat_map, features, params)

    assert out.shape == (B, 1)
    assert bool(jnp.all(out >= 0.0))                       # softplus output is non-negative
    assert bool(jnp.allclose(out, ref, rtol=1e-2, atol=1e-2)), (out, ref)
    print("KERNEL_OK")
</pallas_src>

<mosaic_0001>
module attributes {stable_mosaic.version = 11 : i64} {
  func.func @_head_kernel(%arg0: i32, %arg1: memref<2x1536x64xf32, #tpu.memory_space<vmem>>, %arg2: memref<2x44xf32, #tpu.memory_space<vmem>>, %arg3: memref<44x256xf32, #tpu.memory_space<vmem>>, %arg4: memref<1x256xf32, #tpu.memory_space<vmem>>, %arg5: memref<256x256xf32, #tpu.memory_space<vmem>>, %arg6: memref<1x256xf32, #tpu.memory_space<vmem>>, %arg7: memref<1x1536xf32, #tpu.memory_space<vmem>>, %arg8: memref<1x256xf32, #tpu.memory_space<vmem>>, %arg9: memref<1x1xf32, #tpu.memory_space<vmem>>, %arg10: memref<2x1xf32, #tpu.memory_space<vmem>>) attributes {dimension_semantics = [#tpu.dimension_semantics<parallel>], iteration_bounds = array<i64: 1>, scalar_prefetch = 0 : i64, scratch_operands = 0 : i64, tpu.core_type = #tpu.core_type<tc>, window_params = [{transform_indices = @transform_0, window_bounds = array<i64: 2, 1536, 64>}, {transform_indices = @transform_1, window_bounds = array<i64: 2, 44>}, {pipeline_mode = #tpu.pipeline_mode<synchronous>, transform_indices = @transform_2, window_bounds = array<i64: 44, 256>}, {pipeline_mode = #tpu.pipeline_mode<synchronous>, transform_indices = @transform_3, window_bounds = array<i64: 1, 256>}, {pipeline_mode = #tpu.pipeline_mode<synchronous>, transform_indices = @transform_4, window_bounds = array<i64: 256, 256>}, {pipeline_mode = #tpu.pipeline_mode<synchronous>, transform_indices = @transform_5, window_bounds = array<i64: 1, 256>}, {pipeline_mode = #tpu.pipeline_mode<synchronous>, transform_indices = @transform_6, window_bounds = array<i64: 1, 1536>}, {pipeline_mode = #tpu.pipeline_mode<synchronous>, transform_indices = @transform_7, window_bounds = array<i64: 1, 256>}, {pipeline_mode = #tpu.pipeline_mode<synchronous>, transform_indices = @transform_8, window_bounds = array<i64: 1, 1>}, {transform_indices = @transform_9, window_bounds = array<i64: 2, 1>}]} {
    %c0 = arith.constant 0 : index
    %c0_0 = arith.constant 0 : index
    %c0_1 = arith.constant 0 : index
    %0 = vector.load %arg1[%c0, %c0_0, %c0_1] : memref<2x1536x64xf32, #tpu.memory_space<vmem>>, vector<2x1536x64xf32>
    %cst = arith.constant dense<0.000000e+00> : vector<2x1536xf32>
    %1 = vector.multi_reduction <add>, %0, %cst [2] : vector<2x1536x64xf32> to vector<2x1536xf32>
    %cst_2 = arith.constant 1.562500e-02 : f32
    %2 = vector.broadcast %cst_2 : f32 to vector<2x1536xf32>
    %3 = arith.mulf %1, %2 : vector<2x1536xf32>
    %c0_3 = arith.constant 0 : index
    %c0_4 = arith.constant 0 : index
    %4 = vector.load %arg7[%c0_3, %c0_4] : memref<1x1536xf32, #tpu.memory_space<vmem>>, vector<1x1536xf32>
    %5 = vector.broadcast %4 : vector<1x1536xf32> to vector<2x1536xf32>
    %6 = arith.mulf %3, %5 : vector<2x1536xf32>
    %cst_5 = arith.constant dense<0.000000e+00> : vector<2xf32>
    %7 = vector.multi_reduction <add>, %6, %cst_5 [1] : vector<2x1536xf32> to vector<2xf32>
    %8 = vector.shape_cast %7 : vector<2xf32> to vector<2x1xf32>
    %c0_6 = arith.constant 0 : index
    %c0_7 = arith.constant 0 : index
    %9 = vector.load %arg2[%c0_6, %c0_7] : memref<2x44xf32, #tpu.memory_space<vmem>>, vector<2x44xf32>
    %c0_8 = arith.constant 0 : index
    %c0_9 = arith.constant 0 : index
    %10 = vector.load %arg3[%c0_8, %c0_9] : memref<44x256xf32, #tpu.memory_space<vmem>>, vector<44x256xf32>
    %cst_10 = arith.constant dense<0.000000e+00> : vector<2x256xf32>
    %11 = tpu.matmul %9, %10, %cst_10 {dimension_numbers = #tpu.dot_dimension_numbers<[1], [0], [0], [1], [0, 0, 1, 1], [], []>} : vector<2x44xf32>, vector<44x256xf32>, vector<2x256xf32> -> vector<2x256xf32>
    %c0_11 = arith.constant 0 : index
    %c0_12 = arith.constant 0 : index
    %12 = vector.load %arg4[%c0_11, %c0_12] : memref<1x256xf32, #tpu.memory_space<vmem>>, vector<1x256xf32>
    %13 = vector.broadcast %12 : vector<1x256xf32> to vector<2x256xf32>
    %14 = arith.addf %11, %13 : vector<2x256xf32>
    %cst_13 = arith.constant 0.000000e+00 : f32
    %15 = vector.broadcast %cst_13 : f32 to vector<2x256xf32>
    %16 = arith.maximumf %14, %15 : vector<2x256xf32>
    %c0_14 = arith.constant 0 : index
    %c0_15 = arith.constant 0 : index
    %17 = vector.load %arg5[%c0_14, %c0_15] : memref<256x256xf32, #tpu.memory_space<vmem>>, vector<256x256xf32>
    %cst_16 = arith.constant dense<0.000000e+00> : vector<2x256xf32>
    %18 = tpu.matmul %16, %17, %cst_16 {dimension_numbers = #tpu.dot_dimension_numbers<[1], [0], [0], [1], [0, 0, 1, 1], [], []>} : vector<2x256xf32>, vector<256x256xf32>, vector<2x256xf32> -> vector<2x256xf32>
    %c0_17 = arith.constant 0 : index
    %c0_18 = arith.constant 0 : index
    %19 = vector.load %arg6[%c0_17, %c0_18] : memref<1x256xf32, #tpu.memory_space<vmem>>, vector<1x256xf32>
    %20 = vector.broadcast %19 : vector<1x256xf32> to vector<2x256xf32>
    %21 = arith.addf %18, %20 : vector<2x256xf32>
    %cst_19 = arith.constant 0.000000e+00 : f32
    %22 = vector.broadcast %cst_19 : f32 to vector<2x256xf32>
    %23 = arith.maximumf %21, %22 : vector<2x256xf32>
    %c0_20 = arith.constant 0 : index
    %c0_21 = arith.constant 0 : index
    %24 = vector.load %arg8[%c0_20, %c0_21] : memref<1x256xf32, #tpu.memory_space<vmem>>, vector<1x256xf32>
    %25 = vector.broadcast %24 : vector<1x256xf32> to vector<2x256xf32>
    %26 = arith.mulf %23, %25 : vector<2x256xf32>
    %cst_22 = arith.constant dense<0.000000e+00> : vector<2xf32>
    %27 = vector.multi_reduction <add>, %26, %cst_22 [1] : vector<2x256xf32> to vector<2xf32>
    %28 = vector.shape_cast %27 : vector<2xf32> to vector<2x1xf32>
    %29 = arith.addf %8, %28 : vector<2x1xf32>
    %c0_23 = arith.constant 0 : index
    %c0_24 = arith.constant 0 : index
    %30 = vector.load %arg9[%c0_23, %c0_24] : memref<1x1xf32, #tpu.memory_space<vmem>>, vector<1x1xf32>
    %31 = vector.broadcast %30 : vector<1x1xf32> to vector<2x1xf32>
    %32 = arith.addf %29, %31 : vector<2x1xf32>
    %cst_25 = arith.constant 0.000000e+00 : f32
    %33 = vector.broadcast %cst_25 : f32 to vector<2x1xf32>
    %34 = arith.maximumf %32, %33 : vector<2x1xf32>
    %35 = math.absf %32 : vector<2x1xf32>
    %cst_26 = arith.constant 0.000000e+00 : f32
    %36 = vector.broadcast %cst_26 : f32 to vector<2x1xf32>
    %37 = arith.subf %36, %35 : vector<2x1xf32>
    %38 = math.exp %37 : vector<2x1xf32>
    %cst_27 = arith.constant 1.000000e+00 : f32
    %39 = vector.broadcast %cst_27 : f32 to vector<2x1xf32>
    %40 = arith.addf %39, %38 : vector<2x1xf32>
    %41 = math.log %40 : vector<2x1xf32>
    %42 = arith.addf %34, %41 : vector<2x1xf32>
    %c0_28 = arith.constant 0 : index
    %c0_29 = arith.constant 0 : index
    %43 = vector.load %arg10[%c0_28, %c0_29] : memref<2x1xf32, #tpu.memory_space<vmem>>, vector<2x1xf32>
    tpu.vector_store %arg10[%c0_28, %c0_29], %42 {strides = array<i32>} : memref<2x1xf32, #tpu.memory_space<vmem>>, vector<2x1xf32>,
    return
  }
  func.func @transform_0(%arg0: i32) -> (i32, i32, i32) {
    %c0_i32 = arith.constant 0 : i32
    %c0_i32_0 = arith.constant 0 : i32
    %c0_i32_1 = arith.constant 0 : i32
    return %arg0, %c0_i32, %c0_i32_0 : i32, i32, i32
  }
  func.func @transform_1(%arg0: i32) -> (i32, i32) {
    %c0_i32 = arith.constant 0 : i32
    %c0_i32_0 = arith.constant 0 : i32
    return %arg0, %c0_i32 : i32, i32
  }
  func.func @transform_2(%arg0: i32) -> (i32, i32) {
    %c0_i32 = arith.constant 0 : i32
    %c0_i32_0 = arith.constant 0 : i32
    %c0_i32_1 = arith.constant 0 : i32
    return %c0_i32, %c0_i32_0 : i32, i32
  }
  func.func @transform_3(%arg0: i32) -> (i32, i32) {
    %c0_i32 = arith.constant 0 : i32
    %c0_i32_0 = arith.constant 0 : i32
    %c0_i32_1 = arith.constant 0 : i32
    return %c0_i32, %c0_i32_0 : i32, i32
  }
  func.func @transform_4(%arg0: i32) -> (i32, i32) {
    %c0_i32 = arith.constant 0 : i32
    %c0_i32_0 = arith.constant 0 : i32
    %c0_i32_1 = arith.constant 0 : i32
    return %c0_i32, %c0_i32_0 : i32, i32
  }
  func.func @transform_5(%arg0: i32) -> (i32, i32) {
    %c0_i32 = arith.constant 0 : i32
    %c0_i32_0 = arith.constant 0 : i32
    %c0_i32_1 = arith.constant 0 : i32
    return %c0_i32, %c0_i32_0 : i32, i32
  }
  func.func @transform_6(%arg0: i32) -> (i32, i32) {
    %c0_i32 = arith.constant 0 : i32
    %c0_i32_0 = arith.constant 0 : i32
    %c0_i32_1 = arith.constant 0 : i32
    return %c0_i32, %c0_i32_0 : i32, i32
  }
  func.func @transform_7(%arg0: i32) -> (i32, i32) {
    %c0_i32 = arith.constant 0 : i32
    %c0_i32_0 = arith.constant 0 : i32
    %c0_i32_1 = arith.constant 0 : i32
    return %c0_i32, %c0_i32_0 : i32, i32
  }
  func.func @transform_8(%arg0: i32) -> (i32, i32) {
    %c0_i32 = arith.constant 0 : i32
    %c0_i32_0 = arith.constant 0 : i32
    %c0_i32_1 = arith.constant 0 : i32
    return %c0_i32, %c0_i32_0 : i32, i32
  }
  func.func @transform_9(%arg0: i32) -> (i32, i32) {
    %c0_i32 = arith.constant 0 : i32
    %c0_i32_0 = arith.constant 0 : i32
    return %arg0, %c0_i32 : i32, i32
  }
}

</mosaic_0001>

<bundles_post_ra>
// kernel: model_head.1
= control target key start
LH: loop header
LB: loop body
LE: loop exit
PB: predicated region body
PF: predicated region fallthrough
CT: control target
= control target key end

     0   :  { %vm418_vm0 = vcmask 523264   ;;  %vm6883_vm1 = vcmask 1043456   ;;  %vm6879_vm2 = vcmask 359424   ;;  %vm4886_vm3 = vcmask 130112   ;;  %s13280_s0 = inlined_call_operand.vmem [shape: f32[2,1536,64], index: 0, kind: input, shape index: {}]   ;;  %s13281_s6 = inlined_call_operand.vmem [shape: f32[1,1536], index: 6, kind: input, shape index: {}]   ;;  %s13282_s2 = inlined_call_operand.vmem [shape: f32[44,256], index: 2, kind: input, shape index: {}]   ;;  %s13283_s1 = inlined_call_operand.vmem [shape: f32[2,44], index: 1, kind: input, shape index: {}]   ;;  %s13284_s4 = inlined_call_operand.vmem [shape: f32[256,256], index: 4, kind: input, shape index: {}]   ;;  %s13285_s3 = inlined_call_operand.vmem [shape: f32[1,256], index: 3, kind: input, shape index: {}]   ;;  %s13286_s5 = inlined_call_operand.vmem [shape: f32[1,256], index: 5, kind: input, shape index: {}]   ;;  %s13287_s7 = inlined_call_operand.vmem [shape: f32[1,256], index: 7, kind: input, shape index: {}]   ;;  %s13288_s8 = inlined_call_operand.<no memory space> [shape: f32[1,1], index: 8, kind: input, shape index: {}]   ;;  %s13289_s9 = inlined_call_operand.vmem [shape: f32[2,1], index: 9, kind: output, shape index: {}]  }
   0x1   :  { %v36_v0 = vld [vmem:[%s13280_s0 + $0x10] sm:$0xff]  ;;  %v34_v1 = vld [vmem:[%s13280_s0] sm:$0xff]  ;;  %v37_v2 = vld [vmem:[%s13280_s0 + $0x18] sm:$0xff]  ;;  %vm13490_vm4 = vcmask 195712   ;;  %vm13491_vm5 = vcmask 261312   ;;  %vm4907_vm6 = vcmask 326912  }
   0x2   :  { %v425_v3 = vsel %vm418_vm0, %v36_v0, 0.0  ;;  %v419_v4 = vsel %vm418_vm0, %v34_v1, 0.0  ;;  %v35_v5 = vld [vmem:[%s13280_s0 + $0x8] sm:$0xff]  ;;  %v428_v6 = vsel %vm418_vm0, %v37_v2, 0.0  ;;  %v38_v9 = vld [vmem:[%s13280_s0 + $0x20] sm:$0xff]  ;;  %v41_v12 = vld [vmem:[%s13280_s0 + $0x38] sm:$0xff] }
   0x3   :  { %426 = vadd.xlane.f32.xlu1 %v425_v3  ;;  %420 = vadd.xlane.f32.xlu0 %v419_v4  ;;  %v422_v7 = vsel %vm418_vm0, %v35_v5, 0.0  ;;  %v39_v8 = vld [vmem:[%s13280_s0 + $0x28] sm:$0xff]  ;;  %v431_v11 = vsel %vm418_vm0, %v38_v9, 0.0  ;;  %v40_v13 = vld [vmem:[%s13280_s0 + $0x30] sm:$0xff]  ;;  %v440_v14 = vsel %vm418_vm0, %v41_v12, 0.0  ;;  %v42_v17 = vld [vmem:[%s13280_s0 + $0x40] sm:$0xff] }
   0x4   :  { %v434_v10 = vsel %vm418_vm0, %v39_v8, 0.0  ;;  %v437_v15 = vsel %vm418_vm0, %v40_v13, 0.0  ;;  %v43_v16 = vld [vmem:[%s13280_s0 + $0x48] sm:$0xff]  ;;  %v443_v19 = vsel %vm418_vm0, %v42_v17, 0.0  ;;  %v45_v20 = vld [vmem:[%s13280_s0 + $0x58] sm:$0xff]  ;;  %v44_v21 = vld [vmem:[%s13280_s0 + $0x50] sm:$0xff] }
   0x5   :  { %v446_v18 = vsel %vm418_vm0, %v43_v16, 0.0  ;;  %v452_v22 = vsel %vm418_vm0, %v45_v20, 0.0  ;;  %v449_v23 = vsel %vm418_vm0, %v44_v21, 0.0  ;;  %v47_v24 = vld [vmem:[%s13280_s0 + $0x68] sm:$0xff]  ;;  %v46_v25 = vld [vmem:[%s13280_s0 + $0x60] sm:$0xff]  ;;  %v49_v28 = vld [vmem:[%s13280_s0 + $0x78] sm:$0xff] }
   0x6   :  { %v458_v26 = vsel %vm418_vm0, %v47_v24, 0.0  ;;  %v455_v27 = vsel %vm418_vm0, %v46_v25, 0.0  ;;  %v48_v29 = vld [vmem:[%s13280_s0 + $0x70] sm:$0xff]  ;;  %v464_v30 = vsel %vm418_vm0, %v49_v28, 0.0  ;;  %v51_v32 = vld [vmem:[%s13280_s0 + $0x88] sm:$0xff]  ;;  %v50_v33 = vld [vmem:[%s13280_s0 + $0x80] sm:$0xff] }
   0x7   :  { %429 = vadd.xlane.f32.xlu1 %v428_v6  ;;  %423 = vadd.xlane.f32.xlu0 %v422_v7  ;;  %v461_v31 = vsel %vm418_vm0, %v48_v29, 0.0  ;;  %v470_v34 = vsel %vm418_vm0, %v51_v32, 0.0  ;;  %v467_v35 = vsel %vm418_vm0, %v50_v33, 0.0  ;;  %v53_v36 = vld [vmem:[%s13280_s0 + $0x98] sm:$0xff]  ;;  %v52_v37 = vld [vmem:[%s13280_s0 + $0x90] sm:$0xff]  ;;  %v55_v40 = vld [vmem:[%s13280_s0 + $0xa8] sm:$0xff] }
   0x8   :  { %v476_v38 = vsel %vm418_vm0, %v53_v36, 0.0  ;;  %v473_v39 = vsel %vm418_vm0, %v52_v37, 0.0  ;;  %v54_v41 = vld [vmem:[%s13280_s0 + $0xa0] sm:$0xff]  ;;  %v482_v42 = vsel %vm418_vm0, %v55_v40, 0.0  ;;  %v57_v44 = vld [vmem:[%s13280_s0 + $0xb8] sm:$0xff]  ;;  %v56_v45 = vld [vmem:[%s13280_s0 + $0xb0] sm:$0xff] }
   0x9   :  { %v479_v43 = vsel %vm418_vm0, %v54_v41, 0.0  ;;  %v488_v46 = vsel %vm418_vm0, %v57_v44, 0.0  ;;  %v485_v47 = vsel %vm418_vm0, %v56_v45, 0.0  ;;  %v59_v48 = vld [vmem:[%s13280_s0 + $0xc8] sm:$0xff]  ;;  %v58_v49 = vld [vmem:[%s13280_s0 + $0xc0] sm:$0xff]  ;;  %v61_v52 = vld [vmem:[%s13280_s0 + $0xd8] sm:$0xff] }
   0xa   :  { %v494_v50 = vsel %vm418_vm0, %v59_v48, 0.0  ;;  %v491_v51 = vsel %vm418_vm0, %v58_v49, 0.0  ;;  %v60_v53 = vld [vmem:[%s13280_s0 + $0xd0] sm:$0xff]  ;;  %v500_v54 = vsel %vm418_vm0, %v61_v52, 0.0  ;;  %v63_v56 = vld [vmem:[%s13280_s0 + $0xe8] sm:$0xff]  ;;  %v62_v57 = vld [vmem:[%s13280_s0 + $0xe0] sm:$0xff] }
   0xb   :  { %435 = vadd.xlane.f32.xlu1 %v434_v10  ;;  %432 = vadd.xlane.f32.xlu0 %v431_v11  ;;  %v497_v55 = vsel %vm418_vm0, %v60_v53, 0.0  ;;  %v506_v58 = vsel %vm418_vm0, %v63_v56, 0.0  ;;  %v503_v59 = vsel %vm418_vm0, %v62_v57, 0.0  ;;  %v65_v60 = vld [vmem:[%s13280_s0 + $0xf8] sm:$0xff]  ;;  %v64_v61 = vld [vmem:[%s13280_s0 + $0xf0] sm:$0xff]  ;;  %v67_v0 = vld [vmem:[%s13280_s0 + $0x108] sm:$0xff] }
   0xc   :  { %v512_v62 = vsel %vm418_vm0, %v65_v60, 0.0  ;;  %v509_v63 = vsel %vm418_vm0, %v64_v61, 0.0  ;;  %v66_v1 = vld [vmem:[%s13280_s0 + $0x100] sm:$0xff]  ;;  %v518_v2 = vsel %vm418_vm0, %v67_v0, 0.0  ;;  %v69_v4 = vld [vmem:[%s13280_s0 + $0x118] sm:$0xff]  ;;  %v68_v5 = vld [vmem:[%s13280_s0 + $0x110] sm:$0xff] }
   0xd   :  { %v515_v3 = vsel %vm418_vm0, %v66_v1, 0.0  ;;  %v524_v6 = vsel %vm418_vm0, %v69_v4, 0.0  ;;  %v521_v7 = vsel %vm418_vm0, %v68_v5, 0.0  ;;  %v71_v8 = vld [vmem:[%s13280_s0 + $0x128] sm:$0xff]  ;;  %v70_v9 = vld [vmem:[%s13280_s0 + $0x120] sm:$0xff]  ;;  %v73_v12 = vld [vmem:[%s13280_s0 + $0x138] sm:$0xff] }
   0xe   :  { %v530_v10 = vsel %vm418_vm0, %v71_v8, 0.0  ;;  %v527_v11 = vsel %vm418_vm0, %v70_v9, 0.0  ;;  %v72_v13 = vld [vmem:[%s13280_s0 + $0x130] sm:$0xff]  ;;  %v75_v16 = vld [vmem:[%s13280_s0 + $0x148] sm:$0xff]  ;;  %v74_v17 = vld [vmem:[%s13280_s0 + $0x140] sm:$0xff]  ;;  %vm13489_vm7 = vcmask 392512  }
   0xf   :  { %441 = vadd.xlane.f32.xlu1 %v440_v14  ;;  %438 = vadd.xlane.f32.xlu0 %v437_v15  ;;  %v536_v14 = vsel %vm418_vm0, %v73_v12, 0.0  ;;  %v533_v15 = vsel %vm418_vm0, %v72_v13, 0.0  ;;  %v77_v20 = vld [vmem:[%s13280_s0 + $0x158] sm:$0xff]  ;;  %v76_v21 = vld [vmem:[%s13280_s0 + $0x150] sm:$0xff]  ;;  %v79_v24 = vld [vmem:[%s13280_s0 + $0x168] sm:$0xff]  ;;  %vm4921_vm8 = vcmask 458112  }
  0x10   :  { %v78_v25 = vld [vmem:[%s13280_s0 + $0x160] sm:$0xff]  ;;  %v81_v28 = vld [vmem:[%s13280_s0 + $0x178] sm:$0xff]  ;;  %v80_v29 = vld [vmem:[%s13280_s0 + $0x170] sm:$0xff]  ;;  %vm4928_vm9 = vcmask 523712   ;;  %vm4935_vm10 = vcmask 589312   ;;  %vm4942_vm11 = vcmask 654912  }
  0x11   :  { %v83_v32 = vld [vmem:[%s13280_s0 + $0x188] sm:$0xff]  ;;  %v82_v33 = vld [vmem:[%s13280_s0 + $0x180] sm:$0xff]  ;;  %v85_v36 = vld [vmem:[%s13280_s0 + $0x198] sm:$0xff]  ;;  %vm4949_vm12 = vcmask 720512   ;;  %vm4956_vm13 = vcmask 786112   ;;  %vm4963_vm14 = vcmask 851712  }
  0x12   :  { %v84_v37 = vld [vmem:[%s13280_s0 + $0x190] sm:$0xff]  ;;  %v87_v40 = vld [vmem:[%s13280_s0 + $0x1a8] sm:$0xff]  ;;  %v86_v41 = vld [vmem:[%s13280_s0 + $0x1a0] sm:$0xff]  ;;  %vm4970_vm15 = vcmask 917312  }
  0x13   :  { %447 = vadd.xlane.f32.xlu1 %v446_v18  ;;  %444 = vadd.xlane.f32.xlu0 %v443_v19  ;;  %v542_v18 = vsel %vm418_vm0, %v75_v16, 0.0  ;;  %v539_v19 = vsel %vm418_vm0, %v74_v17, 0.0  ;;  %v89_v44 = vld [vmem:[%s13280_s0 + $0x1b8] sm:$0xff]  ;;  %v88_v45 = vld [vmem:[%s13280_s0 + $0x1b0] sm:$0xff]  ;;  %v91_v48 = vld [vmem:[%s13280_s0 + $0x1c8] sm:$0xff] }
  0x14   :  { %v90_v49 = vld [vmem:[%s13280_s0 + $0x1c0] sm:$0xff]  ;;  %v93_v52 = vld [vmem:[%s13280_s0 + $0x1d8] sm:$0xff]  ;;  %v92_v53 = vld [vmem:[%s13280_s0 + $0x1d0] sm:$0xff] }
  0x15   :  { %v95_v56 = vld [vmem:[%s13280_s0 + $0x1e8] sm:$0xff]  ;;  %v94_v57 = vld [vmem:[%s13280_s0 + $0x1e0] sm:$0xff]  ;;  %v97_v60 = vld [vmem:[%s13280_s0 + $0x1f8] sm:$0xff] }
  0x16   :  { %v96_v61 = vld [vmem:[%s13280_s0 + $0x1f0] sm:$0xff]  ;;  %v99_v0 = vld [vmem:[%s13280_s0 + $0x208] sm:$0xff]  ;;  %v98_v1 = vld [vmem:[%s13280_s0 + $0x200] sm:$0xff] }
  0x17   :  { %453 = vadd.xlane.f32.xlu1 %v452_v22  ;;  %450 = vadd.xlane.f32.xlu0 %v449_v23  ;;  %v548_v22 = vsel %vm418_vm0, %v77_v20, 0.0  ;;  %v545_v23 = vsel %vm418_vm0, %v76_v21, 0.0  ;;  %v101_v4 = vld [vmem:[%s13280_s0 + $0x218] sm:$0xff]  ;;  %v100_v5 = vld [vmem:[%s13280_s0 + $0x210] sm:$0xff]  ;;  %v103_v8 = vld [vmem:[%s13280_s0 + $0x228] sm:$0xff] }
  0x18   :  { %v102_v9 = vld [vmem:[%s13280_s0 + $0x220] sm:$0xff]  ;;  %v105_v12 = vld [vmem:[%s13280_s0 + $0x238] sm:$0xff]  ;;  %v104_v13 = vld [vmem:[%s13280_s0 + $0x230] sm:$0xff] }
  0x19   :  { %v632_v16 = vsel %vm418_vm0, %v105_v12, 0.0  ;;  %v629_v17 = vsel %vm418_vm0, %v104_v13, 0.0 }
  0x1b   :  { %459 = vadd.xlane.f32.xlu1 %v458_v26  ;;  %456 = vadd.xlane.f32.xlu0 %v455_v27  ;;  %v554_v26 = vsel %vm418_vm0, %v79_v24, 0.0  ;;  %v551_v27 = vsel %vm418_vm0, %v78_v25, 0.0  ;;  %v109_v24 = vld [vmem:[%s13280_s0 + $0x258] sm:$0xff]  ;;  %v108_v25 = vld [vmem:[%s13280_s0 + $0x250] sm:$0xff] }
  0x1f   :  { %465 = vadd.xlane.f32.xlu1 %v464_v30  ;;  %462 = vadd.xlane.f32.xlu0 %v461_v31  ;;  %v560_v30 = vsel %vm418_vm0, %v81_v28, 0.0  ;;  %v557_v31 = vsel %vm418_vm0, %v80_v29, 0.0  ;;  %v644_v28 = vsel %vm418_vm0, %v109_v24, 0.0  ;;  %v641_v29 = vsel %vm418_vm0, %v108_v25, 0.0  ;;  %v129_v24 = vld [vmem:[%s13280_s0 + $0x2f8] sm:$0xff]  ;;  %v128_v25 = vld [vmem:[%s13280_s0 + $0x2f0] sm:$0xff] }
  0x23   :  { %471 = vadd.xlane.f32.xlu1 %v470_v34  ;;  %468 = vadd.xlane.f32.xlu0 %v467_v35  ;;  %v566_v34 = vsel %vm418_vm0, %v83_v32, 0.0  ;;  %v563_v35 = vsel %vm418_vm0, %v82_v33, 0.0 }
  0x27   :  { %477 = vadd.xlane.f32.xlu1 %v476_v38  ;;  %474 = vadd.xlane.f32.xlu0 %v473_v39  ;;  %v572_v38 = vsel %vm418_vm0, %v85_v36, 0.0  ;;  %v569_v39 = vsel %vm418_vm0, %v84_v37, 0.0  ;;  %v113_v36 = vld [vmem:[%s13280_s0 + $0x278] sm:$0xff]  ;;  %v112_v37 = vld [vmem:[%s13280_s0 + $0x270] sm:$0xff] }
  0x2b   :  { %483 = vadd.xlane.f32.xlu1 %v482_v42  ;;  %480 = vadd.xlane.f32.xlu0 %v479_v43  ;;  %v578_v42 = vsel %vm418_vm0, %v87_v40, 0.0  ;;  %v575_v43 = vsel %vm418_vm0, %v86_v41, 0.0  ;;  %v656_v40 = vsel %vm418_vm0, %v113_v36, 0.0  ;;  %v653_v41 = vsel %vm418_vm0, %v112_v37, 0.0 }
  0x2f   :  { %489 = vadd.xlane.f32.xlu1 %v488_v46  ;;  %486 = vadd.xlane.f32.xlu0 %v485_v47  ;;  %v584_v46 = vsel %vm418_vm0, %v89_v44, 0.0  ;;  %v581_v47 = vsel %vm418_vm0, %v88_v45, 0.0 }
  0x33   :  { %495 = vadd.xlane.f32.xlu1 %v494_v50  ;;  %492 = vadd.xlane.f32.xlu0 %v491_v51  ;;  %v590_v50 = vsel %vm418_vm0, %v91_v48, 0.0  ;;  %v587_v51 = vsel %vm418_vm0, %v90_v49, 0.0  ;;  %v117_v48 = vld [vmem:[%s13280_s0 + $0x298] sm:$0xff]  ;;  %v116_v49 = vld [vmem:[%s13280_s0 + $0x290] sm:$0xff] }
  0x37   :  { %501 = vadd.xlane.f32.xlu1 %v500_v54  ;;  %498 = vadd.xlane.f32.xlu0 %v497_v55  ;;  %v596_v54 = vsel %vm418_vm0, %v93_v52, 0.0  ;;  %v593_v55 = vsel %vm418_vm0, %v92_v53, 0.0  ;;  %v668_v52 = vsel %vm418_vm0, %v117_v48, 0.0  ;;  %v665_v53 = vsel %vm418_vm0, %v116_v49, 0.0 }
  0x3b   :  { %507 = vadd.xlane.f32.xlu1 %v506_v58  ;;  %504 = vadd.xlane.f32.xlu0 %v503_v59  ;;  %v602_v58 = vsel %vm418_vm0, %v95_v56, 0.0  ;;  %v599_v59 = vsel %vm418_vm0, %v94_v57, 0.0 }
  0x3f   :  { %513 = vadd.xlane.f32.xlu1 %v512_v62  ;;  %510 = vadd.xlane.f32.xlu0 %v509_v63  ;;  %v608_v62 = vsel %vm418_vm0, %v97_v60, 0.0  ;;  %v605_v63 = vsel %vm418_vm0, %v96_v61, 0.0  ;;  %v121_v60 = vld [vmem:[%s13280_s0 + $0x2b8] sm:$0xff]  ;;  %v120_v61 = vld [vmem:[%s13280_s0 + $0x2b0] sm:$0xff] }
  0x43   :  { %519 = vadd.xlane.f32.xlu1 %v518_v2  ;;  %516 = vadd.xlane.f32.xlu0 %v515_v3  ;;  %v614_v2 = vsel %vm418_vm0, %v99_v0, 0.0  ;;  %v611_v3 = vsel %vm418_vm0, %v98_v1, 0.0  ;;  %v680_v0 = vsel %vm418_vm0, %v121_v60, 0.0  ;;  %v677_v1 = vsel %vm418_vm0, %v120_v61, 0.0  ;;  %v137_v60 = vld [vmem:[%s13280_s0 + $0x338] sm:$0xff]  ;;  %v136_v61 = vld [vmem:[%s13280_s0 + $0x330] sm:$0xff] }
  0x47   :  { %525 = vadd.xlane.f32.xlu1 %v524_v6  ;;  %522 = vadd.xlane.f32.xlu0 %v521_v7  ;;  %v620_v6 = vsel %vm418_vm0, %v101_v4, 0.0  ;;  %v617_v7 = vsel %vm418_vm0, %v100_v5, 0.0 }
  0x4b   :  { %531 = vadd.xlane.f32.xlu1 %v530_v10  ;;  %528 = vadd.xlane.f32.xlu0 %v527_v11  ;;  %v626_v10 = vsel %vm418_vm0, %v103_v8, 0.0  ;;  %v623_v11 = vsel %vm418_vm0, %v102_v9, 0.0  ;;  %v125_v8 = vld [vmem:[%s13280_s0 + $0x2d8] sm:$0xff]  ;;  %v124_v9 = vld [vmem:[%s13280_s0 + $0x2d0] sm:$0xff] }
  0x4c   :  { %v692_v12 = vsel %vm418_vm0, %v125_v8, 0.0  ;;  %v689_v13 = vsel %vm418_vm0, %v124_v9, 0.0 }
  0x4f   :  { %537 = vadd.xlane.f32.xlu1 %v536_v14  ;;  %534 = vadd.xlane.f32.xlu0 %v533_v15 }
  0x53   :  { %543 = vadd.xlane.f32.xlu1 %v542_v18  ;;  %540 = vadd.xlane.f32.xlu0 %v539_v19  ;;  %v107_v18 = vld [vmem:[%s13280_s0 + $0x248] sm:$0xff]  ;;  %v106_v19 = vld [vmem:[%s13280_s0 + $0x240] sm:$0xff] }
  0x57   :  { %549 = vadd.xlane.f32.xlu1 %v548_v22  ;;  %546 = vadd.xlane.f32.xlu0 %v545_v23  ;;  %v638_v22 = vsel %vm418_vm0, %v107_v18, 0.0  ;;  %v635_v23 = vsel %vm418_vm0, %v106_v19, 0.0 }
  0x5b   :  { %555 = vadd.xlane.f32.xlu1 %v554_v26  ;;  %552 = vadd.xlane.f32.xlu0 %v551_v27 }
  0x5f   :  { %561 = vadd.xlane.f32.xlu1 %v560_v30  ;;  %558 = vadd.xlane.f32.xlu0 %v557_v31  ;;  %v111_v30 = vld [vmem:[%s13280_s0 + $0x268] sm:$0xff]  ;;  %v110_v31 = vld [vmem:[%s13280_s0 + $0x260] sm:$0xff] }
  0x63   :  { %567 = vadd.xlane.f32.xlu1 %v566_v34  ;;  %564 = vadd.xlane.f32.xlu0 %v563_v35  ;;  %v650_v34 = vsel %vm418_vm0, %v111_v30, 0.0  ;;  %v647_v35 = vsel %vm418_vm0, %v110_v31, 0.0  ;;  %v704_v30 = vsel %vm418_vm0, %v129_v24, 0.0  ;;  %v701_v31 = vsel %vm418_vm0, %v128_v25, 0.0 }
  0x67   :  { %573 = vadd.xlane.f32.xlu1 %v572_v38  ;;  %570 = vadd.xlane.f32.xlu0 %v569_v39 }
  0x6b   :  { %579 = vadd.xlane.f32.xlu1 %v578_v42  ;;  %576 = vadd.xlane.f32.xlu0 %v575_v43  ;;  %v115_v42 = vld [vmem:[%s13280_s0 + $0x288] sm:$0xff]  ;;  %v114_v43 = vld [vmem:[%s13280_s0 + $0x280] sm:$0xff] }
  0x6f   :  { %585 = vadd.xlane.f32.xlu1 %v584_v46  ;;  %582 = vadd.xlane.f32.xlu0 %v581_v47  ;;  %v662_v46 = vsel %vm418_vm0, %v115_v42, 0.0  ;;  %v659_v47 = vsel %vm418_vm0, %v114_v43, 0.0  ;;  %v133_v42 = vld [vmem:[%s13280_s0 + $0x318] sm:$0xff]  ;;  %v132_v43 = vld [vmem:[%s13280_s0 + $0x310] sm:$0xff] }
  0x70   :  { %v716_v48 = vsel %vm418_vm0, %v133_v42, 0.0  ;;  %v713_v49 = vsel %vm418_vm0, %v132_v43, 0.0  ;;  %v145_v42 = vld [vmem:[%s13280_s0 + $0x378] sm:$0xff]  ;;  %v144_v43 = vld [vmem:[%s13280_s0 + $0x370] sm:$0xff] }
  0x73   :  { %591 = vadd.xlane.f32.xlu1 %v590_v50  ;;  %588 = vadd.xlane.f32.xlu0 %v587_v51 }
  0x77   :  { %597 = vadd.xlane.f32.xlu1 %v596_v54  ;;  %594 = vadd.xlane.f32.xlu0 %v593_v55  ;;  %v119_v54 = vld [vmem:[%s13280_s0 + $0x2a8] sm:$0xff]  ;;  %v118_v55 = vld [vmem:[%s13280_s0 + $0x2a0] sm:$0xff] }
  0x7b   :  { %603 = vadd.xlane.f32.xlu1 %v602_v58  ;;  %600 = vadd.xlane.f32.xlu0 %v599_v59  ;;  %v674_v58 = vsel %vm418_vm0, %v119_v54, 0.0  ;;  %v671_v59 = vsel %vm418_vm0, %v118_v55, 0.0 }
  0x7f   :  { %609 = vadd.xlane.f32.xlu1 %v608_v62  ;;  %606 = vadd.xlane.f32.xlu0 %v605_v63 }
  0x83   :  { %615 = vadd.xlane.f32.xlu1 %v614_v2  ;;  %612 = vadd.xlane.f32.xlu0 %v611_v3  ;;  %v123_v2 = vld [vmem:[%s13280_s0 + $0x2c8] sm:$0xff]  ;;  %v122_v3 = vld [vmem:[%s13280_s0 + $0x2c0] sm:$0xff] }
  0x87   :  { %621 = vadd.xlane.f32.xlu1 %v620_v6  ;;  %618 = vadd.xlane.f32.xlu0 %v617_v7  ;;  %v686_v6 = vsel %vm418_vm0, %v123_v2, 0.0  ;;  %v683_v7 = vsel %vm418_vm0, %v122_v3, 0.0  ;;  %v728_v2 = vsel %vm418_vm0, %v137_v60, 0.0  ;;  %v725_v3 = vsel %vm418_vm0, %v136_v61, 0.0 }
  0x8b   :  { %627 = vadd.xlane.f32.xlu1 %v626_v10  ;;  %624 = vadd.xlane.f32.xlu0 %v623_v11 }
  0x8c   :  { %v7505_v14 = vpop.xlane.xlu1 %426  ;;  %v7507_v15 = vpop.xlane.xlu0 %420 }
  0x8f   :  { %633 = vadd.xlane.f32.xlu1 %v632_v16  ;;  %630 = vadd.xlane.f32.xlu0 %v629_v17  ;;  %v127_v16 = vld [vmem:[%s13280_s0 + $0x2e8] sm:$0xff]  ;;  %v126_v17 = vld [vmem:[%s13280_s0 + $0x2e0] sm:$0xff] }
  0x90   :  { %v7517_v20 = vpop.xlane.xlu1 %429  ;;  %v7519_v21 = vpop.xlane.xlu0 %423 }
  0x93   :  { %639 = vadd.xlane.f32.xlu1 %v638_v22  ;;  %636 = vadd.xlane.f32.xlu0 %v635_v23  ;;  %v698_v22 = vsel %vm418_vm0, %v127_v16, 0.0  ;;  %v695_v23 = vsel %vm418_vm0, %v126_v17, 0.0  ;;  %v141_v16 = vld [vmem:[%s13280_s0 + $0x358] sm:$0xff]  ;;  %v140_v17 = vld [vmem:[%s13280_s0 + $0x350] sm:$0xff] }
  0x94   :  { %v7529_v26 = vpop.xlane.xlu1 %435  ;;  %v7531_v27 = vpop.xlane.xlu0 %432  ;;  %v740_v24 = vsel %vm418_vm0, %v141_v16, 0.0  ;;  %v737_v25 = vsel %vm418_vm0, %v140_v17, 0.0 }
  0x97   :  { %645 = vadd.xlane.f32.xlu1 %v644_v28  ;;  %642 = vadd.xlane.f32.xlu0 %v641_v29 }
  0x98   :  { %v7541_v32 = vpop.xlane.xlu1 %441  ;;  %v7543_v33 = vpop.xlane.xlu0 %438 }
  0x9b   :  { %651 = vadd.xlane.f32.xlu1 %v650_v34  ;;  %648 = vadd.xlane.f32.xlu0 %v647_v35  ;;  %v131_v34 = vld [vmem:[%s13280_s0 + $0x308] sm:$0xff]  ;;  %v130_v35 = vld [vmem:[%s13280_s0 + $0x300] sm:$0xff] }
  0x9c   :  { %v7553_v38 = vpop.xlane.xlu1 %447  ;;  %v7555_v39 = vpop.xlane.xlu0 %444 }
  0x9f   :  { %657 = vadd.xlane.f32.xlu1 %v656_v40  ;;  %654 = vadd.xlane.f32.xlu0 %v653_v41  ;;  %v710_v40 = vsel %vm418_vm0, %v131_v34, 0.0  ;;  %v707_v41 = vsel %vm418_vm0, %v130_v35, 0.0 }
  0xa0   :  { %v7565_v44 = vpop.xlane.xlu1 %453  ;;  %v7567_v45 = vpop.xlane.xlu0 %450 }
  0xa3   :  { %663 = vadd.xlane.f32.xlu1 %v662_v46  ;;  %660 = vadd.xlane.f32.xlu0 %v659_v47 }
  0xa4   :  { %v7577_v50 = vpop.xlane.xlu1 %459  ;;  %v7579_v51 = vpop.xlane.xlu0 %456 }
  0xa7   :  { %669 = vadd.xlane.f32.xlu1 %v668_v52  ;;  %666 = vadd.xlane.f32.xlu0 %v665_v53  ;;  %v135_v52 = vld [vmem:[%s13280_s0 + $0x328] sm:$0xff]  ;;  %v134_v53 = vld [vmem:[%s13280_s0 + $0x320] sm:$0xff] }
  0xa8   :  { %v7589_v56 = vpop.xlane.xlu1 %465  ;;  %v7591_v57 = vpop.xlane.xlu0 %462 }
  0xab   :  { %675 = vadd.xlane.f32.xlu1 %v674_v58  ;;  %672 = vadd.xlane.f32.xlu0 %v671_v59  ;;  %v722_v58 = vsel %vm418_vm0, %v135_v52, 0.0  ;;  %v719_v59 = vsel %vm418_vm0, %v134_v53, 0.0  ;;  %v752_v52 = vsel %vm418_vm0, %v145_v42, 0.0  ;;  %v749_v53 = vsel %vm418_vm0, %v144_v43, 0.0  ;;  %v153_v42 = vld [vmem:[%s13280_s0 + $0x3b8] sm:$0xff]  ;;  %v152_v43 = vld [vmem:[%s13280_s0 + $0x3b0] sm:$0xff] }
  0xac   :  { %v7601_v62 = vpop.xlane.xlu1 %471  ;;  %v7603_v63 = vpop.xlane.xlu0 %468 }
  0xaf   :  { %681 = vadd.xlane.f32.xlu1 %v680_v0  ;;  %678 = vadd.xlane.f32.xlu0 %v677_v1 }
  0xb0   :  { %v7613_v4 = vpop.xlane.xlu1 %477  ;;  %v7615_v5 = vpop.xlane.xlu0 %474 }
  0xb3   :  { %687 = vadd.xlane.f32.xlu1 %v686_v6  ;;  %684 = vadd.xlane.f32.xlu0 %v683_v7  ;;  %v139_v6 = vld [vmem:[%s13280_s0 + $0x348] sm:$0xff]  ;;  %v138_v7 = vld [vmem:[%s13280_s0 + $0x340] sm:$0xff] }
  0xb4   :  { %v7625_v10 = vpop.xlane.xlu1 %483  ;;  %v7627_v11 = vpop.xlane.xlu0 %480 }
  0xb7   :  { %693 = vadd.xlane.f32.xlu1 %v692_v12  ;;  %690 = vadd.xlane.f32.xlu0 %v689_v13  ;;  %v734_v12 = vsel %vm418_vm0, %v139_v6, 0.0  ;;  %v731_v13 = vsel %vm418_vm0, %v138_v7, 0.0  ;;  %v149_v6 = vld [vmem:[%s13280_s0 + $0x398] sm:$0xff]  ;;  %v148_v7 = vld [vmem:[%s13280_s0 + $0x390] sm:$0xff] }
  0xb8   :  { %v7637_v18 = vpop.xlane.xlu1 %489  ;;  %v7639_v19 = vpop.xlane.xlu0 %486  ;;  %v764_v16 = vsel %vm418_vm0, %v149_v6, 0.0  ;;  %v761_v17 = vsel %vm418_vm0, %v148_v7, 0.0 }
  0xbb   :  { %699 = vadd.xlane.f32.xlu1 %v698_v22  ;;  %696 = vadd.xlane.f32.xlu0 %v695_v23 }
  0xbc   :  { %v7649_v28 = vpop.xlane.xlu1 %495  ;;  %v7651_v29 = vpop.xlane.xlu0 %492 }
  0xbd   :  { %13493 = vst [vmem:[#allocation3_spill] sm:$0xff] %v7651_v29 }
  0xbf   :  { %705 = vadd.xlane.f32.xlu1 %v704_v30  ;;  %702 = vadd.xlane.f32.xlu0 %v701_v31  ;;  %v143_v30 = vld [vmem:[%s13280_s0 + $0x368] sm:$0xff]  ;;  %v142_v31 = vld [vmem:[%s13280_s0 + $0x360] sm:$0xff] }
  0xc0   :  { %v7661_v36 = vpop.xlane.xlu1 %501  ;;  %v7663_v37 = vpop.xlane.xlu0 %498 }
  0xc1   :  { %13494 = vst [vmem:[#allocation4_spill] sm:$0xff] %v7661_v36  ;;  %13495 = vst [vmem:[#allocation5_spill] sm:$0xff] %v7663_v37 }
  0xc3   :  { %711 = vadd.xlane.f32.xlu1 %v710_v40  ;;  %708 = vadd.xlane.f32.xlu0 %v707_v41  ;;  %v746_v40 = vsel %vm418_vm0, %v143_v30, 0.0  ;;  %v743_v41 = vsel %vm418_vm0, %v142_v31, 0.0 }
  0xc4   :  { %v7673_v46 = vpop.xlane.xlu1 %507  ;;  %v7675_v47 = vpop.xlane.xlu0 %504 }
  0xc5   :  { %13496 = vst [vmem:[#allocation6_spill] sm:$0xff] %v7673_v46  ;;  %13497 = vst [vmem:[#allocation7_spill] sm:$0xff] %v7675_v47 }
  0xc7   :  { %717 = vadd.xlane.f32.xlu1 %v716_v48  ;;  %714 = vadd.xlane.f32.xlu0 %v713_v49 }
  0xc8   :  { %v7685_v54 = vpop.xlane.xlu1 %513  ;;  %v7687_v55 = vpop.xlane.xlu0 %510 }
  0xc9   :  { %13498 = vst [vmem:[#allocation8_spill] sm:$0xff] %v7685_v54  ;;  %13499 = vst [vmem:[#allocation9_spill] sm:$0xff] %v7687_v55 }
  0xcb   :  { %723 = vadd.xlane.f32.xlu1 %v722_v58  ;;  %720 = vadd.xlane.f32.xlu0 %v719_v59  ;;  %v147_v58 = vld [vmem:[%s13280_s0 + $0x388] sm:$0xff]  ;;  %v146_v59 = vld [vmem:[%s13280_s0 + $0x380] sm:$0xff] }
  0xcc   :  { %v7697_v0 = vpop.xlane.xlu1 %519  ;;  %v7699_v1 = vpop.xlane.xlu0 %516 }
  0xcd   :  { %13500 = vst [vmem:[#allocation10_spill] sm:$0xff] %v7697_v0  ;;  %13501 = vst [vmem:[#allocation11_spill] sm:$0xff] %v7699_v1 }
  0xcf   :  { %729 = vadd.xlane.f32.xlu1 %v728_v2  ;;  %726 = vadd.xlane.f32.xlu0 %v725_v3  ;;  %v758_v2 = vsel %vm418_vm0, %v147_v58, 0.0  ;;  %v755_v3 = vsel %vm418_vm0, %v146_v59, 0.0  ;;  %v776_v58 = vsel %vm418_vm0, %v153_v42, 0.0  ;;  %v773_v59 = vsel %vm418_vm0, %v152_v43, 0.0 }
  0xd0   :  { %v7709_v8 = vpop.xlane.xlu1 %525  ;;  %v7711_v9 = vpop.xlane.xlu0 %522 }
  0xd1   :  { %13502 = vst [vmem:[#allocation12_spill] sm:$0xff] %v7709_v8  ;;  %13503 = vst [vmem:[#allocation13_spill] sm:$0xff] %v7711_v9 }
  0xd3   :  { %735 = vadd.xlane.f32.xlu1 %v734_v12  ;;  %732 = vadd.xlane.f32.xlu0 %v731_v13 }
  0xd4   :  { %v7721_v22 = vpop.xlane.xlu1 %531  ;;  %v7723_v23 = vpop.xlane.xlu0 %528 }
  0xd5   :  { %13504 = vst [vmem:[#allocation14_spill] sm:$0xff] %v7721_v22  ;;  %13505 = vst [vmem:[#allocation15_spill] sm:$0xff] %v7723_v23 }
  0xd7   :  { %741 = vadd.xlane.f32.xlu1 %v740_v24  ;;  %738 = vadd.xlane.f32.xlu0 %v737_v25  ;;  %v151_v24 = vld [vmem:[%s13280_s0 + $0x3a8] sm:$0xff]  ;;  %v150_v25 = vld [vmem:[%s13280_s0 + $0x3a0] sm:$0xff] }
  0xd8   :  { %v7733_v34 = vpop.xlane.xlu1 %537  ;;  %v7735_v35 = vpop.xlane.xlu0 %534 }
  0xd9   :  { %13506 = vst [vmem:[#allocation16_spill] sm:$0xff] %v7733_v34  ;;  %13507 = vst [vmem:[#allocation17_spill] sm:$0xff] %v7735_v35 }
  0xdb   :  { %747 = vadd.xlane.f32.xlu1 %v746_v40  ;;  %744 = vadd.xlane.f32.xlu0 %v743_v41  ;;  %v770_v40 = vsel %vm418_vm0, %v151_v24, 0.0  ;;  %v767_v41 = vsel %vm418_vm0, %v150_v25, 0.0  ;;  %v157_v24 = vld [vmem:[%s13280_s0 + $0x3d8] sm:$0xff]  ;;  %v156_v25 = vld [vmem:[%s13280_s0 + $0x3d0] sm:$0xff] }
  0xdc   :  { %v7745_v48 = vpop.xlane.xlu1 %543  ;;  %v7747_v49 = vpop.xlane.xlu0 %540  ;;  %v788_v42 = vsel %vm418_vm0, %v157_v24, 0.0  ;;  %v785_v43 = vsel %vm418_vm0, %v156_v25, 0.0  ;;  %v161_v24 = vld [vmem:[%s13280_s0 + $0x3f8] sm:$0xff]  ;;  %v160_v25 = vld [vmem:[%s13280_s0 + $0x3f0] sm:$0xff] }
  0xdd   :  { %13508 = vst [vmem:[#allocation18_spill] sm:$0xff] %v7745_v48  ;;  %13509 = vst [vmem:[#allocation19_spill] sm:$0xff] %v7747_v49 }
  0xdf   :  { %753 = vadd.xlane.f32.xlu1 %v752_v52  ;;  %750 = vadd.xlane.f32.xlu0 %v749_v53 }
  0xe0   :  { %v7757_v60 = vpop.xlane.xlu1 %549  ;;  %v7759_v61 = vpop.xlane.xlu0 %546 }
  0xe1   :  { %13510 = vst [vmem:[#allocation20_spill] sm:$0xff] %v7757_v60  ;;  %13511 = vst [vmem:[#allocation21_spill] sm:$0xff] %v7759_v61 }
  0xe3   :  { %759 = vadd.xlane.f32.xlu1 %v758_v2  ;;  %756 = vadd.xlane.f32.xlu0 %v755_v3  ;;  %v155_v2 = vld [vmem:[%s13280_s0 + $0x3c8] sm:$0xff]  ;;  %v154_v3 = vld [vmem:[%s13280_s0 + $0x3c0] sm:$0xff] }
  0xe4   :  { %v7769_v12 = vpop.xlane.xlu1 %555  ;;  %v7771_v13 = vpop.xlane.xlu0 %552 }
  0xe5   :  { %13512 = vst [vmem:[#allocation22_spill] sm:$0xff] %v7769_v12  ;;  %13513 = vst [vmem:[#allocation23_spill] sm:$0xff] %v7771_v13 }
  0xe7   :  { %765 = vadd.xlane.f32.xlu1 %v764_v16  ;;  %762 = vadd.xlane.f32.xlu0 %v761_v17  ;;  %v782_v16 = vsel %vm418_vm0, %v155_v2, 0.0  ;;  %v779_v17 = vsel %vm418_vm0, %v154_v3, 0.0 }
  0xe8   :  { %v7781_v30 = vpop.xlane.xlu1 %561  ;;  %v7783_v31 = vpop.xlane.xlu0 %558 }
  0xe9   :  { %13514 = vst [vmem:[#allocation24_spill] sm:$0xff] %v7781_v30  ;;  %13515 = vst [vmem:[#allocation25_spill] sm:$0xff] %v7783_v31 }
  0xeb   :  { %771 = vadd.xlane.f32.xlu1 %v770_v40  ;;  %768 = vadd.xlane.f32.xlu0 %v767_v41 }
  0xec   :  { %v7793_v52 = vpop.xlane.xlu1 %567  ;;  %v7795_v53 = vpop.xlane.xlu0 %564 }
  0xed   :  { %13516 = vst [vmem:[#allocation26_spill] sm:$0xff] %v7793_v52  ;;  %13517 = vst [vmem:[#allocation27_spill] sm:$0xff] %v7795_v53 }
  0xef   :  { %777 = vadd.xlane.f32.xlu1 %v776_v58  ;;  %774 = vadd.xlane.f32.xlu0 %v773_v59  ;;  %v159_v58 = vld [vmem:[%s13280_s0 + $0x3e8] sm:$0xff]  ;;  %v158_v59 = vld [vmem:[%s13280_s0 + $0x3e0] sm:$0xff] }
  0xf0   :  { %v7805_v6 = vpop.xlane.xlu1 %573  ;;  %v7807_v7 = vpop.xlane.xlu0 %570 }
  0xf1   :  { %13518 = vst [vmem:[#allocation28_spill] sm:$0xff] %v7805_v6  ;;  %13519 = vst [vmem:[#allocation29_spill] sm:$0xff] %v7807_v7 }
  0xf3   :  { %783 = vadd.xlane.f32.xlu1 %v782_v16  ;;  %780 = vadd.xlane.f32.xlu0 %v779_v17  ;;  %v794_v16 = vsel %vm418_vm0, %v159_v58, 0.0  ;;  %v791_v17 = vsel %vm418_vm0, %v158_v59, 0.0  ;;  %v797_v58 = vsel %vm418_vm0, %v160_v25, 0.0  ;;  %v163_v59 = vld [vmem:[%s13280_s0 + $0x408] sm:$0xff]  ;;  %v165_v25 = vld [vmem:[%s13280_s0 + $0x418] sm:$0xff] }
  0xf4   :  { %v7817_v40 = vpop.xlane.xlu1 %579  ;;  %v7819_v41 = vpop.xlane.xlu0 %576 }
  0xf5   :  { %13520 = vst [vmem:[#allocation30_spill] sm:$0xff] %v7817_v40  ;;  %13521 = vst [vmem:[#allocation31_spill] sm:$0xff] %v7819_v41  ;;  %v13290_v41 = vlaneseq }
  0xf7   :  { %789 = vadd.xlane.f32.xlu1 %v788_v42  ;;  %786 = vadd.xlane.f32.xlu0 %v785_v43 }
  0xf8   :  { %v7829_v2 = vpop.xlane.xlu1 %585  ;;  %v7831_v3 = vpop.xlane.xlu0 %582 }
  0xf9   :  { %13522 = vst [vmem:[#allocation32_spill] sm:$0xff] %v7829_v2  ;;  %13523 = vst [vmem:[#allocation33_spill] sm:$0xff] %v7831_v3  ;;  %v800_v3 = vsel %vm418_vm0, %v161_v24, 0.0  ;;  %v162_v2 = vld [vmem:[%s13280_s0 + $0x400] sm:$0xff] }
  0xfa   :  { %v803_v24 = vsel %vm418_vm0, %v162_v2, 0.0  ;;  %v167_v2 = vld [vmem:[%s13280_s0 + $0x428] sm:$0xff] }
  0xfb   :  { %795 = vadd.xlane.f32.xlu1 %v794_v16  ;;  %792 = vadd.xlane.f32.xlu0 %v791_v17 }
  0xfc   :  { %v7841_v42 = vpop.xlane.xlu1 %591  ;;  %v7843_v43 = vpop.xlane.xlu0 %588 }
  0xfd   :  { %13524 = vst [vmem:[#allocation34_spill] sm:$0xff] %v7841_v42  ;;  %13525 = vst [vmem:[#allocation35_spill] sm:$0xff] %v7843_v43  ;;  %v806_v43 = vsel %vm418_vm0, %v163_v59, 0.0  ;;  %v164_v42 = vld [vmem:[%s13280_s0 + $0x410] sm:$0xff] }
  0xfe   :  { %v809_v59 = vsel %vm418_vm0, %v164_v42, 0.0  ;;  %v169_v42 = vld [vmem:[%s13280_s0 + $0x438] sm:$0xff] }
  0xff   :  { %801 = vadd.xlane.f32.xlu1 %v800_v3  ;;  %798 = vadd.xlane.f32.xlu0 %v797_v58 }
 0x100   :  { %v7853_v16 = vpop.xlane.xlu1 %597  ;;  %v7855_v17 = vpop.xlane.xlu0 %594 }
 0x101   :  { %13526 = vst [vmem:[#allocation36_spill] sm:$0xff] %v7853_v16  ;;  %13527 = vst [vmem:[#allocation37_spill] sm:$0xff] %v7855_v17  ;;  %v812_v17 = vsel %vm418_vm0, %v165_v25, 0.0  ;;  %v166_v16 = vld [vmem:[%s13280_s0 + $0x420] sm:$0xff] }
 0x102   :  { %v815_v25 = vsel %vm418_vm0, %v166_v16, 0.0  ;;  %v171_v16 = vld [vmem:[%s13280_s0 + $0x448] sm:$0xff] }
 0x103   :  { %807 = vadd.xlane.f32.xlu1 %v806_v43  ;;  %804 = vadd.xlane.f32.xlu0 %v803_v24 }
 0x104   :  { %v7865_v3 = vpop.xlane.xlu1 %603  ;;  %v7867_v58 = vpop.xlane.xlu0 %600 }
 0x105   :  { %13528 = vst [vmem:[#allocation38_spill] sm:$0xff] %v7865_v3  ;;  %13529 = vst [vmem:[#allocation39_spill] sm:$0xff] %v7867_v58  ;;  %v818_v58 = vsel %vm418_vm0, %v167_v2, 0.0  ;;  %v168_v3 = vld [vmem:[%s13280_s0 + $0x430] sm:$0xff] }
 0x106   :  { %v821_v2 = vsel %vm418_vm0, %v168_v3, 0.0  ;;  %v173_v3 = vld [vmem:[%s13280_s0 + $0x458] sm:$0xff] }
 0x107   :  { %813 = vadd.xlane.f32.xlu1 %v812_v17  ;;  %810 = vadd.xlane.f32.xlu0 %v809_v59 }
 0x108   :  { %v7877_v43 = vpop.xlane.xlu1 %609  ;;  %v7879_v24 = vpop.xlane.xlu0 %606 }
 0x109   :  { %13530 = vst [vmem:[#allocation40_spill] sm:$0xff] %v7877_v43  ;;  %13531 = vst [vmem:[#allocation41_spill] sm:$0xff] %v7879_v24  ;;  %v824_v24 = vsel %vm418_vm0, %v169_v42, 0.0  ;;  %v170_v43 = vld [vmem:[%s13280_s0 + $0x440] sm:$0xff] }
 0x10a   :  { %v827_v42 = vsel %vm418_vm0, %v170_v43, 0.0  ;;  %v175_v43 = vld [vmem:[%s13280_s0 + $0x468] sm:$0xff] }
 0x10b   :  { %819 = vadd.xlane.f32.xlu1 %v818_v58  ;;  %816 = vadd.xlane.f32.xlu0 %v815_v25 }
 0x10c   :  { %v7889_v17 = vpop.xlane.xlu1 %615  ;;  %v7891_v59 = vpop.xlane.xlu0 %612 }
 0x10d   :  { %13532 = vst [vmem:[#allocation42_spill] sm:$0xff] %v7889_v17  ;;  %13533 = vst [vmem:[#allocation43_spill] sm:$0xff] %v7891_v59  ;;  %v830_v59 = vsel %vm418_vm0, %v171_v16, 0.0  ;;  %v172_v17 = vld [vmem:[%s13280_s0 + $0x450] sm:$0xff] }
 0x10e   :  { %v833_v16 = vsel %vm418_vm0, %v172_v17, 0.0  ;;  %v177_v17 = vld [vmem:[%s13280_s0 + $0x478] sm:$0xff] }
 0x10f   :  { %825 = vadd.xlane.f32.xlu1 %v824_v24  ;;  %822 = vadd.xlane.f32.xlu0 %v821_v2 }
 0x110   :  { %v7901_v58 = vpop.xlane.xlu1 %621  ;;  %v7903_v25 = vpop.xlane.xlu0 %618 }
 0x111   :  { %13534 = vst [vmem:[#allocation44_spill] sm:$0xff] %v7901_v58  ;;  %13535 = vst [vmem:[#allocation45_spill] sm:$0xff] %v7903_v25  ;;  %v836_v25 = vsel %vm418_vm0, %v173_v3, 0.0  ;;  %v174_v58 = vld [vmem:[%s13280_s0 + $0x460] sm:$0xff] }
 0x112   :  { %v839_v3 = vsel %vm418_vm0, %v174_v58, 0.0  ;;  %v179_v58 = vld [vmem:[%s13280_s0 + $0x488] sm:$0xff] }
 0x113   :  { %831 = vadd.xlane.f32.xlu1 %v830_v59  ;;  %828 = vadd.xlane.f32.xlu0 %v827_v42 }
 0x114   :  { %v7913_v24 = vpop.xlane.xlu1 %627  ;;  %v7915_v2 = vpop.xlane.xlu0 %624 }
 0x115   :  { %13536 = vst [vmem:[#allocation46_spill] sm:$0xff] %v7913_v24  ;;  %13537 = vst [vmem:[#allocation47_spill] sm:$0xff] %v7915_v2  ;;  %v842_v2 = vsel %vm418_vm0, %v175_v43, 0.0  ;;  %v176_v24 = vld [vmem:[%s13280_s0 + $0x470] sm:$0xff] }
 0x116   :  { %v845_v43 = vsel %vm418_vm0, %v176_v24, 0.0  ;;  %v181_v24 = vld [vmem:[%s13280_s0 + $0x498] sm:$0xff] }
 0x117   :  { %837 = vadd.xlane.f32.xlu1 %v836_v25  ;;  %834 = vadd.xlane.f32.xlu0 %v833_v16 }
 0x118   :  { %v7925_v59 = vpop.xlane.xlu1 %633  ;;  %v7927_v42 = vpop.xlane.xlu0 %630 }
 0x119   :  { %13538 = vst [vmem:[#allocation48_spill] sm:$0xff] %v7925_v59  ;;  %13539 = vst [vmem:[#allocation49_spill] sm:$0xff] %v7927_v42  ;;  %v848_v42 = vsel %vm418_vm0, %v177_v17, 0.0  ;;  %v178_v59 = vld [vmem:[%s13280_s0 + $0x480] sm:$0xff] }
 0x11a   :  { %v851_v17 = vsel %vm418_vm0, %v178_v59, 0.0  ;;  %v183_v59 = vld [vmem:[%s13280_s0 + $0x4a8] sm:$0xff] }
 0x11b   :  { %843 = vadd.xlane.f32.xlu1 %v842_v2  ;;  %840 = vadd.xlane.f32.xlu0 %v839_v3 }
 0x11c   :  { %v7937_v25 = vpop.xlane.xlu1 %639  ;;  %v7939_v16 = vpop.xlane.xlu0 %636 }
 0x11d   :  { %13540 = vst [vmem:[#allocation50_spill] sm:$0xff] %v7937_v25  ;;  %13541 = vst [vmem:[#allocation51_spill] sm:$0xff] %v7939_v16  ;;  %v854_v16 = vsel %vm418_vm0, %v179_v58, 0.0  ;;  %v180_v25 = vld [vmem:[%s13280_s0 + $0x490] sm:$0xff] }
 0x11e   :  { %v857_v58 = vsel %vm418_vm0, %v180_v25, 0.0  ;;  %v185_v25 = vld [vmem:[%s13280_s0 + $0x4b8] sm:$0xff] }
 0x11f   :  { %849 = vadd.xlane.f32.xlu1 %v848_v42  ;;  %846 = vadd.xlane.f32.xlu0 %v845_v43 }
 0x120   :  { %v7949_v2 = vpop.xlane.xlu1 %645  ;;  %v7951_v3 = vpop.xlane.xlu0 %642 }
 0x121   :  { %13542 = vst [vmem:[#allocation52_spill] sm:$0xff] %v7949_v2  ;;  %13543 = vst [vmem:[#allocation53_spill] sm:$0xff] %v7951_v3  ;;  %v860_v3 = vsel %vm418_vm0, %v181_v24, 0.0  ;;  %v182_v2 = vld [vmem:[%s13280_s0 + $0x4a0] sm:$0xff] }
 0x122   :  { %v863_v24 = vsel %vm418_vm0, %v182_v2, 0.0  ;;  %v187_v2 = vld [vmem:[%s13280_s0 + $0x4c8] sm:$0xff] }
 0x123   :  { %855 = vadd.xlane.f32.xlu1 %v854_v16  ;;  %852 = vadd.xlane.f32.xlu0 %v851_v17 }
 0x124   :  { %v7961_v42 = vpop.xlane.xlu1 %651  ;;  %v7963_v43 = vpop.xlane.xlu0 %648 }
 0x125   :  { %13544 = vst [vmem:[#allocation54_spill] sm:$0xff] %v7961_v42  ;;  %13545 = vst [vmem:[#allocation55_spill] sm:$0xff] %v7963_v43  ;;  %v866_v43 = vsel %vm418_vm0, %v183_v59, 0.0  ;;  %v184_v42 = vld [vmem:[%s13280_s0 + $0x4b0] sm:$0xff] }
 0x126   :  { %v869_v59 = vsel %vm418_vm0, %v184_v42, 0.0  ;;  %v189_v42 = vld [vmem:[%s13280_s0 + $0x4d8] sm:$0xff] }
 0x127   :  { %861 = vadd.xlane.f32.xlu1 %v860_v3  ;;  %858 = vadd.xlane.f32.xlu0 %v857_v58 }
 0x128   :  { %v7973_v16 = vpop.xlane.xlu1 %657  ;;  %v7975_v17 = vpop.xlane.xlu0 %654 }
 0x129   :  { %13546 = vst [vmem:[#allocation56_spill] sm:$0xff] %v7973_v16  ;;  %13547 = vst [vmem:[#allocation57_spill] sm:$0xff] %v7975_v17  ;;  %v872_v17 = vsel %vm418_vm0, %v185_v25, 0.0  ;;  %v186_v16 = vld [vmem:[%s13280_s0 + $0x4c0] sm:$0xff] }
 0x12a   :  { %v875_v25 = vsel %vm418_vm0, %v186_v16, 0.0  ;;  %v191_v16 = vld [vmem:[%s13280_s0 + $0x4e8] sm:$0xff] }
 0x12b   :  { %867 = vadd.xlane.f32.xlu1 %v866_v43  ;;  %864 = vadd.xlane.f32.xlu0 %v863_v24 }
 0x12c   :  { %v7985_v3 = vpop.xlane.xlu1 %663  ;;  %v7987_v58 = vpop.xlane.xlu0 %660 }
 0x12d   :  { %13548 = vst [vmem:[#allocation58_spill] sm:$0xff] %v7985_v3  ;;  %13549 = vst [vmem:[#allocation59_spill] sm:$0xff] %v7987_v58  ;;  %v878_v58 = vsel %vm418_vm0, %v187_v2, 0.0  ;;  %v188_v3 = vld [vmem:[%s13280_s0 + $0x4d0] sm:$0xff] }
 0x12e   :  { %v881_v2 = vsel %vm418_vm0, %v188_v3, 0.0  ;;  %v193_v3 = vld [vmem:[%s13280_s0 + $0x4f8] sm:$0xff] }
 0x12f   :  { %873 = vadd.xlane.f32.xlu1 %v872_v17  ;;  %870 = vadd.xlane.f32.xlu0 %v869_v59 }
 0x130   :  { %v7997_v43 = vpop.xlane.xlu1 %669  ;;  %v7999_v24 = vpop.xlane.xlu0 %666 }
 0x131   :  { %13550 = vst [vmem:[#allocation60_spill] sm:$0xff] %v7997_v43  ;;  %13551 = vst [vmem:[#allocation61_spill] sm:$0xff] %v7999_v24  ;;  %v884_v24 = vsel %vm418_vm0, %v189_v42, 0.0  ;;  %v190_v43 = vld [vmem:[%s13280_s0 + $0x4e0] sm:$0xff] }
 0x132   :  { %v887_v42 = vsel %vm418_vm0, %v190_v43, 0.0  ;;  %v195_v43 = vld [vmem:[%s13280_s0 + $0x508] sm:$0xff] }
 0x133   :  { %879 = vadd.xlane.f32.xlu1 %v878_v58  ;;  %876 = vadd.xlane.f32.xlu0 %v875_v25 }
 0x134   :  { %v8009_v17 = vpop.xlane.xlu1 %675  ;;  %v8011_v59 = vpop.xlane.xlu0 %672 }
 0x135   :  { %13552 = vst [vmem:[#allocation62_spill] sm:$0xff] %v8009_v17  ;;  %13553 = vst [vmem:[#allocation63_spill] sm:$0xff] %v8011_v59  ;;  %v890_v59 = vsel %vm418_vm0, %v191_v16, 0.0  ;;  %v192_v17 = vld [vmem:[%s13280_s0 + $0x4f0] sm:$0xff] }
 0x136   :  { %v893_v16 = vsel %vm418_vm0, %v192_v17, 0.0  ;;  %v197_v17 = vld [vmem:[%s13280_s0 + $0x518] sm:$0xff] }
 0x137   :  { %885 = vadd.xlane.f32.xlu1 %v884_v24  ;;  %882 = vadd.xlane.f32.xlu0 %v881_v2 }
 0x138   :  { %v8021_v58 = vpop.xlane.xlu1 %681  ;;  %v8023_v25 = vpop.xlane.xlu0 %678 }
 0x139   :  { %13554 = vst [vmem:[#allocation64_spill] sm:$0xff] %v8021_v58  ;;  %13555 = vst [vmem:[#allocation65_spill] sm:$0xff] %v8023_v25  ;;  %v896_v25 = vsel %vm418_vm0, %v193_v3, 0.0  ;;  %v194_v58 = vld [vmem:[%s13280_s0 + $0x500] sm:$0xff] }
 0x13a   :  { %v899_v3 = vsel %vm418_vm0, %v194_v58, 0.0  ;;  %v199_v58 = vld [vmem:[%s13280_s0 + $0x528] sm:$0xff] }
 0x13b   :  { %891 = vadd.xlane.f32.xlu1 %v890_v59  ;;  %888 = vadd.xlane.f32.xlu0 %v887_v42 }
 0x13c   :  { %v8033_v24 = vpop.xlane.xlu1 %687  ;;  %v8035_v2 = vpop.xlane.xlu0 %684 }
 0x13d   :  { %13556 = vst [vmem:[#allocation66_spill] sm:$0xff] %v8033_v24  ;;  %13557 = vst [vmem:[#allocation67_spill] sm:$0xff] %v8035_v2  ;;  %v902_v2 = vsel %vm418_vm0, %v195_v43, 0.0  ;;  %v196_v24 = vld [vmem:[%s13280_s0 + $0x510] sm:$0xff] }
 0x13e   :  { %v905_v43 = vsel %vm418_vm0, %v196_v24, 0.0  ;;  %v201_v24 = vld [vmem:[%s13280_s0 + $0x538] sm:$0xff] }
 0x13f   :  { %897 = vadd.xlane.f32.xlu1 %v896_v25  ;;  %894 = vadd.xlane.f32.xlu0 %v893_v16 }
 0x140   :  { %v8045_v59 = vpop.xlane.xlu1 %693  ;;  %v8047_v42 = vpop.xlane.xlu0 %690 }
 0x141   :  { %13558 = vst [vmem:[#allocation68_spill] sm:$0xff] %v8045_v59  ;;  %13559 = vst [vmem:[#allocation69_spill] sm:$0xff] %v8047_v42  ;;  %v908_v42 = vsel %vm418_vm0, %v197_v17, 0.0  ;;  %v198_v59 = vld [vmem:[%s13280_s0 + $0x520] sm:$0xff] }
 0x142   :  { %v911_v17 = vsel %vm418_vm0, %v198_v59, 0.0  ;;  %v203_v59 = vld [vmem:[%s13280_s0 + $0x548] sm:$0xff] }
 0x143   :  { %903 = vadd.xlane.f32.xlu1 %v902_v2  ;;  %900 = vadd.xlane.f32.xlu0 %v899_v3 }
 0x144   :  { %v8057_v25 = vpop.xlane.xlu1 %699  ;;  %v8059_v16 = vpop.xlane.xlu0 %696 }
 0x145   :  { %13560 = vst [vmem:[#allocation70_spill] sm:$0xff] %v8057_v25  ;;  %13561 = vst [vmem:[#allocation71_spill] sm:$0xff] %v8059_v16  ;;  %v914_v16 = vsel %vm418_vm0, %v199_v58, 0.0  ;;  %v200_v25 = vld [vmem:[%s13280_s0 + $0x530] sm:$0xff] }
 0x146   :  { %v917_v58 = vsel %vm418_vm0, %v200_v25, 0.0  ;;  %v205_v25 = vld [vmem:[%s13280_s0 + $0x558] sm:$0xff] }
 0x147   :  { %909 = vadd.xlane.f32.xlu1 %v908_v42  ;;  %906 = vadd.xlane.f32.xlu0 %v905_v43 }
 0x148   :  { %v8069_v2 = vpop.xlane.xlu1 %705  ;;  %v8071_v3 = vpop.xlane.xlu0 %702 }
 0x149   :  { %13562 = vst [vmem:[#allocation72_spill] sm:$0xff] %v8069_v2  ;;  %13563 = vst [vmem:[#allocation73_spill] sm:$0xff] %v8071_v3  ;;  %v920_v3 = vsel %vm418_vm0, %v201_v24, 0.0  ;;  %v202_v2 = vld [vmem:[%s13280_s0 + $0x540] sm:$0xff] }
 0x14a   :  { %v923_v24 = vsel %vm418_vm0, %v202_v2, 0.0  ;;  %v207_v2 = vld [vmem:[%s13280_s0 + $0x568] sm:$0xff] }
 0x14b   :  { %915 = vadd.xlane.f32.xlu1 %v914_v16  ;;  %912 = vadd.xlane.f32.xlu0 %v911_v17 }
 0x14c   :  { %v8081_v42 = vpop.xlane.xlu1 %711  ;;  %v8083_v43 = vpop.xlane.xlu0 %708 }
 0x14d   :  { %13564 = vst [vmem:[#allocation74_spill] sm:$0xff] %v8081_v42  ;;  %13565 = vst [vmem:[#allocation75_spill] sm:$0xff] %v8083_v43  ;;  %v926_v43 = vsel %vm418_vm0, %v203_v59, 0.0  ;;  %v204_v42 = vld [vmem:[%s13280_s0 + $0x550] sm:$0xff] }
 0x14e   :  { %v929_v59 = vsel %vm418_vm0, %v204_v42, 0.0  ;;  %v209_v42 = vld [vmem:[%s13280_s0 + $0x578] sm:$0xff] }
 0x14f   :  { %921 = vadd.xlane.f32.xlu1 %v920_v3  ;;  %918 = vadd.xlane.f32.xlu0 %v917_v58 }
 0x150   :  { %v8093_v16 = vpop.xlane.xlu1 %717  ;;  %v8095_v17 = vpop.xlane.xlu0 %714 }
 0x151   :  { %13566 = vst [vmem:[#allocation76_spill] sm:$0xff] %v8093_v16  ;;  %13567 = vst [vmem:[#allocation77_spill] sm:$0xff] %v8095_v17  ;;  %v932_v17 = vsel %vm418_vm0, %v205_v25, 0.0  ;;  %v206_v16 = vld [vmem:[%s13280_s0 + $0x560] sm:$0xff] }
 0x152   :  { %v935_v25 = vsel %vm418_vm0, %v206_v16, 0.0  ;;  %v211_v16 = vld [vmem:[%s13280_s0 + $0x588] sm:$0xff] }
 0x153   :  { %927 = vadd.xlane.f32.xlu1 %v926_v43  ;;  %924 = vadd.xlane.f32.xlu0 %v923_v24 }
 0x154   :  { %v8105_v3 = vpop.xlane.xlu1 %723  ;;  %v8107_v58 = vpop.xlane.xlu0 %720 }
 0x155   :  { %13568 = vst [vmem:[#allocation78_spill] sm:$0xff] %v8105_v3  ;;  %13569 = vst [vmem:[#allocation79_spill] sm:$0xff] %v8107_v58  ;;  %v938_v58 = vsel %vm418_vm0, %v207_v2, 0.0  ;;  %v208_v3 = vld [vmem:[%s13280_s0 + $0x570] sm:$0xff] }
 0x156   :  { %v941_v2 = vsel %vm418_vm0, %v208_v3, 0.0  ;;  %v213_v3 = vld [vmem:[%s13280_s0 + $0x598] sm:$0xff] }
 0x157   :  { %933 = vadd.xlane.f32.xlu1 %v932_v17  ;;  %930 = vadd.xlane.f32.xlu0 %v929_v59 }
 0x158   :  { %v8117_v43 = vpop.xlane.xlu1 %729  ;;  %v8119_v24 = vpop.xlane.xlu0 %726 }
 0x159   :  { %13570 = vst [vmem:[#allocation80_spill] sm:$0xff] %v8117_v43  ;;  %13571 = vst [vmem:[#allocation81_spill] sm:$0xff] %v8119_v24  ;;  %v944_v24 = vsel %vm418_vm0, %v209_v42, 0.0  ;;  %v210_v43 = vld [vmem:[%s13280_s0 + $0x580] sm:$0xff] }
 0x15a   :  { %v947_v42 = vsel %vm418_vm0, %v210_v43, 0.0  ;;  %v215_v43 = vld [vmem:[%s13280_s0 + $0x5a8] sm:$0xff] }
 0x15b   :  { %939 = vadd.xlane.f32.xlu1 %v938_v58  ;;  %936 = vadd.xlane.f32.xlu0 %v935_v25 }
 0x15c   :  { %v8129_v17 = vpop.xlane.xlu1 %735  ;;  %v8131_v59 = vpop.xlane.xlu0 %732 }
 0x15d   :  { %13572 = vst [vmem:[#allocation82_spill] sm:$0xff] %v8129_v17  ;;  %13573 = vst [vmem:[#allocation83_spill] sm:$0xff] %v8131_v59  ;;  %v950_v59 = vsel %vm418_vm0, %v211_v16, 0.0  ;;  %v212_v17 = vld [vmem:[%s13280_s0 + $0x590] sm:$0xff] }
 0x15e   :  { %v953_v16 = vsel %vm418_vm0, %v212_v17, 0.0  ;;  %v217_v17 = vld [vmem:[%s13280_s0 + $0x5b8] sm:$0xff] }
 0x15f   :  { %945 = vadd.xlane.f32.xlu1 %v944_v24  ;;  %942 = vadd.xlane.f32.xlu0 %v941_v2 }
 0x160   :  { %v8141_v58 = vpop.xlane.xlu1 %741  ;;  %v8143_v25 = vpop.xlane.xlu0 %738 }
 0x161   :  { %13574 = vst [vmem:[#allocation84_spill] sm:$0xff] %v8141_v58  ;;  %13575 = vst [vmem:[#allocation85_spill] sm:$0xff] %v8143_v25  ;;  %v956_v25 = vsel %vm418_vm0, %v213_v3, 0.0  ;;  %v214_v58 = vld [vmem:[%s13280_s0 + $0x5a0] sm:$0xff] }
 0x162   :  { %v959_v3 = vsel %vm418_vm0, %v214_v58, 0.0  ;;  %v219_v58 = vld [vmem:[%s13280_s0 + $0x5c8] sm:$0xff] }
 0x163   :  { %951 = vadd.xlane.f32.xlu1 %v950_v59  ;;  %948 = vadd.xlane.f32.xlu0 %v947_v42 }
 0x164   :  { %v8153_v24 = vpop.xlane.xlu1 %747  ;;  %v8155_v2 = vpop.xlane.xlu0 %744 }
 0x165   :  { %13576 = vst [vmem:[#allocation86_spill] sm:$0xff] %v8153_v24  ;;  %13577 = vst [vmem:[#allocation87_spill] sm:$0xff] %v8155_v2  ;;  %v962_v2 = vsel %vm418_vm0, %v215_v43, 0.0  ;;  %v216_v24 = vld [vmem:[%s13280_s0 + $0x5b0] sm:$0xff] }
 0x166   :  { %v965_v43 = vsel %vm418_vm0, %v216_v24, 0.0  ;;  %v221_v24 = vld [vmem:[%s13280_s0 + $0x5d8] sm:$0xff] }
 0x167   :  { %957 = vadd.xlane.f32.xlu1 %v956_v25  ;;  %954 = vadd.xlane.f32.xlu0 %v953_v16 }
 0x168   :  { %v8165_v59 = vpop.xlane.xlu1 %753  ;;  %v8167_v42 = vpop.xlane.xlu0 %750 }
 0x169   :  { %13578 = vst [vmem:[#allocation88_spill] sm:$0xff] %v8165_v59  ;;  %13579 = vst [vmem:[#allocation89_spill] sm:$0xff] %v8167_v42  ;;  %v968_v42 = vsel %vm418_vm0, %v217_v17, 0.0  ;;  %v218_v59 = vld [vmem:[%s13280_s0 + $0x5c0] sm:$0xff] }
 0x16a   :  { %v971_v17 = vsel %vm418_vm0, %v218_v59, 0.0  ;;  %v223_v59 = vld [vmem:[%s13280_s0 + $0x5e8] sm:$0xff] }
 0x16b   :  { %963 = vadd.xlane.f32.xlu1 %v962_v2  ;;  %960 = vadd.xlane.f32.xlu0 %v959_v3 }
 0x16c   :  { %v8177_v25 = vpop.xlane.xlu1 %759  ;;  %v8179_v16 = vpop.xlane.xlu0 %756 }
 0x16d   :  { %13580 = vst [vmem:[#allocation90_spill] sm:$0xff] %v8177_v25  ;;  %13581 = vst [vmem:[#allocation91_spill] sm:$0xff] %v8179_v16  ;;  %v974_v16 = vsel %vm418_vm0, %v219_v58, 0.0  ;;  %v220_v25 = vld [vmem:[%s13280_s0 + $0x5d0] sm:$0xff] }
 0x16e   :  { %v977_v58 = vsel %vm418_vm0, %v220_v25, 0.0  ;;  %v225_v25 = vld [vmem:[%s13280_s0 + $0x5f8] sm:$0xff] }
 0x16f   :  { %969 = vadd.xlane.f32.xlu1 %v968_v42  ;;  %966 = vadd.xlane.f32.xlu0 %v965_v43 }
 0x170   :  { %v8189_v2 = vpop.xlane.xlu1 %765  ;;  %v8191_v3 = vpop.xlane.xlu0 %762 }
 0x171   :  { %13582 = vst [vmem:[#allocation92_spill] sm:$0xff] %v8189_v2  ;;  %13583 = vst [vmem:[#allocation93_spill] sm:$0xff] %v8191_v3  ;;  %v980_v3 = vsel %vm418_vm0, %v221_v24, 0.0  ;;  %v222_v2 = vld [vmem:[%s13280_s0 + $0x5e0] sm:$0xff] }
 0x172   :  { %v983_v24 = vsel %vm418_vm0, %v222_v2, 0.0  ;;  %v227_v2 = vld [vmem:[%s13280_s0 + $0x608] sm:$0xff] }
 0x173   :  { %975 = vadd.xlane.f32.xlu1 %v974_v16  ;;  %972 = vadd.xlane.f32.xlu0 %v971_v17 }
 0x174   :  { %v8201_v42 = vpop.xlane.xlu1 %771  ;;  %v8203_v43 = vpop.xlane.xlu0 %768 }
 0x175   :  { %13584 = vst [vmem:[#allocation94_spill] sm:$0xff] %v8201_v42  ;;  %13585 = vst [vmem:[#allocation95_spill] sm:$0xff] %v8203_v43  ;;  %v986_v43 = vsel %vm418_vm0, %v223_v59, 0.0  ;;  %v224_v42 = vld [vmem:[%s13280_s0 + $0x5f0] sm:$0xff] }
 0x176   :  { %v989_v59 = vsel %vm418_vm0, %v224_v42, 0.0  ;;  %v229_v42 = vld [vmem:[%s13280_s0 + $0x618] sm:$0xff] }
 0x177   :  { %981 = vadd.xlane.f32.xlu1 %v980_v3  ;;  %978 = vadd.xlane.f32.xlu0 %v977_v58 }
 0x178   :  { %v8213_v16 = vpop.xlane.xlu1 %777  ;;  %v8215_v17 = vpop.xlane.xlu0 %774 }
 0x179   :  { %13586 = vst [vmem:[#allocation96_spill] sm:$0xff] %v8213_v16  ;;  %13587 = vst [vmem:[#allocation97_spill] sm:$0xff] %v8215_v17  ;;  %v992_v17 = vsel %vm418_vm0, %v225_v25, 0.0  ;;  %v226_v16 = vld [vmem:[%s13280_s0 + $0x600] sm:$0xff] }
 0x17a   :  { %v995_v25 = vsel %vm418_vm0, %v226_v16, 0.0  ;;  %v231_v16 = vld [vmem:[%s13280_s0 + $0x628] sm:$0xff] }
 0x17b   :  { %987 = vadd.xlane.f32.xlu1 %v986_v43  ;;  %984 = vadd.xlane.f32.xlu0 %v983_v24 }
 0x17c   :  { %v8225_v3 = vpop.xlane.xlu1 %783  ;;  %v8227_v58 = vpop.xlane.xlu0 %780 }
 0x17d   :  { %13588 = vst [vmem:[#allocation98_spill] sm:$0xff] %v8225_v3  ;;  %13589 = vst [vmem:[#allocation99_spill] sm:$0xff] %v8227_v58  ;;  %v998_v58 = vsel %vm418_vm0, %v227_v2, 0.0  ;;  %v228_v3 = vld [vmem:[%s13280_s0 + $0x610] sm:$0xff] }
 0x17e   :  { %v1001_v2 = vsel %vm418_vm0, %v228_v3, 0.0  ;;  %v233_v3 = vld [vmem:[%s13280_s0 + $0x638] sm:$0xff] }
 0x17f   :  { %993 = vadd.xlane.f32.xlu1 %v992_v17  ;;  %990 = vadd.xlane.f32.xlu0 %v989_v59 }
 0x180   :  { %v8237_v43 = vpop.xlane.xlu1 %789  ;;  %v8239_v24 = vpop.xlane.xlu0 %786 }
 0x181   :  { %13590 = vst [vmem:[#allocation100_spill] sm:$0xff] %v8237_v43  ;;  %13591 = vst [vmem:[#allocation101_spill] sm:$0xff] %v8239_v24  ;;  %v1004_v24 = vsel %vm418_vm0, %v229_v42, 0.0  ;;  %v230_v43 = vld [vmem:[%s13280_s0 + $0x620] sm:$0xff] }
 0x182   :  { %v1007_v42 = vsel %vm418_vm0, %v230_v43, 0.0  ;;  %v235_v43 = vld [vmem:[%s13280_s0 + $0x648] sm:$0xff] }
 0x183   :  { %999 = vadd.xlane.f32.xlu1 %v998_v58  ;;  %996 = vadd.xlane.f32.xlu0 %v995_v25 }
 0x184   :  { %v8249_v17 = vpop.xlane.xlu1 %795  ;;  %v8251_v59 = vpop.xlane.xlu0 %792 }
 0x185   :  { %13592 = vst [vmem:[#allocation102_spill] sm:$0xff] %v8249_v17  ;;  %13593 = vst [vmem:[#allocation103_spill] sm:$0xff] %v8251_v59  ;;  %v1010_v59 = vsel %vm418_vm0, %v231_v16, 0.0  ;;  %v232_v17 = vld [vmem:[%s13280_s0 + $0x630] sm:$0xff] }
 0x186   :  { %v1013_v16 = vsel %vm418_vm0, %v232_v17, 0.0  ;;  %v237_v17 = vld [vmem:[%s13280_s0 + $0x658] sm:$0xff] }
 0x187   :  { %1005 = vadd.xlane.f32.xlu1 %v1004_v24  ;;  %1002 = vadd.xlane.f32.xlu0 %v1001_v2 }
 0x188   :  { %v8261_v58 = vpop.xlane.xlu1 %801  ;;  %v8263_v25 = vpop.xlane.xlu0 %798 }
 0x189   :  { %13594 = vst [vmem:[#allocation104_spill] sm:$0xff] %v8261_v58  ;;  %13595 = vst [vmem:[#allocation105_spill] sm:$0xff] %v8263_v25  ;;  %v1016_v25 = vsel %vm418_vm0, %v233_v3, 0.0  ;;  %v234_v58 = vld [vmem:[%s13280_s0 + $0x640] sm:$0xff] }
 0x18a   :  { %v1019_v3 = vsel %vm418_vm0, %v234_v58, 0.0  ;;  %v239_v58 = vld [vmem:[%s13280_s0 + $0x668] sm:$0xff] }
 0x18b   :  { %1011 = vadd.xlane.f32.xlu1 %v1010_v59  ;;  %1008 = vadd.xlane.f32.xlu0 %v1007_v42 }
 0x18c   :  { %v8273_v24 = vpop.xlane.xlu1 %807  ;;  %v8275_v2 = vpop.xlane.xlu0 %804 }
 0x18d   :  { %13596 = vst [vmem:[#allocation106_spill] sm:$0xff] %v8273_v24  ;;  %13597 = vst [vmem:[#allocation107_spill] sm:$0xff] %v8275_v2  ;;  %v1022_v2 = vsel %vm418_vm0, %v235_v43, 0.0  ;;  %v236_v24 = vld [vmem:[%s13280_s0 + $0x650] sm:$0xff] }
 0x18e   :  { %v1025_v43 = vsel %vm418_vm0, %v236_v24, 0.0  ;;  %v241_v24 = vld [vmem:[%s13280_s0 + $0x678] sm:$0xff] }
 0x18f   :  { %1017 = vadd.xlane.f32.xlu1 %v1016_v25  ;;  %1014 = vadd.xlane.f32.xlu0 %v1013_v16 }
 0x190   :  { %v8285_v59 = vpop.xlane.xlu1 %813  ;;  %v8287_v42 = vpop.xlane.xlu0 %810 }
 0x191   :  { %13598 = vst [vmem:[#allocation108_spill] sm:$0xff] %v8285_v59  ;;  %13599 = vst [vmem:[#allocation109_spill] sm:$0xff] %v8287_v42  ;;  %v1028_v42 = vsel %vm418_vm0, %v237_v17, 0.0  ;;  %v238_v59 = vld [vmem:[%s13280_s0 + $0x660] sm:$0xff] }
 0x192   :  { %v1031_v17 = vsel %vm418_vm0, %v238_v59, 0.0  ;;  %v243_v59 = vld [vmem:[%s13280_s0 + $0x688] sm:$0xff] }
 0x193   :  { %1023 = vadd.xlane.f32.xlu1 %v1022_v2  ;;  %1020 = vadd.xlane.f32.xlu0 %v1019_v3 }
 0x194   :  { %v8297_v25 = vpop.xlane.xlu1 %819  ;;  %v8299_v16 = vpop.xlane.xlu0 %816 }
 0x195   :  { %13600 = vst [vmem:[#allocation110_spill] sm:$0xff] %v8297_v25  ;;  %13601 = vst [vmem:[#allocation111_spill] sm:$0xff] %v8299_v16  ;;  %v1034_v16 = vsel %vm418_vm0, %v239_v58, 0.0  ;;  %v240_v25 = vld [vmem:[%s13280_s0 + $0x670] sm:$0xff] }
 0x196   :  { %v1037_v58 = vsel %vm418_vm0, %v240_v25, 0.0  ;;  %v245_v25 = vld [vmem:[%s13280_s0 + $0x698] sm:$0xff] }
 0x197   :  { %1029 = vadd.xlane.f32.xlu1 %v1028_v42  ;;  %1026 = vadd.xlane.f32.xlu0 %v1025_v43 }
 0x198   :  { %v8309_v2 = vpop.xlane.xlu1 %825  ;;  %v8311_v3 = vpop.xlane.xlu0 %822 }
 0x199   :  { %13602 = vst [vmem:[#allocation112_spill] sm:$0xff] %v8309_v2  ;;  %13603 = vst [vmem:[#allocation113_spill] sm:$0xff] %v8311_v3  ;;  %v1040_v3 = vsel %vm418_vm0, %v241_v24, 0.0  ;;  %v242_v2 = vld [vmem:[%s13280_s0 + $0x680] sm:$0xff] }
 0x19a   :  { %v1043_v24 = vsel %vm418_vm0, %v242_v2, 0.0  ;;  %v247_v2 = vld [vmem:[%s13280_s0 + $0x6a8] sm:$0xff] }
 0x19b   :  { %1035 = vadd.xlane.f32.xlu1 %v1034_v16  ;;  %1032 = vadd.xlane.f32.xlu0 %v1031_v17 }
 0x19c   :  { %v8321_v42 = vpop.xlane.xlu1 %831  ;;  %v8323_v43 = vpop.xlane.xlu0 %828 }
 0x19d   :  { %13604 = vst [vmem:[#allocation114_spill] sm:$0xff] %v8321_v42  ;;  %13605 = vst [vmem:[#allocation115_spill] sm:$0xff] %v8323_v43  ;;  %v1046_v43 = vsel %vm418_vm0, %v243_v59, 0.0  ;;  %v244_v42 = vld [vmem:[%s13280_s0 + $0x690] sm:$0xff] }
 0x19e   :  { %v1049_v59 = vsel %vm418_vm0, %v244_v42, 0.0  ;;  %v249_v42 = vld [vmem:[%s13280_s0 + $0x6b8] sm:$0xff] }
 0x19f   :  { %1041 = vadd.xlane.f32.xlu1 %v1040_v3  ;;  %1038 = vadd.xlane.f32.xlu0 %v1037_v58 }
 0x1a0   :  { %v8333_v16 = vpop.xlane.xlu1 %837  ;;  %v8335_v17 = vpop.xlane.xlu0 %834 }
 0x1a1   :  { %13606 = vst [vmem:[#allocation116_spill] sm:$0xff] %v8333_v16  ;;  %13607 = vst [vmem:[#allocation117_spill] sm:$0xff] %v8335_v17  ;;  %v1052_v17 = vsel %vm418_vm0, %v245_v25, 0.0  ;;  %v246_v16 = vld [vmem:[%s13280_s0 + $0x6a0] sm:$0xff] }
 0x1a2   :  { %v1055_v25 = vsel %vm418_vm0, %v246_v16, 0.0  ;;  %v251_v16 = vld [vmem:[%s13280_s0 + $0x6c8] sm:$0xff] }
 0x1a3   :  { %1047 = vadd.xlane.f32.xlu1 %v1046_v43  ;;  %1044 = vadd.xlane.f32.xlu0 %v1043_v24 }
 0x1a4   :  { %v8345_v3 = vpop.xlane.xlu1 %843  ;;  %v8347_v58 = vpop.xlane.xlu0 %840 }
 0x1a5   :  { %13608 = vst [vmem:[#allocation118_spill] sm:$0xff] %v8345_v3  ;;  %13609 = vst [vmem:[#allocation119_spill] sm:$0xff] %v8347_v58  ;;  %v1058_v58 = vsel %vm418_vm0, %v247_v2, 0.0  ;;  %v248_v3 = vld [vmem:[%s13280_s0 + $0x6b0] sm:$0xff] }
 0x1a6   :  { %v1061_v2 = vsel %vm418_vm0, %v248_v3, 0.0  ;;  %v253_v3 = vld [vmem:[%s13280_s0 + $0x6d8] sm:$0xff] }
 0x1a7   :  { %1053 = vadd.xlane.f32.xlu1 %v1052_v17  ;;  %1050 = vadd.xlane.f32.xlu0 %v1049_v59 }
 0x1a8   :  { %v8357_v43 = vpop.xlane.xlu1 %849  ;;  %v8359_v24 = vpop.xlane.xlu0 %846 }
 0x1a9   :  { %13610 = vst [vmem:[#allocation120_spill] sm:$0xff] %v8357_v43  ;;  %13611 = vst [vmem:[#allocation121_spill] sm:$0xff] %v8359_v24  ;;  %v1064_v24 = vsel %vm418_vm0, %v249_v42, 0.0  ;;  %v250_v43 = vld [vmem:[%s13280_s0 + $0x6c0] sm:$0xff] }
 0x1aa   :  { %v1067_v42 = vsel %vm418_vm0, %v250_v43, 0.0  ;;  %v255_v43 = vld [vmem:[%s13280_s0 + $0x6e8] sm:$0xff] }
 0x1ab   :  { %1059 = vadd.xlane.f32.xlu1 %v1058_v58  ;;  %1056 = vadd.xlane.f32.xlu0 %v1055_v25 }
 0x1ac   :  { %v8369_v17 = vpop.xlane.xlu1 %855  ;;  %v8371_v59 = vpop.xlane.xlu0 %852 }
 0x1ad   :  { %13612 = vst [vmem:[#allocation122_spill] sm:$0xff] %v8369_v17  ;;  %13613 = vst [vmem:[#allocation123_spill] sm:$0xff] %v8371_v59  ;;  %v1070_v59 = vsel %vm418_vm0, %v251_v16, 0.0  ;;  %v252_v17 = vld [vmem:[%s13280_s0 + $0x6d0] sm:$0xff] }
 0x1ae   :  { %v1073_v16 = vsel %vm418_vm0, %v252_v17, 0.0  ;;  %v257_v17 = vld [vmem:[%s13280_s0 + $0x6f8] sm:$0xff] }
 0x1af   :  { %1065 = vadd.xlane.f32.xlu1 %v1064_v24  ;;  %1062 = vadd.xlane.f32.xlu0 %v1061_v2 }
 0x1b0   :  { %v8381_v58 = vpop.xlane.xlu1 %861  ;;  %v8383_v25 = vpop.xlane.xlu0 %858 }
 0x1b1   :  { %13614 = vst [vmem:[#allocation124_spill] sm:$0xff] %v8381_v58  ;;  %13615 = vst [vmem:[#allocation125_spill] sm:$0xff] %v8383_v25  ;;  %v1076_v25 = vsel %vm418_vm0, %v253_v3, 0.0  ;;  %v254_v58 = vld [vmem:[%s13280_s0 + $0x6e0] sm:$0xff] }
 0x1b2   :  { %v1079_v3 = vsel %vm418_vm0, %v254_v58, 0.0  ;;  %v259_v58 = vld [vmem:[%s13280_s0 + $0x708] sm:$0xff] }
 0x1b3   :  { %1071 = vadd.xlane.f32.xlu1 %v1070_v59  ;;  %1068 = vadd.xlane.f32.xlu0 %v1067_v42 }
 0x1b4   :  { %v8393_v24 = vpop.xlane.xlu1 %867  ;;  %v8395_v2 = vpop.xlane.xlu0 %864 }
 0x1b5   :  { %13616 = vst [vmem:[#allocation126_spill] sm:$0xff] %v8393_v24  ;;  %13617 = vst [vmem:[#allocation127_spill] sm:$0xff] %v8395_v2  ;;  %v1082_v2 = vsel %vm418_vm0, %v255_v43, 0.0  ;;  %v256_v24 = vld [vmem:[%s13280_s0 + $0x6f0] sm:$0xff] }
 0x1b6   :  { %v1085_v43 = vsel %vm418_vm0, %v256_v24, 0.0  ;;  %v261_v24 = vld [vmem:[%s13280_s0 + $0x718] sm:$0xff] }
 0x1b7   :  { %1077 = vadd.xlane.f32.xlu1 %v1076_v25  ;;  %1074 = vadd.xlane.f32.xlu0 %v1073_v16 }
 0x1b8   :  { %v8405_v59 = vpop.xlane.xlu1 %873  ;;  %v8407_v42 = vpop.xlane.xlu0 %870 }
 0x1b9   :  { %13618 = vst [vmem:[#allocation128_spill] sm:$0xff] %v8405_v59  ;;  %13619 = vst [vmem:[#allocation129_spill] sm:$0xff] %v8407_v42  ;;  %v1088_v42 = vsel %vm418_vm0, %v257_v17, 0.0  ;;  %v258_v59 = vld [vmem:[%s13280_s0 + $0x700] sm:$0xff] }
 0x1ba   :  { %v1091_v17 = vsel %vm418_vm0, %v258_v59, 0.0  ;;  %v263_v59 = vld [vmem:[%s13280_s0 + $0x728] sm:$0xff] }
 0x1bb   :  { %1083 = vadd.xlane.f32.xlu1 %v1082_v2  ;;  %1080 = vadd.xlane.f32.xlu0 %v1079_v3 }
 0x1bc   :  { %v8417_v25 = vpop.xlane.xlu1 %879  ;;  %v8419_v16 = vpop.xlane.xlu0 %876 }
 0x1bd   :  { %13620 = vst [vmem:[#allocation130_spill] sm:$0xff] %v8417_v25  ;;  %13621 = vst [vmem:[#allocation131_spill] sm:$0xff] %v8419_v16  ;;  %v1094_v16 = vsel %vm418_vm0, %v259_v58, 0.0  ;;  %v260_v25 = vld [vmem:[%s13280_s0 + $0x710] sm:$0xff] }
 0x1be   :  { %v1097_v58 = vsel %vm418_vm0, %v260_v25, 0.0  ;;  %v265_v25 = vld [vmem:[%s13280_s0 + $0x738] sm:$0xff] }
 0x1bf   :  { %1089 = vadd.xlane.f32.xlu1 %v1088_v42  ;;  %1086 = vadd.xlane.f32.xlu0 %v1085_v43 }
 0x1c0   :  { %v8429_v2 = vpop.xlane.xlu1 %885  ;;  %v8431_v3 = vpop.xlane.xlu0 %882 }
 0x1c1   :  { %13622 = vst [vmem:[#allocation132_spill] sm:$0xff] %v8429_v2  ;;  %13623 = vst [vmem:[#allocation133_spill] sm:$0xff] %v8431_v3  ;;  %v1100_v3 = vsel %vm418_vm0, %v261_v24, 0.0  ;;  %v262_v2 = vld [vmem:[%s13280_s0 + $0x720] sm:$0xff] }
 0x1c2   :  { %v1103_v24 = vsel %vm418_vm0, %v262_v2, 0.0  ;;  %v267_v2 = vld [vmem:[%s13280_s0 + $0x748] sm:$0xff] }
 0x1c3   :  { %1095 = vadd.xlane.f32.xlu1 %v1094_v16  ;;  %1092 = vadd.xlane.f32.xlu0 %v1091_v17 }
 0x1c4   :  { %v8441_v42 = vpop.xlane.xlu1 %891  ;;  %v8443_v43 = vpop.xlane.xlu0 %888 }
 0x1c5   :  { %13624 = vst [vmem:[#allocation134_spill] sm:$0xff] %v8441_v42  ;;  %13625 = vst [vmem:[#allocation135_spill] sm:$0xff] %v8443_v43  ;;  %v1106_v43 = vsel %vm418_vm0, %v263_v59, 0.0  ;;  %v264_v42 = vld [vmem:[%s13280_s0 + $0x730] sm:$0xff] }
 0x1c6   :  { %v1109_v59 = vsel %vm418_vm0, %v264_v42, 0.0  ;;  %v269_v42 = vld [vmem:[%s13280_s0 + $0x758] sm:$0xff] }
 0x1c7   :  { %1101 = vadd.xlane.f32.xlu1 %v1100_v3  ;;  %1098 = vadd.xlane.f32.xlu0 %v1097_v58 }
 0x1c8   :  { %v8453_v16 = vpop.xlane.xlu1 %897  ;;  %v8455_v17 = vpop.xlane.xlu0 %894 }
 0x1c9   :  { %13626 = vst [vmem:[#allocation136_spill] sm:$0xff] %v8453_v16  ;;  %13627 = vst [vmem:[#allocation137_spill] sm:$0xff] %v8455_v17  ;;  %v1112_v17 = vsel %vm418_vm0, %v265_v25, 0.0  ;;  %v266_v16 = vld [vmem:[%s13280_s0 + $0x740] sm:$0xff] }
 0x1ca   :  { %v1115_v25 = vsel %vm418_vm0, %v266_v16, 0.0  ;;  %v271_v16 = vld [vmem:[%s13280_s0 + $0x768] sm:$0xff] }
 0x1cb   :  { %1107 = vadd.xlane.f32.xlu1 %v1106_v43  ;;  %1104 = vadd.xlane.f32.xlu0 %v1103_v24 }
 0x1cc   :  { %v8465_v3 = vpop.xlane.xlu1 %903  ;;  %v8467_v58 = vpop.xlane.xlu0 %900 }
 0x1cd   :  { %13628 = vst [vmem:[#allocation138_spill] sm:$0xff] %v8465_v3  ;;  %13629 = vst [vmem:[#allocation139_spill] sm:$0xff] %v8467_v58  ;;  %v1118_v58 = vsel %vm418_vm0, %v267_v2, 0.0  ;;  %v268_v3 = vld [vmem:[%s13280_s0 + $0x750] sm:$0xff] }
 0x1ce   :  { %v1121_v2 = vsel %vm418_vm0, %v268_v3, 0.0  ;;  %v273_v3 = vld [vmem:[%s13280_s0 + $0x778] sm:$0xff] }
 0x1cf   :  { %1113 = vadd.xlane.f32.xlu1 %v1112_v17  ;;  %1110 = vadd.xlane.f32.xlu0 %v1109_v59 }
 0x1d0   :  { %v8477_v43 = vpop.xlane.xlu1 %909  ;;  %v8479_v24 = vpop.xlane.xlu0 %906 }
 0x1d1   :  { %13630 = vst [vmem:[#allocation140_spill] sm:$0xff] %v8477_v43  ;;  %13631 = vst [vmem:[#allocation141_spill] sm:$0xff] %v8479_v24  ;;  %v1124_v24 = vsel %vm418_vm0, %v269_v42, 0.0  ;;  %v270_v43 = vld [vmem:[%s13280_s0 + $0x760] sm:$0xff] }
 0x1d2   :  { %v1127_v42 = vsel %vm418_vm0, %v270_v43, 0.0  ;;  %v275_v43 = vld [vmem:[%s13280_s0 + $0x788] sm:$0xff] }
 0x1d3   :  { %1119 = vadd.xlane.f32.xlu1 %v1118_v58  ;;  %1116 = vadd.xlane.f32.xlu0 %v1115_v25 }
 0x1d4   :  { %v8489_v17 = vpop.xlane.xlu1 %915  ;;  %v8491_v59 = vpop.xlane.xlu0 %912 }
 0x1d5   :  { %13632 = vst [vmem:[#allocation142_spill] sm:$0xff] %v8489_v17  ;;  %13633 = vst [vmem:[#allocation143_spill] sm:$0xff] %v8491_v59  ;;  %v1130_v59 = vsel %vm418_vm0, %v271_v16, 0.0  ;;  %v272_v17 = vld [vmem:[%s13280_s0 + $0x770] sm:$0xff] }
 0x1d6   :  { %v1133_v16 = vsel %vm418_vm0, %v272_v17, 0.0  ;;  %v277_v17 = vld [vmem:[%s13280_s0 + $0x798] sm:$0xff] }
 0x1d7   :  { %1125 = vadd.xlane.f32.xlu1 %v1124_v24  ;;  %1122 = vadd.xlane.f32.xlu0 %v1121_v2 }
 0x1d8   :  { %v8501_v58 = vpop.xlane.xlu1 %921  ;;  %v8503_v25 = vpop.xlane.xlu0 %918 }
 0x1d9   :  { %13634 = vst [vmem:[#allocation144_spill] sm:$0xff] %v8501_v58  ;;  %13635 = vst [vmem:[#allocation145_spill] sm:$0xff] %v8503_v25  ;;  %v1136_v25 = vsel %vm418_vm0, %v273_v3, 0.0  ;;  %v274_v58 = vld [vmem:[%s13280_s0 + $0x780] sm:$0xff] }
 0x1da   :  { %v1139_v3 = vsel %vm418_vm0, %v274_v58, 0.0  ;;  %v279_v58 = vld [vmem:[%s13280_s0 + $0x7a8] sm:$0xff] }
 0x1db   :  { %1131 = vadd.xlane.f32.xlu1 %v1130_v59  ;;  %1128 = vadd.xlane.f32.xlu0 %v1127_v42 }
 0x1dc   :  { %v8513_v24 = vpop.xlane.xlu1 %927  ;;  %v8515_v2 = vpop.xlane.xlu0 %924 }
 0x1dd   :  { %13636 = vst [vmem:[#allocation146_spill] sm:$0xff] %v8513_v24  ;;  %13637 = vst [vmem:[#allocation147_spill] sm:$0xff] %v8515_v2  ;;  %v1142_v2 = vsel %vm418_vm0, %v275_v43, 0.0  ;;  %v276_v24 = vld [vmem:[%s13280_s0 + $0x790] sm:$0xff] }
 0x1de   :  { %v1145_v43 = vsel %vm418_vm0, %v276_v24, 0.0  ;;  %v281_v24 = vld [vmem:[%s13280_s0 + $0x7b8] sm:$0xff] }
 0x1df   :  { %1137 = vadd.xlane.f32.xlu1 %v1136_v25  ;;  %1134 = vadd.xlane.f32.xlu0 %v1133_v16 }
 0x1e0   :  { %v8525_v59 = vpop.xlane.xlu1 %933  ;;  %v8527_v42 = vpop.xlane.xlu0 %930 }
 0x1e1   :  { %13638 = vst [vmem:[#allocation148_spill] sm:$0xff] %v8525_v59  ;;  %13639 = vst [vmem:[#allocation149_spill] sm:$0xff] %v8527_v42  ;;  %v1148_v42 = vsel %vm418_vm0, %v277_v17, 0.0  ;;  %v278_v59 = vld [vmem:[%s13280_s0 + $0x7a0] sm:$0xff] }
 0x1e2   :  { %v1151_v17 = vsel %vm418_vm0, %v278_v59, 0.0  ;;  %v283_v59 = vld [vmem:[%s13280_s0 + $0x7c8] sm:$0xff] }
 0x1e3   :  { %1143 = vadd.xlane.f32.xlu1 %v1142_v2  ;;  %1140 = vadd.xlane.f32.xlu0 %v1139_v3 }
 0x1e4   :  { %v8537_v25 = vpop.xlane.xlu1 %939  ;;  %v8539_v16 = vpop.xlane.xlu0 %936 }
 0x1e5   :  { %13640 = vst [vmem:[#allocation150_spill] sm:$0xff] %v8537_v25  ;;  %13641 = vst [vmem:[#allocation151_spill] sm:$0xff] %v8539_v16  ;;  %v1154_v16 = vsel %vm418_vm0, %v279_v58, 0.0  ;;  %v280_v25 = vld [vmem:[%s13280_s0 + $0x7b0] sm:$0xff] }
 0x1e6   :  { %v1157_v58 = vsel %vm418_vm0, %v280_v25, 0.0  ;;  %v285_v25 = vld [vmem:[%s13280_s0 + $0x7d8] sm:$0xff] }
 0x1e7   :  { %1149 = vadd.xlane.f32.xlu1 %v1148_v42  ;;  %1146 = vadd.xlane.f32.xlu0 %v1145_v43 }
 0x1e8   :  { %v8549_v2 = vpop.xlane.xlu1 %945  ;;  %v8551_v3 = vpop.xlane.xlu0 %942 }
 0x1e9   :  { %13642 = vst [vmem:[#allocation152_spill] sm:$0xff] %v8549_v2  ;;  %13643 = vst [vmem:[#allocation153_spill] sm:$0xff] %v8551_v3  ;;  %v1160_v3 = vsel %vm418_vm0, %v281_v24, 0.0  ;;  %v282_v2 = vld [vmem:[%s13280_s0 + $0x7c0] sm:$0xff] }
 0x1ea   :  { %v1163_v24 = vsel %vm418_vm0, %v282_v2, 0.0  ;;  %v287_v2 = vld [vmem:[%s13280_s0 + $0x7e8] sm:$0xff] }
 0x1eb   :  { %1155 = vadd.xlane.f32.xlu1 %v1154_v16  ;;  %1152 = vadd.xlane.f32.xlu0 %v1151_v17 }
 0x1ec   :  { %v8561_v42 = vpop.xlane.xlu1 %951  ;;  %v8563_v43 = vpop.xlane.xlu0 %948 }
 0x1ed   :  { %13644 = vst [vmem:[#allocation154_spill] sm:$0xff] %v8561_v42  ;;  %13645 = vst [vmem:[#allocation155_spill] sm:$0xff] %v8563_v43  ;;  %v1166_v43 = vsel %vm418_vm0, %v283_v59, 0.0  ;;  %v284_v42 = vld [vmem:[%s13280_s0 + $0x7d0] sm:$0xff] }
 0x1ee   :  { %v1169_v59 = vsel %vm418_vm0, %v284_v42, 0.0  ;;  %v289_v42 = vld [vmem:[%s13280_s0 + $0x7f8] sm:$0xff] }
 0x1ef   :  { %1161 = vadd.xlane.f32.xlu1 %v1160_v3  ;;  %1158 = vadd.xlane.f32.xlu0 %v1157_v58 }
 0x1f0   :  { %v8573_v16 = vpop.xlane.xlu1 %957  ;;  %v8575_v17 = vpop.xlane.xlu0 %954 }
 0x1f1   :  { %13646 = vst [vmem:[#allocation156_spill] sm:$0xff] %v8573_v16  ;;  %13647 = vst [vmem:[#allocation157_spill] sm:$0xff] %v8575_v17  ;;  %v1172_v17 = vsel %vm418_vm0, %v285_v25, 0.0  ;;  %v286_v16 = vld [vmem:[%s13280_s0 + $0x7e0] sm:$0xff] }
 0x1f2   :  { %v1175_v25 = vsel %vm418_vm0, %v286_v16, 0.0  ;;  %v291_v16 = vld [vmem:[%s13280_s0 + $0x808] sm:$0xff] }
 0x1f3   :  { %1167 = vadd.xlane.f32.xlu1 %v1166_v43  ;;  %1164 = vadd.xlane.f32.xlu0 %v1163_v24 }
 0x1f4   :  { %v8585_v3 = vpop.xlane.xlu1 %963  ;;  %v8587_v58 = vpop.xlane.xlu0 %960 }
 0x1f5   :  { %13648 = vst [vmem:[#allocation158_spill] sm:$0xff] %v8585_v3  ;;  %13649 = vst [vmem:[#allocation159_spill] sm:$0xff] %v8587_v58  ;;  %v1178_v58 = vsel %vm418_vm0, %v287_v2, 0.0  ;;  %v288_v3 = vld [vmem:[%s13280_s0 + $0x7f0] sm:$0xff] }
 0x1f6   :  { %v1181_v2 = vsel %vm418_vm0, %v288_v3, 0.0  ;;  %v293_v3 = vld [vmem:[%s13280_s0 + $0x818] sm:$0xff] }
 0x1f7   :  { %1173 = vadd.xlane.f32.xlu1 %v1172_v17  ;;  %1170 = vadd.xlane.f32.xlu0 %v1169_v59 }
 0x1f8   :  { %v8597_v43 = vpop.xlane.xlu1 %969  ;;  %v8599_v24 = vpop.xlane.xlu0 %966 }
 0x1f9   :  { %13650 = vst [vmem:[#allocation160_spill] sm:$0xff] %v8597_v43  ;;  %13651 = vst [vmem:[#allocation161_spill] sm:$0xff] %v8599_v24  ;;  %v1184_v24 = vsel %vm418_vm0, %v289_v42, 0.0  ;;  %v290_v43 = vld [vmem:[%s13280_s0 + $0x800] sm:$0xff] }
 0x1fa   :  { %v1187_v42 = vsel %vm418_vm0, %v290_v43, 0.0  ;;  %v295_v43 = vld [vmem:[%s13280_s0 + $0x828] sm:$0xff] }
 0x1fb   :  { %1179 = vadd.xlane.f32.xlu1 %v1178_v58  ;;  %1176 = vadd.xlane.f32.xlu0 %v1175_v25 }
 0x1fc   :  { %v8609_v17 = vpop.xlane.xlu1 %975  ;;  %v8611_v59 = vpop.xlane.xlu0 %972 }
 0x1fd   :  { %13652 = vst [vmem:[#allocation162_spill] sm:$0xff] %v8609_v17  ;;  %13653 = vst [vmem:[#allocation163_spill] sm:$0xff] %v8611_v59  ;;  %v1190_v59 = vsel %vm418_vm0, %v291_v16, 0.0  ;;  %v292_v17 = vld [vmem:[%s13280_s0 + $0x810] sm:$0xff] }
 0x1fe   :  { %v1193_v16 = vsel %vm418_vm0, %v292_v17, 0.0  ;;  %v297_v17 = vld [vmem:[%s13280_s0 + $0x838] sm:$0xff] }
 0x1ff   :  { %1185 = vadd.xlane.f32.xlu1 %v1184_v24  ;;  %1182 = vadd.xlane.f32.xlu0 %v1181_v2 }
 0x200   :  { %v8621_v58 = vpop.xlane.xlu1 %981  ;;  %v8623_v25 = vpop.xlane.xlu0 %978 }
 0x201   :  { %13654 = vst [vmem:[#allocation164_spill] sm:$0xff] %v8621_v58  ;;  %13655 = vst [vmem:[#allocation165_spill] sm:$0xff] %v8623_v25  ;;  %v1196_v25 = vsel %vm418_vm0, %v293_v3, 0.0  ;;  %v294_v58 = vld [vmem:[%s13280_s0 + $0x820] sm:$0xff] }
 0x202   :  { %v1199_v3 = vsel %vm418_vm0, %v294_v58, 0.0  ;;  %v299_v58 = vld [vmem:[%s13280_s0 + $0x848] sm:$0xff] }
 0x203   :  { %1191 = vadd.xlane.f32.xlu1 %v1190_v59  ;;  %1188 = vadd.xlane.f32.xlu0 %v1187_v42 }
 0x204   :  { %v8633_v24 = vpop.xlane.xlu1 %987  ;;  %v8635_v2 = vpop.xlane.xlu0 %984 }
 0x205   :  { %13656 = vst [vmem:[#allocation166_spill] sm:$0xff] %v8633_v24  ;;  %13657 = vst [vmem:[#allocation167_spill] sm:$0xff] %v8635_v2  ;;  %v1202_v2 = vsel %vm418_vm0, %v295_v43, 0.0  ;;  %v296_v24 = vld [vmem:[%s13280_s0 + $0x830] sm:$0xff] }
 0x206   :  { %v1205_v43 = vsel %vm418_vm0, %v296_v24, 0.0  ;;  %v301_v24 = vld [vmem:[%s13280_s0 + $0x858] sm:$0xff] }
 0x207   :  { %1197 = vadd.xlane.f32.xlu1 %v1196_v25  ;;  %1194 = vadd.xlane.f32.xlu0 %v1193_v16 }
 0x208   :  { %v8645_v59 = vpop.xlane.xlu1 %993  ;;  %v8647_v42 = vpop.xlane.xlu0 %990 }
 0x209   :  { %13658 = vst [vmem:[#allocation168_spill] sm:$0xff] %v8645_v59  ;;  %13659 = vst [vmem:[#allocation169_spill] sm:$0xff] %v8647_v42  ;;  %v1208_v42 = vsel %vm418_vm0, %v297_v17, 0.0  ;;  %v298_v59 = vld [vmem:[%s13280_s0 + $0x840] sm:$0xff] }
 0x20a   :  { %v1211_v17 = vsel %vm418_vm0, %v298_v59, 0.0  ;;  %v303_v59 = vld [vmem:[%s13280_s0 + $0x868] sm:$0xff] }
 0x20b   :  { %1203 = vadd.xlane.f32.xlu1 %v1202_v2  ;;  %1200 = vadd.xlane.f32.xlu0 %v1199_v3 }
 0x20c   :  { %v8657_v25 = vpop.xlane.xlu1 %999  ;;  %v8659_v16 = vpop.xlane.xlu0 %996 }
 0x20d   :  { %13660 = vst [vmem:[#allocation170_spill] sm:$0xff] %v8657_v25  ;;  %13661 = vst [vmem:[#allocation171_spill] sm:$0xff] %v8659_v16  ;;  %v1214_v16 = vsel %vm418_vm0, %v299_v58, 0.0  ;;  %v300_v25 = vld [vmem:[%s13280_s0 + $0x850] sm:$0xff] }
 0x20e   :  { %v1217_v58 = vsel %vm418_vm0, %v300_v25, 0.0  ;;  %v305_v25 = vld [vmem:[%s13280_s0 + $0x878] sm:$0xff] }
 0x20f   :  { %1209 = vadd.xlane.f32.xlu1 %v1208_v42  ;;  %1206 = vadd.xlane.f32.xlu0 %v1205_v43 }
 0x210   :  { %v8669_v2 = vpop.xlane.xlu1 %1005  ;;  %v8671_v3 = vpop.xlane.xlu0 %1002 }
 0x211   :  { %13662 = vst [vmem:[#allocation172_spill] sm:$0xff] %v8669_v2  ;;  %13663 = vst [vmem:[#allocation173_spill] sm:$0xff] %v8671_v3  ;;  %v1220_v3 = vsel %vm418_vm0, %v301_v24, 0.0  ;;  %v302_v2 = vld [vmem:[%s13280_s0 + $0x860] sm:$0xff] }
 0x212   :  { %v1223_v24 = vsel %vm418_vm0, %v302_v2, 0.0  ;;  %v307_v2 = vld [vmem:[%s13280_s0 + $0x888] sm:$0xff] }
 0x213   :  { %1215 = vadd.xlane.f32.xlu1 %v1214_v16  ;;  %1212 = vadd.xlane.f32.xlu0 %v1211_v17 }
 0x214   :  { %v8681_v42 = vpop.xlane.xlu1 %1011  ;;  %v8683_v43 = vpop.xlane.xlu0 %1008 }
 0x215   :  { %13664 = vst [vmem:[#allocation174_spill] sm:$0xff] %v8681_v42  ;;  %13665 = vst [vmem:[#allocation175_spill] sm:$0xff] %v8683_v43  ;;  %v1226_v43 = vsel %vm418_vm0, %v303_v59, 0.0  ;;  %v304_v42 = vld [vmem:[%s13280_s0 + $0x870] sm:$0xff] }
 0x216   :  { %v1229_v59 = vsel %vm418_vm0, %v304_v42, 0.0  ;;  %v309_v42 = vld [vmem:[%s13280_s0 + $0x898] sm:$0xff] }
 0x217   :  { %1221 = vadd.xlane.f32.xlu1 %v1220_v3  ;;  %1218 = vadd.xlane.f32.xlu0 %v1217_v58 }
 0x218   :  { %v8693_v16 = vpop.xlane.xlu1 %1017  ;;  %v8695_v17 = vpop.xlane.xlu0 %1014 }
 0x219   :  { %13666 = vst [vmem:[#allocation176_spill] sm:$0xff] %v8693_v16  ;;  %13667 = vst [vmem:[#allocation177_spill] sm:$0xff] %v8695_v17  ;;  %v1232_v17 = vsel %vm418_vm0, %v305_v25, 0.0  ;;  %v306_v16 = vld [vmem:[%s13280_s0 + $0x880] sm:$0xff] }
 0x21a   :  { %v1235_v25 = vsel %vm418_vm0, %v306_v16, 0.0  ;;  %v311_v16 = vld [vmem:[%s13280_s0 + $0x8a8] sm:$0xff] }
 0x21b   :  { %1227 = vadd.xlane.f32.xlu1 %v1226_v43  ;;  %1224 = vadd.xlane.f32.xlu0 %v1223_v24 }
 0x21c   :  { %v8705_v3 = vpop.xlane.xlu1 %1023  ;;  %v8707_v58 = vpop.xlane.xlu0 %1020 }
 0x21d   :  { %13668 = vst [vmem:[#allocation178_spill] sm:$0xff] %v8705_v3  ;;  %13669 = vst [vmem:[#allocation179_spill] sm:$0xff] %v8707_v58  ;;  %v1238_v58 = vsel %vm418_vm0, %v307_v2, 0.0  ;;  %v308_v3 = vld [vmem:[%s13280_s0 + $0x890] sm:$0xff] }
 0x21e   :  { %v1241_v2 = vsel %vm418_vm0, %v308_v3, 0.0  ;;  %v313_v3 = vld [vmem:[%s13280_s0 + $0x8b8] sm:$0xff] }
 0x21f   :  { %1233 = vadd.xlane.f32.xlu1 %v1232_v17  ;;  %1230 = vadd.xlane.f32.xlu0 %v1229_v59 }
 0x220   :  { %v8717_v43 = vpop.xlane.xlu1 %1029  ;;  %v8719_v24 = vpop.xlane.xlu0 %1026 }
 0x221   :  { %13670 = vst [vmem:[#allocation180_spill] sm:$0xff] %v8717_v43  ;;  %13671 = vst [vmem:[#allocation181_spill] sm:$0xff] %v8719_v24  ;;  %v1244_v24 = vsel %vm418_vm0, %v309_v42, 0.0  ;;  %v310_v43 = vld [vmem:[%s13280_s0 + $0x8a0] sm:$0xff] }
 0x222   :  { %v1247_v42 = vsel %vm418_vm0, %v310_v43, 0.0  ;;  %v315_v43 = vld [vmem:[%s13280_s0 + $0x8c8] sm:$0xff] }
 0x223   :  { %1239 = vadd.xlane.f32.xlu1 %v1238_v58  ;;  %1236 = vadd.xlane.f32.xlu0 %v1235_v25 }
 0x224   :  { %v8729_v17 = vpop.xlane.xlu1 %1035  ;;  %v8731_v59 = vpop.xlane.xlu0 %1032 }
 0x225   :  { %13672 = vst [vmem:[#allocation182_spill] sm:$0xff] %v8729_v17  ;;  %13673 = vst [vmem:[#allocation183_spill] sm:$0xff] %v8731_v59  ;;  %v1250_v59 = vsel %vm418_vm0, %v311_v16, 0.0  ;;  %v312_v17 = vld [vmem:[%s13280_s0 + $0x8b0] sm:$0xff] }
 0x226   :  { %v1253_v16 = vsel %vm418_vm0, %v312_v17, 0.0  ;;  %v317_v17 = vld [vmem:[%s13280_s0 + $0x8d8] sm:$0xff] }
 0x227   :  { %1245 = vadd.xlane.f32.xlu1 %v1244_v24  ;;  %1242 = vadd.xlane.f32.xlu0 %v1241_v2 }
 0x228   :  { %v8741_v58 = vpop.xlane.xlu1 %1041  ;;  %v8743_v25 = vpop.xlane.xlu0 %1038 }
 0x229   :  { %13674 = vst [vmem:[#allocation184_spill] sm:$0xff] %v8741_v58  ;;  %13675 = vst [vmem:[#allocation185_spill] sm:$0xff] %v8743_v25  ;;  %v1256_v25 = vsel %vm418_vm0, %v313_v3, 0.0  ;;  %v314_v58 = vld [vmem:[%s13280_s0 + $0x8c0] sm:$0xff] }
 0x22a   :  { %v1259_v3 = vsel %vm418_vm0, %v314_v58, 0.0  ;;  %v319_v58 = vld [vmem:[%s13280_s0 + $0x8e8] sm:$0xff] }
 0x22b   :  { %1251 = vadd.xlane.f32.xlu1 %v1250_v59  ;;  %1248 = vadd.xlane.f32.xlu0 %v1247_v42 }
 0x22c   :  { %v8753_v24 = vpop.xlane.xlu1 %1047  ;;  %v8755_v2 = vpop.xlane.xlu0 %1044 }
 0x22d   :  { %13676 = vst [vmem:[#allocation186_spill] sm:$0xff] %v8753_v24  ;;  %13677 = vst [vmem:[#allocation187_spill] sm:$0xff] %v8755_v2  ;;  %v1262_v2 = vsel %vm418_vm0, %v315_v43, 0.0  ;;  %v316_v24 = vld [vmem:[%s13280_s0 + $0x8d0] sm:$0xff] }
 0x22e   :  { %v1265_v43 = vsel %vm418_vm0, %v316_v24, 0.0  ;;  %v321_v24 = vld [vmem:[%s13280_s0 + $0x8f8] sm:$0xff] }
 0x22f   :  { %1257 = vadd.xlane.f32.xlu1 %v1256_v25  ;;  %1254 = vadd.xlane.f32.xlu0 %v1253_v16 }
 0x230   :  { %v8765_v59 = vpop.xlane.xlu1 %1053  ;;  %v8767_v42 = vpop.xlane.xlu0 %1050 }
 0x231   :  { %13678 = vst [vmem:[#allocation188_spill] sm:$0xff] %v8765_v59  ;;  %13679 = vst [vmem:[#allocation189_spill] sm:$0xff] %v8767_v42  ;;  %v1268_v42 = vsel %vm418_vm0, %v317_v17, 0.0  ;;  %v318_v59 = vld [vmem:[%s13280_s0 + $0x8e0] sm:$0xff] }
 0x232   :  { %v1271_v17 = vsel %vm418_vm0, %v318_v59, 0.0  ;;  %v323_v59 = vld [vmem:[%s13280_s0 + $0x908] sm:$0xff] }
 0x233   :  { %1263 = vadd.xlane.f32.xlu1 %v1262_v2  ;;  %1260 = vadd.xlane.f32.xlu0 %v1259_v3 }
 0x234   :  { %v8777_v25 = vpop.xlane.xlu1 %1059  ;;  %v8779_v16 = vpop.xlane.xlu0 %1056 }
 0x235   :  { %13680 = vst [vmem:[#allocation190_spill] sm:$0xff] %v8777_v25  ;;  %13681 = vst [vmem:[#allocation191_spill] sm:$0xff] %v8779_v16  ;;  %v1274_v16 = vsel %vm418_vm0, %v319_v58, 0.0  ;;  %v320_v25 = vld [vmem:[%s13280_s0 + $0x8f0] sm:$0xff] }
 0x236   :  { %v1277_v58 = vsel %vm418_vm0, %v320_v25, 0.0  ;;  %v325_v25 = vld [vmem:[%s13280_s0 + $0x918] sm:$0xff] }
 0x237   :  { %1269 = vadd.xlane.f32.xlu1 %v1268_v42  ;;  %1266 = vadd.xlane.f32.xlu0 %v1265_v43 }
 0x238   :  { %v8789_v2 = vpop.xlane.xlu1 %1065  ;;  %v8791_v3 = vpop.xlane.xlu0 %1062 }
 0x239   :  { %13682 = vst [vmem:[#allocation192_spill] sm:$0xff] %v8789_v2  ;;  %13683 = vst [vmem:[#allocation193_spill] sm:$0xff] %v8791_v3  ;;  %v1280_v3 = vsel %vm418_vm0, %v321_v24, 0.0  ;;  %v322_v2 = vld [vmem:[%s13280_s0 + $0x900] sm:$0xff] }
 0x23a   :  { %v1283_v24 = vsel %vm418_vm0, %v322_v2, 0.0  ;;  %v327_v2 = vld [vmem:[%s13280_s0 + $0x928] sm:$0xff] }
 0x23b   :  { %1275 = vadd.xlane.f32.xlu1 %v1274_v16  ;;  %1272 = vadd.xlane.f32.xlu0 %v1271_v17 }
 0x23c   :  { %v8801_v42 = vpop.xlane.xlu1 %1071  ;;  %v8803_v43 = vpop.xlane.xlu0 %1068 }
 0x23d   :  { %13684 = vst [vmem:[#allocation194_spill] sm:$0xff] %v8801_v42  ;;  %13685 = vst [vmem:[#allocation195_spill] sm:$0xff] %v8803_v43  ;;  %v1286_v43 = vsel %vm418_vm0, %v323_v59, 0.0  ;;  %v324_v42 = vld [vmem:[%s13280_s0 + $0x910] sm:$0xff] }
 0x23e   :  { %v1289_v59 = vsel %vm418_vm0, %v324_v42, 0.0  ;;  %v329_v42 = vld [vmem:[%s13280_s0 + $0x938] sm:$0xff] }
 0x23f   :  { %1281 = vadd.xlane.f32.xlu1 %v1280_v3  ;;  %1278 = vadd.xlane.f32.xlu0 %v1277_v58 }
 0x240   :  { %v8813_v16 = vpop.xlane.xlu1 %1077  ;;  %v8815_v17 = vpop.xlane.xlu0 %1074 }
 0x241   :  { %13686 = vst [vmem:[#allocation196_spill] sm:$0xff] %v8813_v16  ;;  %13687 = vst [vmem:[#allocation197_spill] sm:$0xff] %v8815_v17  ;;  %v1292_v17 = vsel %vm418_vm0, %v325_v25, 0.0  ;;  %v326_v16 = vld [vmem:[%s13280_s0 + $0x920] sm:$0xff] }
 0x242   :  { %v1295_v25 = vsel %vm418_vm0, %v326_v16, 0.0  ;;  %v331_v16 = vld [vmem:[%s13280_s0 + $0x948] sm:$0xff] }
 0x243   :  { %1287 = vadd.xlane.f32.xlu1 %v1286_v43  ;;  %1284 = vadd.xlane.f32.xlu0 %v1283_v24 }
 0x244   :  { %v8825_v3 = vpop.xlane.xlu1 %1083  ;;  %v8827_v58 = vpop.xlane.xlu0 %1080 }
 0x245   :  { %13688 = vst [vmem:[#allocation198_spill] sm:$0xff] %v8825_v3  ;;  %13689 = vst [vmem:[#allocation199_spill] sm:$0xff] %v8827_v58  ;;  %v1298_v58 = vsel %vm418_vm0, %v327_v2, 0.0  ;;  %v328_v3 = vld [vmem:[%s13280_s0 + $0x930] sm:$0xff] }
 0x246   :  { %v1301_v2 = vsel %vm418_vm0, %v328_v3, 0.0  ;;  %v333_v3 = vld [vmem:[%s13280_s0 + $0x958] sm:$0xff] }
 0x247   :  { %1293 = vadd.xlane.f32.xlu1 %v1292_v17  ;;  %1290 = vadd.xlane.f32.xlu0 %v1289_v59 }
 0x248   :  { %v8837_v43 = vpop.xlane.xlu1 %1089  ;;  %v8839_v24 = vpop.xlane.xlu0 %1086 }
 0x249   :  { %13690 = vst [vmem:[#allocation200_spill] sm:$0xff] %v8837_v43  ;;  %13691 = vst [vmem:[#allocation201_spill] sm:$0xff] %v8839_v24  ;;  %v1304_v24 = vsel %vm418_vm0, %v329_v42, 0.0  ;;  %v330_v43 = vld [vmem:[%s13280_s0 + $0x940] sm:$0xff] }
 0x24a   :  { %v1307_v42 = vsel %vm418_vm0, %v330_v43, 0.0  ;;  %v335_v43 = vld [vmem:[%s13280_s0 + $0x968] sm:$0xff] }
 0x24b   :  { %1299 = vadd.xlane.f32.xlu1 %v1298_v58  ;;  %1296 = vadd.xlane.f32.xlu0 %v1295_v25 }
 0x24c   :  { %v8849_v17 = vpop.xlane.xlu1 %1095  ;;  %v8851_v59 = vpop.xlane.xlu0 %1092 }
 0x24d   :  { %13692 = vst [vmem:[#allocation202_spill] sm:$0xff] %v8849_v17  ;;  %13693 = vst [vmem:[#allocation203_spill] sm:$0xff] %v8851_v59  ;;  %v1310_v59 = vsel %vm418_vm0, %v331_v16, 0.0  ;;  %v332_v17 = vld [vmem:[%s13280_s0 + $0x950] sm:$0xff] }
 0x24e   :  { %v1313_v16 = vsel %vm418_vm0, %v332_v17, 0.0  ;;  %v337_v17 = vld [vmem:[%s13280_s0 + $0x978] sm:$0xff] }
 0x24f   :  { %1305 = vadd.xlane.f32.xlu1 %v1304_v24  ;;  %1302 = vadd.xlane.f32.xlu0 %v1301_v2 }
 0x250   :  { %v8861_v58 = vpop.xlane.xlu1 %1101  ;;  %v8863_v25 = vpop.xlane.xlu0 %1098 }
 0x251   :  { %13694 = vst [vmem:[#allocation204_spill] sm:$0xff] %v8861_v58  ;;  %13695 = vst [vmem:[#allocation205_spill] sm:$0xff] %v8863_v25  ;;  %v1316_v25 = vsel %vm418_vm0, %v333_v3, 0.0  ;;  %v334_v58 = vld [vmem:[%s13280_s0 + $0x960] sm:$0xff] }
 0x252   :  { %v1319_v3 = vsel %vm418_vm0, %v334_v58, 0.0  ;;  %v339_v58 = vld [vmem:[%s13280_s0 + $0x988] sm:$0xff] }
 0x253   :  { %1311 = vadd.xlane.f32.xlu1 %v1310_v59  ;;  %1308 = vadd.xlane.f32.xlu0 %v1307_v42 }
 0x254   :  { %v8873_v24 = vpop.xlane.xlu1 %1107  ;;  %v8875_v2 = vpop.xlane.xlu0 %1104 }
 0x255   :  { %13696 = vst [vmem:[#allocation206_spill] sm:$0xff] %v8873_v24  ;;  %13697 = vst [vmem:[#allocation207_spill] sm:$0xff] %v8875_v2  ;;  %v1322_v2 = vsel %vm418_vm0, %v335_v43, 0.0  ;;  %v336_v24 = vld [vmem:[%s13280_s0 + $0x970] sm:$0xff] }
 0x256   :  { %v1325_v43 = vsel %vm418_vm0, %v336_v24, 0.0  ;;  %v341_v24 = vld [vmem:[%s13280_s0 + $0x998] sm:$0xff] }
 0x257   :  { %1317 = vadd.xlane.f32.xlu1 %v1316_v25  ;;  %1314 = vadd.xlane.f32.xlu0 %v1313_v16 }
 0x258   :  { %v8885_v59 = vpop.xlane.xlu1 %1113  ;;  %v8887_v42 = vpop.xlane.xlu0 %1110 }
 0x259   :  { %13698 = vst [vmem:[#allocation208_spill] sm:$0xff] %v8885_v59  ;;  %13699 = vst [vmem:[#allocation209_spill] sm:$0xff] %v8887_v42  ;;  %v1328_v42 = vsel %vm418_vm0, %v337_v17, 0.0  ;;  %v338_v59 = vld [vmem:[%s13280_s0 + $0x980] sm:$0xff] }
 0x25a   :  { %v1331_v17 = vsel %vm418_vm0, %v338_v59, 0.0  ;;  %v343_v59 = vld [vmem:[%s13280_s0 + $0x9a8] sm:$0xff] }
 0x25b   :  { %1323 = vadd.xlane.f32.xlu1 %v1322_v2  ;;  %1320 = vadd.xlane.f32.xlu0 %v1319_v3 }
 0x25c   :  { %v8897_v25 = vpop.xlane.xlu1 %1119  ;;  %v8899_v16 = vpop.xlane.xlu0 %1116 }
 0x25d   :  { %13700 = vst [vmem:[#allocation210_spill] sm:$0xff] %v8897_v25  ;;  %13701 = vst [vmem:[#allocation211_spill] sm:$0xff] %v8899_v16  ;;  %v1334_v16 = vsel %vm418_vm0, %v339_v58, 0.0  ;;  %v340_v25 = vld [vmem:[%s13280_s0 + $0x990] sm:$0xff] }
 0x25e   :  { %v1337_v58 = vsel %vm418_vm0, %v340_v25, 0.0  ;;  %v345_v25 = vld [vmem:[%s13280_s0 + $0x9b8] sm:$0xff] }
 0x25f   :  { %1329 = vadd.xlane.f32.xlu1 %v1328_v42  ;;  %1326 = vadd.xlane.f32.xlu0 %v1325_v43 }
 0x260   :  { %v8909_v2 = vpop.xlane.xlu1 %1125  ;;  %v8911_v3 = vpop.xlane.xlu0 %1122 }
 0x261   :  { %13702 = vst [vmem:[#allocation212_spill] sm:$0xff] %v8909_v2  ;;  %13703 = vst [vmem:[#allocation213_spill] sm:$0xff] %v8911_v3  ;;  %v1340_v3 = vsel %vm418_vm0, %v341_v24, 0.0  ;;  %v342_v2 = vld [vmem:[%s13280_s0 + $0x9a0] sm:$0xff] }
 0x262   :  { %v1343_v24 = vsel %vm418_vm0, %v342_v2, 0.0  ;;  %v347_v2 = vld [vmem:[%s13280_s0 + $0x9c8] sm:$0xff] }
 0x263   :  { %1335 = vadd.xlane.f32.xlu1 %v1334_v16  ;;  %1332 = vadd.xlane.f32.xlu0 %v1331_v17 }
 0x264   :  { %v8921_v42 = vpop.xlane.xlu1 %1131  ;;  %v8923_v43 = vpop.xlane.xlu0 %1128 }
 0x265   :  { %13704 = vst [vmem:[#allocation214_spill] sm:$0xff] %v8921_v42  ;;  %13705 = vst [vmem:[#allocation215_spill] sm:$0xff] %v8923_v43  ;;  %v1346_v43 = vsel %vm418_vm0, %v343_v59, 0.0  ;;  %v344_v42 = vld [vmem:[%s13280_s0 + $0x9b0] sm:$0xff] }
 0x266   :  { %v1349_v59 = vsel %vm418_vm0, %v344_v42, 0.0  ;;  %v349_v42 = vld [vmem:[%s13280_s0 + $0x9d8] sm:$0xff] }
 0x267   :  { %1341 = vadd.xlane.f32.xlu1 %v1340_v3  ;;  %1338 = vadd.xlane.f32.xlu0 %v1337_v58 }
 0x268   :  { %v8933_v16 = vpop.xlane.xlu1 %1137  ;;  %v8935_v17 = vpop.xlane.xlu0 %1134 }
 0x269   :  { %13706 = vst [vmem:[#allocation216_spill] sm:$0xff] %v8933_v16  ;;  %13707 = vst [vmem:[#allocation217_spill] sm:$0xff] %v8935_v17  ;;  %v1352_v17 = vsel %vm418_vm0, %v345_v25, 0.0  ;;  %v346_v16 = vld [vmem:[%s13280_s0 + $0x9c0] sm:$0xff] }
 0x26a   :  { %v1355_v25 = vsel %vm418_vm0, %v346_v16, 0.0  ;;  %v351_v16 = vld [vmem:[%s13280_s0 + $0x9e8] sm:$0xff] }
 0x26b   :  { %1347 = vadd.xlane.f32.xlu1 %v1346_v43  ;;  %1344 = vadd.xlane.f32.xlu0 %v1343_v24 }
 0x26c   :  { %v8945_v3 = vpop.xlane.xlu1 %1143  ;;  %v8947_v58 = vpop.xlane.xlu0 %1140 }
 0x26d   :  { %13708 = vst [vmem:[#allocation218_spill] sm:$0xff] %v8945_v3  ;;  %13709 = vst [vmem:[#allocation219_spill] sm:$0xff] %v8947_v58  ;;  %v1358_v58 = vsel %vm418_vm0, %v347_v2, 0.0  ;;  %v348_v3 = vld [vmem:[%s13280_s0 + $0x9d0] sm:$0xff] }
 0x26e   :  { %v1361_v2 = vsel %vm418_vm0, %v348_v3, 0.0  ;;  %v353_v3 = vld [vmem:[%s13280_s0 + $0x9f8] sm:$0xff] }
 0x26f   :  { %1353 = vadd.xlane.f32.xlu1 %v1352_v17  ;;  %1350 = vadd.xlane.f32.xlu0 %v1349_v59 }
 0x270   :  { %v8957_v43 = vpop.xlane.xlu1 %1149  ;;  %v8959_v24 = vpop.xlane.xlu0 %1146 }
 0x271   :  { %13710 = vst [vmem:[#allocation220_spill] sm:$0xff] %v8957_v43  ;;  %13711 = vst [vmem:[#allocation221_spill] sm:$0xff] %v8959_v24  ;;  %v1364_v24 = vsel %vm418_vm0, %v349_v42, 0.0  ;;  %v350_v43 = vld [vmem:[%s13280_s0 + $0x9e0] sm:$0xff] }
 0x272   :  { %v1367_v42 = vsel %vm418_vm0, %v350_v43, 0.0  ;;  %v355_v43 = vld [vmem:[%s13280_s0 + $0xa08] sm:$0xff] }
 0x273   :  { %1359 = vadd.xlane.f32.xlu1 %v1358_v58  ;;  %1356 = vadd.xlane.f32.xlu0 %v1355_v25 }
 0x274   :  { %v8969_v17 = vpop.xlane.xlu1 %1155  ;;  %v8971_v59 = vpop.xlane.xlu0 %1152 }
 0x275   :  { %13712 = vst [vmem:[#allocation222_spill] sm:$0xff] %v8969_v17  ;;  %13713 = vst [vmem:[#allocation223_spill] sm:$0xff] %v8971_v59  ;;  %v1370_v59 = vsel %vm418_vm0, %v351_v16, 0.0  ;;  %v352_v17 = vld [vmem:[%s13280_s0 + $0x9f0] sm:$0xff] }
 0x276   :  { %v1373_v16 = vsel %vm418_vm0, %v352_v17, 0.0  ;;  %v357_v17 = vld [vmem:[%s13280_s0 + $0xa18] sm:$0xff] }
 0x277   :  { %1365 = vadd.xlane.f32.xlu1 %v1364_v24  ;;  %1362 = vadd.xlane.f32.xlu0 %v1361_v2 }
 0x278   :  { %v8981_v58 = vpop.xlane.xlu1 %1161  ;;  %v8983_v25 = vpop.xlane.xlu0 %1158 }
 0x279   :  { %13714 = vst [vmem:[#allocation224_spill] sm:$0xff] %v8981_v58  ;;  %13715 = vst [vmem:[#allocation225_spill] sm:$0xff] %v8983_v25  ;;  %v1376_v25 = vsel %vm418_vm0, %v353_v3, 0.0  ;;  %v354_v58 = vld [vmem:[%s13280_s0 + $0xa00] sm:$0xff] }
 0x27a   :  { %v1379_v3 = vsel %vm418_vm0, %v354_v58, 0.0  ;;  %v359_v58 = vld [vmem:[%s13280_s0 + $0xa28] sm:$0xff] }
 0x27b   :  { %1371 = vadd.xlane.f32.xlu1 %v1370_v59  ;;  %1368 = vadd.xlane.f32.xlu0 %v1367_v42 }
 0x27c   :  { %v8993_v24 = vpop.xlane.xlu1 %1167  ;;  %v8995_v2 = vpop.xlane.xlu0 %1164 }
 0x27d   :  { %13716 = vst [vmem:[#allocation226_spill] sm:$0xff] %v8993_v24  ;;  %13717 = vst [vmem:[#allocation227_spill] sm:$0xff] %v8995_v2  ;;  %v1382_v2 = vsel %vm418_vm0, %v355_v43, 0.0  ;;  %v356_v24 = vld [vmem:[%s13280_s0 + $0xa10] sm:$0xff] }
 0x27e   :  { %v1385_v43 = vsel %vm418_vm0, %v356_v24, 0.0  ;;  %v361_v24 = vld [vmem:[%s13280_s0 + $0xa38] sm:$0xff] }
 0x27f   :  { %1377 = vadd.xlane.f32.xlu1 %v1376_v25  ;;  %1374 = vadd.xlane.f32.xlu0 %v1373_v16 }
 0x280   :  { %v9005_v59 = vpop.xlane.xlu1 %1173  ;;  %v9007_v42 = vpop.xlane.xlu0 %1170 }
 0x281   :  { %13718 = vst [vmem:[#allocation228_spill] sm:$0xff] %v9005_v59  ;;  %13719 = vst [vmem:[#allocation229_spill] sm:$0xff] %v9007_v42  ;;  %v1388_v42 = vsel %vm418_vm0, %v357_v17, 0.0  ;;  %v358_v59 = vld [vmem:[%s13280_s0 + $0xa20] sm:$0xff] }
 0x282   :  { %v1391_v17 = vsel %vm418_vm0, %v358_v59, 0.0  ;;  %v363_v59 = vld [vmem:[%s13280_s0 + $0xa48] sm:$0xff] }
 0x283   :  { %1383 = vadd.xlane.f32.xlu1 %v1382_v2  ;;  %1380 = vadd.xlane.f32.xlu0 %v1379_v3 }
 0x284   :  { %v9017_v25 = vpop.xlane.xlu1 %1179  ;;  %v9019_v16 = vpop.xlane.xlu0 %1176 }
 0x285   :  { %13720 = vst [vmem:[#allocation230_spill] sm:$0xff] %v9017_v25  ;;  %13721 = vst [vmem:[#allocation231_spill] sm:$0xff] %v9019_v16  ;;  %v1394_v16 = vsel %vm418_vm0, %v359_v58, 0.0  ;;  %v360_v25 = vld [vmem:[%s13280_s0 + $0xa30] sm:$0xff] }
 0x286   :  { %v1397_v58 = vsel %vm418_vm0, %v360_v25, 0.0  ;;  %v365_v25 = vld [vmem:[%s13280_s0 + $0xa58] sm:$0xff] }
 0x287   :  { %1389 = vadd.xlane.f32.xlu1 %v1388_v42  ;;  %1386 = vadd.xlane.f32.xlu0 %v1385_v43 }
 0x288   :  { %v9029_v2 = vpop.xlane.xlu1 %1185  ;;  %v9031_v3 = vpop.xlane.xlu0 %1182 }
 0x289   :  { %13722 = vst [vmem:[#allocation232_spill] sm:$0xff] %v9029_v2  ;;  %13723 = vst [vmem:[#allocation233_spill] sm:$0xff] %v9031_v3  ;;  %v1400_v3 = vsel %vm418_vm0, %v361_v24, 0.0  ;;  %v362_v2 = vld [vmem:[%s13280_s0 + $0xa40] sm:$0xff] }
 0x28a   :  { %v1403_v24 = vsel %vm418_vm0, %v362_v2, 0.0  ;;  %v367_v2 = vld [vmem:[%s13280_s0 + $0xa68] sm:$0xff] }
 0x28b   :  { %1395 = vadd.xlane.f32.xlu1 %v1394_v16  ;;  %1392 = vadd.xlane.f32.xlu0 %v1391_v17 }
 0x28c   :  { %v9041_v42 = vpop.xlane.xlu1 %1191  ;;  %v9043_v43 = vpop.xlane.xlu0 %1188 }
 0x28d   :  { %13724 = vst [vmem:[#allocation234_spill] sm:$0xff] %v9041_v42  ;;  %13725 = vst [vmem:[#allocation235_spill] sm:$0xff] %v9043_v43  ;;  %v1406_v43 = vsel %vm418_vm0, %v363_v59, 0.0  ;;  %v364_v42 = vld [vmem:[%s13280_s0 + $0xa50] sm:$0xff] }
 0x28e   :  { %v1409_v59 = vsel %vm418_vm0, %v364_v42, 0.0  ;;  %v369_v42 = vld [vmem:[%s13280_s0 + $0xa78] sm:$0xff] }
 0x28f   :  { %1401 = vadd.xlane.f32.xlu1 %v1400_v3  ;;  %1398 = vadd.xlane.f32.xlu0 %v1397_v58 }
 0x290   :  { %v9053_v16 = vpop.xlane.xlu1 %1197  ;;  %v9055_v17 = vpop.xlane.xlu0 %1194 }
 0x291   :  { %13726 = vst [vmem:[#allocation236_spill] sm:$0xff] %v9053_v16  ;;  %13727 = vst [vmem:[#allocation237_spill] sm:$0xff] %v9055_v17  ;;  %v1412_v17 = vsel %vm418_vm0, %v365_v25, 0.0  ;;  %v366_v16 = vld [vmem:[%s13280_s0 + $0xa60] sm:$0xff] }
 0x292   :  { %v1415_v25 = vsel %vm418_vm0, %v366_v16, 0.0  ;;  %v371_v16 = vld [vmem:[%s13280_s0 + $0xa88] sm:$0xff] }
 0x293   :  { %1407 = vadd.xlane.f32.xlu1 %v1406_v43  ;;  %1404 = vadd.xlane.f32.xlu0 %v1403_v24 }
 0x294   :  { %v9065_v3 = vpop.xlane.xlu1 %1203  ;;  %v9067_v58 = vpop.xlane.xlu0 %1200 }
 0x295   :  { %13728 = vst [vmem:[#allocation238_spill] sm:$0xff] %v9065_v3  ;;  %13729 = vst [vmem:[#allocation239_spill] sm:$0xff] %v9067_v58  ;;  %v1418_v58 = vsel %vm418_vm0, %v367_v2, 0.0  ;;  %v368_v3 = vld [vmem:[%s13280_s0 + $0xa70] sm:$0xff] }
 0x296   :  { %v1421_v2 = vsel %vm418_vm0, %v368_v3, 0.0  ;;  %v373_v3 = vld [vmem:[%s13280_s0 + $0xa98] sm:$0xff] }
 0x297   :  { %1413 = vadd.xlane.f32.xlu1 %v1412_v17  ;;  %1410 = vadd.xlane.f32.xlu0 %v1409_v59 }
 0x298   :  { %v9077_v43 = vpop.xlane.xlu1 %1209  ;;  %v9079_v24 = vpop.xlane.xlu0 %1206 }
 0x299   :  { %13730 = vst [vmem:[#allocation240_spill] sm:$0xff] %v9077_v43  ;;  %13731 = vst [vmem:[#allocation241_spill] sm:$0xff] %v9079_v24  ;;  %v1424_v24 = vsel %vm418_vm0, %v369_v42, 0.0  ;;  %v370_v43 = vld [vmem:[%s13280_s0 + $0xa80] sm:$0xff] }
 0x29a   :  { %v1427_v42 = vsel %vm418_vm0, %v370_v43, 0.0  ;;  %v375_v43 = vld [vmem:[%s13280_s0 + $0xaa8] sm:$0xff] }
 0x29b   :  { %1419 = vadd.xlane.f32.xlu1 %v1418_v58  ;;  %1416 = vadd.xlane.f32.xlu0 %v1415_v25 }
 0x29c   :  { %v9089_v17 = vpop.xlane.xlu1 %1215  ;;  %v9091_v59 = vpop.xlane.xlu0 %1212 }
 0x29d   :  { %13732 = vst [vmem:[#allocation242_spill] sm:$0xff] %v9089_v17  ;;  %13733 = vst [vmem:[#allocation243_spill] sm:$0xff] %v9091_v59  ;;  %v1430_v59 = vsel %vm418_vm0, %v371_v16, 0.0  ;;  %v372_v17 = vld [vmem:[%s13280_s0 + $0xa90] sm:$0xff] }
 0x29e   :  { %v1433_v16 = vsel %vm418_vm0, %v372_v17, 0.0  ;;  %v377_v17 = vld [vmem:[%s13280_s0 + $0xab8] sm:$0xff] }
 0x29f   :  { %1425 = vadd.xlane.f32.xlu1 %v1424_v24  ;;  %1422 = vadd.xlane.f32.xlu0 %v1421_v2 }
 0x2a0   :  { %v9101_v58 = vpop.xlane.xlu1 %1221  ;;  %v9103_v25 = vpop.xlane.xlu0 %1218 }
 0x2a1   :  { %13734 = vst [vmem:[#allocation244_spill] sm:$0xff] %v9101_v58  ;;  %13735 = vst [vmem:[#allocation245_spill] sm:$0xff] %v9103_v25  ;;  %v1436_v25 = vsel %vm418_vm0, %v373_v3, 0.0  ;;  %v374_v58 = vld [vmem:[%s13280_s0 + $0xaa0] sm:$0xff] }
 0x2a2   :  { %v1439_v3 = vsel %vm418_vm0, %v374_v58, 0.0  ;;  %v379_v58 = vld [vmem:[%s13280_s0 + $0xac8] sm:$0xff] }
 0x2a3   :  { %1431 = vadd.xlane.f32.xlu1 %v1430_v59  ;;  %1428 = vadd.xlane.f32.xlu0 %v1427_v42 }
 0x2a4   :  { %v9113_v24 = vpop.xlane.xlu1 %1227  ;;  %v9115_v2 = vpop.xlane.xlu0 %1224 }
 0x2a5   :  { %13736 = vst [vmem:[#allocation246_spill] sm:$0xff] %v9113_v24  ;;  %13737 = vst [vmem:[#allocation247_spill] sm:$0xff] %v9115_v2  ;;  %v1442_v2 = vsel %vm418_vm0, %v375_v43, 0.0  ;;  %v376_v24 = vld [vmem:[%s13280_s0 + $0xab0] sm:$0xff] }
 0x2a6   :  { %v1445_v43 = vsel %vm418_vm0, %v376_v24, 0.0  ;;  %v381_v24 = vld [vmem:[%s13280_s0 + $0xad8] sm:$0xff] }
 0x2a7   :  { %1437 = vadd.xlane.f32.xlu1 %v1436_v25  ;;  %1434 = vadd.xlane.f32.xlu0 %v1433_v16 }
 0x2a8   :  { %v9125_v59 = vpop.xlane.xlu1 %1233  ;;  %v9127_v42 = vpop.xlane.xlu0 %1230 }
 0x2a9   :  { %13738 = vst [vmem:[#allocation248_spill] sm:$0xff] %v9125_v59  ;;  %13739 = vst [vmem:[#allocation249_spill] sm:$0xff] %v9127_v42  ;;  %v1448_v42 = vsel %vm418_vm0, %v377_v17, 0.0  ;;  %v378_v59 = vld [vmem:[%s13280_s0 + $0xac0] sm:$0xff] }
 0x2aa   :  { %v1451_v17 = vsel %vm418_vm0, %v378_v59, 0.0  ;;  %v383_v59 = vld [vmem:[%s13280_s0 + $0xae8] sm:$0xff] }
 0x2ab   :  { %1443 = vadd.xlane.f32.xlu1 %v1442_v2  ;;  %1440 = vadd.xlane.f32.xlu0 %v1439_v3 }
 0x2ac   :  { %v9137_v25 = vpop.xlane.xlu1 %1239  ;;  %v9139_v16 = vpop.xlane.xlu0 %1236 }
 0x2ad   :  { %13740 = vst [vmem:[#allocation250_spill] sm:$0xff] %v9137_v25  ;;  %13741 = vst [vmem:[#allocation251_spill] sm:$0xff] %v9139_v16  ;;  %v1454_v16 = vsel %vm418_vm0, %v379_v58, 0.0  ;;  %v380_v25 = vld [vmem:[%s13280_s0 + $0xad0] sm:$0xff] }
 0x2ae   :  { %v1457_v58 = vsel %vm418_vm0, %v380_v25, 0.0  ;;  %v385_v25 = vld [vmem:[%s13280_s0 + $0xaf8] sm:$0xff] }
 0x2af   :  { %1449 = vadd.xlane.f32.xlu1 %v1448_v42  ;;  %1446 = vadd.xlane.f32.xlu0 %v1445_v43 }
 0x2b0   :  { %v9149_v2 = vpop.xlane.xlu1 %1245  ;;  %v9151_v3 = vpop.xlane.xlu0 %1242 }
 0x2b1   :  { %13742 = vst [vmem:[#allocation252_spill] sm:$0xff] %v9149_v2  ;;  %13743 = vst [vmem:[#allocation253_spill] sm:$0xff] %v9151_v3  ;;  %v1460_v3 = vsel %vm418_vm0, %v381_v24, 0.0  ;;  %v382_v2 = vld [vmem:[%s13280_s0 + $0xae0] sm:$0xff] }
 0x2b2   :  { %v1463_v24 = vsel %vm418_vm0, %v382_v2, 0.0  ;;  %v387_v2 = vld [vmem:[%s13280_s0 + $0xb08] sm:$0xff] }
 0x2b3   :  { %1455 = vadd.xlane.f32.xlu1 %v1454_v16  ;;  %1452 = vadd.xlane.f32.xlu0 %v1451_v17 }
 0x2b4   :  { %v9161_v42 = vpop.xlane.xlu1 %1251  ;;  %v9163_v43 = vpop.xlane.xlu0 %1248 }
 0x2b5   :  { %13744 = vst [vmem:[#allocation254_spill] sm:$0xff] %v9161_v42  ;;  %13745 = vst [vmem:[#allocation255_spill] sm:$0xff] %v9163_v43  ;;  %v1466_v43 = vsel %vm418_vm0, %v383_v59, 0.0  ;;  %v384_v42 = vld [vmem:[%s13280_s0 + $0xaf0] sm:$0xff] }
 0x2b6   :  { %v1469_v59 = vsel %vm418_vm0, %v384_v42, 0.0  ;;  %v389_v42 = vld [vmem:[%s13280_s0 + $0xb18] sm:$0xff] }
 0x2b7   :  { %1461 = vadd.xlane.f32.xlu1 %v1460_v3  ;;  %1458 = vadd.xlane.f32.xlu0 %v1457_v58 }
 0x2b8   :  { %v9173_v16 = vpop.xlane.xlu1 %1257  ;;  %v9175_v17 = vpop.xlane.xlu0 %1254 }
 0x2b9   :  { %13746 = vst [vmem:[#allocation256_spill] sm:$0xff] %v9173_v16  ;;  %13747 = vst [vmem:[#allocation257_spill] sm:$0xff] %v9175_v17  ;;  %v1472_v17 = vsel %vm418_vm0, %v385_v25, 0.0  ;;  %v386_v16 = vld [vmem:[%s13280_s0 + $0xb00] sm:$0xff] }
 0x2ba   :  { %v1475_v25 = vsel %vm418_vm0, %v386_v16, 0.0  ;;  %v391_v16 = vld [vmem:[%s13280_s0 + $0xb28] sm:$0xff] }
 0x2bb   :  { %1467 = vadd.xlane.f32.xlu1 %v1466_v43  ;;  %1464 = vadd.xlane.f32.xlu0 %v1463_v24 }
 0x2bc   :  { %v9185_v3 = vpop.xlane.xlu1 %1263  ;;  %v9187_v58 = vpop.xlane.xlu0 %1260 }
 0x2bd   :  { %13748 = vst [vmem:[#allocation258_spill] sm:$0xff] %v9185_v3  ;;  %13749 = vst [vmem:[#allocation259_spill] sm:$0xff] %v9187_v58  ;;  %v1478_v58 = vsel %vm418_vm0, %v387_v2, 0.0  ;;  %v388_v3 = vld [vmem:[%s13280_s0 + $0xb10] sm:$0xff] }
 0x2be   :  { %v1481_v2 = vsel %vm418_vm0, %v388_v3, 0.0  ;;  %v393_v3 = vld [vmem:[%s13280_s0 + $0xb38] sm:$0xff] }
 0x2bf   :  { %1473 = vadd.xlane.f32.xlu1 %v1472_v17  ;;  %1470 = vadd.xlane.f32.xlu0 %v1469_v59 }
 0x2c0   :  { %v9197_v43 = vpop.xlane.xlu1 %1269  ;;  %v9199_v24 = vpop.xlane.xlu0 %1266 }
 0x2c1   :  { %13750 = vst [vmem:[#allocation260_spill] sm:$0xff] %v9197_v43  ;;  %13751 = vst [vmem:[#allocation261_spill] sm:$0xff] %v9199_v24  ;;  %v1484_v24 = vsel %vm418_vm0, %v389_v42, 0.0  ;;  %v390_v43 = vld [vmem:[%s13280_s0 + $0xb20] sm:$0xff] }
 0x2c2   :  { %v1487_v42 = vsel %vm418_vm0, %v390_v43, 0.0  ;;  %v395_v43 = vld [vmem:[%s13280_s0 + $0xb48] sm:$0xff] }
 0x2c3   :  { %1479 = vadd.xlane.f32.xlu1 %v1478_v58  ;;  %1476 = vadd.xlane.f32.xlu0 %v1475_v25 }
 0x2c4   :  { %v9209_v17 = vpop.xlane.xlu1 %1275  ;;  %v9211_v59 = vpop.xlane.xlu0 %1272 }
 0x2c5   :  { %13752 = vst [vmem:[#allocation262_spill] sm:$0xff] %v9209_v17  ;;  %13753 = vst [vmem:[#allocation263_spill] sm:$0xff] %v9211_v59  ;;  %v1490_v59 = vsel %vm418_vm0, %v391_v16, 0.0  ;;  %v392_v17 = vld [vmem:[%s13280_s0 + $0xb30] sm:$0xff] }
 0x2c6   :  { %v1493_v16 = vsel %vm418_vm0, %v392_v17, 0.0  ;;  %v397_v17 = vld [vmem:[%s13280_s0 + $0xb58] sm:$0xff] }
 0x2c7   :  { %1485 = vadd.xlane.f32.xlu1 %v1484_v24  ;;  %1482 = vadd.xlane.f32.xlu0 %v1481_v2 }
 0x2c8   :  { %v9221_v58 = vpop.xlane.xlu1 %1281  ;;  %v9223_v25 = vpop.xlane.xlu0 %1278 }
 0x2c9   :  { %13754 = vst [vmem:[#allocation264_spill] sm:$0xff] %v9221_v58  ;;  %13755 = vst [vmem:[#allocation265_spill] sm:$0xff] %v9223_v25  ;;  %v1496_v25 = vsel %vm418_vm0, %v393_v3, 0.0  ;;  %v394_v58 = vld [vmem:[%s13280_s0 + $0xb40] sm:$0xff] }
 0x2ca   :  { %v1499_v3 = vsel %vm418_vm0, %v394_v58, 0.0  ;;  %v399_v58 = vld [vmem:[%s13280_s0 + $0xb68] sm:$0xff] }
 0x2cb   :  { %1491 = vadd.xlane.f32.xlu1 %v1490_v59  ;;  %1488 = vadd.xlane.f32.xlu0 %v1487_v42 }
 0x2cc   :  { %v9233_v24 = vpop.xlane.xlu1 %1287  ;;  %v9235_v2 = vpop.xlane.xlu0 %1284 }
 0x2cd   :  { %13756 = vst [vmem:[#allocation266_spill] sm:$0xff] %v9233_v24  ;;  %13757 = vst [vmem:[#allocation267_spill] sm:$0xff] %v9235_v2  ;;  %v1502_v2 = vsel %vm418_vm0, %v395_v43, 0.0  ;;  %v396_v24 = vld [vmem:[%s13280_s0 + $0xb50] sm:$0xff] }
 0x2ce   :  { %v1505_v43 = vsel %vm418_vm0, %v396_v24, 0.0  ;;  %v401_v24 = vld [vmem:[%s13280_s0 + $0xb78] sm:$0xff] }
 0x2cf   :  { %1497 = vadd.xlane.f32.xlu1 %v1496_v25  ;;  %1494 = vadd.xlane.f32.xlu0 %v1493_v16 }
 0x2d0   :  { %v9245_v59 = vpop.xlane.xlu1 %1293  ;;  %v9247_v42 = vpop.xlane.xlu0 %1290 }
 0x2d1   :  { %13758 = vst [vmem:[#allocation268_spill] sm:$0xff] %v9245_v59  ;;  %13759 = vst [vmem:[#allocation269_spill] sm:$0xff] %v9247_v42  ;;  %v1508_v42 = vsel %vm418_vm0, %v397_v17, 0.0  ;;  %v398_v59 = vld [vmem:[%s13280_s0 + $0xb60] sm:$0xff] }
 0x2d2   :  { %v1511_v17 = vsel %vm418_vm0, %v398_v59, 0.0  ;;  %v403_v59 = vld [vmem:[%s13280_s0 + $0xb88] sm:$0xff] }
 0x2d3   :  { %1503 = vadd.xlane.f32.xlu1 %v1502_v2  ;;  %1500 = vadd.xlane.f32.xlu0 %v1499_v3 }
 0x2d4   :  { %v9257_v25 = vpop.xlane.xlu1 %1299  ;;  %v9259_v16 = vpop.xlane.xlu0 %1296 }
 0x2d5   :  { %13760 = vst [vmem:[#allocation270_spill] sm:$0xff] %v9257_v25  ;;  %13761 = vst [vmem:[#allocation271_spill] sm:$0xff] %v9259_v16  ;;  %v1514_v16 = vsel %vm418_vm0, %v399_v58, 0.0  ;;  %v400_v25 = vld [vmem:[%s13280_s0 + $0xb70] sm:$0xff] }
 0x2d6   :  { %v1517_v58 = vsel %vm418_vm0, %v400_v25, 0.0  ;;  %v405_v25 = vld [vmem:[%s13280_s0 + $0xb98] sm:$0xff] }
 0x2d7   :  { %1509 = vadd.xlane.f32.xlu1 %v1508_v42  ;;  %1506 = vadd.xlane.f32.xlu0 %v1505_v43 }
 0x2d8   :  { %v9269_v2 = vpop.xlane.xlu1 %1305  ;;  %v9271_v3 = vpop.xlane.xlu0 %1302 }
 0x2d9   :  { %13762 = vst [vmem:[#allocation272_spill] sm:$0xff] %v9269_v2  ;;  %13763 = vst [vmem:[#allocation273_spill] sm:$0xff] %v9271_v3  ;;  %v1520_v3 = vsel %vm418_vm0, %v401_v24, 0.0  ;;  %v402_v2 = vld [vmem:[%s13280_s0 + $0xb80] sm:$0xff] }
 0x2da   :  { %v1523_v24 = vsel %vm418_vm0, %v402_v2, 0.0  ;;  %v407_v2 = vld [vmem:[%s13280_s0 + $0xba8] sm:$0xff] }
 0x2db   :  { %1515 = vadd.xlane.f32.xlu1 %v1514_v16  ;;  %1512 = vadd.xlane.f32.xlu0 %v1511_v17 }
 0x2dc   :  { %v9281_v42 = vpop.xlane.xlu1 %1311  ;;  %v9283_v43 = vpop.xlane.xlu0 %1308 }
 0x2dd   :  { %13764 = vst [vmem:[#allocation274_spill] sm:$0xff] %v9281_v42  ;;  %13765 = vst [vmem:[#allocation275_spill] sm:$0xff] %v9283_v43  ;;  %v1526_v43 = vsel %vm418_vm0, %v403_v59, 0.0  ;;  %v404_v42 = vld [vmem:[%s13280_s0 + $0xb90] sm:$0xff] }
 0x2de   :  { %v1529_v59 = vsel %vm418_vm0, %v404_v42, 0.0  ;;  %v409_v42 = vld [vmem:[%s13280_s0 + $0xbb8] sm:$0xff] }
 0x2df   :  { %1521 = vadd.xlane.f32.xlu1 %v1520_v3  ;;  %1518 = vadd.xlane.f32.xlu0 %v1517_v58 }
 0x2e0   :  { %v9293_v16 = vpop.xlane.xlu1 %1317  ;;  %v9295_v17 = vpop.xlane.xlu0 %1314 }
 0x2e1   :  { %13766 = vst [vmem:[#allocation276_spill] sm:$0xff] %v9293_v16  ;;  %13767 = vst [vmem:[#allocation277_spill] sm:$0xff] %v9295_v17  ;;  %v1532_v17 = vsel %vm418_vm0, %v405_v25, 0.0  ;;  %v406_v16 = vld [vmem:[%s13280_s0 + $0xba0] sm:$0xff] }
 0x2e2   :  { %v1535_v25 = vsel %vm418_vm0, %v406_v16, 0.0  ;;  %v411_v16 = vld [vmem:[%s13280_s0 + $0xbc8] sm:$0xff] }
 0x2e3   :  { %1527 = vadd.xlane.f32.xlu1 %v1526_v43  ;;  %1524 = vadd.xlane.f32.xlu0 %v1523_v24 }
 0x2e4   :  { %v9305_v3 = vpop.xlane.xlu1 %1323  ;;  %v9307_v58 = vpop.xlane.xlu0 %1320 }
 0x2e5   :  { %13768 = vst [vmem:[#allocation278_spill] sm:$0xff] %v9305_v3  ;;  %13769 = vst [vmem:[#allocation279_spill] sm:$0xff] %v9307_v58  ;;  %v1538_v58 = vsel %vm418_vm0, %v407_v2, 0.0  ;;  %v408_v3 = vld [vmem:[%s13280_s0 + $0xbb0] sm:$0xff] }
 0x2e6   :  { %v1541_v2 = vsel %vm418_vm0, %v408_v3, 0.0  ;;  %v413_v3 = vld [vmem:[%s13280_s0 + $0xbd8] sm:$0xff] }
 0x2e7   :  { %1533 = vadd.xlane.f32.xlu1 %v1532_v17  ;;  %1530 = vadd.xlane.f32.xlu0 %v1529_v59 }
 0x2e8   :  { %v9317_v43 = vpop.xlane.xlu1 %1329  ;;  %v9319_v24 = vpop.xlane.xlu0 %1326 }
 0x2e9   :  { %13770 = vst [vmem:[#allocation280_spill] sm:$0xff] %v9317_v43  ;;  %13771 = vst [vmem:[#allocation281_spill] sm:$0xff] %v9319_v24  ;;  %v1544_v24 = vsel %vm418_vm0, %v409_v42, 0.0  ;;  %v410_v43 = vld [vmem:[%s13280_s0 + $0xbc0] sm:$0xff] }
 0x2ea   :  { %v1547_v42 = vsel %vm418_vm0, %v410_v43, 0.0  ;;  %v415_v43 = vld [vmem:[%s13280_s0 + $0xbe8] sm:$0xff] }
 0x2eb   :  { %1539 = vadd.xlane.f32.xlu1 %v1538_v58  ;;  %1536 = vadd.xlane.f32.xlu0 %v1535_v25 }
 0x2ec   :  { %v9329_v17 = vpop.xlane.xlu1 %1335  ;;  %v9331_v59 = vpop.xlane.xlu0 %1332 }
 0x2ed   :  { %13772 = vst [vmem:[#allocation282_spill] sm:$0xff] %v9329_v17  ;;  %13773 = vst [vmem:[#allocation283_spill] sm:$0xff] %v9331_v59  ;;  %v1550_v59 = vsel %vm418_vm0, %v411_v16, 0.0  ;;  %v412_v17 = vld [vmem:[%s13280_s0 + $0xbd0] sm:$0xff] }
 0x2ee   :  { %v1553_v16 = vsel %vm418_vm0, %v412_v17, 0.0  ;;  %v417_v17 = vld [vmem:[%s13280_s0 + $0xbf8] sm:$0xff] }
 0x2ef   :  { %1545 = vadd.xlane.f32.xlu1 %v1544_v24  ;;  %1542 = vadd.xlane.f32.xlu0 %v1541_v2 }
 0x2f0   :  { %v9341_v58 = vpop.xlane.xlu1 %1341  ;;  %v9343_v25 = vpop.xlane.xlu0 %1338 }
 0x2f1   :  { %13774 = vst [vmem:[#allocation284_spill] sm:$0xff] %v9341_v58  ;;  %13775 = vst [vmem:[#allocation285_spill] sm:$0xff] %v9343_v25  ;;  %v1556_v25 = vsel %vm418_vm0, %v413_v3, 0.0  ;;  %v414_v58 = vld [vmem:[%s13280_s0 + $0xbe0] sm:$0xff] }
 0x2f2   :  { %v1559_v3 = vsel %vm418_vm0, %v414_v58, 0.0 }
 0x2f3   :  { %1551 = vadd.xlane.f32.xlu1 %v1550_v59  ;;  %1548 = vadd.xlane.f32.xlu0 %v1547_v42 }
 0x2f4   :  { %v9353_v24 = vpop.xlane.xlu1 %1347  ;;  %v9355_v2 = vpop.xlane.xlu0 %1344 }
 0x2f5   :  { %13776 = vst [vmem:[#allocation286_spill] sm:$0xff] %v9353_v24  ;;  %13777 = vst [vmem:[#allocation287_spill] sm:$0xff] %v9355_v2  ;;  %v1562_v2 = vsel %vm418_vm0, %v415_v43, 0.0  ;;  %v416_v24 = vld [vmem:[%s13280_s0 + $0xbf0] sm:$0xff] }
 0x2f6   :  { %v1565_v43 = vsel %vm418_vm0, %v416_v24, 0.0 }
 0x2f7   :  { %1557 = vadd.xlane.f32.xlu1 %v1556_v25  ;;  %1554 = vadd.xlane.f32.xlu0 %v1553_v16 }
 0x2f8   :  { %v9365_v59 = vpop.xlane.xlu1 %1353  ;;  %v9367_v42 = vpop.xlane.xlu0 %1350 }
 0x2f9   :  { %13778 = vst [vmem:[#allocation288_spill] sm:$0xff] %v9365_v59  ;;  %13779 = vst [vmem:[#allocation289_spill] sm:$0xff] %v9367_v42  ;;  %v1568_v42 = vsel %vm418_vm0, %v417_v17, 0.0  ;;  %vm4977_vm0 = vcmask 982912  }
 0x2fb   :  { %1563 = vadd.xlane.f32.xlu1 %v1562_v2  ;;  %1560 = vadd.xlane.f32.xlu0 %v1559_v3  ;;  %v9392_v2 = vshrl.u32 %v13290_v41, 7 }
 0x2fc   :  { %v9377_v25 = vpop.xlane.xlu1 %1359  ;;  %v9379_v16 = vpop.xlane.xlu0 %1356 }
 0x2fd   :  { %13780 = vst [vmem:[#allocation290_spill] sm:$0xff] %v9377_v25  ;;  %13781 = vst [vmem:[#allocation291_spill] sm:$0xff] %v9379_v16  ;;  %v9399_v24 = vsub.s32 0, %v9392_v2  ;;  %v1981_v60 = vsub.s32 5, %v9392_v2 }
 0x2fe   :  { %13786 = vst [vmem:[#allocation296_spill] sm:$0xff] %v9392_v2 }
 0x2ff   :  { %1569 = vadd.xlane.f32.xlu1 %v1568_v42  ;;  %1566 = vadd.xlane.f32.xlu0 %v1565_v43  ;;  %13789 = vst [vmem:[#allocation299_spill] sm:$0xff] %v9399_v24  ;;  %v9404_v42 = vld [vmem:[%s13281_s6] sm:$0xff] }
 0x300   :  { %v9383_v58 = vpop.xlane.xlu1 %1365  ;;  %v9385_v59 = vpop.xlane.xlu0 %1362  ;;  %v1962_v41 = vrot.slane %v9404_v42, %v9399_v24  ;;  %v1982_v35 = vrot.slane %v9404_v42, %v1981_v60 }
 0x301   :  { %13782 = vst [vmem:[#allocation292_spill] sm:$0xff] %v9383_v58  ;;  %13783 = vst [vmem:[#allocation293_spill] sm:$0xff] %v9385_v59 }
 0x304   :  { %v9387_v40 = vpop.xlane.xlu1 %1371  ;;  %v9389_v7 = vpop.xlane.xlu0 %1368 }
 0x305   :  { %13784 = vst [vmem:[#allocation294_spill] sm:$0xff] %v9387_v40  ;;  %13785 = vst [vmem:[#allocation295_spill] sm:$0xff] %v9389_v7 }
 0x308   :  { %v9394_v3 = vpop.xlane.xlu1 %1377  ;;  %v9396_v16 = vpop.xlane.xlu0 %1374 }
 0x309   :  { %13787 = vst [vmem:[#allocation297_spill] sm:$0xff] %v9394_v3  ;;  %13788 = vst [vmem:[#allocation298_spill] sm:$0xff] %v9396_v16 }
 0x30c   :  { %v9406_v17 = vpop.xlane.xlu1 %1383  ;;  %v9408_v43 = vpop.xlane.xlu0 %1380 }
 0x30d   :  { %13790 = vst [vmem:[#allocation300_spill] sm:$0xff] %v9406_v17  ;;  %13791 = vst [vmem:[#allocation301_spill] sm:$0xff] %v9408_v43 }
 0x310   :  { %2012 = vbcast.lane.b32.xlu1 %v1962_v41, 264  ;;  %v9412_v7 = vpop.xlane.xlu1 %1389  ;;  %v9414_v3 = vpop.xlane.xlu0 %1386 }
 0x311   :  { %13792 = vst [vmem:[#allocation302_spill] sm:$0xff] %v9412_v7  ;;  %13793 = vst [vmem:[#allocation303_spill] sm:$0xff] %v9414_v3 }
 0x314   :  { %2016 = vbcast.lane.b32.xlu1 %v1962_v41, 272  ;;  %v9416_v16 = vpop.xlane.xlu1 %1395  ;;  %v9418_v40 = vpop.xlane.xlu0 %1392 }
 0x315   :  { %13794 = vst [vmem:[#allocation304_spill] sm:$0xff] %v9416_v16  ;;  %13795 = vst [vmem:[#allocation305_spill] sm:$0xff] %v9418_v40  ;;  %2008 = vbcast.lane.b32.xlu0 %v1962_v41, 256 }
 0x318   :  { %2020 = vbcast.lane.b32.xlu1 %v1962_v41, 280  ;;  %v9420_v59 = vpop.xlane.xlu1 %1401  ;;  %v9422_v17 = vpop.xlane.xlu0 %1398 }
 0x319   :  { %13796 = vst [vmem:[#allocation306_spill] sm:$0xff] %v9420_v59  ;;  %13797 = vst [vmem:[#allocation307_spill] sm:$0xff] %v9422_v17  ;;  %2024 = vbcast.lane.b32.xlu0 %v1962_v41, 288 }
 0x31c   :  { %2028 = vbcast.lane.b32.xlu1 %v1962_v41, 296  ;;  %v9424_v43 = vpop.xlane.xlu1 %1407  ;;  %v9426_v58 = vpop.xlane.xlu0 %1404 }
 0x31d   :  { %13798 = vst [vmem:[#allocation308_spill] sm:$0xff] %v9424_v43  ;;  %13799 = vst [vmem:[#allocation309_spill] sm:$0xff] %v9426_v58  ;;  %2032 = vbcast.lane.b32.xlu0 %v1962_v41, 304  ;;  %v9441_v58 = vsub.s32 1, %v9392_v2 }
 0x31f   :  { %13806 = vst [vmem:[#allocation316_spill] sm:$0xff] %v9441_v58 }
 0x320   :  { %2036 = vbcast.lane.b32.xlu1 %v1962_v41, 312  ;;  %v9428_v3 = vpop.xlane.xlu1 %1413  ;;  %v9430_v7 = vpop.xlane.xlu0 %1410 }
 0x321   :  { %13800 = vst [vmem:[#allocation310_spill] sm:$0xff] %v9428_v3  ;;  %13801 = vst [vmem:[#allocation311_spill] sm:$0xff] %v9430_v7  ;;  %2040 = vbcast.lane.b32.xlu0 %v1962_v41, 320 }
 0x324   :  { %2044 = vbcast.lane.b32.xlu1 %v1962_v41, 328  ;;  %v9432_v40 = vpop.xlane.xlu1 %1419  ;;  %v9434_v16 = vpop.xlane.xlu0 %1416 }
 0x325   :  { %13802 = vst [vmem:[#allocation312_spill] sm:$0xff] %v9432_v40  ;;  %13803 = vst [vmem:[#allocation313_spill] sm:$0xff] %v9434_v16  ;;  %2048 = vbcast.lane.b32.xlu0 %v1962_v41, 336  ;;  %v1966_v40 = vrot.slane %v9404_v42, %v9441_v58 }
 0x328   :  { %2052 = vbcast.lane.b32.xlu1 %v1962_v41, 344  ;;  %v9436_v17 = vpop.xlane.xlu1 %1425  ;;  %v9438_v59 = vpop.xlane.xlu0 %1422 }
 0x329   :  { %13804 = vst [vmem:[#allocation314_spill] sm:$0xff] %v9436_v17  ;;  %13805 = vst [vmem:[#allocation315_spill] sm:$0xff] %v9438_v59  ;;  %2056 = vbcast.lane.b32.xlu0 %v1962_v41, 352 }
 0x32c   :  { %2060 = vbcast.lane.b32.xlu1 %v1962_v41, 360  ;;  %v9443_v3 = vpop.xlane.xlu1 %1431  ;;  %v9445_v7 = vpop.xlane.xlu0 %1428 }
 0x32d   :  { %13807 = vst [vmem:[#allocation317_spill] sm:$0xff] %v9443_v3  ;;  %13808 = vst [vmem:[#allocation318_spill] sm:$0xff] %v9445_v7  ;;  %2064 = vbcast.lane.b32.xlu0 %v1962_v41, 368 }
 0x330   :  { %2068 = vbcast.lane.b32.xlu1 %v1962_v41, 376  ;;  %v9449_v16 = vpop.xlane.xlu1 %1437  ;;  %v9451_v43 = vpop.xlane.xlu0 %1434 }
 0x331   :  { %13809 = vst [vmem:[#allocation319_spill] sm:$0xff] %v9449_v16  ;;  %13810 = vst [vmem:[#allocation320_spill] sm:$0xff] %v9451_v43  ;;  %2071 = vbcast.lane.b32.xlu0 %v1966_v40, 256 }
 0x334   :  { %2075 = vbcast.lane.b32.xlu1 %v1966_v40, 264  ;;  %v9453_v59 = vpop.xlane.xlu1 %1443  ;;  %v9455_v17 = vpop.xlane.xlu0 %1440 }
 0x335   :  { %13811 = vst [vmem:[#allocation321_spill] sm:$0xff] %v9453_v59  ;;  %13812 = vst [vmem:[#allocation322_spill] sm:$0xff] %v9455_v17  ;;  %2079 = vbcast.lane.b32.xlu0 %v1966_v40, 272 }
 0x338   :  { %2083 = vbcast.lane.b32.xlu1 %v1966_v40, 280  ;;  %v9457_v3 = vpop.xlane.xlu1 %1449  ;;  %v9459_v7 = vpop.xlane.xlu0 %1446 }
 0x339   :  { %13813 = vst [vmem:[#allocation323_spill] sm:$0xff] %v9457_v3  ;;  %13814 = vst [vmem:[#allocation324_spill] sm:$0xff] %v9459_v7  ;;  %2087 = vbcast.lane.b32.xlu0 %v1966_v40, 288 }
 0x33c   :  { %2091 = vbcast.lane.b32.xlu1 %v1966_v40, 296  ;;  %v9461_v25 = vpop.xlane.xlu1 %1455  ;;  %v9463_v41 = vpop.xlane.xlu0 %1452 }
 0x33d   :  { %13815 = vst [vmem:[#allocation325_spill] sm:$0xff] %v9461_v25  ;;  %13816 = vst [vmem:[#allocation326_spill] sm:$0xff] %v9463_v41  ;;  %2095 = vbcast.lane.b32.xlu0 %v1966_v40, 304  ;;  %v13291_v41 = vsub.s32 2, %v9392_v2 }
 0x340   :  { %2099 = vbcast.lane.b32.xlu1 %v1966_v40, 312  ;;  %v9465_v43 = vpop.xlane.xlu1 %1461  ;;  %v9467_v16 = vpop.xlane.xlu0 %1458 }
 0x341   :  { %13817 = vst [vmem:[#allocation327_spill] sm:$0xff] %v9465_v43  ;;  %13818 = vst [vmem:[#allocation328_spill] sm:$0xff] %v9467_v16  ;;  %2103 = vbcast.lane.b32.xlu0 %v1966_v40, 320 }
 0x344   :  { %2107 = vbcast.lane.b32.xlu1 %v1966_v40, 328  ;;  %v9469_v17 = vpop.xlane.xlu1 %1467  ;;  %v9471_v59 = vpop.xlane.xlu0 %1464 }
 0x345   :  { %13819 = vst [vmem:[#allocation329_spill] sm:$0xff] %v9469_v17  ;;  %13820 = vst [vmem:[#allocation330_spill] sm:$0xff] %v9471_v59  ;;  %2111 = vbcast.lane.b32.xlu0 %v1966_v40, 336  ;;  %v1970_v17 = vrot.slane %v9404_v42, %v13291_v41 }
 0x348   :  { %2115 = vbcast.lane.b32.xlu1 %v1966_v40, 344  ;;  %v9473_v7 = vpop.xlane.xlu1 %1473  ;;  %v9475_v3 = vpop.xlane.xlu0 %1470 }
 0x349   :  { %13821 = vst [vmem:[#allocation331_spill] sm:$0xff] %v9473_v7  ;;  %13822 = vst [vmem:[#allocation332_spill] sm:$0xff] %v9475_v3  ;;  %2119 = vbcast.lane.b32.xlu0 %v1966_v40, 352 }
 0x34c   :  { %2123 = vbcast.lane.b32.xlu1 %v1966_v40, 360  ;;  %v9478_v25 = vpop.xlane.xlu1 %1479  ;;  %v9480_v43 = vpop.xlane.xlu0 %1476 }
 0x34d   :  { %13823 = vst [vmem:[#allocation333_spill] sm:$0xff] %v9478_v25  ;;  %13824 = vst [vmem:[#allocation334_spill] sm:$0xff] %v9480_v43  ;;  %2127 = vbcast.lane.b32.xlu0 %v1966_v40, 368 }
 0x350   :  { %2131 = vbcast.lane.b32.xlu1 %v1966_v40, 376  ;;  %v9485_v59 = vpop.xlane.xlu1 %1485  ;;  %v9487_v16 = vpop.xlane.xlu0 %1482 }
 0x351   :  { %13825 = vst [vmem:[#allocation335_spill] sm:$0xff] %v9485_v59  ;;  %13826 = vst [vmem:[#allocation336_spill] sm:$0xff] %v9487_v16  ;;  %2134 = vbcast.lane.b32.xlu0 %v1970_v17, 256 }
 0x354   :  { %2138 = vbcast.lane.b32.xlu1 %v1970_v17, 264  ;;  %v9489_v3 = vpop.xlane.xlu1 %1491  ;;  %v9491_v7 = vpop.xlane.xlu0 %1488 }
 0x355   :  { %13827 = vst [vmem:[#allocation337_spill] sm:$0xff] %v9489_v3  ;;  %13828 = vst [vmem:[#allocation338_spill] sm:$0xff] %v9491_v7  ;;  %2142 = vbcast.lane.b32.xlu0 %v1970_v17, 272 }
 0x358   :  { %2146 = vbcast.lane.b32.xlu1 %v1970_v17, 280  ;;  %v9493_v25 = vpop.xlane.xlu1 %1497  ;;  %v9495_v43 = vpop.xlane.xlu0 %1494 }
 0x359   :  { %13829 = vst [vmem:[#allocation339_spill] sm:$0xff] %v9493_v25  ;;  %13830 = vst [vmem:[#allocation340_spill] sm:$0xff] %v9495_v43  ;;  %2150 = vbcast.lane.b32.xlu0 %v1970_v17, 288 }
 0x35c   :  { %2154 = vbcast.lane.b32.xlu1 %v1970_v17, 296  ;;  %v9497_v41 = vpop.xlane.xlu1 %1503  ;;  %v9499_v40 = vpop.xlane.xlu0 %1500 }
 0x35d   :  { %13831 = vst [vmem:[#allocation341_spill] sm:$0xff] %v9497_v41  ;;  %13832 = vst [vmem:[#allocation342_spill] sm:$0xff] %v9499_v40  ;;  %2158 = vbcast.lane.b32.xlu0 %v1970_v17, 304  ;;  %v13292_v40 = vsub.s32 3, %v9392_v2 }
 0x360   :  { %2162 = vbcast.lane.b32.xlu1 %v1970_v17, 312  ;;  %v9501_v16 = vpop.xlane.xlu1 %1509  ;;  %v9503_v59 = vpop.xlane.xlu0 %1506 }
 0x361   :  { %13833 = vst [vmem:[#allocation343_spill] sm:$0xff] %v9501_v16  ;;  %13834 = vst [vmem:[#allocation344_spill] sm:$0xff] %v9503_v59  ;;  %2166 = vbcast.lane.b32.xlu0 %v1970_v17, 320 }
 0x364   :  { %2170 = vbcast.lane.b32.xlu1 %v1970_v17, 328  ;;  %v9505_v7 = vpop.xlane.xlu1 %1515  ;;  %v9507_v3 = vpop.xlane.xlu0 %1512 }
 0x365   :  { %13835 = vst [vmem:[#allocation345_spill] sm:$0xff] %v9505_v7  ;;  %13836 = vst [vmem:[#allocation346_spill] sm:$0xff] %v9507_v3  ;;  %2174 = vbcast.lane.b32.xlu0 %v1970_v17, 336  ;;  %v1974_v7 = vrot.slane %v9404_v42, %v13292_v40 }
 0x368   :  { %2178 = vbcast.lane.b32.xlu1 %v1970_v17, 344  ;;  %v9509_v43 = vpop.xlane.xlu1 %1521  ;;  %v9511_v25 = vpop.xlane.xlu0 %1518 }
 0x369   :  { %13837 = vst [vmem:[#allocation347_spill] sm:$0xff] %v9509_v43  ;;  %13838 = vst [vmem:[#allocation348_spill] sm:$0xff] %v9511_v25  ;;  %2182 = vbcast.lane.b32.xlu0 %v1970_v17, 352 }
 0x36c   :  { %2186 = vbcast.lane.b32.xlu1 %v1970_v17, 360  ;;  %v9514_v41 = vpop.xlane.xlu1 %1527  ;;  %v9516_v16 = vpop.xlane.xlu0 %1524 }
 0x36d   :  { %13839 = vst [vmem:[#allocation349_spill] sm:$0xff] %v9514_v41  ;;  %13840 = vst [vmem:[#allocation350_spill] sm:$0xff] %v9516_v16  ;;  %2190 = vbcast.lane.b32.xlu0 %v1970_v17, 368 }
 0x370   :  { %2194 = vbcast.lane.b32.xlu1 %v1970_v17, 376  ;;  %v9521_v3 = vpop.xlane.xlu1 %1533  ;;  %v9523_v59 = vpop.xlane.xlu0 %1530 }
 0x371   :  { %13841 = vst [vmem:[#allocation351_spill] sm:$0xff] %v9521_v3  ;;  %13842 = vst [vmem:[#allocation352_spill] sm:$0xff] %v9523_v59  ;;  %2197 = vbcast.lane.b32.xlu0 %v1974_v7, 256 }
 0x374   :  { %2201 = vbcast.lane.b32.xlu1 %v1974_v7, 264  ;;  %v9525_v25 = vpop.xlane.xlu1 %1539  ;;  %v9527_v43 = vpop.xlane.xlu0 %1536 }
 0x375   :  { %13843 = vst [vmem:[#allocation353_spill] sm:$0xff] %v9525_v25  ;;  %13844 = vst [vmem:[#allocation354_spill] sm:$0xff] %v9527_v43  ;;  %2205 = vbcast.lane.b32.xlu0 %v1974_v7, 272 }
 0x378   :  { %2209 = vbcast.lane.b32.xlu1 %v1974_v7, 280  ;;  %v9529_v41 = vpop.xlane.xlu1 %1545  ;;  %v9531_v16 = vpop.xlane.xlu0 %1542 }
 0x379   :  { %13845 = vst [vmem:[#allocation355_spill] sm:$0xff] %v9529_v41  ;;  %13846 = vst [vmem:[#allocation356_spill] sm:$0xff] %v9531_v16  ;;  %2213 = vbcast.lane.b32.xlu0 %v1974_v7, 288 }
 0x37c   :  { %2217 = vbcast.lane.b32.xlu1 %v1974_v7, 296  ;;  %v9533_v40 = vpop.xlane.xlu1 %1551  ;;  %v9535_v17 = vpop.xlane.xlu0 %1548 }
 0x37d   :  { %13847 = vst [vmem:[#allocation357_spill] sm:$0xff] %v9533_v40  ;;  %13848 = vst [vmem:[#allocation358_spill] sm:$0xff] %v9535_v17  ;;  %2221 = vbcast.lane.b32.xlu0 %v1974_v7, 304  ;;  %v1977_v17 = vsub.s32 4, %v9392_v2 }
 0x380   :  { %2225 = vbcast.lane.b32.xlu1 %v1974_v7, 312  ;;  %v9537_v59 = vpop.xlane.xlu1 %1557  ;;  %v9539_v3 = vpop.xlane.xlu0 %1554 }
 0x381   :  { %13849 = vst [vmem:[#allocation359_spill] sm:$0xff] %v9537_v59  ;;  %13850 = vst [vmem:[#allocation360_spill] sm:$0xff] %v9539_v3  ;;  %2229 = vbcast.lane.b32.xlu0 %v1974_v7, 320  ;;  %v1978_v3 = vrot.slane %v9404_v42, %v1977_v17 }
 0x384   :  { %2233 = vbcast.lane.b32.xlu1 %v1974_v7, 328  ;;  %v9541_v43 = vpop.xlane.xlu1 %1563  ;;  %v9543_v25 = vpop.xlane.xlu0 %1560 }
 0x385   :  { %13851 = vst [vmem:[#allocation361_spill] sm:$0xff] %v9541_v43  ;;  %13852 = vst [vmem:[#allocation362_spill] sm:$0xff] %v9543_v25  ;;  %2237 = vbcast.lane.b32.xlu0 %v1974_v7, 336 }
 0x388   :  { %2241 = vbcast.lane.b32.xlu1 %v1974_v7, 344  ;;  %v9545_v16 = vpop.xlane.xlu1 %1569  ;;  %v9547_v41 = vpop.xlane.xlu0 %1566 }
 0x389   :  { %13853 = vst [vmem:[#allocation363_spill] sm:$0xff] %v9545_v16  ;;  %13854 = vst [vmem:[#allocation364_spill] sm:$0xff] %v9547_v41  ;;  %2245 = vbcast.lane.b32.xlu0 %v1974_v7, 352 }
 0x38c   :  { %2249 = vbcast.lane.b32.xlu1 %v1974_v7, 360  ;;  %v9550_v40 = vpop.permute.xlu1 %2012  ;;  %v9552_v59 = vpop.permute.xlu0 %2008 }
 0x38d   :  { %13855 = vst [vmem:[#allocation365_spill] sm:$0xff] %v9550_v40  ;;  %13856 = vst [vmem:[#allocation366_spill] sm:$0xff] %v9552_v59  ;;  %2253 = vbcast.lane.b32.xlu0 %v1974_v7, 368 }
 0x390   :  { %2257 = vbcast.lane.b32.xlu1 %v1974_v7, 376  ;;  %v9555_v43 = vpop.permute.xlu1 %2016  ;;  %v9557_v25 = vpop.permute.xlu0 %2024 }
 0x391   :  { %13857 = vst [vmem:[#allocation367_spill] sm:$0xff] %v9555_v43  ;;  %13858 = vst [vmem:[#allocation368_spill] sm:$0xff] %v9557_v25  ;;  %2260 = vbcast.lane.b32.xlu0 %v1978_v3, 256 }
 0x394   :  { %2264 = vbcast.lane.b32.xlu1 %v1978_v3, 264  ;;  %v9559_v16 = vpop.permute.xlu1 %2020  ;;  %v9561_v41 = vpop.permute.xlu0 %2032 }
 0x395   :  { %13859 = vst [vmem:[#allocation369_spill] sm:$0xff] %v9559_v16  ;;  %13860 = vst [vmem:[#allocation370_spill] sm:$0xff] %v9561_v41  ;;  %2268 = vbcast.lane.b32.xlu0 %v1978_v3, 272 }
 0x398   :  { %2272 = vbcast.lane.b32.xlu1 %v1978_v3, 280  ;;  %v9563_v6 = vpop.permute.xlu1 %2028  ;;  %v9565_v53 = vpop.permute.xlu0 %2040 }
 0x399   :  { %13861 = vst [vmem:[#allocation371_spill] sm:$0xff] %v9563_v6  ;;  %13862 = vst [vmem:[#allocation372_spill] sm:$0xff] %v9565_v53  ;;  %2276 = vbcast.lane.b32.xlu0 %v1978_v3, 288 }
 0x39c   :  { %2280 = vbcast.lane.b32.xlu1 %v1978_v3, 296  ;;  %v9567_v17 = vpop.permute.xlu1 %2036  ;;  %v9569_v7 = vpop.permute.xlu0 %2048 }
 0x39d   :  { %13863 = vst [vmem:[#allocation373_spill] sm:$0xff] %v9567_v17  ;;  %13864 = vst [vmem:[#allocation374_spill] sm:$0xff] %v9569_v7  ;;  %2284 = vbcast.lane.b32.xlu0 %v1978_v3, 304 }
 0x3a0   :  { %2288 = vbcast.lane.b32.xlu1 %v1978_v3, 312  ;;  %v9571_v52 = vpop.permute.xlu1 %2044  ;;  %v9573_v31 = vpop.permute.xlu0 %2056 }
 0x3a1   :  { %13865 = vst [vmem:[#allocation375_spill] sm:$0xff] %v9571_v52  ;;  %13866 = vst [vmem:[#allocation376_spill] sm:$0xff] %v9573_v31  ;;  %2292 = vbcast.lane.b32.xlu0 %v1978_v3, 320 }
 0x3a4   :  { %2296 = vbcast.lane.b32.xlu1 %v1978_v3, 328  ;;  %v9575_v30 = vpop.permute.xlu1 %2052  ;;  %v9577_v13 = vpop.permute.xlu0 %2064 }
 0x3a5   :  { %13867 = vst [vmem:[#allocation377_spill] sm:$0xff] %v9575_v30  ;;  %13868 = vst [vmem:[#allocation378_spill] sm:$0xff] %v9577_v13  ;;  %2300 = vbcast.lane.b32.xlu0 %v1978_v3, 336 }
 0x3a8   :  { %2304 = vbcast.lane.b32.xlu1 %v1978_v3, 344  ;;  %v9579_v12 = vpop.permute.xlu1 %2060  ;;  %v9581_v61 = vpop.permute.xlu0 %2071 }
 0x3a9   :  { %13869 = vst [vmem:[#allocation379_spill] sm:$0xff] %v9579_v12  ;;  %13870 = vst [vmem:[#allocation380_spill] sm:$0xff] %v9581_v61  ;;  %2308 = vbcast.lane.b32.xlu0 %v1978_v3, 352 }
 0x3ac   :  { %2312 = vbcast.lane.b32.xlu1 %v1978_v3, 360  ;;  %v9584_v49 = vpop.permute.xlu1 %2068  ;;  %v9586_v48 = vpop.permute.xlu0 %2079 }
 0x3ad   :  { %13871 = vst [vmem:[#allocation381_spill] sm:$0xff] %v9584_v49  ;;  %13872 = vst [vmem:[#allocation382_spill] sm:$0xff] %v9586_v48  ;;  %2316 = vbcast.lane.b32.xlu0 %v1978_v3, 368 }
 0x3b0   :  { %2320 = vbcast.lane.b32.xlu1 %v1978_v3, 376  ;;  %v9589_v34 = vpop.permute.xlu1 %2075  ;;  %v9591_v23 = vpop.permute.xlu0 %2087 }
 0x3b1   :  { %13873 = vst [vmem:[#allocation383_spill] sm:$0xff] %v9589_v34  ;;  %13874 = vst [vmem:[#allocation384_spill] sm:$0xff] %v9591_v23  ;;  %2323 = vbcast.lane.b32.xlu0 %v1982_v35, 256 }
 0x3b4   :  { %2327 = vbcast.lane.b32.xlu1 %v1982_v35, 264  ;;  %v9593_v22 = vpop.permute.xlu1 %2083  ;;  %v9595_v9 = vpop.permute.xlu0 %2095 }
 0x3b5   :  { %13875 = vst [vmem:[#allocation385_spill] sm:$0xff] %v9593_v22  ;;  %13876 = vst [vmem:[#allocation386_spill] sm:$0xff] %v9595_v9  ;;  %2331 = vbcast.lane.b32.xlu0 %v1982_v35, 272 }
 0x3b8   :  { %2335 = vbcast.lane.b32.xlu1 %v1982_v35, 280  ;;  %v9597_v8 = vpop.permute.xlu1 %2091  ;;  %v9599_v1 = vpop.permute.xlu0 %2103 }
 0x3b9   :  { %13877 = vst [vmem:[#allocation387_spill] sm:$0xff] %v9597_v8  ;;  %13878 = vst [vmem:[#allocation388_spill] sm:$0xff] %v9599_v1  ;;  %2339 = vbcast.lane.b32.xlu0 %v1982_v35, 288 }
 0x3bc   :  { %2343 = vbcast.lane.b32.xlu1 %v1982_v35, 296  ;;  %v9601_v60 = vpop.permute.xlu1 %2099  ;;  %v9603_v3 = vpop.permute.xlu0 %2111 }
 0x3bd   :  { %13879 = vst [vmem:[#allocation389_spill] sm:$0xff] %v9601_v60  ;;  %13880 = vst [vmem:[#allocation390_spill] sm:$0xff] %v9603_v3  ;;  %2347 = vbcast.lane.b32.xlu0 %v1982_v35, 304  ;;  %v1985_v3 = vsub.s32 6, %v9392_v2 }
 0x3c0   :  { %2351 = vbcast.lane.b32.xlu1 %v1982_v35, 312  ;;  %v9605_v0 = vpop.permute.xlu1 %2107  ;;  %v9607_v55 = vpop.permute.xlu0 %2119 }
 0x3c1   :  { %13881 = vst [vmem:[#allocation391_spill] sm:$0xff] %v9605_v0  ;;  %13882 = vst [vmem:[#allocation392_spill] sm:$0xff] %v9607_v55  ;;  %2355 = vbcast.lane.b32.xlu0 %v1982_v35, 320  ;;  %v1986_v55 = vrot.slane %v9404_v42, %v1985_v3 }
 0x3c4   :  { %2359 = vbcast.lane.b32.xlu1 %v1982_v35, 328  ;;  %v9609_v54 = vpop.permute.xlu1 %2115  ;;  %v9611_v47 = vpop.permute.xlu0 %2127 }
 0x3c5   :  { %13883 = vst [vmem:[#allocation393_spill] sm:$0xff] %v9609_v54  ;;  %13884 = vst [vmem:[#allocation394_spill] sm:$0xff] %v9611_v47  ;;  %2363 = vbcast.lane.b32.xlu0 %v1982_v35, 336 }
 0x3c8   :  { %2367 = vbcast.lane.b32.xlu1 %v1982_v35, 344  ;;  %v9613_v46 = vpop.permute.xlu1 %2123  ;;  %v9615_v37 = vpop.permute.xlu0 %2134 }
 0x3c9   :  { %13885 = vst [vmem:[#allocation395_spill] sm:$0xff] %v9613_v46  ;;  %13886 = vst [vmem:[#allocation396_spill] sm:$0xff] %v9615_v37  ;;  %2371 = vbcast.lane.b32.xlu0 %v1982_v35, 352 }
 0x3cc   :  { %2375 = vbcast.lane.b32.xlu1 %v1982_v35, 360  ;;  %v9618_v1 = vpop.permute.xlu1 %2131  ;;  %v9620_v36 = vpop.permute.xlu0 %2142 }
 0x3cd   :  { %13887 = vst [vmem:[#allocation397_spill] sm:$0xff] %v9618_v1  ;;  %13888 = vst [vmem:[#allocation398_spill] sm:$0xff] %v9620_v36  ;;  %2379 = vbcast.lane.b32.xlu0 %v1982_v35, 368 }
 0x3d0   :  { %2383 = vbcast.lane.b32.xlu1 %v1982_v35, 376  ;;  %v9623_v54 = vpop.permute.xlu1 %2138  ;;  %v9625_v47 = vpop.permute.xlu0 %2150 }
 0x3d1   :  { %13889 = vst [vmem:[#allocation399_spill] sm:$0xff] %v9623_v54  ;;  %13890 = vst [vmem:[#allocation400_spill] sm:$0xff] %v9625_v47  ;;  %2386 = vbcast.lane.b32.xlu0 %v1986_v55, 256 }
 0x3d4   :  { %2390 = vbcast.lane.b32.xlu1 %v1986_v55, 264  ;;  %v9627_v46 = vpop.permute.xlu1 %2146  ;;  %v9629_v37 = vpop.permute.xlu0 %2158 }
 0x3d5   :  { %13891 = vst [vmem:[#allocation401_spill] sm:$0xff] %v9627_v46  ;;  %13892 = vst [vmem:[#allocation402_spill] sm:$0xff] %v9629_v37  ;;  %2394 = vbcast.lane.b32.xlu0 %v1986_v55, 272 }
 0x3d8   :  { %2398 = vbcast.lane.b32.xlu1 %v1986_v55, 280  ;;  %v9631_v29 = vpop.permute.xlu1 %2154  ;;  %v9633_v1 = vpop.permute.xlu0 %2166 }
 0x3d9   :  { %13893 = vst [vmem:[#allocation403_spill] sm:$0xff] %v9631_v29  ;;  %13894 = vst [vmem:[#allocation404_spill] sm:$0xff] %v9633_v1  ;;  %2402 = vbcast.lane.b32.xlu0 %v1986_v55, 288 }
 0x3dc   :  { %2406 = vbcast.lane.b32.xlu1 %v1986_v55, 296  ;;  %v9635_v3 = vpop.permute.xlu1 %2162  ;;  %v9637_v35 = vpop.permute.xlu0 %2174 }
 0x3dd   :  { %13895 = vst [vmem:[#allocation405_spill] sm:$0xff] %v9635_v3  ;;  %13896 = vst [vmem:[#allocation406_spill] sm:$0xff] %v9637_v35  ;;  %2410 = vbcast.lane.b32.xlu0 %v1986_v55, 304  ;;  %v1989_v35 = vsub.s32 7, %v9392_v2 }
 0x3e0   :  { %2414 = vbcast.lane.b32.xlu1 %v1986_v55, 312  ;;  %v9639_v47 = vpop.permute.xlu1 %2170  ;;  %v9641_v36 = vpop.permute.xlu0 %2182 }
 0x3e1   :  { %13897 = vst [vmem:[#allocation407_spill] sm:$0xff] %v9639_v47  ;;  %13898 = vst [vmem:[#allocation408_spill] sm:$0xff] %v9641_v36  ;;  %2418 = vbcast.lane.b32.xlu0 %v1986_v55, 320  ;;  %v1990_v36 = vrot.slane %v9404_v42, %v1989_v35 }
 0x3e4   :  { %2422 = vbcast.lane.b32.xlu1 %v1986_v55, 328  ;;  %v9643_v37 = vpop.permute.xlu1 %2178  ;;  %v9645_v46 = vpop.permute.xlu0 %2190 }
 0x3e5   :  { %13899 = vst [vmem:[#allocation409_spill] sm:$0xff] %v9643_v37  ;;  %13900 = vst [vmem:[#allocation410_spill] sm:$0xff] %v9645_v46  ;;  %2426 = vbcast.lane.b32.xlu0 %v1986_v55, 336 }
 0x3e8   :  { %2430 = vbcast.lane.b32.xlu1 %v1986_v55, 344  ;;  %v9647_v1 = vpop.permute.xlu1 %2186  ;;  %v9649_v29 = vpop.permute.xlu0 %2197 }
 0x3e9   :  { %13901 = vst [vmem:[#allocation411_spill] sm:$0xff] %v9647_v1  ;;  %13902 = vst [vmem:[#allocation412_spill] sm:$0xff] %v9649_v29  ;;  %2434 = vbcast.lane.b32.xlu0 %v1986_v55, 352 }
 0x3ec   :  { %2438 = vbcast.lane.b32.xlu1 %v1986_v55, 360  ;;  %v9652_v3 = vpop.permute.xlu1 %2194  ;;  %v9654_v47 = vpop.permute.xlu0 %2205 }
 0x3ed   :  { %13903 = vst [vmem:[#allocation413_spill] sm:$0xff] %v9652_v3  ;;  %13904 = vst [vmem:[#allocation414_spill] sm:$0xff] %v9654_v47  ;;  %2442 = vbcast.lane.b32.xlu0 %v1986_v55, 368 }
 0x3f0   :  { %2446 = vbcast.lane.b32.xlu1 %v1986_v55, 376  ;;  %v9657_v37 = vpop.permute.xlu1 %2201  ;;  %v9659_v46 = vpop.permute.xlu0 %2213 }
 0x3f1   :  { %13905 = vst [vmem:[#allocation415_spill] sm:$0xff] %v9657_v37  ;;  %13906 = vst [vmem:[#allocation416_spill] sm:$0xff] %v9659_v46  ;;  %2449 = vbcast.lane.b32.xlu0 %v1990_v36, 256 }
 0x3f4   :  { %2453 = vbcast.lane.b32.xlu1 %v1990_v36, 264  ;;  %v9661_v1 = vpop.permute.xlu1 %2209  ;;  %v9663_v29 = vpop.permute.xlu0 %2221 }
 0x3f5   :  { %13907 = vst [vmem:[#allocation417_spill] sm:$0xff] %v9661_v1  ;;  %13908 = vst [vmem:[#allocation418_spill] sm:$0xff] %v9663_v29  ;;  %2457 = vbcast.lane.b32.xlu0 %v1990_v36, 272 }
 0x3f8   :  { %2461 = vbcast.lane.b32.xlu1 %v1990_v36, 280  ;;  %v9665_v54 = vpop.permute.xlu1 %2217  ;;  %v9667_v3 = vpop.permute.xlu0 %2229 }
 0x3f9   :  { %13909 = vst [vmem:[#allocation419_spill] sm:$0xff] %v9665_v54  ;;  %13910 = vst [vmem:[#allocation420_spill] sm:$0xff] %v9667_v3  ;;  %2465 = vbcast.lane.b32.xlu0 %v1990_v36, 288 }
 0x3fc   :  { %2469 = vbcast.lane.b32.xlu1 %v1990_v36, 296  ;;  %v9669_v42 = vpop.permute.xlu1 %2225  ;;  %v9671_v55 = vpop.permute.xlu0 %2237 }
 0x3fd   :  { %13911 = vst [vmem:[#allocation421_spill] sm:$0xff] %v9669_v42  ;;  %13912 = vst [vmem:[#allocation422_spill] sm:$0xff] %v9671_v55  ;;  %2473 = vbcast.lane.b32.xlu0 %v1990_v36, 304  ;;  %v9688_v55 = vld [vmem:[%s13281_s6 + $0x8] sm:$0xf] }
 0x400   :  { %2477 = vbcast.lane.b32.xlu1 %v1990_v36, 312  ;;  %v9673_v35 = vpop.permute.xlu1 %2233  ;;  %v9675_v46 = vpop.permute.xlu0 %2245 }
 0x401   :  { %13913 = vst [vmem:[#allocation423_spill] sm:$0xff] %v9673_v35  ;;  %13914 = vst [vmem:[#allocation424_spill] sm:$0xff] %v9675_v46  ;;  %2481 = vbcast.lane.b32.xlu0 %v1990_v36, 320 }
 0x404   :  { %2485 = vbcast.lane.b32.xlu1 %v1990_v36, 328  ;;  %v9677_v29 = vpop.permute.xlu1 %2241  ;;  %v9679_v47 = vpop.permute.xlu0 %2253 }
 0x405   :  { %13915 = vst [vmem:[#allocation425_spill] sm:$0xff] %v9677_v29  ;;  %13916 = vst [vmem:[#allocation426_spill] sm:$0xff] %v9679_v47  ;;  %2489 = vbcast.lane.b32.xlu0 %v1990_v36, 336  ;;  %v1994_v47 = vrot.slane %v9688_v55, %v9399_v24  ;;  %v7167_v29 = vmov 0  }
 0x406   :  { %7161 = vset.pattern.permute.xlu0 %v7167_v29  ;;  %7162 = vset.pattern.permute.xlu1 %v7167_v29 }
 0x408   :  { %2493 = vbcast.lane.b32.xlu1 %v1990_v36, 344  ;;  %v9681_v3 = vpop.permute.xlu1 %2249  ;;  %v9683_v54 = vpop.permute.xlu0 %2260 }
 0x409   :  { %13917 = vst [vmem:[#allocation427_spill] sm:$0xff] %v9681_v3  ;;  %13918 = vst [vmem:[#allocation428_spill] sm:$0xff] %v9683_v54  ;;  %2497 = vbcast.lane.b32.xlu0 %v1990_v36, 352 }
 0x40c   :  { %2501 = vbcast.lane.b32.xlu1 %v1990_v36, 360  ;;  %v9690_v46 = vpop.permute.xlu1 %2257  ;;  %v9692_v35 = vpop.permute.xlu0 %2268 }
 0x40d   :  { %13919 = vst [vmem:[#allocation429_spill] sm:$0xff] %v9690_v46  ;;  %13920 = vst [vmem:[#allocation430_spill] sm:$0xff] %v9692_v35  ;;  %2505 = vbcast.lane.b32.xlu0 %v1990_v36, 368 }
 0x410   :  { %2509 = vbcast.lane.b32.xlu1 %v1990_v36, 376  ;;  %v9696_v54 = vpop.permute.xlu1 %2264  ;;  %v9698_v3 = vpop.permute.xlu0 %2276 }
 0x411   :  { %13921 = vst [vmem:[#allocation431_spill] sm:$0xff] %v9696_v54  ;;  %13922 = vst [vmem:[#allocation432_spill] sm:$0xff] %v9698_v3  ;;  %2512 = vbcast.lane.b32.xlu0 %v1994_v47, 256 }
 0x414   :  { %2516 = vbcast.lane.b32.xlu1 %v1994_v47, 264  ;;  %v9700_v42 = vpop.permute.xlu1 %2272  ;;  %v9702_v1 = vpop.permute.xlu0 %2284 }
 0x415   :  { %13923 = vst [vmem:[#allocation433_spill] sm:$0xff] %v9700_v42  ;;  %13924 = vst [vmem:[#allocation434_spill] sm:$0xff] %v9702_v1  ;;  %2520 = vbcast.lane.b32.xlu0 %v1994_v47, 272 }
 0x418   :  { %2524 = vbcast.lane.b32.xlu1 %v1994_v47, 280  ;;  %v9704_v35 = vpop.permute.xlu1 %2280  ;;  %v9706_v46 = vpop.permute.xlu0 %2292 }
 0x419   :  { %13925 = vst [vmem:[#allocation435_spill] sm:$0xff] %v9704_v35  ;;  %13926 = vst [vmem:[#allocation436_spill] sm:$0xff] %v9706_v46  ;;  %2528 = vbcast.lane.b32.xlu0 %v1994_v47, 288 }
 0x41c   :  { %2532 = vbcast.lane.b32.xlu1 %v1994_v47, 296  ;;  %v9708_v29 = vpop.permute.xlu1 %2288  ;;  %v9710_v36 = vpop.permute.xlu0 %2300 }
 0x41d   :  { %13927 = vst [vmem:[#allocation437_spill] sm:$0xff] %v9708_v29  ;;  %13928 = vst [vmem:[#allocation438_spill] sm:$0xff] %v9710_v36  ;;  %2536 = vbcast.lane.b32.xlu0 %v1994_v47, 304 }
 0x420   :  { %2540 = vbcast.lane.b32.xlu1 %v1994_v47, 312  ;;  %v9712_v24 = vpop.permute.xlu1 %2296  ;;  %v9714_v3 = vpop.permute.xlu0 %2308 }
 0x421   :  { %13929 = vst [vmem:[#allocation439_spill] sm:$0xff] %v9712_v24  ;;  %13930 = vst [vmem:[#allocation440_spill] sm:$0xff] %v9714_v3  ;;  %2544 = vbcast.lane.b32.xlu0 %v1994_v47, 320  ;;  %v1998_v3 = vrot.slane %v9688_v55, %v9441_v58 }
 0x424   :  { %2548 = vbcast.lane.b32.xlu1 %v1994_v47, 328  ;;  %v9716_v1 = vpop.permute.xlu1 %2304  ;;  %v9718_v42 = vpop.permute.xlu0 %2316 }
 0x425   :  { %13931 = vst [vmem:[#allocation441_spill] sm:$0xff] %v9716_v1  ;;  %13932 = vst [vmem:[#allocation442_spill] sm:$0xff] %v9718_v42  ;;  %2552 = vbcast.lane.b32.xlu0 %v1994_v47, 336 }
 0x428   :  { %2556 = vbcast.lane.b32.xlu1 %v1994_v47, 344  ;;  %v9720_v46 = vpop.permute.xlu1 %2312  ;;  %v9722_v35 = vpop.permute.xlu0 %2323 }
 0x429   :  { %13933 = vst [vmem:[#allocation443_spill] sm:$0xff] %v9720_v46  ;;  %13934 = vst [vmem:[#allocation444_spill] sm:$0xff] %v9722_v35  ;;  %2560 = vbcast.lane.b32.xlu0 %v1994_v47, 352 }
 0x42c   :  { %2564 = vbcast.lane.b32.xlu1 %v1994_v47, 360  ;;  %v9724_v36 = vpop.permute.xlu1 %2320  ;;  %v9726_v29 = vpop.permute.xlu0 %2331 }
 0x42d   :  { %13935 = vst [vmem:[#allocation445_spill] sm:$0xff] %v9724_v36  ;;  %13936 = vst [vmem:[#allocation446_spill] sm:$0xff] %v9726_v29  ;;  %2568 = vbcast.lane.b32.xlu0 %v1994_v47, 368 }
 0x430   :  { %2572 = vbcast.lane.b32.xlu1 %v1994_v47, 376  ;;  %v9730_v1 = vpop.permute.xlu1 %2327  ;;  %v9732_v42 = vpop.permute.xlu0 %2339 }
 0x431   :  { %13937 = vst [vmem:[#allocation447_spill] sm:$0xff] %v9730_v1  ;;  %13938 = vst [vmem:[#allocation448_spill] sm:$0xff] %v9732_v42  ;;  %2575 = vbcast.lane.b32.xlu0 %v1998_v3, 256 }
 0x434   :  { %2579 = vbcast.lane.b32.xlu1 %v1998_v3, 264  ;;  %v9734_v46 = vpop.permute.xlu1 %2335  ;;  %v9736_v35 = vpop.permute.xlu0 %2347 }
 0x435   :  { %13939 = vst [vmem:[#allocation449_spill] sm:$0xff] %v9734_v46  ;;  %13940 = vst [vmem:[#allocation450_spill] sm:$0xff] %v9736_v35  ;;  %2583 = vbcast.lane.b32.xlu0 %v1998_v3, 272 }
 0x438   :  { %2587 = vbcast.lane.b32.xlu1 %v1998_v3, 280  ;;  %v9738_v36 = vpop.permute.xlu1 %2343  ;;  %v9740_v29 = vpop.permute.xlu0 %2355 }
 0x439   :  { %13941 = vst [vmem:[#allocation451_spill] sm:$0xff] %v9738_v36  ;;  %13942 = vst [vmem:[#allocation452_spill] sm:$0xff] %v9740_v29  ;;  %2591 = vbcast.lane.b32.xlu0 %v1998_v3, 288 }
 0x43c   :  { %2595 = vbcast.lane.b32.xlu1 %v1998_v3, 296  ;;  %v9742_v58 = vpop.permute.xlu1 %2351  ;;  %v9744_v47 = vpop.permute.xlu0 %2363 }
 0x43d   :  { %13943 = vst [vmem:[#allocation453_spill] sm:$0xff] %v9742_v58  ;;  %13944 = vst [vmem:[#allocation454_spill] sm:$0xff] %v9744_v47  ;;  %2599 = vbcast.lane.b32.xlu0 %v1998_v3, 304 }
 0x440   :  { %2603 = vbcast.lane.b32.xlu1 %v1998_v3, 312  ;;  %v9746_v42 = vpop.permute.xlu1 %2359  ;;  %v9748_v1 = vpop.permute.xlu0 %2371 }
 0x441   :  { %13945 = vst [vmem:[#allocation455_spill] sm:$0xff] %v9746_v42  ;;  %13946 = vst [vmem:[#allocation456_spill] sm:$0xff] %v9748_v1  ;;  %2607 = vbcast.lane.b32.xlu0 %v1998_v3, 320  ;;  %v13953_v1 = vsub.s32 2, %v9392_v2 }
 0x443   :  { %v2002_v42 = vrot.slane %v9688_v55, %v13953_v1 }
 0x444   :  { %2611 = vbcast.lane.b32.xlu1 %v1998_v3, 328  ;;  %v9750_v35 = vpop.permute.xlu1 %2367  ;;  %v9752_v46 = vpop.permute.xlu0 %2379 }
 0x445   :  { %13947 = vst [vmem:[#allocation457_spill] sm:$0xff] %v9750_v35  ;;  %13948 = vst [vmem:[#allocation458_spill] sm:$0xff] %v9752_v46  ;;  %2615 = vbcast.lane.b32.xlu0 %v1998_v3, 336 }
 0x448   :  { %2619 = vbcast.lane.b32.xlu1 %v1998_v3, 344  ;;  %v9754_v29 = vpop.permute.xlu1 %2375  ;;  %v9756_v36 = vpop.permute.xlu0 %2386 }
 0x449   :  { %13949 = vst [vmem:[#allocation459_spill] sm:$0xff] %v9754_v29  ;;  %13950 = vst [vmem:[#allocation460_spill] sm:$0xff] %v9756_v36  ;;  %2623 = vbcast.lane.b32.xlu0 %v1998_v3, 352 }
 0x44c   :  { %2627 = vbcast.lane.b32.xlu1 %v1998_v3, 360  ;;  %v9758_v47 = vpop.permute.xlu1 %2383  ;;  %v9760_v58 = vpop.permute.xlu0 %2394 }
 0x44d   :  { %13951 = vst [vmem:[#allocation461_spill] sm:$0xff] %v9758_v47  ;;  %13952 = vst [vmem:[#allocation462_spill] sm:$0xff] %v9760_v58  ;;  %2631 = vbcast.lane.b32.xlu0 %v1998_v3, 368 }
 0x450   :  { %2635 = vbcast.lane.b32.xlu1 %v1998_v3, 376  ;;  %v9765_v35 = vpop.permute.xlu1 %2390  ;;  %v9767_v46 = vpop.permute.xlu0 %2402 }
 0x451   :  { %13954 = vst [vmem:[#allocation463_spill] sm:$0xff] %v9765_v35  ;;  %13955 = vst [vmem:[#allocation464_spill] sm:$0xff] %v9767_v46  ;;  %2638 = vbcast.lane.b32.xlu0 %v2002_v42, 256 }
 0x454   :  { %2642 = vbcast.lane.b32.xlu1 %v2002_v42, 264  ;;  %v9769_v29 = vpop.permute.xlu1 %2398  ;;  %v9771_v36 = vpop.permute.xlu0 %2410 }
 0x455   :  { %13956 = vst [vmem:[#allocation465_spill] sm:$0xff] %v9769_v29  ;;  %13957 = vst [vmem:[#allocation466_spill] sm:$0xff] %v9771_v36  ;;  %2646 = vbcast.lane.b32.xlu0 %v2002_v42, 272 }
 0x458   :  { %2650 = vbcast.lane.b32.xlu1 %v2002_v42, 280  ;;  %v9773_v47 = vpop.permute.xlu1 %2406  ;;  %v9775_v58 = vpop.permute.xlu0 %2418 }
 0x459   :  { %13958 = vst [vmem:[#allocation467_spill] sm:$0xff] %v9773_v47  ;;  %13959 = vst [vmem:[#allocation468_spill] sm:$0xff] %v9775_v58  ;;  %2654 = vbcast.lane.b32.xlu0 %v2002_v42, 288 }
 0x45c   :  { %2658 = vbcast.lane.b32.xlu1 %v2002_v42, 296  ;;  %v9777_v1 = vpop.permute.xlu1 %2414  ;;  %v9779_v3 = vpop.permute.xlu0 %2426 }
 0x45d   :  { %13960 = vst [vmem:[#allocation469_spill] sm:$0xff] %v9777_v1  ;;  %13961 = vst [vmem:[#allocation470_spill] sm:$0xff] %v9779_v3  ;;  %2662 = vbcast.lane.b32.xlu0 %v2002_v42, 304 }
 0x460   :  { %2666 = vbcast.lane.b32.xlu1 %v2002_v42, 312  ;;  %v9781_v46 = vpop.permute.xlu1 %2422  ;;  %v9783_v35 = vpop.permute.xlu0 %2434 }
 0x461   :  { %13962 = vst [vmem:[#allocation471_spill] sm:$0xff] %v9781_v46  ;;  %13963 = vst [vmem:[#allocation472_spill] sm:$0xff] %v9783_v35  ;;  %2670 = vbcast.lane.b32.xlu0 %v2002_v42, 320  ;;  %v13970_v35 = vsub.s32 3, %v9392_v2 }
 0x463   :  { %v2006_v46 = vrot.slane %v9688_v55, %v13970_v35 }
 0x464   :  { %2674 = vbcast.lane.b32.xlu1 %v2002_v42, 328  ;;  %v9785_v36 = vpop.permute.xlu1 %2430  ;;  %v9787_v29 = vpop.permute.xlu0 %2442 }
 0x465   :  { %13964 = vst [vmem:[#allocation473_spill] sm:$0xff] %v9785_v36  ;;  %13965 = vst [vmem:[#allocation474_spill] sm:$0xff] %v9787_v29  ;;  %2678 = vbcast.lane.b32.xlu0 %v2002_v42, 336 }
 0x468   :  { %2682 = vbcast.lane.b32.xlu1 %v2002_v42, 344  ;;  %v9789_v58 = vpop.permute.xlu1 %2438  ;;  %v9791_v47 = vpop.permute.xlu0 %2449 }
 0x469   :  { %13966 = vst [vmem:[#allocation475_spill] sm:$0xff] %v9789_v58  ;;  %13967 = vst [vmem:[#allocation476_spill] sm:$0xff] %v9791_v47  ;;  %2686 = vbcast.lane.b32.xlu0 %v2002_v42, 352 }
 0x46c   :  { %2690 = vbcast.lane.b32.xlu1 %v2002_v42, 360  ;;  %v9793_v3 = vpop.permute.xlu1 %2446  ;;  %v9795_v1 = vpop.permute.xlu0 %2457 }
 0x46d   :  { %13968 = vst [vmem:[#allocation477_spill] sm:$0xff] %v9793_v3  ;;  %13969 = vst [vmem:[#allocation478_spill] sm:$0xff] %v9795_v1  ;;  %2694 = vbcast.lane.b32.xlu0 %v2002_v42, 368 }
 0x470   :  { %2698 = vbcast.lane.b32.xlu1 %v2002_v42, 376  ;;  %v9800_v36 = vpop.permute.xlu1 %2453  ;;  %v9802_v29 = vpop.permute.xlu0 %2465 }
 0x471   :  { %13971 = vst [vmem:[#allocation479_spill] sm:$0xff] %v9800_v36  ;;  %13972 = vst [vmem:[#allocation480_spill] sm:$0xff] %v9802_v29  ;;  %2701 = vbcast.lane.b32.xlu0 %v2006_v46, 256 }
 0x474   :  { %2705 = vbcast.lane.b32.xlu1 %v2006_v46, 264  ;;  %v9804_v58 = vpop.permute.xlu1 %2461  ;;  %v9806_v47 = vpop.permute.xlu0 %2473 }
 0x475   :  { %13973 = vst [vmem:[#allocation481_spill] sm:$0xff] %v9804_v58  ;;  %13974 = vst [vmem:[#allocation482_spill] sm:$0xff] %v9806_v47  ;;  %2709 = vbcast.lane.b32.xlu0 %v2006_v46, 272 }
 0x478   :  { %2713 = vbcast.lane.b32.xlu1 %v2006_v46, 280  ;;  %v9808_v3 = vpop.permute.xlu1 %2469  ;;  %v9810_v1 = vpop.permute.xlu0 %2481 }
 0x479   :  { %13975 = vst [vmem:[#allocation483_spill] sm:$0xff] %v9808_v3  ;;  %13976 = vst [vmem:[#allocation484_spill] sm:$0xff] %v9810_v1  ;;  %2717 = vbcast.lane.b32.xlu0 %v2006_v46, 288 }
 0x47c   :  { %2721 = vbcast.lane.b32.xlu1 %v2006_v46, 296  ;;  %v9812_v55 = vpop.permute.xlu1 %2477  ;;  %v9814_v42 = vpop.permute.xlu0 %2489 }
 0x47d   :  { %13977 = vst [vmem:[#allocation485_spill] sm:$0xff] %v9812_v55  ;;  %13978 = vst [vmem:[#allocation486_spill] sm:$0xff] %v9814_v42  ;;  %2725 = vbcast.lane.b32.xlu0 %v2006_v46, 304 }
 0x480   :  { %2729 = vbcast.lane.b32.xlu1 %v2006_v46, 312  ;;  %v9816_v35 = vpop.permute.xlu1 %2485  ;;  %v9818_v2 = vpop.permute.xlu0 %2497 }
 0x481   :  { %13979 = vst [vmem:[#allocation487_spill] sm:$0xff] %v9816_v35  ;;  %13980 = vst [vmem:[#allocation488_spill] sm:$0xff] %v9818_v2  ;;  %2733 = vbcast.lane.b32.xlu0 %v2006_v46, 320  ;;  %v1571_v2 = vmul.f32 0.015625, %v7507_v15 }
 0x483   :  { %v2955_v35 = vmul.f32 %v9552_v59, %v1571_v2 }
 0x484   :  { %2737 = vbcast.lane.b32.xlu1 %v2006_v46, 328  ;;  %v9820_v47 = vpop.permute.xlu1 %2493  ;;  %v9822_v29 = vpop.permute.xlu0 %2505 }
 0x485   :  { %13981 = vst [vmem:[#allocation489_spill] sm:$0xff] %v9820_v47  ;;  %13982 = vst [vmem:[#allocation490_spill] sm:$0xff] %v9822_v29  ;;  %2741 = vbcast.lane.b32.xlu0 %v2006_v46, 336  ;;  %v1572_v47 = vmul.f32 0.015625, %v7519_v21  ;;  %v1576_v21 = vmul.f32 0.015625, %v7529_v26  ;;  %v1577_v26 = vmul.f32 0.015625, %v7543_v33 }
 0x486   :  { %v1582_v33 = vmul.f32 0.015625, %v7565_v44  ;;  %v1583_v44 = vmul.f32 0.015625, %v7579_v51  ;;  %v1588_v51 = vmul.f32 0.015625, %v7601_v62  ;;  %v1589_v62 = vmul.f32 0.015625, %v7615_v5 }
 0x487   :  { %v2960_v59 = vmul.f32 %v9563_v6, %v1576_v21  ;;  %v2961_v21 = vmul.f32 %v9561_v41, %v1577_v26  ;;  %v1594_v5 = vmul.f32 0.015625, %v7637_v18  ;;  %v14002_v18 = vld [vmem:[#allocation3_spill] sm:$0xff] }
 0x488   :  { %2745 = vbcast.lane.b32.xlu1 %v2006_v46, 344  ;;  %v9824_v1 = vpop.permute.xlu1 %2501  ;;  %v9826_v3 = vpop.permute.xlu0 %2512 }
 0x489   :  { %13983 = vst [vmem:[#allocation491_spill] sm:$0xff] %v9824_v1  ;;  %13984 = vst [vmem:[#allocation492_spill] sm:$0xff] %v9826_v3  ;;  %2749 = vbcast.lane.b32.xlu0 %v2006_v46, 352  ;;  %v1574_v3 = vmul.f32 0.015625, %v7517_v20  ;;  %v2956_v1 = vmul.f32 %v9550_v40, %v1572_v47  ;;  %v1575_v20 = vmul.f32 0.015625, %v7531_v27  ;;  %v1580_v27 = vmul.f32 0.015625, %v7553_v38 }
 0x48a   :  { %v1581_v38 = vmul.f32 0.015625, %v7567_v45  ;;  %v1586_v45 = vmul.f32 0.015625, %v7589_v56  ;;  %v1587_v56 = vmul.f32 0.015625, %v7603_v63  ;;  %v1592_v63 = vmul.f32 0.015625, %v7625_v10 }
 0x48b   :  { %v1593_v10 = vmul.f32 0.015625, %v7639_v19  ;;  %v14005_v19 = vld [vmem:[#allocation4_spill] sm:$0xff] }
 0x48c   :  { %2753 = vbcast.lane.b32.xlu1 %v2006_v46, 360  ;;  %v9828_v42 = vpop.permute.xlu1 %2509  ;;  %v9830_v55 = vpop.permute.xlu0 %2520 }
 0x48d   :  { %13985 = vst [vmem:[#allocation493_spill] sm:$0xff] %v9828_v42  ;;  %13986 = vst [vmem:[#allocation494_spill] sm:$0xff] %v9830_v55  ;;  %2757 = vbcast.lane.b32.xlu0 %v2006_v46, 368  ;;  %v2958_v42 = vmul.f32 %v9559_v16, %v1574_v3  ;;  %v1573_v55 = vmul.f32 0.015625, %v7505_v14  ;;  %v1578_v14 = vmul.f32 0.015625, %v7541_v32  ;;  %v1579_v32 = vmul.f32 0.015625, %v7555_v39 }
 0x48e   :  { %v1584_v39 = vmul.f32 0.015625, %v7577_v50  ;;  %v1585_v50 = vmul.f32 0.015625, %v7591_v57  ;;  %v1590_v57 = vmul.f32 0.015625, %v7613_v4  ;;  %v1591_v4 = vmul.f32 0.015625, %v7627_v11 }
 0x48f   :  { %v2962_v3 = vmul.f32 %v9567_v17, %v1578_v14  ;;  %v2963_v14 = vmul.f32 %v9565_v53, %v1579_v32  ;;  %v1596_v11 = vmul.f32 0.015625, %v7649_v28  ;;  %v14008_v28 = vld [vmem:[#allocation5_spill] sm:$0xff] }
 0x490   :  { %2761 = vbcast.lane.b32.xlu1 %v2006_v46, 376  ;;  %v9835_v29 = vpop.permute.xlu1 %2516  ;;  %v9837_v58 = vpop.permute.xlu0 %2528  ;;  %v2957_v46 = vmul.f32 %v9555_v43, %v1573_v55 }
 0x491   :  { %13987 = vst [vmem:[#allocation495_spill] sm:$0xff] %v9835_v29  ;;  %3724 = vperm.xlu0 %7161, %v2955_v35  }
 0x494   :  { %v9843_v15 = vpop.permute.xlu1 %2524  ;;  %3727 = vperm.xlu1 %7162, %v2956_v1   ;;  %v9845_v2 = vpop.permute.xlu0 %2536  ;;  %v2959_v1 = vmul.f32 %v9557_v25, %v1575_v20 }
 0x495   :  { %3733 = vperm.xlu0 %7161, %v2958_v42  }
 0x498   :  { %v9851_v35 = vpop.permute.xlu1 %2532  ;;  %3730 = vperm.xlu1 %7162, %v2957_v46   ;;  %v9853_v47 = vpop.permute.xlu0 %2544  ;;  %v2964_v46 = vmul.f32 %v9571_v52, %v1580_v27  ;;  %v2965_v27 = vmul.f32 %v9569_v7, %v1581_v38 }
 0x499   :  { %3739 = vperm.xlu0 %7161, %v2960_v59  }
 0x49c   :  { %v9859_v42 = vpop.permute.xlu1 %2540  ;;  %3736 = vperm.xlu1 %7162, %v2959_v1   ;;  %v9861_v55 = vpop.permute.xlu0 %2552  ;;  %v2966_v1 = vmul.f32 %v9575_v30, %v1582_v33  ;;  %v2967_v33 = vmul.f32 %v9573_v31, %v1583_v44 }
 0x49d   :  { %3745 = vperm.xlu0 %7161, %v2962_v3  }
 0x4a0   :  { %v9867_v59 = vpop.permute.xlu1 %2548  ;;  %3742 = vperm.xlu1 %7162, %v2961_v21   ;;  %v9869_v20 = vpop.permute.xlu0 %2560  ;;  %v2968_v21 = vmul.f32 %v9579_v12, %v1584_v39  ;;  %v2969_v39 = vmul.f32 %v9577_v13, %v1585_v50 }
 0x4a1   :  { %3751 = vperm.xlu0 %7161, %v2964_v46  }
 0x4a4   :  { %v9875_v3 = vpop.permute.xlu1 %2556  ;;  %3748 = vperm.xlu1 %7162, %v2963_v14   ;;  %v9877_v26 = vpop.permute.xlu0 %2568  ;;  %v2970_v14 = vmul.f32 %v9584_v49, %v1586_v45  ;;  %v2971_v45 = vmul.f32 %v9581_v61, %v1587_v56 }
 0x4a5   :  { %13988 = vst [vmem:[#allocation496_spill] sm:$0xff] %v9875_v3  ;;  %13989 = vst [vmem:[#allocation497_spill] sm:$0xff] %v9877_v26  ;;  %3757 = vperm.xlu0 %7161, %v2966_v1  }
 0x4a8   :  { %v9883_v46 = vpop.permute.xlu1 %2564  ;;  %3754 = vperm.xlu1 %7162, %v2965_v27   ;;  %v9885_v32 = vpop.permute.xlu0 %2575  ;;  %v2972_v27 = vmul.f32 %v9589_v34, %v1588_v51  ;;  %v2973_v51 = vmul.f32 %v9586_v48, %v1589_v62 }
 0x4a9   :  { %13990 = vst [vmem:[#allocation498_spill] sm:$0xff] %v9883_v46  ;;  %13991 = vst [vmem:[#allocation499_spill] sm:$0xff] %v9885_v32  ;;  %3763 = vperm.xlu0 %7161, %v2968_v21  }
 0x4ac   :  { %v9891_v1 = vpop.permute.xlu1 %2572  ;;  %3760 = vperm.xlu1 %7162, %v2967_v33   ;;  %v9893_v38 = vpop.permute.xlu0 %2583  ;;  %v2974_v33 = vmul.f32 %v9593_v22, %v1590_v57  ;;  %v2975_v57 = vmul.f32 %v9591_v23, %v1591_v4  ;;  %v14007_v23 = vld [vmem:[#allocation393_spill] sm:$0xff] }
 0x4ad   :  { %13992 = vst [vmem:[#allocation500_spill] sm:$0xff] %v9891_v1  ;;  %13993 = vst [vmem:[#allocation501_spill] sm:$0xff] %v9893_v38  ;;  %3769 = vperm.xlu0 %7161, %v2970_v14  }
 0x4b0   :  { %v9899_v21 = vpop.permute.xlu1 %2579  ;;  %3766 = vperm.xlu1 %7162, %v2969_v39   ;;  %v9901_v44 = vpop.permute.xlu0 %2591  ;;  %v2976_v39 = vmul.f32 %v9597_v8, %v1592_v63  ;;  %v2977_v63 = vmul.f32 %v9595_v9, %v1593_v10  ;;  %v14013_v9 = vld [vmem:[#allocation395_spill] sm:$0xff] }
 0x4b1   :  { %13994 = vst [vmem:[#allocation502_spill] sm:$0xff] %v9899_v21  ;;  %13995 = vst [vmem:[#allocation503_spill] sm:$0xff] %v9901_v44  ;;  %3775 = vperm.xlu0 %7161, %v2972_v27  }
 0x4b4   :  { %v9907_v14 = vpop.permute.xlu1 %2587  ;;  %3772 = vperm.xlu1 %7162, %v2971_v45   ;;  %v9909_v50 = vpop.permute.xlu0 %2599  ;;  %v2978_v45 = vmul.f32 %v9601_v60, %v1594_v5  ;;  %v1598_v5 = vmul.f32 0.015625, %v14005_v19  ;;  %v14014_v19 = vld [vmem:[#allocation7_spill] sm:$0xff] }
 0x4b5   :  { %13996 = vst [vmem:[#allocation504_spill] sm:$0xff] %v9907_v14  ;;  %13997 = vst [vmem:[#allocation505_spill] sm:$0xff] %v9909_v50  ;;  %3781 = vperm.xlu0 %7161, %v2974_v33  }
 0x4b6   :  { %v2982_v48 = vmul.f32 %v14007_v23, %v1598_v5  ;;  %v14017_v5 = vld [vmem:[#allocation8_spill] sm:$0xff] }
 0x4b8   :  { %v9915_v27 = vpop.permute.xlu1 %2595  ;;  %3778 = vperm.xlu1 %7162, %v2973_v51   ;;  %v9917_v56 = vpop.permute.xlu0 %2607  ;;  %v2980_v51 = vmul.f32 %v9605_v0, %v1596_v11  ;;  %v14011_v11 = vld [vmem:[#allocation6_spill] sm:$0xff] }
 0x4b9   :  { %13998 = vst [vmem:[#allocation506_spill] sm:$0xff] %v9915_v27  ;;  %13999 = vst [vmem:[#allocation507_spill] sm:$0xff] %v9917_v56  ;;  %3787 = vperm.xlu0 %7161, %v2976_v39   ;;  %v1595_v39 = vmul.f32 0.015625, %v14002_v18  ;;  %v1600_v18 = vmul.f32 0.015625, %v14011_v11  ;;  %v14020_v11 = vld [vmem:[#allocation9_spill] sm:$0xff] }
 0x4bb   :  { %v2984_v61 = vmul.f32 %v14013_v9, %v1600_v18  ;;  %v14023_v18 = vld [vmem:[#allocation10_spill] sm:$0xff] }
 0x4bc   :  { %v9923_v33 = vpop.permute.xlu1 %2603  ;;  %3784 = vperm.xlu1 %7162, %v2975_v57   ;;  %v9925_v62 = vpop.permute.xlu0 %2615  ;;  %v14006_v57 = vld [vmem:[#allocation388_spill] sm:$0xff] }
 0x4bd   :  { %14000 = vst [vmem:[#allocation508_spill] sm:$0xff] %v9923_v33  ;;  %14001 = vst [vmem:[#allocation509_spill] sm:$0xff] %v9925_v62  ;;  %3793 = vperm.xlu0 %7161, %v2978_v45   ;;  %v2979_v60 = vmul.f32 %v14006_v57, %v1595_v39  ;;  %v1597_v45 = vmul.f32 0.015625, %v14008_v28  ;;  %v1602_v28 = vmul.f32 0.015625, %v14017_v5  ;;  %v14019_v57 = vld [vmem:[#allocation397_spill] sm:$0xff]  ;;  %v14026_v5 = vld [vmem:[#allocation11_spill] sm:$0xff] }
 0x4bf   :  { %v2986_v13 = vmul.f32 %v14019_v57, %v1602_v28  ;;  %v14029_v28 = vld [vmem:[#allocation12_spill] sm:$0xff] }
 0x4c0   :  { %v9931_v8 = vpop.permute.xlu1 %2611  ;;  %3790 = vperm.xlu1 %7162, %v2977_v63   ;;  %v9933_v4 = vpop.permute.xlu0 %2623  ;;  %v14012_v63 = vld [vmem:[#allocation390_spill] sm:$0xff] }
 0x4c1   :  { %14003 = vst [vmem:[#allocation3_spill] sm:$0xff] %v9931_v8  ;;  %14004 = vst [vmem:[#allocation510_spill] sm:$0xff] %v9933_v4  ;;  %3799 = vperm.xlu0 %7161, %v2980_v51   ;;  %v2981_v0 = vmul.f32 %v14012_v63, %v1597_v45  ;;  %v1599_v51 = vmul.f32 0.015625, %v14014_v19  ;;  %v1604_v19 = vmul.f32 0.015625, %v14023_v18  ;;  %v14025_v63 = vld [vmem:[#allocation399_spill] sm:$0xff]  ;;  %v14032_v18 = vld [vmem:[#allocation13_spill] sm:$0xff] }
 0x4c3   :  { %v2988_v31 = vmul.f32 %v14025_v63, %v1604_v19  ;;  %v14035_v19 = vld [vmem:[#allocation14_spill] sm:$0xff] }
 0x4c4   :  { %v9939_v22 = vpop.permute.xlu1 %2619  ;;  %3796 = vperm.xlu1 %7162, %v2979_v60   ;;  %v9941_v10 = vpop.permute.xlu0 %2631  ;;  %v14018_v60 = vld [vmem:[#allocation392_spill] sm:$0xff] }
 0x4c5   :  { %14009 = vst [vmem:[#allocation4_spill] sm:$0xff] %v9939_v22  ;;  %14010 = vst [vmem:[#allocation5_spill] sm:$0xff] %v9941_v10  ;;  %3805 = vperm.xlu0 %7161, %v2982_v48   ;;  %v2983_v23 = vmul.f32 %v14018_v60, %v1599_v51  ;;  %v1601_v48 = vmul.f32 0.015625, %v14020_v11  ;;  %v1606_v11 = vmul.f32 0.015625, %v14029_v28  ;;  %v14031_v60 = vld [vmem:[#allocation401_spill] sm:$0xff]  ;;  %v14038_v28 = vld [vmem:[#allocation15_spill] sm:$0xff] }
 0x4c7   :  { %v2990_v7 = vmul.f32 %v14031_v60, %v1606_v11  ;;  %v14041_v11 = vld [vmem:[#allocation16_spill] sm:$0xff] }
 0x4c8   :  { %v9947_v34 = vpop.permute.xlu1 %2627  ;;  %3802 = vperm.xlu1 %7162, %v2981_v0   ;;  %v9949_v39 = vpop.permute.xlu0 %2638  ;;  %v14024_v0 = vld [vmem:[#allocation394_spill] sm:$0xff] }
 0x4c9   :  { %14015 = vst [vmem:[#allocation6_spill] sm:$0xff] %v9947_v34  ;;  %14016 = vst [vmem:[#allocation7_spill] sm:$0xff] %v9949_v39  ;;  %3811 = vperm.xlu0 %7161, %v2984_v61   ;;  %v2985_v9 = vmul.f32 %v14024_v0, %v1601_v48  ;;  %v1603_v61 = vmul.f32 0.015625, %v14026_v5  ;;  %v1608_v5 = vmul.f32 0.015625, %v14035_v19  ;;  %v14037_v0 = vld [vmem:[#allocation403_spill] sm:$0xff]  ;;  %v14044_v19 = vld [vmem:[#allocation17_spill] sm:$0xff] }
 0x4cb   :  { %v2992_v53 = vmul.f32 %v14037_v0, %v1608_v5  ;;  %v14047_v5 = vld [vmem:[#allocation18_spill] sm:$0xff] }
 0x4cc   :  { %v9955_v49 = vpop.permute.xlu1 %2635  ;;  %3808 = vperm.xlu1 %7162, %v2983_v23   ;;  %v9957_v45 = vpop.permute.xlu0 %2646  ;;  %v14030_v23 = vld [vmem:[#allocation396_spill] sm:$0xff] }
 0x4cd   :  { %14021 = vst [vmem:[#allocation8_spill] sm:$0xff] %v9955_v49  ;;  %14022 = vst [vmem:[#allocation9_spill] sm:$0xff] %v9957_v45  ;;  %3817 = vperm.xlu0 %7161, %v2986_v13   ;;  %v2987_v57 = vmul.f32 %v14030_v23, %v1603_v61  ;;  %v1605_v13 = vmul.f32 0.015625, %v14032_v18  ;;  %v1610_v18 = vmul.f32 0.015625, %v14041_v11  ;;  %v14043_v23 = vld [vmem:[#allocation405_spill] sm:$0xff]  ;;  %v14050_v11 = vld [vmem:[#allocation19_spill] sm:$0xff] }
 0x4cf   :  { %v2994_v41 = vmul.f32 %v14043_v23, %v1610_v18  ;;  %v14053_v18 = vld [vmem:[#allocation20_spill] sm:$0xff] }
 0x4d0   :  { %v9963_v12 = vpop.permute.xlu1 %2642  ;;  %3814 = vperm.xlu1 %7162, %v2985_v9   ;;  %v9965_v51 = vpop.permute.xlu0 %2654  ;;  %v14036_v9 = vld [vmem:[#allocation398_spill] sm:$0xff] }
 0x4d1   :  { %14027 = vst [vmem:[#allocation10_spill] sm:$0xff] %v9963_v12  ;;  %14028 = vst [vmem:[#allocation11_spill] sm:$0xff] %v9965_v51  ;;  %3823 = vperm.xlu0 %7161, %v2988_v31   ;;  %v2989_v63 = vmul.f32 %v14036_v9, %v1605_v13  ;;  %v1607_v31 = vmul.f32 0.015625, %v14038_v28  ;;  %v1612_v28 = vmul.f32 0.015625, %v14047_v5  ;;  %v14049_v9 = vld [vmem:[#allocation407_spill] sm:$0xff]  ;;  %v14056_v5 = vld [vmem:[#allocation21_spill] sm:$0xff] }
 0x4d3   :  { %v2996_v25 = vmul.f32 %v14049_v9, %v1612_v28  ;;  %v14059_v28 = vld [vmem:[#allocation22_spill] sm:$0xff] }
 0x4d4   :  { %v9971_v30 = vpop.permute.xlu1 %2650  ;;  %3820 = vperm.xlu1 %7162, %v2987_v57   ;;  %v9973_v48 = vpop.permute.xlu0 %2662  ;;  %v14042_v57 = vld [vmem:[#allocation400_spill] sm:$0xff] }
 0x4d5   :  { %14033 = vst [vmem:[#allocation12_spill] sm:$0xff] %v9971_v30  ;;  %14034 = vst [vmem:[#allocation13_spill] sm:$0xff] %v9973_v48  ;;  %3829 = vperm.xlu0 %7161, %v2990_v7   ;;  %v2991_v60 = vmul.f32 %v14042_v57, %v1607_v31  ;;  %v1609_v7 = vmul.f32 0.015625, %v14044_v19  ;;  %v1614_v19 = vmul.f32 0.015625, %v14053_v18  ;;  %v14055_v57 = vld [vmem:[#allocation409_spill] sm:$0xff]  ;;  %v14062_v18 = vld [vmem:[#allocation23_spill] sm:$0xff] }
 0x4d7   :  { %v2998_v43 = vmul.f32 %v14055_v57, %v1614_v19  ;;  %v14065_v19 = vld [vmem:[#allocation24_spill] sm:$0xff] }
 0x4d8   :  { %v9979_v52 = vpop.permute.xlu1 %2658  ;;  %3826 = vperm.xlu1 %7162, %v2989_v63   ;;  %v9981_v61 = vpop.permute.xlu0 %2670  ;;  %v14048_v63 = vld [vmem:[#allocation402_spill] sm:$0xff] }
 0x4d9   :  { %14039 = vst [vmem:[#allocation14_spill] sm:$0xff] %v9979_v52  ;;  %14040 = vst [vmem:[#allocation15_spill] sm:$0xff] %v9981_v61  ;;  %3835 = vperm.xlu0 %7161, %v2992_v53   ;;  %v2993_v0 = vmul.f32 %v14048_v63, %v1609_v7  ;;  %v1611_v53 = vmul.f32 0.015625, %v14050_v11  ;;  %v1616_v11 = vmul.f32 0.015625, %v14059_v28  ;;  %v14061_v63 = vld [vmem:[#allocation411_spill] sm:$0xff]  ;;  %v14068_v28 = vld [vmem:[#allocation25_spill] sm:$0xff] }
 0x4db   :  { %v3000_v40 = vmul.f32 %v14061_v63, %v1616_v11  ;;  %v14071_v11 = vld [vmem:[#allocation26_spill] sm:$0xff] }
 0x4dc   :  { %v9987_v17 = vpop.permute.xlu1 %2666  ;;  %3832 = vperm.xlu1 %7162, %v2991_v60   ;;  %v9989_v13 = vpop.permute.xlu0 %2678  ;;  %v14054_v60 = vld [vmem:[#allocation404_spill] sm:$0xff] }
 0x4dd   :  { %14045 = vst [vmem:[#allocation16_spill] sm:$0xff] %v9987_v17  ;;  %14046 = vst [vmem:[#allocation17_spill] sm:$0xff] %v9989_v13  ;;  %3841 = vperm.xlu0 %7161, %v2994_v41   ;;  %v2995_v23 = vmul.f32 %v14054_v60, %v1611_v53  ;;  %v1613_v41 = vmul.f32 0.015625, %v14056_v5  ;;  %v1618_v5 = vmul.f32 0.015625, %v14065_v19  ;;  %v14067_v60 = vld [vmem:[#allocation413_spill] sm:$0xff]  ;;  %v14073_v19 = vld [vmem:[#allocation27_spill] sm:$0xff] }
 0x4e0   :  { %v9995_v6 = vpop.permute.xlu1 %2674  ;;  %3838 = vperm.xlu1 %7162, %v2993_v0   ;;  %v9997_v31 = vpop.permute.xlu0 %2686  ;;  %v14060_v0 = vld [vmem:[#allocation406_spill] sm:$0xff] }
 0x4e1   :  { %14051 = vst [vmem:[#allocation18_spill] sm:$0xff] %v9995_v6  ;;  %14052 = vst [vmem:[#allocation19_spill] sm:$0xff] %v9997_v31  ;;  %3847 = vperm.xlu0 %7161, %v2996_v25   ;;  %v2997_v9 = vmul.f32 %v14060_v0, %v1613_v41  ;;  %v1615_v25 = vmul.f32 0.015625, %v14062_v18  ;;  %v1620_v18 = vmul.f32 0.015625, %v14071_v11  ;;  %v14079_v11 = vld [vmem:[#allocation29_spill] sm:$0xff] }
 0x4e3   :  { %v3004_v0 = vmul.f32 %v9657_v37, %v1620_v18  ;;  %v14082_v18 = vld [vmem:[#allocation30_spill] sm:$0xff] }
 0x4e4   :  { %v10003_v16 = vpop.permute.xlu1 %2682  ;;  %3844 = vperm.xlu1 %7162, %v2995_v23   ;;  %v10005_v7 = vpop.permute.xlu0 %2694  ;;  %v14066_v23 = vld [vmem:[#allocation408_spill] sm:$0xff] }
 0x4e5   :  { %14057 = vst [vmem:[#allocation20_spill] sm:$0xff] %v10003_v16  ;;  %14058 = vst [vmem:[#allocation21_spill] sm:$0xff] %v10005_v7  ;;  %3853 = vperm.xlu0 %7161, %v2998_v43   ;;  %v2999_v57 = vmul.f32 %v14066_v23, %v1615_v25  ;;  %v3002_v7 = vmul.f32 %v14067_v60, %v1618_v5  ;;  %v1617_v43 = vmul.f32 0.015625, %v14068_v28  ;;  %v14076_v5 = vld [vmem:[#allocation28_spill] sm:$0xff]  ;;  %v14078_v23 = vld [vmem:[#allocation417_spill] sm:$0xff] }
 0x4e6   :  { %v1622_v28 = vmul.f32 0.015625, %v14076_v5  ;;  %v14085_v5 = vld [vmem:[#allocation31_spill] sm:$0xff] }
 0x4e8   :  { %v10011_v31 = vpop.permute.xlu1 %2690  ;;  %3850 = vperm.xlu1 %7162, %v2997_v9   ;;  %v10013_v53 = vpop.permute.xlu0 %2701  ;;  %v14072_v9 = vld [vmem:[#allocation410_spill] sm:$0xff] }
 0x4e9   :  { %14063 = vst [vmem:[#allocation22_spill] sm:$0xff] %v10011_v31  ;;  %14064 = vst [vmem:[#allocation23_spill] sm:$0xff] %v10013_v53  ;;  %3859 = vperm.xlu0 %7161, %v3000_v40   ;;  %v3001_v63 = vmul.f32 %v14072_v9, %v1617_v43  ;;  %v1619_v40 = vmul.f32 0.015625, %v14073_v19  ;;  %v1624_v19 = vmul.f32 0.015625, %v14082_v18  ;;  %v14084_v9 = vld [vmem:[#allocation419_spill] sm:$0xff]  ;;  %v14091_v18 = vld [vmem:[#allocation33_spill] sm:$0xff] }
 0x4ec   :  { %v10019_v13 = vpop.permute.xlu1 %2698  ;;  %3856 = vperm.xlu1 %7162, %v2999_v57   ;;  %v10021_v41 = vpop.permute.xlu0 %2709  ;;  %v14077_v57 = vld [vmem:[#allocation412_spill] sm:$0xff] }
 0x4ed   :  { %14069 = vst [vmem:[#allocation24_spill] sm:$0xff] %v10019_v13  ;;  %14070 = vst [vmem:[#allocation25_spill] sm:$0xff] %v10021_v41  ;;  %3865 = vperm.xlu0 %7161, %v3002_v7   ;;  %v3003_v60 = vmul.f32 %v14077_v57, %v1619_v40  ;;  %v3006_v41 = vmul.f32 %v14078_v23, %v1622_v28  ;;  %v1621_v7 = vmul.f32 0.015625, %v14079_v11  ;;  %v14088_v28 = vld [vmem:[#allocation32_spill] sm:$0xff]  ;;  %v14090_v57 = vld [vmem:[#allocation421_spill] sm:$0xff] }
 0x4ee   :  { %v1626_v11 = vmul.f32 0.015625, %v14088_v28  ;;  %v14097_v28 = vld [vmem:[#allocation35_spill] sm:$0xff] }
 0x4f0   :  { %v10027_v53 = vpop.permute.xlu1 %2705  ;;  %3862 = vperm.xlu1 %7162, %v3001_v63   ;;  %v10029_v25 = vpop.permute.xlu0 %2717  ;;  %v14083_v63 = vld [vmem:[#allocation414_spill] sm:$0xff] }
 0x4f1   :  { %14074 = vst [vmem:[#allocation26_spill] sm:$0xff] %v10027_v53  ;;  %14075 = vst [vmem:[#allocation27_spill] sm:$0xff] %v10029_v25  ;;  %3871 = vperm.xlu0 %7161, %v3004_v0   ;;  %v3005_v37 = vmul.f32 %v14083_v63, %v1621_v7  ;;  %v3008_v25 = vmul.f32 %v14084_v9, %v1624_v19  ;;  %v1623_v0 = vmul.f32 0.015625, %v14085_v5  ;;  %v14094_v19 = vld [vmem:[#allocation34_spill] sm:$0xff]  ;;  %v14096_v63 = vld [vmem:[#allocation423_spill] sm:$0xff] }
 0x4f2   :  { %v1628_v5 = vmul.f32 0.015625, %v14094_v19  ;;  %v14103_v19 = vld [vmem:[#allocation37_spill] sm:$0xff] }
 0x4f4   :  { %v10035_v13 = vpop.permute.xlu1 %2713  ;;  %3868 = vperm.xlu1 %7162, %v3003_v60   ;;  %v10037_v43 = vpop.permute.xlu0 %2725  ;;  %v14089_v60 = vld [vmem:[#allocation416_spill] sm:$0xff] }
 0x4f5   :  { %14080 = vst [vmem:[#allocation28_spill] sm:$0xff] %v10035_v13  ;;  %14081 = vst [vmem:[#allocation29_spill] sm:$0xff] %v10037_v43  ;;  %3877 = vperm.xlu0 %7161, %v3006_v41   ;;  %v3007_v23 = vmul.f32 %v14089_v60, %v1623_v0  ;;  %v3010_v43 = vmul.f32 %v14090_v57, %v1626_v11  ;;  %v1625_v41 = vmul.f32 0.015625, %v14091_v18  ;;  %v14099_v0 = vld [vmem:[#allocation36_spill] sm:$0xff]  ;;  %v14102_v60 = vld [vmem:[#allocation425_spill] sm:$0xff] }
 0x4f6   :  { %v1630_v11 = vmul.f32 0.015625, %v14099_v0  ;;  %v14100_v18 = vld [vmem:[#allocation420_spill] sm:$0xff]  ;;  %v14108_v0 = vld [vmem:[#allocation39_spill] sm:$0xff] }
 0x4f8   :  { %v10043_v53 = vpop.permute.xlu1 %2721  ;;  %3874 = vperm.xlu1 %7162, %v3005_v37   ;;  %v10045_v40 = vpop.permute.xlu0 %2733  ;;  %v14095_v37 = vld [vmem:[#allocation418_spill] sm:$0xff] }
 0x4f9   :  { %14086 = vst [vmem:[#allocation30_spill] sm:$0xff] %v10043_v53  ;;  %14087 = vst [vmem:[#allocation31_spill] sm:$0xff] %v10045_v40  ;;  %3883 = vperm.xlu0 %7161, %v3008_v25   ;;  %v3009_v9 = vmul.f32 %v14095_v37, %v1625_v41  ;;  %v3012_v40 = vmul.f32 %v14096_v63, %v1628_v5  ;;  %v1627_v25 = vmul.f32 0.015625, %v14097_v28  ;;  %v14105_v41 = vld [vmem:[#allocation38_spill] sm:$0xff] }
 0x4fa   :  { %v1632_v5 = vmul.f32 0.015625, %v14105_v41  ;;  %v14106_v28 = vld [vmem:[#allocation422_spill] sm:$0xff]  ;;  %v14114_v41 = vld [vmem:[#allocation41_spill] sm:$0xff] }
 0x4fb   :  { %v3011_v57 = vmul.f32 %v14100_v18, %v1627_v25 }
 0x4fc   :  { %v10051_v13 = vpop.permute.xlu1 %2729  ;;  %3880 = vperm.xlu1 %7162, %v3007_v23   ;;  %v10053_v7 = vpop.permute.xlu0 %2741 }
 0x4fd   :  { %14092 = vst [vmem:[#allocation32_spill] sm:$0xff] %v10051_v13  ;;  %14093 = vst [vmem:[#allocation33_spill] sm:$0xff] %v10053_v7  ;;  %3889 = vperm.xlu0 %7161, %v3010_v43   ;;  %v3014_v7 = vmul.f32 %v14102_v60, %v1630_v11  ;;  %v1629_v43 = vmul.f32 0.015625, %v14103_v19  ;;  %v14111_v11 = vld [vmem:[#allocation40_spill] sm:$0xff] }
 0x4fe   :  { %v1634_v60 = vmul.f32 0.015625, %v14111_v11  ;;  %v14112_v19 = vld [vmem:[#allocation424_spill] sm:$0xff]  ;;  %v14119_v11 = vld [vmem:[#allocation43_spill] sm:$0xff] }
 0x4ff   :  { %v3013_v63 = vmul.f32 %v14106_v28, %v1629_v43 }
 0x500   :  { %v10059_v53 = vpop.permute.xlu1 %2737  ;;  %3886 = vperm.xlu1 %7162, %v3009_v9   ;;  %v10063_v23 = vpop.permute.xlu0 %2749  ;;  %v14107_v9 = vld [vmem:[#allocation427_spill] sm:$0xff] }
 0x501   :  { %14098 = vst [vmem:[#allocation34_spill] sm:$0xff] %v10059_v53  ;;  %3895 = vperm.xlu0 %7161, %v3012_v40   ;;  %14101 = vst [vmem:[#allocation35_spill] sm:$0xff] %v10063_v23  ;;  %v3016_v37 = vmul.f32 %v14107_v9, %v1632_v5  ;;  %v1631_v40 = vmul.f32 0.015625, %v14108_v0  ;;  %v14117_v5 = vld [vmem:[#allocation42_spill] sm:$0xff] }
 0x502   :  { %v1636_v0 = vmul.f32 0.015625, %v14117_v5  ;;  %v14118_v9 = vld [vmem:[#allocation426_spill] sm:$0xff]  ;;  %v14125_v5 = vld [vmem:[#allocation45_spill] sm:$0xff] }
 0x503   :  { %v3015_v18 = vmul.f32 %v14112_v19, %v1631_v40  ;;  %v14122_v40 = vld [vmem:[#allocation44_spill] sm:$0xff] }
 0x504   :  { %v10067_v13 = vpop.permute.xlu1 %2745  ;;  %3892 = vperm.xlu1 %7162, %v3011_v57   ;;  %v10073_v53 = vpop.permute.xlu0 %2757  ;;  %v14113_v57 = vld [vmem:[#allocation429_spill] sm:$0xff] }
 0x505   :  { %14104 = vst [vmem:[#allocation36_spill] sm:$0xff] %v10067_v13  ;;  %3901 = vperm.xlu0 %7161, %v3014_v7   ;;  %14109 = vst [vmem:[#allocation37_spill] sm:$0xff] %v10073_v53  ;;  %v3018_v23 = vmul.f32 %v14113_v57, %v1634_v60  ;;  %v1633_v7 = vmul.f32 0.015625, %v14114_v41  ;;  %v1638_v41 = vmul.f32 0.015625, %v14122_v40  ;;  %v14131_v40 = vld [vmem:[#allocation47_spill] sm:$0xff] }
 0x507   :  { %v3017_v28 = vmul.f32 %v14118_v9, %v1633_v7 }
 0x508   :  { %v10075_v25 = vpop.permute.xlu1 %2753  ;;  %3898 = vperm.xlu1 %7162, %v3013_v63   ;;  %v3020_v63 = vmul.f32 %v9696_v54, %v1636_v0  ;;  %v14128_v0 = vld [vmem:[#allocation46_spill] sm:$0xff] }
 0x509   :  { %14110 = vst [vmem:[#allocation38_spill] sm:$0xff] %v10075_v25  ;;  %3907 = vperm.xlu0 %7161, %v3016_v37   ;;  %v1635_v37 = vmul.f32 0.015625, %v14119_v11  ;;  %v1640_v11 = vmul.f32 0.015625, %v14128_v0  ;;  %v14137_v0 = vld [vmem:[#allocation49_spill] sm:$0xff] }
 0x50c   :  { %v10081_v13 = vpop.permute.xlu1 %2761  ;;  %3904 = vperm.xlu1 %7162, %v3015_v18   ;;  %v10083_v43 = vpop.permute.xlu0 %3724  ;;  %v14123_v18 = vld [vmem:[#allocation428_spill] sm:$0xff] }
 0x50d   :  { %14115 = vst [vmem:[#allocation39_spill] sm:$0xff] %v10081_v13  ;;  %14116 = vst [vmem:[#allocation40_spill] sm:$0xff] %v10083_v43  ;;  %3913 = vperm.xlu0 %7161, %v3018_v23   ;;  %v3019_v57 = vmul.f32 %v14123_v18, %v1635_v37  ;;  %v14124_v43 = vld [vmem:[#allocation433_spill] sm:$0xff]  ;;  %v1637_v23 = vmul.f32 0.015625, %v14125_v5 }
 0x50e   :  { %v3022_v19 = vmul.f32 %v14124_v43, %v1638_v41  ;;  %v14134_v41 = vld [vmem:[#allocation48_spill] sm:$0xff] }
 0x50f   :  { %v1642_v5 = vmul.f32 0.015625, %v14134_v41  ;;  %v14142_v41 = vld [vmem:[#allocation51_spill] sm:$0xff] }
 0x510   :  { %v10089_v53 = vpop.permute.xlu1 %3727  ;;  %3910 = vperm.xlu1 %7162, %v3017_v28   ;;  %v10091_v60 = vpop.permute.xlu0 %3733  ;;  %v14129_v28 = vld [vmem:[#allocation430_spill] sm:$0xff] }
 0x511   :  { %14120 = vst [vmem:[#allocation41_spill] sm:$0xff] %v10089_v53  ;;  %14121 = vst [vmem:[#allocation42_spill] sm:$0xff] %v10091_v60  ;;  %3919 = vperm.xlu0 %7161, %v3020_v63   ;;  %v3021_v53 = vmul.f32 %v14129_v28, %v1637_v23  ;;  %v14130_v60 = vld [vmem:[#allocation435_spill] sm:$0xff]  ;;  %v1639_v63 = vmul.f32 0.015625, %v14131_v40 }
 0x512   :  { %v3024_v54 = vmul.f32 %v14130_v60, %v1640_v11  ;;  %v14140_v11 = vld [vmem:[#allocation50_spill] sm:$0xff] }
 0x513   :  { %v1644_v40 = vmul.f32 0.015625, %v14140_v11  ;;  %v14148_v11 = vld [vmem:[#allocation53_spill] sm:$0xff] }
 0x514   :  { %v10097_v13 = vpop.permute.xlu1 %3730  ;;  %3916 = vperm.xlu1 %7162, %v3019_v57   ;;  %v10099_v7 = vpop.permute.xlu0 %3739  ;;  %v14135_v57 = vld [vmem:[#allocation432_spill] sm:$0xff] }
 0x515   :  { %14126 = vst [vmem:[#allocation43_spill] sm:$0xff] %v10097_v13  ;;  %14127 = vst [vmem:[#allocation44_spill] sm:$0xff] %v10099_v7  ;;  %3925 = vperm.xlu0 %7161, %v3022_v19   ;;  %v3023_v13 = vmul.f32 %v14135_v57, %v1639_v63  ;;  %v14136_v7 = vld [vmem:[#allocation437_spill] sm:$0xff]  ;;  %v1641_v19 = vmul.f32 0.015625, %v14137_v0 }
 0x516   :  { %v3026_v43 = vmul.f32 %v14136_v7, %v1642_v5  ;;  %v14145_v5 = vld [vmem:[#allocation52_spill] sm:$0xff] }
 0x517   :  { %v1646_v0 = vmul.f32 0.015625, %v14145_v5  ;;  %v14154_v5 = vld [vmem:[#allocation55_spill] sm:$0xff] }
 0x518   :  { %v10105_v9 = vpop.permute.xlu1 %3736  ;;  %3922 = vperm.xlu1 %7162, %v3021_v53   ;;  %v10107_v37 = vpop.permute.xlu0 %3745  ;;  %v14141_v53 = vld [vmem:[#allocation434_spill] sm:$0xff] }
 0x519   :  { %14132 = vst [vmem:[#allocation45_spill] sm:$0xff] %v10105_v9  ;;  %14133 = vst [vmem:[#allocation46_spill] sm:$0xff] %v10107_v37  ;;  %3931 = vperm.xlu0 %7161, %v3024_v54   ;;  %v3025_v9 = vmul.f32 %v14141_v53, %v1641_v19  ;;  %v3028_v37 = vmul.f32 %v9712_v24, %v1644_v40  ;;  %v1643_v54 = vmul.f32 0.015625, %v14142_v41  ;;  %v14151_v40 = vld [vmem:[#allocation54_spill] sm:$0xff] }
 0x51a   :  { %v1648_v41 = vmul.f32 0.015625, %v14151_v40  ;;  %v14160_v40 = vld [vmem:[#allocation57_spill] sm:$0xff] }
 0x51c   :  { %v10113_v18 = vpop.permute.xlu1 %3742  ;;  %3928 = vperm.xlu1 %7162, %v3023_v13   ;;  %v10115_v23 = vpop.permute.xlu0 %3751  ;;  %v14146_v13 = vld [vmem:[#allocation436_spill] sm:$0xff] }
 0x51d   :  { %14138 = vst [vmem:[#allocation430_spill] sm:$0xff] %v10113_v18  ;;  %14139 = vst [vmem:[#allocation47_spill] sm:$0xff] %v10115_v23  ;;  %3937 = vperm.xlu0 %7161, %v3026_v43   ;;  %v3027_v18 = vmul.f32 %v14146_v13, %v1643_v54  ;;  %v14147_v23 = vld [vmem:[#allocation441_spill] sm:$0xff]  ;;  %v1645_v43 = vmul.f32 0.015625, %v14148_v11 }
 0x51e   :  { %v3030_v7 = vmul.f32 %v14147_v23, %v1646_v0  ;;  %v14157_v0 = vld [vmem:[#allocation56_spill] sm:$0xff] }
 0x51f   :  { %v1650_v11 = vmul.f32 0.015625, %v14157_v0  ;;  %v14166_v0 = vld [vmem:[#allocation59_spill] sm:$0xff] }
 0x520   :  { %v10121_v60 = vpop.permute.xlu1 %3748  ;;  %3934 = vperm.xlu1 %7162, %v3025_v9   ;;  %v10123_v63 = vpop.permute.xlu0 %3757  ;;  %v14152_v9 = vld [vmem:[#allocation438_spill] sm:$0xff] }
 0x521   :  { %14143 = vst [vmem:[#allocation48_spill] sm:$0xff] %v10121_v60  ;;  %14144 = vst [vmem:[#allocation49_spill] sm:$0xff] %v10123_v63  ;;  %3943 = vperm.xlu0 %7161, %v3028_v37   ;;  %v3029_v60 = vmul.f32 %v14152_v9, %v1645_v43  ;;  %v14153_v63 = vld [vmem:[#allocation443_spill] sm:$0xff]  ;;  %v1647_v37 = vmul.f32 0.015625, %v14154_v5 }
 0x522   :  { %v3032_v24 = vmul.f32 %v14153_v63, %v1648_v41  ;;  %v14163_v41 = vld [vmem:[#allocation58_spill] sm:$0xff] }
 0x523   :  { %v1652_v5 = vmul.f32 0.015625, %v14163_v41  ;;  %v14172_v41 = vld [vmem:[#allocation61_spill] sm:$0xff] }
 0x524   :  { %v10129_v57 = vpop.permute.xlu1 %3754  ;;  %3940 = vperm.xlu1 %7162, %v3027_v18   ;;  %v10131_v19 = vpop.permute.xlu0 %3763  ;;  %v14158_v18 = vld [vmem:[#allocation440_spill] sm:$0xff] }
 0x525   :  { %14149 = vst [vmem:[#allocation50_spill] sm:$0xff] %v10129_v57  ;;  %14150 = vst [vmem:[#allocation51_spill] sm:$0xff] %v10131_v19  ;;  %3949 = vperm.xlu0 %7161, %v3030_v7   ;;  %v3031_v57 = vmul.f32 %v14158_v18, %v1647_v37  ;;  %v14159_v19 = vld [vmem:[#allocation445_spill] sm:$0xff]  ;;  %v1649_v7 = vmul.f32 0.015625, %v14160_v40 }
 0x526   :  { %v3034_v23 = vmul.f32 %v14159_v19, %v1650_v11  ;;  %v14169_v11 = vld [vmem:[#allocation60_spill] sm:$0xff] }
 0x527   :  { %v1654_v40 = vmul.f32 0.015625, %v14169_v11  ;;  %v14178_v11 = vld [vmem:[#allocation63_spill] sm:$0xff] }
 0x528   :  { %v10137_v53 = vpop.permute.xlu1 %3760  ;;  %3946 = vperm.xlu1 %7162, %v3029_v60   ;;  %v10139_v54 = vpop.permute.xlu0 %3769  ;;  %v14164_v60 = vld [vmem:[#allocation442_spill] sm:$0xff] }
 0x529   :  { %14155 = vst [vmem:[#allocation52_spill] sm:$0xff] %v10137_v53  ;;  %14156 = vst [vmem:[#allocation53_spill] sm:$0xff] %v10139_v54  ;;  %3955 = vperm.xlu0 %7161, %v3032_v24   ;;  %v3033_v53 = vmul.f32 %v14164_v60, %v1649_v7  ;;  %v14165_v54 = vld [vmem:[#allocation447_spill] sm:$0xff]  ;;  %v1651_v24 = vmul.f32 0.015625, %v14166_v0 }
 0x52a   :  { %v3036_v63 = vmul.f32 %v14165_v54, %v1652_v5  ;;  %v14175_v5 = vld [vmem:[#allocation62_spill] sm:$0xff] }
 0x52b   :  { %v1656_v0 = vmul.f32 0.015625, %v14175_v5  ;;  %v14184_v5 = vld [vmem:[#allocation65_spill] sm:$0xff] }
 0x52c   :  { %v10145_v13 = vpop.permute.xlu1 %3766  ;;  %3952 = vperm.xlu1 %7162, %v3031_v57   ;;  %v10147_v43 = vpop.permute.xlu0 %3775  ;;  %v14170_v57 = vld [vmem:[#allocation444_spill] sm:$0xff] }
 0x52d   :  { %14161 = vst [vmem:[#allocation54_spill] sm:$0xff] %v10145_v13  ;;  %14162 = vst [vmem:[#allocation55_spill] sm:$0xff] %v10147_v43  ;;  %3961 = vperm.xlu0 %7161, %v3034_v23   ;;  %v3035_v13 = vmul.f32 %v14170_v57, %v1651_v24  ;;  %v14171_v43 = vld [vmem:[#allocation449_spill] sm:$0xff]  ;;  %v1653_v23 = vmul.f32 0.015625, %v14172_v41 }
 0x52e   :  { %v3038_v19 = vmul.f32 %v14171_v43, %v1654_v40  ;;  %v14181_v40 = vld [vmem:[#allocation64_spill] sm:$0xff] }
 0x52f   :  { %v1658_v41 = vmul.f32 0.015625, %v14181_v40  ;;  %v14190_v40 = vld [vmem:[#allocation67_spill] sm:$0xff] }
 0x530   :  { %v10153_v9 = vpop.permute.xlu1 %3772  ;;  %3958 = vperm.xlu1 %7162, %v3033_v53   ;;  %v10155_v37 = vpop.permute.xlu0 %3781  ;;  %v14176_v53 = vld [vmem:[#allocation446_spill] sm:$0xff] }
 0x531   :  { %14167 = vst [vmem:[#allocation56_spill] sm:$0xff] %v10153_v9  ;;  %14168 = vst [vmem:[#allocation57_spill] sm:$0xff] %v10155_v37  ;;  %3967 = vperm.xlu0 %7161, %v3036_v63   ;;  %v3037_v9 = vmul.f32 %v14176_v53, %v1653_v23  ;;  %v14177_v37 = vld [vmem:[#allocation451_spill] sm:$0xff]  ;;  %v1655_v63 = vmul.f32 0.015625, %v14178_v11 }
 0x532   :  { %v3040_v54 = vmul.f32 %v14177_v37, %v1656_v0  ;;  %v14187_v0 = vld [vmem:[#allocation66_spill] sm:$0xff] }
 0x533   :  { %v1660_v11 = vmul.f32 0.015625, %v14187_v0  ;;  %v14196_v0 = vld [vmem:[#allocation69_spill] sm:$0xff] }
 0x534   :  { %v10161_v18 = vpop.permute.xlu1 %3778  ;;  %3964 = vperm.xlu1 %7162, %v3035_v13   ;;  %v10163_v7 = vpop.permute.xlu0 %3787  ;;  %v14182_v13 = vld [vmem:[#allocation448_spill] sm:$0xff] }
 0x535   :  { %14173 = vst [vmem:[#allocation58_spill] sm:$0xff] %v10161_v18  ;;  %14174 = vst [vmem:[#allocation59_spill] sm:$0xff] %v10163_v7  ;;  %3973 = vperm.xlu0 %7161, %v3038_v19   ;;  %v3039_v18 = vmul.f32 %v14182_v13, %v1655_v63  ;;  %v14183_v7 = vld [vmem:[#allocation453_spill] sm:$0xff]  ;;  %v1657_v19 = vmul.f32 0.015625, %v14184_v5 }
 0x536   :  { %v3042_v43 = vmul.f32 %v14183_v7, %v1658_v41  ;;  %v14193_v41 = vld [vmem:[#allocation68_spill] sm:$0xff] }
 0x537   :  { %v1662_v5 = vmul.f32 0.015625, %v14193_v41  ;;  %v14202_v41 = vld [vmem:[#allocation71_spill] sm:$0xff] }
 0x538   :  { %v10169_v60 = vpop.permute.xlu1 %3784  ;;  %3970 = vperm.xlu1 %7162, %v3037_v9   ;;  %v10171_v24 = vpop.permute.xlu0 %3793  ;;  %v14188_v9 = vld [vmem:[#allocation450_spill] sm:$0xff] }
 0x539   :  { %14179 = vst [vmem:[#allocation60_spill] sm:$0xff] %v10169_v60  ;;  %14180 = vst [vmem:[#allocation61_spill] sm:$0xff] %v10171_v24  ;;  %3979 = vperm.xlu0 %7161, %v3040_v54   ;;  %v3041_v60 = vmul.f32 %v14188_v9, %v1657_v19  ;;  %v14189_v24 = vld [vmem:[#allocation455_spill] sm:$0xff]  ;;  %v1659_v54 = vmul.f32 0.015625, %v14190_v40 }
 0x53a   :  { %v3044_v37 = vmul.f32 %v14189_v24, %v1660_v11  ;;  %v14199_v11 = vld [vmem:[#allocation70_spill] sm:$0xff] }
 0x53b   :  { %v1664_v40 = vmul.f32 0.015625, %v14199_v11  ;;  %v14208_v11 = vld [vmem:[#allocation73_spill] sm:$0xff] }
 0x53c   :  { %v10177_v57 = vpop.permute.xlu1 %3790  ;;  %3976 = vperm.xlu1 %7162, %v3039_v18   ;;  %v10179_v23 = vpop.permute.xlu0 %3799  ;;  %v14194_v18 = vld [vmem:[#allocation452_spill] sm:$0xff] }
 0x53d   :  { %14185 = vst [vmem:[#allocation62_spill] sm:$0xff] %v10177_v57  ;;  %14186 = vst [vmem:[#allocation63_spill] sm:$0xff] %v10179_v23  ;;  %3985 = vperm.xlu0 %7161, %v3042_v43   ;;  %v3043_v57 = vmul.f32 %v14194_v18, %v1659_v54  ;;  %v14195_v23 = vld [vmem:[#allocation457_spill] sm:$0xff]  ;;  %v1661_v43 = vmul.f32 0.015625, %v14196_v0 }
 0x53e   :  { %v3046_v7 = vmul.f32 %v14195_v23, %v1662_v5  ;;  %v14205_v5 = vld [vmem:[#allocation72_spill] sm:$0xff] }
 0x53f   :  { %v1666_v0 = vmul.f32 0.015625, %v14205_v5  ;;  %v14214_v5 = vld [vmem:[#allocation75_spill] sm:$0xff] }
 0x540   :  { %v10185_v53 = vpop.permute.xlu1 %3796  ;;  %3982 = vperm.xlu1 %7162, %v3041_v60   ;;  %v10187_v63 = vpop.permute.xlu0 %3805  ;;  %v14200_v60 = vld [vmem:[#allocation454_spill] sm:$0xff] }
 0x541   :  { %14191 = vst [vmem:[#allocation64_spill] sm:$0xff] %v10185_v53  ;;  %14192 = vst [vmem:[#allocation65_spill] sm:$0xff] %v10187_v63  ;;  %3991 = vperm.xlu0 %7161, %v3044_v37   ;;  %v3045_v53 = vmul.f32 %v14200_v60, %v1661_v43  ;;  %v14201_v63 = vld [vmem:[#allocation459_spill] sm:$0xff]  ;;  %v1663_v37 = vmul.f32 0.015625, %v14202_v41 }
 0x542   :  { %v3048_v24 = vmul.f32 %v14201_v63, %v1664_v40  ;;  %v14211_v40 = vld [vmem:[#allocation74_spill] sm:$0xff] }
 0x543   :  { %v1668_v41 = vmul.f32 0.015625, %v14211_v40  ;;  %v14220_v40 = vld [vmem:[#allocation77_spill] sm:$0xff] }
 0x544   :  { %v10193_v13 = vpop.permute.xlu1 %3802  ;;  %3988 = vperm.xlu1 %7162, %v3043_v57   ;;  %v10195_v19 = vpop.permute.xlu0 %3811  ;;  %v14206_v57 = vld [vmem:[#allocation456_spill] sm:$0xff] }
 0x545   :  { %14197 = vst [vmem:[#allocation66_spill] sm:$0xff] %v10193_v13  ;;  %14198 = vst [vmem:[#allocation67_spill] sm:$0xff] %v10195_v19  ;;  %3997 = vperm.xlu0 %7161, %v3046_v7   ;;  %v3047_v13 = vmul.f32 %v14206_v57, %v1663_v37  ;;  %v14207_v19 = vld [vmem:[#allocation461_spill] sm:$0xff]  ;;  %v1665_v7 = vmul.f32 0.015625, %v14208_v11 }
 0x546   :  { %v3050_v23 = vmul.f32 %v14207_v19, %v1666_v0  ;;  %v14217_v0 = vld [vmem:[#allocation76_spill] sm:$0xff] }
 0x547   :  { %v1670_v11 = vmul.f32 0.015625, %v14217_v0  ;;  %v14226_v0 = vld [vmem:[#allocation79_spill] sm:$0xff] }
 0x548   :  { %v10201_v9 = vpop.permute.xlu1 %3808  ;;  %3994 = vperm.xlu1 %7162, %v3045_v53   ;;  %v10203_v54 = vpop.permute.xlu0 %3817  ;;  %v14212_v53 = vld [vmem:[#allocation458_spill] sm:$0xff] }
 0x549   :  { %14203 = vst [vmem:[#allocation68_spill] sm:$0xff] %v10201_v9  ;;  %14204 = vst [vmem:[#allocation69_spill] sm:$0xff] %v10203_v54  ;;  %4003 = vperm.xlu0 %7161, %v3048_v24   ;;  %v3049_v9 = vmul.f32 %v14212_v53, %v1665_v7  ;;  %v14213_v54 = vld [vmem:[#allocation463_spill] sm:$0xff]  ;;  %v1667_v24 = vmul.f32 0.015625, %v14214_v5 }
 0x54a   :  { %v3052_v63 = vmul.f32 %v14213_v54, %v1668_v41  ;;  %v14223_v41 = vld [vmem:[#allocation78_spill] sm:$0xff] }
 0x54b   :  { %v1672_v5 = vmul.f32 0.015625, %v14223_v41  ;;  %v14232_v41 = vld [vmem:[#allocation81_spill] sm:$0xff] }
 0x54c   :  { %v10209_v18 = vpop.permute.xlu1 %3814  ;;  %4000 = vperm.xlu1 %7162, %v3047_v13   ;;  %v10211_v43 = vpop.permute.xlu0 %3823  ;;  %v14218_v13 = vld [vmem:[#allocation460_spill] sm:$0xff] }
 0x54d   :  { %14209 = vst [vmem:[#allocation70_spill] sm:$0xff] %v10209_v18  ;;  %14210 = vst [vmem:[#allocation71_spill] sm:$0xff] %v10211_v43  ;;  %4009 = vperm.xlu0 %7161, %v3050_v23   ;;  %v3051_v18 = vmul.f32 %v14218_v13, %v1667_v24  ;;  %v14219_v43 = vld [vmem:[#allocation465_spill] sm:$0xff]  ;;  %v1669_v23 = vmul.f32 0.015625, %v14220_v40 }
 0x54e   :  { %v3054_v19 = vmul.f32 %v14219_v43, %v1670_v11  ;;  %v14229_v11 = vld [vmem:[#allocation80_spill] sm:$0xff] }
 0x54f   :  { %v1674_v40 = vmul.f32 0.015625, %v14229_v11  ;;  %v14238_v11 = vld [vmem:[#allocation83_spill] sm:$0xff] }
 0x550   :  { %v10217_v60 = vpop.permute.xlu1 %3820  ;;  %4006 = vperm.xlu1 %7162, %v3049_v9   ;;  %v10219_v37 = vpop.permute.xlu0 %3829  ;;  %v14224_v9 = vld [vmem:[#allocation462_spill] sm:$0xff] }
 0x551   :  { %14215 = vst [vmem:[#allocation72_spill] sm:$0xff] %v10217_v60  ;;  %14216 = vst [vmem:[#allocation73_spill] sm:$0xff] %v10219_v37  ;;  %4015 = vperm.xlu0 %7161, %v3052_v63   ;;  %v3053_v60 = vmul.f32 %v14224_v9, %v1669_v23  ;;  %v14225_v37 = vld [vmem:[#allocation467_spill] sm:$0xff]  ;;  %v1671_v63 = vmul.f32 0.015625, %v14226_v0 }
 0x552   :  { %v3056_v54 = vmul.f32 %v14225_v37, %v1672_v5  ;;  %v14235_v5 = vld [vmem:[#allocation82_spill] sm:$0xff] }
 0x553   :  { %v1676_v0 = vmul.f32 0.015625, %v14235_v5  ;;  %v14244_v5 = vld [vmem:[#allocation85_spill] sm:$0xff] }
 0x554   :  { %v10225_v57 = vpop.permute.xlu1 %3826  ;;  %4012 = vperm.xlu1 %7162, %v3051_v18   ;;  %v10227_v7 = vpop.permute.xlu0 %3835  ;;  %v14230_v18 = vld [vmem:[#allocation464_spill] sm:$0xff] }
 0x555   :  { %14221 = vst [vmem:[#allocation74_spill] sm:$0xff] %v10225_v57  ;;  %14222 = vst [vmem:[#allocation75_spill] sm:$0xff] %v10227_v7  ;;  %4021 = vperm.xlu0 %7161, %v3054_v19   ;;  %v3055_v57 = vmul.f32 %v14230_v18, %v1671_v63  ;;  %v14231_v7 = vld [vmem:[#allocation469_spill] sm:$0xff]  ;;  %v1673_v19 = vmul.f32 0.015625, %v14232_v41 }
 0x556   :  { %v3058_v43 = vmul.f32 %v14231_v7, %v1674_v40  ;;  %v14241_v40 = vld [vmem:[#allocation84_spill] sm:$0xff] }
 0x557   :  { %v1678_v41 = vmul.f32 0.015625, %v14241_v40  ;;  %v14250_v40 = vld [vmem:[#allocation87_spill] sm:$0xff] }
 0x558   :  { %v10233_v53 = vpop.permute.xlu1 %3832  ;;  %4018 = vperm.xlu1 %7162, %v3053_v60   ;;  %v10235_v24 = vpop.permute.xlu0 %3841  ;;  %v14236_v60 = vld [vmem:[#allocation466_spill] sm:$0xff] }
 0x559   :  { %14227 = vst [vmem:[#allocation76_spill] sm:$0xff] %v10233_v53  ;;  %14228 = vst [vmem:[#allocation77_spill] sm:$0xff] %v10235_v24  ;;  %4027 = vperm.xlu0 %7161, %v3056_v54   ;;  %v3057_v53 = vmul.f32 %v14236_v60, %v1673_v19  ;;  %v14237_v24 = vld [vmem:[#allocation471_spill] sm:$0xff]  ;;  %v1675_v54 = vmul.f32 0.015625, %v14238_v11 }
 0x55a   :  { %v3060_v37 = vmul.f32 %v14237_v24, %v1676_v0  ;;  %v14247_v0 = vld [vmem:[#allocation86_spill] sm:$0xff] }
 0x55b   :  { %v1680_v11 = vmul.f32 0.015625, %v14247_v0  ;;  %v14256_v0 = vld [vmem:[#allocation89_spill] sm:$0xff] }
 0x55c   :  { %v10241_v13 = vpop.permute.xlu1 %3838  ;;  %4024 = vperm.xlu1 %7162, %v3055_v57   ;;  %v10243_v23 = vpop.permute.xlu0 %3847  ;;  %v14242_v57 = vld [vmem:[#allocation468_spill] sm:$0xff] }
 0x55d   :  { %14233 = vst [vmem:[#allocation78_spill] sm:$0xff] %v10241_v13  ;;  %14234 = vst [vmem:[#allocation79_spill] sm:$0xff] %v10243_v23  ;;  %4033 = vperm.xlu0 %7161, %v3058_v43   ;;  %v3059_v13 = vmul.f32 %v14242_v57, %v1675_v54  ;;  %v14243_v23 = vld [vmem:[#allocation473_spill] sm:$0xff]  ;;  %v1677_v43 = vmul.f32 0.015625, %v14244_v5 }
 0x55e   :  { %v3062_v7 = vmul.f32 %v14243_v23, %v1678_v41  ;;  %v14253_v41 = vld [vmem:[#allocation88_spill] sm:$0xff] }
 0x55f   :  { %v1682_v5 = vmul.f32 0.015625, %v14253_v41  ;;  %v14261_v41 = vld [vmem:[#allocation91_spill] sm:$0xff] }
 0x560   :  { %v10249_v9 = vpop.permute.xlu1 %3844  ;;  %4030 = vperm.xlu1 %7162, %v3057_v53   ;;  %v10251_v63 = vpop.permute.xlu0 %3853  ;;  %v14248_v53 = vld [vmem:[#allocation470_spill] sm:$0xff] }
 0x561   :  { %14239 = vst [vmem:[#allocation80_spill] sm:$0xff] %v10249_v9  ;;  %14240 = vst [vmem:[#allocation81_spill] sm:$0xff] %v10251_v63  ;;  %4039 = vperm.xlu0 %7161, %v3060_v37   ;;  %v3061_v9 = vmul.f32 %v14248_v53, %v1677_v43  ;;  %v14249_v63 = vld [vmem:[#allocation475_spill] sm:$0xff]  ;;  %v1679_v37 = vmul.f32 0.015625, %v14250_v40 }
 0x562   :  { %v3064_v24 = vmul.f32 %v14249_v63, %v1680_v11  ;;  %v14259_v11 = vld [vmem:[#allocation90_spill] sm:$0xff] }
 0x563   :  { %v1684_v40 = vmul.f32 0.015625, %v14259_v11  ;;  %v14267_v11 = vld [vmem:[#allocation93_spill] sm:$0xff] }
 0x564   :  { %v10257_v18 = vpop.permute.xlu1 %3850  ;;  %4036 = vperm.xlu1 %7162, %v3059_v13   ;;  %v10259_v19 = vpop.permute.xlu0 %3859  ;;  %v14254_v13 = vld [vmem:[#allocation472_spill] sm:$0xff] }
 0x565   :  { %14245 = vst [vmem:[#allocation82_spill] sm:$0xff] %v10257_v18  ;;  %14246 = vst [vmem:[#allocation83_spill] sm:$0xff] %v10259_v19  ;;  %4045 = vperm.xlu0 %7161, %v3062_v7   ;;  %v3063_v18 = vmul.f32 %v14254_v13, %v1679_v37  ;;  %v14255_v19 = vld [vmem:[#allocation477_spill] sm:$0xff]  ;;  %v1681_v7 = vmul.f32 0.015625, %v14256_v0 }
 0x566   :  { %v3066_v23 = vmul.f32 %v14255_v19, %v1682_v5  ;;  %v14264_v5 = vld [vmem:[#allocation92_spill] sm:$0xff] }
 0x567   :  { %v1686_v0 = vmul.f32 0.015625, %v14264_v5  ;;  %v14273_v5 = vld [vmem:[#allocation95_spill] sm:$0xff] }
 0x568   :  { %v10265_v60 = vpop.permute.xlu1 %3856  ;;  %4042 = vperm.xlu1 %7162, %v3061_v9   ;;  %v10267_v54 = vpop.permute.xlu0 %3865  ;;  %v14260_v9 = vld [vmem:[#allocation474_spill] sm:$0xff] }
 0x569   :  { %14251 = vst [vmem:[#allocation84_spill] sm:$0xff] %v10265_v60  ;;  %14252 = vst [vmem:[#allocation85_spill] sm:$0xff] %v10267_v54  ;;  %4051 = vperm.xlu0 %7161, %v3064_v24   ;;  %v3065_v60 = vmul.f32 %v14260_v9, %v1681_v7  ;;  %v3068_v54 = vmul.f32 %v9800_v36, %v1684_v40  ;;  %v1683_v24 = vmul.f32 0.015625, %v14261_v41  ;;  %v14270_v40 = vld [vmem:[#allocation94_spill] sm:$0xff] }
 0x56a   :  { %v1688_v41 = vmul.f32 0.015625, %v14270_v40  ;;  %v14279_v40 = vld [vmem:[#allocation97_spill] sm:$0xff] }
 0x56c   :  { %v10273_v57 = vpop.permute.xlu1 %3862  ;;  %4048 = vperm.xlu1 %7162, %v3063_v18   ;;  %v10275_v43 = vpop.permute.xlu0 %3871  ;;  %v14265_v18 = vld [vmem:[#allocation476_spill] sm:$0xff] }
 0x56d   :  { %14257 = vst [vmem:[#allocation86_spill] sm:$0xff] %v10273_v57  ;;  %14258 = vst [vmem:[#allocation470_spill] sm:$0xff] %v10275_v43  ;;  %4057 = vperm.xlu0 %7161, %v3066_v23   ;;  %v3067_v57 = vmul.f32 %v14265_v18, %v1683_v24  ;;  %v14266_v43 = vld [vmem:[#allocation481_spill] sm:$0xff]  ;;  %v1685_v23 = vmul.f32 0.015625, %v14267_v11 }
 0x56e   :  { %v3070_v19 = vmul.f32 %v14266_v43, %v1686_v0  ;;  %v14276_v0 = vld [vmem:[#allocation96_spill] sm:$0xff] }
 0x56f   :  { %v1690_v11 = vmul.f32 0.015625, %v14276_v0  ;;  %v14285_v0 = vld [vmem:[#allocation99_spill] sm:$0xff] }
 0x570   :  { %v10281_v63 = vpop.permute.xlu1 %3868  ;;  %4054 = vperm.xlu1 %7162, %v3065_v60   ;;  %v10283_v37 = vpop.permute.xlu0 %3877  ;;  %v14271_v60 = vld [vmem:[#allocation478_spill] sm:$0xff] }
 0x571   :  { %14262 = vst [vmem:[#allocation87_spill] sm:$0xff] %v10281_v63  ;;  %14263 = vst [vmem:[#allocation88_spill] sm:$0xff] %v10283_v37  ;;  %4063 = vperm.xlu0 %7161, %v3068_v54   ;;  %v3069_v63 = vmul.f32 %v14271_v60, %v1685_v23  ;;  %v14272_v37 = vld [vmem:[#allocation483_spill] sm:$0xff]  ;;  %v1687_v54 = vmul.f32 0.015625, %v14273_v5 }
 0x572   :  { %v3072_v36 = vmul.f32 %v14272_v37, %v1688_v41  ;;  %v14282_v41 = vld [vmem:[#allocation98_spill] sm:$0xff] }
 0x573   :  { %v1692_v5 = vmul.f32 0.015625, %v14282_v41  ;;  %v14291_v41 = vld [vmem:[#allocation101_spill] sm:$0xff] }
 0x574   :  { %v10289_v13 = vpop.permute.xlu1 %3874  ;;  %4060 = vperm.xlu1 %7162, %v3067_v57   ;;  %v10291_v7 = vpop.permute.xlu0 %3883  ;;  %v14277_v57 = vld [vmem:[#allocation480_spill] sm:$0xff] }
 0x575   :  { %14268 = vst [vmem:[#allocation89_spill] sm:$0xff] %v10289_v13  ;;  %14269 = vst [vmem:[#allocation90_spill] sm:$0xff] %v10291_v7  ;;  %4069 = vperm.xlu0 %7161, %v3070_v19   ;;  %v3071_v13 = vmul.f32 %v14277_v57, %v1687_v54  ;;  %v14278_v7 = vld [vmem:[#allocation485_spill] sm:$0xff]  ;;  %v1689_v19 = vmul.f32 0.015625, %v14279_v40 }
 0x576   :  { %v3074_v43 = vmul.f32 %v14278_v7, %v1690_v11  ;;  %v14288_v11 = vld [vmem:[#allocation100_spill] sm:$0xff] }
 0x577   :  { %v1694_v40 = vmul.f32 0.015625, %v14288_v11  ;;  %v14297_v11 = vld [vmem:[#allocation103_spill] sm:$0xff] }
 0x578   :  { %v10297_v9 = vpop.permute.xlu1 %3880  ;;  %4066 = vperm.xlu1 %7162, %v3069_v63   ;;  %v10299_v24 = vpop.permute.xlu0 %3889  ;;  %v14283_v63 = vld [vmem:[#allocation482_spill] sm:$0xff] }
 0x579   :  { %14274 = vst [vmem:[#allocation91_spill] sm:$0xff] %v10297_v9  ;;  %14275 = vst [vmem:[#allocation92_spill] sm:$0xff] %v10299_v24  ;;  %4075 = vperm.xlu0 %7161, %v3072_v36   ;;  %v3073_v9 = vmul.f32 %v14283_v63, %v1689_v19  ;;  %v14284_v24 = vld [vmem:[#allocation487_spill] sm:$0xff]  ;;  %v1691_v36 = vmul.f32 0.015625, %v14285_v0 }
 0x57a   :  { %v3076_v37 = vmul.f32 %v14284_v24, %v1692_v5  ;;  %v14294_v5 = vld [vmem:[#allocation102_spill] sm:$0xff] }
 0x57b   :  { %v1696_v0 = vmul.f32 0.015625, %v14294_v5  ;;  %v14303_v5 = vld [vmem:[#allocation105_spill] sm:$0xff] }
 0x57c   :  { %v10305_v18 = vpop.permute.xlu1 %3886  ;;  %4072 = vperm.xlu1 %7162, %v3071_v13   ;;  %v10307_v23 = vpop.permute.xlu0 %3895  ;;  %v14289_v13 = vld [vmem:[#allocation484_spill] sm:$0xff] }
 0x57d   :  { %14280 = vst [vmem:[#allocation93_spill] sm:$0xff] %v10305_v18  ;;  %14281 = vst [vmem:[#allocation94_spill] sm:$0xff] %v10307_v23  ;;  %4081 = vperm.xlu0 %7161, %v3074_v43   ;;  %v3075_v18 = vmul.f32 %v14289_v13, %v1691_v36  ;;  %v14290_v23 = vld [vmem:[#allocation489_spill] sm:$0xff]  ;;  %v1693_v43 = vmul.f32 0.015625, %v14291_v41 }
 0x57e   :  { %v3078_v7 = vmul.f32 %v14290_v23, %v1694_v40  ;;  %v14300_v40 = vld [vmem:[#allocation104_spill] sm:$0xff] }
 0x57f   :  { %v1698_v41 = vmul.f32 0.015625, %v14300_v40  ;;  %v14308_v40 = vld [vmem:[#allocation107_spill] sm:$0xff] }
 0x580   :  { %v10313_v60 = vpop.permute.xlu1 %3892  ;;  %4078 = vperm.xlu1 %7162, %v3073_v9   ;;  %v10315_v54 = vpop.permute.xlu0 %3901  ;;  %v14295_v9 = vld [vmem:[#allocation486_spill] sm:$0xff] }
 0x581   :  { %14286 = vst [vmem:[#allocation95_spill] sm:$0xff] %v10313_v60  ;;  %14287 = vst [vmem:[#allocation96_spill] sm:$0xff] %v10315_v54  ;;  %4087 = vperm.xlu0 %7161, %v3076_v37   ;;  %v3077_v60 = vmul.f32 %v14295_v9, %v1693_v43  ;;  %v14296_v54 = vld [vmem:[#allocation491_spill] sm:$0xff]  ;;  %v1695_v37 = vmul.f32 0.015625, %v14297_v11 }
 0x582   :  { %v3080_v24 = vmul.f32 %v14296_v54, %v1696_v0  ;;  %v14306_v0 = vld [vmem:[#allocation106_spill] sm:$0xff] }
 0x583   :  { %v1700_v11 = vmul.f32 0.015625, %v14306_v0  ;;  %v14313_v0 = vld [vmem:[#allocation109_spill] sm:$0xff] }
 0x584   :  { %v10321_v57 = vpop.permute.xlu1 %3898  ;;  %4084 = vperm.xlu1 %7162, %v3075_v18   ;;  %v10323_v19 = vpop.permute.xlu0 %3907  ;;  %v14301_v18 = vld [vmem:[#allocation488_spill] sm:$0xff] }
 0x585   :  { %14292 = vst [vmem:[#allocation97_spill] sm:$0xff] %v10321_v57  ;;  %14293 = vst [vmem:[#allocation98_spill] sm:$0xff] %v10323_v19  ;;  %4093 = vperm.xlu0 %7161, %v3078_v7   ;;  %v3079_v57 = vmul.f32 %v14301_v18, %v1695_v37  ;;  %v14302_v19 = vld [vmem:[#allocation493_spill] sm:$0xff]  ;;  %v1697_v7 = vmul.f32 0.015625, %v14303_v5 }
 0x586   :  { %v3082_v23 = vmul.f32 %v14302_v19, %v1698_v41  ;;  %v14311_v41 = vld [vmem:[#allocation108_spill] sm:$0xff] }
 0x587   :  { %v1702_v5 = vmul.f32 0.015625, %v14311_v41  ;;  %v14318_v41 = vld [vmem:[#allocation111_spill] sm:$0xff] }
 0x588   :  { %v10329_v63 = vpop.permute.xlu1 %3904  ;;  %4090 = vperm.xlu1 %7162, %v3077_v60   ;;  %v10331_v36 = vpop.permute.xlu0 %3913  ;;  %v14307_v60 = vld [vmem:[#allocation490_spill] sm:$0xff] }
 0x589   :  { %14298 = vst [vmem:[#allocation99_spill] sm:$0xff] %v10329_v63  ;;  %14299 = vst [vmem:[#allocation100_spill] sm:$0xff] %v10331_v36  ;;  %4099 = vperm.xlu0 %7161, %v3080_v24   ;;  %v3081_v63 = vmul.f32 %v14307_v60, %v1697_v7  ;;  %v3084_v36 = vmul.f32 %v9835_v29, %v1700_v11  ;;  %v1699_v24 = vmul.f32 0.015625, %v14308_v40  ;;  %v14316_v11 = vld [vmem:[#allocation110_spill] sm:$0xff] }
 0x58a   :  { %v1704_v40 = vmul.f32 0.015625, %v14316_v11  ;;  %v14322_v11 = vld [vmem:[#allocation113_spill] sm:$0xff] }
 0x58c   :  { %v10337_v13 = vpop.permute.xlu1 %3910  ;;  %4096 = vperm.xlu1 %7162, %v3079_v57   ;;  %v10339_v43 = vpop.permute.xlu0 %3919  ;;  %v14312_v57 = vld [vmem:[#allocation492_spill] sm:$0xff] }
 0x58d   :  { %14304 = vst [vmem:[#allocation101_spill] sm:$0xff] %v10337_v13  ;;  %14305 = vst [vmem:[#allocation102_spill] sm:$0xff] %v10339_v43  ;;  %4105 = vperm.xlu0 %7161, %v3082_v23   ;;  %v3083_v13 = vmul.f32 %v14312_v57, %v1699_v24  ;;  %v3086_v43 = vmul.f32 %v9843_v15, %v1702_v5  ;;  %v1701_v23 = vmul.f32 0.015625, %v14313_v0  ;;  %v14321_v5 = vld [vmem:[#allocation112_spill] sm:$0xff] }
 0x58e   :  { %v1706_v0 = vmul.f32 0.015625, %v14321_v5  ;;  %v14326_v5 = vld [vmem:[#allocation115_spill] sm:$0xff] }
 0x590   :  { %v10345_v54 = vpop.permute.xlu1 %3916  ;;  %4102 = vperm.xlu1 %7162, %v3081_v63   ;;  %v10347_v37 = vpop.permute.xlu0 %3925  ;;  %v14317_v63 = vld [vmem:[#allocation494_spill] sm:$0xff] }
 0x591   :  { %14309 = vst [vmem:[#allocation486_spill] sm:$0xff] %v10345_v54  ;;  %14310 = vst [vmem:[#allocation103_spill] sm:$0xff] %v10347_v37  ;;  %4111 = vperm.xlu0 %7161, %v3084_v36   ;;  %v3085_v54 = vmul.f32 %v14317_v63, %v1701_v23  ;;  %v3088_v37 = vmul.f32 %v9851_v35, %v1704_v40  ;;  %v1703_v36 = vmul.f32 0.015625, %v14318_v41  ;;  %v14325_v40 = vld [vmem:[#allocation114_spill] sm:$0xff] }
 0x592   :  { %v1708_v41 = vmul.f32 0.015625, %v14325_v40  ;;  %v14330_v40 = vld [vmem:[#allocation117_spill] sm:$0xff] }
 0x594   :  { %v10353_v19 = vpop.permute.xlu1 %3922  ;;  %4108 = vperm.xlu1 %7162, %v3083_v13   ;;  %v10355_v7 = vpop.permute.xlu0 %3931  ;;  %v3087_v13 = vmul.f32 %v9837_v58, %v1703_v36 }
 0x595   :  { %14314 = vst [vmem:[#allocation104_spill] sm:$0xff] %v10353_v19  ;;  %14315 = vst [vmem:[#allocation488_spill] sm:$0xff] %v10355_v7  ;;  %4117 = vperm.xlu0 %7161, %v3086_v43   ;;  %v3090_v7 = vmul.f32 %v9859_v42, %v1706_v0  ;;  %v1705_v43 = vmul.f32 0.015625, %v14322_v11  ;;  %v14329_v0 = vld [vmem:[#allocation116_spill] sm:$0xff] }
 0x596   :  { %v1710_v11 = vmul.f32 0.015625, %v14329_v0  ;;  %v14334_v0 = vld [vmem:[#allocation119_spill] sm:$0xff] }
 0x598   :  { %v10361_v29 = vpop.permute.xlu1 %3928  ;;  %4114 = vperm.xlu1 %7162, %v3085_v54   ;;  %v10363_v24 = vpop.permute.xlu0 %3937  ;;  %v3089_v54 = vmul.f32 %v9845_v2, %v1705_v43 }
 0x599   :  { %14319 = vst [vmem:[#allocation105_spill] sm:$0xff] %v10361_v29  ;;  %14320 = vst [vmem:[#allocation106_spill] sm:$0xff] %v10363_v24  ;;  %4123 = vperm.xlu0 %7161, %v3088_v37   ;;  %v3092_v24 = vmul.f32 %v9867_v59, %v1708_v41  ;;  %v1707_v37 = vmul.f32 0.015625, %v14326_v5  ;;  %v14333_v41 = vld [vmem:[#allocation118_spill] sm:$0xff] }
 0x59a   :  { %v1712_v5 = vmul.f32 0.015625, %v14333_v41  ;;  %v14338_v41 = vld [vmem:[#allocation121_spill] sm:$0xff] }
 0x59c   :  { %v10369_v19 = vpop.permute.xlu1 %3934  ;;  %4120 = vperm.xlu1 %7162, %v3087_v13   ;;  %v10371_v23 = vpop.permute.xlu0 %3943  ;;  %v3091_v13 = vmul.f32 %v9853_v47, %v1707_v37 }
 0x59d   :  { %14323 = vst [vmem:[#allocation490_spill] sm:$0xff] %v10369_v19  ;;  %14324 = vst [vmem:[#allocation107_spill] sm:$0xff] %v10371_v23  ;;  %4129 = vperm.xlu0 %7161, %v3090_v7   ;;  %v3094_v23 = vmul.f32 %v9875_v3, %v1710_v11  ;;  %v1709_v7 = vmul.f32 0.015625, %v14330_v40  ;;  %v14337_v11 = vld [vmem:[#allocation120_spill] sm:$0xff] }
 0x59e   :  { %v1714_v40 = vmul.f32 0.015625, %v14337_v11  ;;  %v14342_v11 = vld [vmem:[#allocation123_spill] sm:$0xff] }
 0x5a0   :  { %v10377_v29 = vpop.permute.xlu1 %3940  ;;  %4126 = vperm.xlu1 %7162, %v3089_v54   ;;  %v10379_v36 = vpop.permute.xlu0 %3949  ;;  %v3093_v54 = vmul.f32 %v9861_v55, %v1709_v7 }
 0x5a1   :  { %14327 = vst [vmem:[#allocation108_spill] sm:$0xff] %v10377_v29  ;;  %14328 = vst [vmem:[#allocation492_spill] sm:$0xff] %v10379_v36  ;;  %4135 = vperm.xlu0 %7161, %v3092_v24   ;;  %v3096_v36 = vmul.f32 %v9883_v46, %v1712_v5  ;;  %v1711_v24 = vmul.f32 0.015625, %v14334_v0  ;;  %v14341_v5 = vld [vmem:[#allocation122_spill] sm:$0xff] }
 0x5a2   :  { %v1716_v0 = vmul.f32 0.015625, %v14341_v5  ;;  %v14346_v5 = vld [vmem:[#allocation125_spill] sm:$0xff] }
 0x5a4   :  { %v10385_v19 = vpop.permute.xlu1 %3946  ;;  %4132 = vperm.xlu1 %7162, %v3091_v13   ;;  %v10387_v43 = vpop.permute.xlu0 %3955  ;;  %v3095_v13 = vmul.f32 %v9869_v20, %v1711_v24 }
 0x5a5   :  { %14331 = vst [vmem:[#allocation109_spill] sm:$0xff] %v10385_v19  ;;  %14332 = vst [vmem:[#allocation110_spill] sm:$0xff] %v10387_v43  ;;  %4141 = vperm.xlu0 %7161, %v3094_v23   ;;  %v3098_v43 = vmul.f32 %v9891_v1, %v1714_v40  ;;  %v1713_v23 = vmul.f32 0.015625, %v14338_v41  ;;  %v14345_v40 = vld [vmem:[#allocation124_spill] sm:$0xff] }
 0x5a6   :  { %v1718_v41 = vmul.f32 0.015625, %v14345_v40  ;;  %v14350_v40 = vld [vmem:[#allocation127_spill] sm:$0xff] }
 0x5a8   :  { %v10393_v29 = vpop.permute.xlu1 %3952  ;;  %4138 = vperm.xlu1 %7162, %v3093_v54   ;;  %v10395_v37 = vpop.permute.xlu0 %3961  ;;  %v3097_v54 = vmul.f32 %v9877_v26, %v1713_v23  ;;  %v14821_v26 = vld [vmem:[#allocation318_spill] sm:$0xff] }
 0x5a9   :  { %14335 = vst [vmem:[#allocation494_spill] sm:$0xff] %v10393_v29  ;;  %14336 = vst [vmem:[#allocation111_spill] sm:$0xff] %v10395_v37  ;;  %4147 = vperm.xlu0 %7161, %v3096_v36   ;;  %v3100_v37 = vmul.f32 %v9899_v21, %v1716_v0  ;;  %v1715_v36 = vmul.f32 0.015625, %v14342_v11  ;;  %v14349_v0 = vld [vmem:[#allocation126_spill] sm:$0xff] }
 0x5aa   :  { %v1720_v11 = vmul.f32 0.015625, %v14349_v0  ;;  %v14354_v0 = vld [vmem:[#allocation129_spill] sm:$0xff]  ;;  %v14808_v21 = vld [vmem:[#allocation310_spill] sm:$0xff] }
 0x5ac   :  { %v10401_v19 = vpop.permute.xlu1 %3958  ;;  %4144 = vperm.xlu1 %7162, %v3095_v13   ;;  %v10403_v7 = vpop.permute.xlu0 %3967  ;;  %v3099_v13 = vmul.f32 %v9885_v32, %v1715_v36 }
 0x5ad   :  { %14339 = vst [vmem:[#allocation112_spill] sm:$0xff] %v10401_v19  ;;  %14340 = vst [vmem:[#allocation113_spill] sm:$0xff] %v10403_v7  ;;  %4153 = vperm.xlu0 %7161, %v3098_v43   ;;  %v3102_v19 = vmul.f32 %v9907_v14, %v1718_v41  ;;  %v1717_v43 = vmul.f32 0.015625, %v14346_v5  ;;  %v14353_v41 = vld [vmem:[#allocation128_spill] sm:$0xff] }
 0x5ae   :  { %v1722_v5 = vmul.f32 0.015625, %v14353_v41  ;;  %v14358_v41 = vld [vmem:[#allocation131_spill] sm:$0xff] }
 0x5b0   :  { %v10409_v29 = vpop.permute.xlu1 %3964  ;;  %4150 = vperm.xlu1 %7162, %v3097_v54   ;;  %v10411_v24 = vpop.permute.xlu0 %3973  ;;  %v3101_v54 = vmul.f32 %v9893_v38, %v1717_v43  ;;  %v11350_v38 = vmul.f32 0.015625, %v14808_v21 }
 0x5b1   :  { %14343 = vst [vmem:[#allocation114_spill] sm:$0xff] %v10409_v29  ;;  %14344 = vst [vmem:[#allocation115_spill] sm:$0xff] %v10411_v24  ;;  %4159 = vperm.xlu0 %7161, %v3100_v37   ;;  %v3104_v24 = vmul.f32 %v9915_v27, %v1720_v11  ;;  %v1719_v37 = vmul.f32 0.015625, %v14350_v40  ;;  %v14357_v11 = vld [vmem:[#allocation130_spill] sm:$0xff] }
 0x5b2   :  { %v1724_v40 = vmul.f32 0.015625, %v14357_v11  ;;  %v14362_v11 = vld [vmem:[#allocation133_spill] sm:$0xff] }
 0x5b4   :  { %v10417_v7 = vpop.permute.xlu1 %3970  ;;  %4156 = vperm.xlu1 %7162, %v3099_v13   ;;  %v10419_v23 = vpop.permute.xlu0 %3979  ;;  %v3103_v13 = vmul.f32 %v9901_v44, %v1719_v37 }
 0x5b5   :  { %14347 = vst [vmem:[#allocation116_spill] sm:$0xff] %v10417_v7  ;;  %14348 = vst [vmem:[#allocation117_spill] sm:$0xff] %v10419_v23  ;;  %4165 = vperm.xlu0 %7161, %v3102_v19   ;;  %v3106_v23 = vmul.f32 %v9923_v33, %v1722_v5  ;;  %v1721_v19 = vmul.f32 0.015625, %v14354_v0  ;;  %v14361_v5 = vld [vmem:[#allocation132_spill] sm:$0xff] }
 0x5b6   :  { %v1726_v0 = vmul.f32 0.015625, %v14361_v5  ;;  %v14366_v5 = vld [vmem:[#allocation135_spill] sm:$0xff] }
 0x5b8   :  { %v10425_v29 = vpop.permute.xlu1 %3976  ;;  %4162 = vperm.xlu1 %7162, %v3101_v54   ;;  %v10427_v36 = vpop.permute.xlu0 %3985  ;;  %v3105_v54 = vmul.f32 %v9909_v50, %v1721_v19 }
 0x5b9   :  { %14351 = vst [vmem:[#allocation118_spill] sm:$0xff] %v10425_v29  ;;  %14352 = vst [vmem:[#allocation119_spill] sm:$0xff] %v10427_v36  ;;  %4171 = vperm.xlu0 %7161, %v3104_v24   ;;  %v3108_v36 = vmul.f32 %v9931_v8, %v1724_v40  ;;  %v1723_v24 = vmul.f32 0.015625, %v14358_v41  ;;  %v14365_v40 = vld [vmem:[#allocation134_spill] sm:$0xff] }
 0x5ba   :  { %v1728_v41 = vmul.f32 0.015625, %v14365_v40  ;;  %v14370_v40 = vld [vmem:[#allocation137_spill] sm:$0xff] }
 0x5bc   :  { %v10433_v7 = vpop.permute.xlu1 %3982  ;;  %4168 = vperm.xlu1 %7162, %v3103_v13   ;;  %v10435_v43 = vpop.permute.xlu0 %3991  ;;  %v3107_v13 = vmul.f32 %v9917_v56, %v1723_v24 }
 0x5bd   :  { %14355 = vst [vmem:[#allocation120_spill] sm:$0xff] %v10433_v7  ;;  %14356 = vst [vmem:[#allocation121_spill] sm:$0xff] %v10435_v43  ;;  %4177 = vperm.xlu0 %7161, %v3106_v23   ;;  %v3110_v43 = vmul.f32 %v9939_v22, %v1726_v0  ;;  %v1725_v23 = vmul.f32 0.015625, %v14362_v11  ;;  %v14369_v0 = vld [vmem:[#allocation136_spill] sm:$0xff] }
 0x5be   :  { %v1730_v11 = vmul.f32 0.015625, %v14369_v0  ;;  %v14374_v0 = vld [vmem:[#allocation139_spill] sm:$0xff] }
 0x5c0   :  { %v10441_v29 = vpop.permute.xlu1 %3988  ;;  %4174 = vperm.xlu1 %7162, %v3105_v54   ;;  %v10443_v37 = vpop.permute.xlu0 %3997  ;;  %v3109_v54 = vmul.f32 %v9925_v62, %v1725_v23  ;;  %v14799_v62 = vld [vmem:[#allocation303_spill] sm:$0xff] }
 0x5c1   :  { %14359 = vst [vmem:[#allocation122_spill] sm:$0xff] %v10441_v29  ;;  %14360 = vst [vmem:[#allocation123_spill] sm:$0xff] %v10443_v37  ;;  %4183 = vperm.xlu0 %7161, %v3108_v36   ;;  %v3112_v37 = vmul.f32 %v9947_v34, %v1728_v41  ;;  %v1727_v36 = vmul.f32 0.015625, %v14366_v5  ;;  %v14373_v41 = vld [vmem:[#allocation138_spill] sm:$0xff] }
 0x5c2   :  { %v1732_v5 = vmul.f32 0.015625, %v14373_v41  ;;  %v14378_v41 = vld [vmem:[#allocation141_spill] sm:$0xff]  ;;  %v14790_v34 = vld [vmem:[#allocation294_spill] sm:$0xff] }
 0x5c4   :  { %v10449_v7 = vpop.permute.xlu1 %3994  ;;  %4180 = vperm.xlu1 %7162, %v3107_v13   ;;  %v10451_v19 = vpop.permute.xlu0 %4003  ;;  %v3111_v13 = vmul.f32 %v9933_v4, %v1727_v36 }
 0x5c5   :  { %14363 = vst [vmem:[#allocation124_spill] sm:$0xff] %v10449_v7  ;;  %14364 = vst [vmem:[#allocation125_spill] sm:$0xff] %v10451_v19  ;;  %4189 = vperm.xlu0 %7161, %v3110_v43   ;;  %v3114_v19 = vmul.f32 %v9955_v49, %v1730_v11  ;;  %v1729_v43 = vmul.f32 0.015625, %v14370_v40  ;;  %v14377_v11 = vld [vmem:[#allocation140_spill] sm:$0xff] }
 0x5c6   :  { %v1734_v40 = vmul.f32 0.015625, %v14377_v11  ;;  %v14382_v11 = vld [vmem:[#allocation143_spill] sm:$0xff] }
 0x5c8   :  { %v10457_v29 = vpop.permute.xlu1 %4000  ;;  %4186 = vperm.xlu1 %7162, %v3109_v54   ;;  %v10459_v24 = vpop.permute.xlu0 %4009  ;;  %v3113_v54 = vmul.f32 %v9941_v10, %v1729_v43  ;;  %v11302_v10 = vmul.f32 0.015625, %v14790_v34 }
 0x5c9   :  { %14367 = vst [vmem:[#allocation126_spill] sm:$0xff] %v10457_v29  ;;  %14368 = vst [vmem:[#allocation127_spill] sm:$0xff] %v10459_v24  ;;  %4195 = vperm.xlu0 %7161, %v3112_v37   ;;  %v3116_v24 = vmul.f32 %v9963_v12, %v1732_v5  ;;  %v1731_v37 = vmul.f32 0.015625, %v14374_v0  ;;  %v14381_v5 = vld [vmem:[#allocation142_spill] sm:$0xff] }
 0x5ca   :  { %v1736_v0 = vmul.f32 0.015625, %v14381_v5  ;;  %v14386_v5 = vld [vmem:[#allocation145_spill] sm:$0xff] }
 0x5cc   :  { %v10465_v7 = vpop.permute.xlu1 %4006  ;;  %4192 = vperm.xlu1 %7162, %v3111_v13   ;;  %v10467_v23 = vpop.permute.xlu0 %4015  ;;  %v3115_v13 = vmul.f32 %v9949_v39, %v1731_v37 }
 0x5cd   :  { %14371 = vst [vmem:[#allocation128_spill] sm:$0xff] %v10465_v7  ;;  %14372 = vst [vmem:[#allocation129_spill] sm:$0xff] %v10467_v23  ;;  %4201 = vperm.xlu0 %7161, %v3114_v19   ;;  %v3118_v7 = vmul.f32 %v9971_v30, %v1734_v40  ;;  %v1733_v19 = vmul.f32 0.015625, %v14378_v41  ;;  %v14385_v40 = vld [vmem:[#allocation144_spill] sm:$0xff] }
 0x5ce   :  { %v1738_v41 = vmul.f32 0.015625, %v14385_v40  ;;  %v14390_v40 = vld [vmem:[#allocation147_spill] sm:$0xff] }
 0x5d0   :  { %v10473_v29 = vpop.permute.xlu1 %4012  ;;  %4198 = vperm.xlu1 %7162, %v3113_v54   ;;  %v10475_v36 = vpop.permute.xlu0 %4021  ;;  %v3117_v54 = vmul.f32 %v9957_v45, %v1733_v19 }
 0x5d1   :  { %14375 = vst [vmem:[#allocation130_spill] sm:$0xff] %v10473_v29  ;;  %14376 = vst [vmem:[#allocation131_spill] sm:$0xff] %v10475_v36  ;;  %4207 = vperm.xlu0 %7161, %v3116_v24   ;;  %v3120_v36 = vmul.f32 %v9979_v52, %v1736_v0  ;;  %v1735_v24 = vmul.f32 0.015625, %v14382_v11  ;;  %v14389_v0 = vld [vmem:[#allocation146_spill] sm:$0xff] }
 0x5d2   :  { %v1740_v11 = vmul.f32 0.015625, %v14389_v0  ;;  %v14394_v0 = vld [vmem:[#allocation149_spill] sm:$0xff] }
 0x5d4   :  { %v10481_v23 = vpop.permute.xlu1 %4018  ;;  %4204 = vperm.xlu1 %7162, %v3115_v13   ;;  %v10483_v43 = vpop.permute.xlu0 %4027  ;;  %v3119_v13 = vmul.f32 %v9965_v51, %v1735_v24 }
 0x5d5   :  { %14379 = vst [vmem:[#allocation132_spill] sm:$0xff] %v10481_v23  ;;  %14380 = vst [vmem:[#allocation133_spill] sm:$0xff] %v10483_v43  ;;  %4213 = vperm.xlu0 %7161, %v3118_v7   ;;  %v3122_v43 = vmul.f32 %v9987_v17, %v1738_v41  ;;  %v1737_v7 = vmul.f32 0.015625, %v14386_v5  ;;  %v14393_v41 = vld [vmem:[#allocation148_spill] sm:$0xff] }
 0x5d6   :  { %v1742_v5 = vmul.f32 0.015625, %v14393_v41  ;;  %v14399_v41 = vld [vmem:[#allocation151_spill] sm:$0xff] }
 0x5d8   :  { %v10489_v29 = vpop.permute.xlu1 %4024  ;;  %4210 = vperm.xlu1 %7162, %v3117_v54   ;;  %v10491_v37 = vpop.permute.xlu0 %4033  ;;  %v3121_v54 = vmul.f32 %v9973_v48, %v1737_v7  ;;  %v14781_v48 = vld [vmem:[#allocation287_spill] sm:$0xff] }
 0x5d9   :  { %14383 = vst [vmem:[#allocation134_spill] sm:$0xff] %v10489_v29  ;;  %14384 = vst [vmem:[#allocation135_spill] sm:$0xff] %v10491_v37  ;;  %4219 = vperm.xlu0 %7161, %v3120_v36   ;;  %v3124_v37 = vmul.f32 %v9995_v6, %v1740_v11  ;;  %v1739_v36 = vmul.f32 0.015625, %v14390_v40  ;;  %v14397_v11 = vld [vmem:[#allocation150_spill] sm:$0xff] }
 0x5da   :  { %v1744_v40 = vmul.f32 0.015625, %v14397_v11  ;;  %v14405_v11 = vld [vmem:[#allocation153_spill] sm:$0xff] }
 0x5dc   :  { %v10497_v23 = vpop.permute.xlu1 %4030  ;;  %4216 = vperm.xlu1 %7162, %v3119_v13   ;;  %v10499_v19 = vpop.permute.xlu0 %4039  ;;  %v3123_v13 = vmul.f32 %v9981_v61, %v1739_v36  ;;  %v14772_v61 = vld [vmem:[#allocation280_spill] sm:$0xff] }
 0x5dd   :  { %14387 = vst [vmem:[#allocation136_spill] sm:$0xff] %v10497_v23  ;;  %14388 = vst [vmem:[#allocation137_spill] sm:$0xff] %v10499_v19  ;;  %4225 = vperm.xlu0 %7161, %v3122_v43   ;;  %v3126_v19 = vmul.f32 %v10003_v16, %v1742_v5  ;;  %v1741_v43 = vmul.f32 0.015625, %v14394_v0  ;;  %v14402_v5 = vld [vmem:[#allocation152_spill] sm:$0xff] }
 0x5de   :  { %v1746_v0 = vmul.f32 0.015625, %v14402_v5 }
 0x5e0   :  { %v10505_v29 = vpop.permute.xlu1 %4036  ;;  %4222 = vperm.xlu1 %7162, %v3121_v54   ;;  %v10507_v24 = vpop.permute.xlu0 %4045  ;;  %v14398_v54 = vld [vmem:[#allocation17_spill] sm:$0xff] }
 0x5e1   :  { %14391 = vst [vmem:[#allocation138_spill] sm:$0xff] %v10505_v29  ;;  %14392 = vst [vmem:[#allocation139_spill] sm:$0xff] %v10507_v24  ;;  %4231 = vperm.xlu0 %7161, %v3124_v37   ;;  %v3125_v29 = vmul.f32 %v14398_v54, %v1741_v43  ;;  %v3128_v24 = vmul.f32 %v10011_v31, %v1744_v40  ;;  %v1743_v37 = vmul.f32 0.015625, %v14399_v41  ;;  %v14408_v40 = vld [vmem:[#allocation154_spill] sm:$0xff] }
 0x5e2   :  { %v1748_v41 = vmul.f32 0.015625, %v14408_v40  ;;  %v6864_v40 = vld [vmem:[%s13282_s2 + $0x48] sm:$0xff] }
 0x5e4   :  { %v10513_v23 = vpop.permute.xlu1 %4042  ;;  %4228 = vperm.xlu1 %7162, %v3123_v13   ;;  %v10515_v7 = vpop.permute.xlu0 %4051  ;;  %v14403_v13 = vld [vmem:[#allocation19_spill] sm:$0xff] }
 0x5e5   :  { %14395 = vst [vmem:[#allocation140_spill] sm:$0xff] %v10513_v23  ;;  %14396 = vst [vmem:[#allocation141_spill] sm:$0xff] %v10515_v7  ;;  %4237 = vperm.xlu0 %7161, %v3126_v19   ;;  %v3127_v23 = vmul.f32 %v14403_v13, %v1743_v37  ;;  %v14404_v7 = vld [vmem:[#allocation24_spill] sm:$0xff]  ;;  %v1745_v19 = vmul.f32 0.015625, %v14405_v11  ;;  %v14411_v37 = vld [vmem:[#allocation155_spill] sm:$0xff] }
 0x5e6   :  { %v3130_v16 = vmul.f32 %v14404_v7, %v1746_v0  ;;  %v1747_v5 = vmul.f32 0.015625, %v14411_v37  ;;  %v14414_v11 = vld [vmem:[#allocation156_spill] sm:$0xff] }
 0x5e8   :  { %v10521_v6 = vpop.permute.xlu1 %4048  ;;  %4234 = vperm.xlu1 %7162, %v3125_v29   ;;  %v10523_v36 = vpop.permute.xlu0 %4057  ;;  %v14409_v29 = vld [vmem:[#allocation21_spill] sm:$0xff] }
 0x5e9   :  { %14400 = vst [vmem:[#allocation142_spill] sm:$0xff] %v10521_v6  ;;  %14401 = vst [vmem:[#allocation143_spill] sm:$0xff] %v10523_v36  ;;  %4243 = vperm.xlu0 %7161, %v3128_v24   ;;  %v3129_v6 = vmul.f32 %v14409_v29, %v1745_v19  ;;  %v14410_v36 = vld [vmem:[#allocation26_spill] sm:$0xff]  ;;  %v1750_v19 = vmul.f32 0.015625, %v14414_v11 }
 0x5ea   :  { %v3132_v31 = vmul.f32 %v14410_v36, %v1748_v41  ;;  %v6866_v24 = vld [vmem:[%s13282_s2 + $0x58] sm:$0xf]  ;;  %v14415_v41 = vld [vmem:[#allocation23_spill] sm:$0xff] }
 0x5eb   :  { %7155 = vmatprep.subr.msk.mxu0 %vm6883_vm1, %v6866_v24  ;;  %v3131_v37 = vmul.f32 %v14415_v41, %v1747_v5  ;;  %v14416_v24 = vld [vmem:[#allocation28_spill] sm:$0xff]  ;;  %v6862_v11 = vld [vmem:[%s13282_s2 + $0x38] sm:$0xff] }
 0x5ec   :  { %v10529_v17 = vpop.permute.xlu1 %4054  ;;  %4240 = vperm.xlu1 %7162, %v3127_v23   ;;  %v10531_v43 = vpop.permute.xlu0 %4063  ;;  %v6861_v5 = vld [vmem:[%s13282_s2 + $0x30] sm:$0xff] }
 0x5ed   :  { %14406 = vst [vmem:[#allocation144_spill] sm:$0xff] %v10529_v17  ;;  %14407 = vst [vmem:[#allocation145_spill] sm:$0xff] %v10531_v43  ;;  %4249 = vperm.xlu0 %7161, %v3130_v16   ;;  %v6865_v16 = vld [vmem:[%s13282_s2 + $0x50] sm:$0xf]  ;;  %v3134_v17 = vmul.f32 %v14416_v24, %v1750_v19  ;;  %v6860_v19 = vld [vmem:[%s13282_s2 + $0x28] sm:$0xff] }
 0x5ee   :  { %7156 = vmatpush1.msk.msra.mxu0 %vm6883_vm1, %v6865_v16  ;;  %vm4984_vm1 = vcmask 1048512  }
 0x5ef   :  { %6912 = vmatprep.subr.mxu0 %v6864_v40  ;;  %v14420_v40 = vld [vmem:[#allocation158_spill] sm:$0xff] }
 0x5f0   :  { %v10540_v0 = vpop.permute.xlu1 %4060  ;;  %4246 = vperm.xlu1 %7162, %v3129_v6   ;;  %v10542_v23 = vpop.permute.xlu0 %4069  ;;  %v6863_v6 = vld [vmem:[%s13282_s2 + $0x40] sm:$0xff] }
 0x5f1   :  { %14412 = vst [vmem:[#allocation146_spill] sm:$0xff] %v10540_v0  ;;  %14413 = vst [vmem:[#allocation147_spill] sm:$0xff] %v10542_v23  ;;  %4255 = vperm.xlu0 %7161, %v3132_v31   ;;  %6913 = vmatpush1.msra.mxu0 %v6863_v6  ;;  %v14417_v31 = vld [vmem:[#allocation157_spill] sm:$0xff]  ;;  %v1752_v0 = vmul.f32 0.015625, %v14420_v40 }
 0x5f2   :  { %v1749_v16 = vmul.f32 0.015625, %v14417_v31  ;;  %6914 = vmatprep.subr.mxu0 %v6862_v11  ;;  %v14421_v6 = vld [vmem:[#allocation25_spill] sm:$0xff]  ;;  %v14422_v11 = vld [vmem:[#allocation30_spill] sm:$0xff] }
 0x5f3   :  { %6915 = vmatpush1.msra.mxu0 %v6861_v5  ;;  %v6858_v40 = vld [vmem:[%s13282_s2 + $0x18] sm:$0xff] }
 0x5f4   :  { %v10560_v23 = vpop.permute.xlu1 %4066  ;;  %4252 = vperm.xlu1 %7162, %v3131_v37   ;;  %v10562_v43 = vpop.permute.xlu0 %4075  ;;  %v3133_v31 = vmul.f32 %v14421_v6, %v1749_v16  ;;  %6916 = vmatprep.subr.mxu0 %v6860_v19  ;;  %v6859_v37 = vld [vmem:[%s13282_s2 + $0x20] sm:$0xff]  ;;  %v6857_v16 = vld [vmem:[%s13282_s2 + $0x10] sm:$0xff] }
 0x5f5   :  { %14418 = vst [vmem:[#allocation148_spill] sm:$0xff] %v10560_v23  ;;  %14419 = vst [vmem:[#allocation149_spill] sm:$0xff] %v10562_v43  ;;  %4261 = vperm.xlu0 %7161, %v3134_v17   ;;  %v3136_v43 = vmul.f32 %v14422_v11, %v1752_v0  ;;  %6917 = vmatpush1.msra.mxu0 %v6859_v37  ;;  %v14423_v17 = vld [vmem:[#allocation159_spill] sm:$0xff]  ;;  %v14426_v19 = vld [vmem:[#allocation160_spill] sm:$0xff] }
 0x5f6   :  { %v1751_v5 = vmul.f32 0.015625, %v14423_v17  ;;  %6918 = vmatprep.subr.mxu0 %v6858_v40  ;;  %v1754_v36 = vmul.f32 0.015625, %v14426_v19  ;;  %v6856_v0 = vld [vmem:[%s13282_s2 + $0x8] sm:$0xff] }
 0x5f7   :  { %6919 = vmatpush1.msra.mxu0 %v6857_v16  ;;  %v14427_v37 = vld [vmem:[#allocation27_spill] sm:$0xff]  ;;  %v14428_v40 = vld [vmem:[#allocation32_spill] sm:$0xff]  ;;  %v14429_v16 = vld [vmem:[#allocation161_spill] sm:$0xff] }
 0x5f8   :  { %v10580_v23 = vpop.permute.xlu1 %4072  ;;  %4258 = vperm.xlu1 %7162, %v3133_v31   ;;  %v10582_v24 = vpop.permute.xlu0 %4081  ;;  %v3135_v17 = vmul.f32 %v14427_v37, %v1751_v5  ;;  %6920 = vmatprep.subr.mxu0 %v6856_v0  ;;  %v6855_v31 = vld [vmem:[%s13282_s2] sm:$0xff]  ;;  %v1753_v19 = vmul.f32 0.015625, %v14429_v16  ;;  %v14438_v16 = vld [vmem:[#allocation164_spill] sm:$0xff] }
 0x5f9   :  { %14424 = vst [vmem:[#allocation150_spill] sm:$0xff] %v10580_v23  ;;  %14425 = vst [vmem:[#allocation151_spill] sm:$0xff] %v10582_v24  ;;  %4267 = vperm.xlu0 %7161, %v3136_v43   ;;  %v3138_v24 = vmul.f32 %v14428_v40, %v1754_v36  ;;  %6921 = vmatpush1.msra.mxu0 %v6855_v31  ;;  %v7168_v23 = vmov 0.0   ;;  %v6854_v43 = vld [vmem:[%s13283_s1] sm:$0x3]  ;;  %v14433_v36 = vld [vmem:[#allocation29_spill] sm:$0xff] }
 0x5fa   :  { %6954 = vmatprep.mubr.f32.mxu0 %v7168_v23  ;;  %v14432_v0 = vld [vmem:[#allocation162_spill] sm:$0xff]  ;;  %v3137_v31 = vmul.f32 %v14433_v36, %v1753_v19  ;;  %v14435_v6 = vld [vmem:[#allocation163_spill] sm:$0xff] }
 0x5fb   :  { %7157 = vmatmul.mubr.msk.f32.vlgmr.msra.gmra.mxu0 %vm6879_vm2, %v6854_v43  ;;  %v1756_v37 = vmul.f32 0.015625, %v14432_v0  ;;  %v14434_v40 = vld [vmem:[#allocation34_spill] sm:$0xff]  ;;  %v1755_v7 = vmul.f32 0.015625, %v14435_v6  ;;  %v14440_v43 = vld [vmem:[#allocation36_spill] sm:$0xff]  ;;  %v14441_v0 = vld [vmem:[#allocation165_spill] sm:$0xff]  ;;  %vm6803_vm2 = vcmask 1041409  }
 0x5fc   :  { %v10600_v11 = vpop.permute.xlu1 %4078  ;;  %4264 = vperm.xlu1 %7162, %v3135_v17   ;;  %v10602_v5 = vpop.permute.xlu0 %4087  ;;  %v14439_v17 = vld [vmem:[#allocation31_spill] sm:$0xff]  ;;  %v14444_v6 = vld [vmem:[#allocation166_spill] sm:$0xff] }
 0x5fd   :  { %14430 = vst [vmem:[#allocation152_spill] sm:$0xff] %v10600_v11  ;;  %14431 = vst [vmem:[#allocation153_spill] sm:$0xff] %v10602_v5  ;;  %4273 = vperm.xlu0 %7161, %v3138_v24   ;;  %v3140_v23 = vmul.f32 %v14434_v40, %v1756_v37  ;;  %v1758_v11 = vmul.f32 0.015625, %v14438_v16  ;;  %v3139_v5 = vmul.f32 %v14439_v17, %v1755_v7  ;;  %v1757_v24 = vmul.f32 0.015625, %v14441_v0  ;;  %v14446_v16 = vld [vmem:[#allocation167_spill] sm:$0xff] }
 0x5fe   :  { %v1760_v19 = vmul.f32 0.015625, %v14444_v6  ;;  %v14452_v6 = vld [vmem:[#allocation169_spill] sm:$0xff] }
 0x5ff   :  { %v3142_v13 = vmul.f32 %v14440_v43, %v1758_v11  ;;  %v14449_v11 = vld [vmem:[#allocation168_spill] sm:$0xff] }
 0x600   :  { %v10608_v41 = vpop.permute.xlu1 %4084  ;;  %4270 = vperm.xlu1 %7162, %v3137_v31   ;;  %v10610_v29 = vpop.permute.xlu0 %4093  ;;  %v14445_v31 = vld [vmem:[#allocation33_spill] sm:$0xff]  ;;  %v1762_v0 = vmul.f32 0.015625, %v14449_v11  ;;  %v14458_v11 = vld [vmem:[#allocation171_spill] sm:$0xff] }
 0x601   :  { %14436 = vst [vmem:[#allocation154_spill] sm:$0xff] %v10608_v41  ;;  %14437 = vst [vmem:[#allocation155_spill] sm:$0xff] %v10610_v29  ;;  %4279 = vperm.xlu0 %7161, %v3140_v23   ;;  %v3141_v41 = vmul.f32 %v14445_v31, %v1757_v24  ;;  %v3144_v29 = vmul.f32 %v10075_v25, %v1760_v19  ;;  %v1759_v23 = vmul.f32 0.015625, %v14446_v16  ;;  %v14455_v19 = vld [vmem:[#allocation170_spill] sm:$0xff] }
 0x602   :  { %v1764_v16 = vmul.f32 0.015625, %v14455_v19  ;;  %v14464_v19 = vld [vmem:[#allocation173_spill] sm:$0xff] }
 0x604   :  { %v10616_v54 = vpop.permute.xlu1 %4090  ;;  %4276 = vperm.xlu1 %7162, %v3139_v5   ;;  %v10618_v37 = vpop.permute.xlu0 %4099  ;;  %v14450_v5 = vld [vmem:[#allocation35_spill] sm:$0xff] }
 0x605   :  { %14442 = vst [vmem:[#allocation156_spill] sm:$0xff] %v10616_v54  ;;  %14443 = vst [vmem:[#allocation157_spill] sm:$0xff] %v10618_v37  ;;  %4285 = vperm.xlu0 %7161, %v3142_v13   ;;  %v3143_v54 = vmul.f32 %v14450_v5, %v1759_v23  ;;  %v14451_v37 = vld [vmem:[#allocation39_spill] sm:$0xff]  ;;  %v1761_v13 = vmul.f32 0.015625, %v14452_v6 }
 0x606   :  { %v3146_v43 = vmul.f32 %v14451_v37, %v1762_v0  ;;  %v14461_v0 = vld [vmem:[#allocation172_spill] sm:$0xff] }
 0x607   :  { %v1766_v6 = vmul.f32 0.015625, %v14461_v0  ;;  %v14470_v0 = vld [vmem:[#allocation175_spill] sm:$0xff] }
 0x608   :  { %v10624_v40 = vpop.permute.xlu1 %4096  ;;  %4282 = vperm.xlu1 %7162, %v3141_v41   ;;  %v10626_v7 = vpop.permute.xlu0 %4105  ;;  %v14456_v41 = vld [vmem:[#allocation37_spill] sm:$0xff] }
 0x609   :  { %14447 = vst [vmem:[#allocation158_spill] sm:$0xff] %v10624_v40  ;;  %14448 = vst [vmem:[#allocation159_spill] sm:$0xff] %v10626_v7  ;;  %4291 = vperm.xlu0 %7161, %v3144_v29   ;;  %v3145_v40 = vmul.f32 %v14456_v41, %v1761_v13  ;;  %v14457_v7 = vld [vmem:[#allocation365_spill] sm:$0xff]  ;;  %v1763_v29 = vmul.f32 0.015625, %v14458_v11  ;;  %v14467_v13 = vld [vmem:[#allocation174_spill] sm:$0xff] }
 0x60a   :  { %v3148_v25 = vmul.f32 %v14457_v7, %v1764_v16  ;;  %v1768_v16 = vmul.f32 0.015625, %v14467_v13  ;;  %v14476_v13 = vld [vmem:[#allocation177_spill] sm:$0xff] }
 0x60c   :  { %v10632_v17 = vpop.permute.xlu1 %4102  ;;  %4288 = vperm.xlu1 %7162, %v3143_v54   ;;  %v10634_v24 = vpop.permute.xlu0 %4111  ;;  %v14462_v54 = vld [vmem:[#allocation366_spill] sm:$0xff] }
 0x60d   :  { %14453 = vst [vmem:[#allocation160_spill] sm:$0xff] %v10632_v17  ;;  %14454 = vst [vmem:[#allocation161_spill] sm:$0xff] %v10634_v24  ;;  %4297 = vperm.xlu0 %7161, %v3146_v43   ;;  %v3147_v37 = vmul.f32 %v14462_v54, %v1763_v29  ;;  %v14463_v24 = vld [vmem:[#allocation369_spill] sm:$0xff]  ;;  %v1765_v43 = vmul.f32 0.015625, %v14464_v19  ;;  %v14473_v29 = vld [vmem:[#allocation176_spill] sm:$0xff] }
 0x60e   :  { %v3150_v17 = vmul.f32 %v14463_v24, %v1766_v6  ;;  %v1770_v6 = vmul.f32 0.015625, %v14473_v29  ;;  %v14475_v19 = vld [vmem:[#allocation373_spill] sm:$0xff]  ;;  %v14482_v29 = vld [vmem:[#allocation179_spill] sm:$0xff] }
 0x610   :  { %v10640_v31 = vpop.permute.xlu1 %4108  ;;  %4294 = vperm.xlu1 %7162, %v3145_v40   ;;  %v10642_v23 = vpop.permute.xlu0 %4117  ;;  %v14468_v40 = vld [vmem:[#allocation367_spill] sm:$0xff] }
 0x611   :  { %14459 = vst [vmem:[#allocation162_spill] sm:$0xff] %v10640_v31  ;;  %14460 = vst [vmem:[#allocation163_spill] sm:$0xff] %v10642_v23  ;;  %4303 = vperm.xlu0 %7161, %v3148_v25   ;;  %v3149_v11 = vmul.f32 %v14468_v40, %v1765_v43  ;;  %v14469_v23 = vld [vmem:[#allocation371_spill] sm:$0xff]  ;;  %v1767_v25 = vmul.f32 0.015625, %v14470_v0  ;;  %v14479_v43 = vld [vmem:[#allocation178_spill] sm:$0xff] }
 0x612   :  { %v3152_v31 = vmul.f32 %v14469_v23, %v1768_v16  ;;  %v1772_v16 = vmul.f32 0.015625, %v14479_v43  ;;  %v14480_v40 = vld [vmem:[#allocation370_spill] sm:$0xff]  ;;  %v14481_v0 = vld [vmem:[#allocation375_spill] sm:$0xff]  ;;  %v14488_v43 = vld [vmem:[#allocation181_spill] sm:$0xff] }
 0x614   :  { %v10648_v5 = vpop.permute.xlu1 %4114  ;;  %4300 = vperm.xlu1 %7162, %v3147_v37   ;;  %v10650_v7 = vpop.permute.xlu0 %4123  ;;  %v14474_v37 = vld [vmem:[#allocation368_spill] sm:$0xff] }
 0x615   :  { %14465 = vst [vmem:[#allocation164_spill] sm:$0xff] %v10648_v5  ;;  %14466 = vst [vmem:[#allocation165_spill] sm:$0xff] %v10650_v7  ;;  %4309 = vperm.xlu0 %7161, %v3150_v17   ;;  %v3151_v54 = vmul.f32 %v14474_v37, %v1767_v25  ;;  %v3154_v7 = vmul.f32 %v14475_v19, %v1770_v6  ;;  %v1769_v17 = vmul.f32 0.015625, %v14476_v13  ;;  %v14485_v6 = vld [vmem:[#allocation180_spill] sm:$0xff]  ;;  %v14487_v13 = vld [vmem:[#allocation377_spill] sm:$0xff] }
 0x616   :  { %v1774_v37 = vmul.f32 0.015625, %v14485_v6  ;;  %v14494_v6 = vld [vmem:[#allocation183_spill] sm:$0xff] }
 0x618   :  { %v10656_v41 = vpop.permute.xlu1 %4120  ;;  %4306 = vperm.xlu1 %7162, %v3149_v11   ;;  %v10658_v24 = vpop.permute.xlu0 %4129  ;;  %v3153_v11 = vmul.f32 %v14480_v40, %v1769_v17 }
 0x619   :  { %14471 = vst [vmem:[#allocation166_spill] sm:$0xff] %v10656_v41  ;;  %14472 = vst [vmem:[#allocation167_spill] sm:$0xff] %v10658_v24  ;;  %4315 = vperm.xlu0 %7161, %v3152_v31   ;;  %v3156_v24 = vmul.f32 %v14481_v0, %v1772_v16  ;;  %v1771_v31 = vmul.f32 0.015625, %v14482_v29  ;;  %v14491_v16 = vld [vmem:[#allocation182_spill] sm:$0xff]  ;;  %v14493_v29 = vld [vmem:[#allocation379_spill] sm:$0xff] }
 0x61a   :  { %v1776_v40 = vmul.f32 0.015625, %v14491_v16  ;;  %v14500_v16 = vld [vmem:[#allocation185_spill] sm:$0xff] }
 0x61c   :  { %v10664_v5 = vpop.permute.xlu1 %4126  ;;  %4312 = vperm.xlu1 %7162, %v3151_v54   ;;  %v10666_v23 = vpop.permute.xlu0 %4135  ;;  %v14486_v54 = vld [vmem:[#allocation372_spill] sm:$0xff] }
 0x61d   :  { %14477 = vst [vmem:[#allocation168_spill] sm:$0xff] %v10664_v5  ;;  %14478 = vst [vmem:[#allocation169_spill] sm:$0xff] %v10666_v23  ;;  %4321 = vperm.xlu0 %7161, %v3154_v7   ;;  %v3155_v19 = vmul.f32 %v14486_v54, %v1771_v31  ;;  %v3158_v23 = vmul.f32 %v14487_v13, %v1774_v37  ;;  %v1773_v7 = vmul.f32 0.015625, %v14488_v43  ;;  %v14497_v37 = vld [vmem:[#allocation184_spill] sm:$0xff]  ;;  %v14499_v43 = vld [vmem:[#allocation381_spill] sm:$0xff] }
 0x61e   :  { %v1778_v54 = vmul.f32 0.015625, %v14497_v37  ;;  %v14506_v37 = vld [vmem:[#allocation187_spill] sm:$0xff] }
 0x620   :  { %v10672_v41 = vpop.permute.xlu1 %4132  ;;  %4318 = vperm.xlu1 %7162, %v3153_v11   ;;  %v10674_v25 = vpop.permute.xlu0 %4141  ;;  %v14492_v11 = vld [vmem:[#allocation374_spill] sm:$0xff] }
 0x621   :  { %14483 = vst [vmem:[#allocation170_spill] sm:$0xff] %v10672_v41  ;;  %14484 = vst [vmem:[#allocation365_spill] sm:$0xff] %v10674_v25  ;;  %4327 = vperm.xlu0 %7161, %v3156_v24   ;;  %v3157_v0 = vmul.f32 %v14492_v11, %v1773_v7  ;;  %v3160_v25 = vmul.f32 %v14493_v29, %v1776_v40  ;;  %v1775_v24 = vmul.f32 0.015625, %v14494_v6  ;;  %v14503_v40 = vld [vmem:[#allocation186_spill] sm:$0xff]  ;;  %v14505_v6 = vld [vmem:[#allocation383_spill] sm:$0xff] }
 0x622   :  { %v1780_v11 = vmul.f32 0.015625, %v14503_v40  ;;  %v14512_v40 = vld [vmem:[#allocation189_spill] sm:$0xff] }
 0x624   :  { %v10680_v5 = vpop.permute.xlu1 %4138  ;;  %4324 = vperm.xlu1 %7162, %v3155_v19   ;;  %v10682_v17 = vpop.permute.xlu0 %4147  ;;  %v14498_v19 = vld [vmem:[#allocation376_spill] sm:$0xff] }
 0x625   :  { %14489 = vst [vmem:[#allocation171_spill] sm:$0xff] %v10680_v5  ;;  %14490 = vst [vmem:[#allocation172_spill] sm:$0xff] %v10682_v17  ;;  %4333 = vperm.xlu0 %7161, %v3158_v23   ;;  %v3159_v13 = vmul.f32 %v14498_v19, %v1775_v24  ;;  %v3162_v17 = vmul.f32 %v14499_v43, %v1778_v54  ;;  %v1777_v23 = vmul.f32 0.015625, %v14500_v16  ;;  %v14509_v54 = vld [vmem:[#allocation188_spill] sm:$0xff]  ;;  %v14511_v16 = vld [vmem:[#allocation385_spill] sm:$0xff] }
 0x626   :  { %v1782_v19 = vmul.f32 0.015625, %v14509_v54  ;;  %v14518_v54 = vld [vmem:[#allocation191_spill] sm:$0xff] }
 0x628   :  { %v10688_v41 = vpop.permute.xlu1 %4144  ;;  %4330 = vperm.xlu1 %7162, %v3157_v0   ;;  %v10690_v31 = vpop.permute.xlu0 %4153  ;;  %v14504_v0 = vld [vmem:[#allocation378_spill] sm:$0xff] }
 0x629   :  { %14495 = vst [vmem:[#allocation366_spill] sm:$0xff] %v10688_v41  ;;  %14496 = vst [vmem:[#allocation369_spill] sm:$0xff] %v10690_v31  ;;  %4339 = vperm.xlu0 %7161, %v3160_v25   ;;  %v3161_v29 = vmul.f32 %v14504_v0, %v1777_v23  ;;  %v3164_v31 = vmul.f32 %v14505_v6, %v1780_v11  ;;  %v1779_v25 = vmul.f32 0.015625, %v14506_v37  ;;  %v14515_v11 = vld [vmem:[#allocation190_spill] sm:$0xff]  ;;  %v14517_v37 = vld [vmem:[#allocation387_spill] sm:$0xff] }
 0x62a   :  { %v1784_v0 = vmul.f32 0.015625, %v14515_v11  ;;  %v14524_v11 = vld [vmem:[#allocation193_spill] sm:$0xff] }
 0x62c   :  { %v10696_v5 = vpop.permute.xlu1 %4150  ;;  %4336 = vperm.xlu1 %7162, %v3159_v13   ;;  %v10698_v7 = vpop.permute.xlu0 %4159  ;;  %v14510_v13 = vld [vmem:[#allocation380_spill] sm:$0xff] }
 0x62d   :  { %14501 = vst [vmem:[#allocation173_spill] sm:$0xff] %v10696_v5  ;;  %14502 = vst [vmem:[#allocation174_spill] sm:$0xff] %v10698_v7  ;;  %4345 = vperm.xlu0 %7161, %v3162_v17   ;;  %v3163_v43 = vmul.f32 %v14510_v13, %v1779_v25  ;;  %v3166_v7 = vmul.f32 %v14511_v16, %v1782_v19  ;;  %v1781_v17 = vmul.f32 0.015625, %v14512_v40  ;;  %v14521_v19 = vld [vmem:[#allocation192_spill] sm:$0xff]  ;;  %v14523_v40 = vld [vmem:[#allocation389_spill] sm:$0xff] }
 0x62e   :  { %v1786_v13 = vmul.f32 0.015625, %v14521_v19  ;;  %v14530_v19 = vld [vmem:[#allocation195_spill] sm:$0xff] }
 0x630   :  { %v10704_v41 = vpop.permute.xlu1 %4156  ;;  %4342 = vperm.xlu1 %7162, %v3161_v29   ;;  %v10706_v24 = vpop.permute.xlu0 %4165  ;;  %v14516_v29 = vld [vmem:[#allocation382_spill] sm:$0xff] }
 0x631   :  { %14507 = vst [vmem:[#allocation367_spill] sm:$0xff] %v10704_v41  ;;  %14508 = vst [vmem:[#allocation371_spill] sm:$0xff] %v10706_v24  ;;  %4351 = vperm.xlu0 %7161, %v3164_v31   ;;  %v3165_v6 = vmul.f32 %v14516_v29, %v1781_v17  ;;  %v3168_v24 = vmul.f32 %v14517_v37, %v1784_v0  ;;  %v1783_v31 = vmul.f32 0.015625, %v14518_v54  ;;  %v14527_v0 = vld [vmem:[#allocation194_spill] sm:$0xff]  ;;  %v14529_v54 = vld [vmem:[#allocation391_spill] sm:$0xff] }
 0x632   :  { %v1788_v29 = vmul.f32 0.015625, %v14527_v0  ;;  %v14536_v0 = vld [vmem:[#allocation197_spill] sm:$0xff] }
 0x634   :  { %v10712_v5 = vpop.permute.xlu1 %4162  ;;  %4348 = vperm.xlu1 %7162, %v3163_v43   ;;  %v10714_v23 = vpop.permute.xlu0 %4171  ;;  %v14522_v43 = vld [vmem:[#allocation384_spill] sm:$0xff] }
 0x635   :  { %14513 = vst [vmem:[#allocation175_spill] sm:$0xff] %v10712_v5  ;;  %14514 = vst [vmem:[#allocation176_spill] sm:$0xff] %v10714_v23  ;;  %4357 = vperm.xlu0 %7161, %v3166_v7   ;;  %v3167_v16 = vmul.f32 %v14522_v43, %v1783_v31  ;;  %v3170_v23 = vmul.f32 %v14523_v40, %v1786_v13  ;;  %v1785_v7 = vmul.f32 0.015625, %v14524_v11  ;;  %v14533_v13 = vld [vmem:[#allocation196_spill] sm:$0xff]  ;;  %v14535_v11 = vld [vmem:[#allocation393_spill] sm:$0xff] }
 0x636   :  { %v1790_v43 = vmul.f32 0.015625, %v14533_v13  ;;  %v14542_v13 = vld [vmem:[#allocation199_spill] sm:$0xff] }
 0x638   :  { %v10720_v41 = vpop.permute.xlu1 %4168  ;;  %4354 = vperm.xlu1 %7162, %v3165_v6   ;;  %v10722_v25 = vpop.permute.xlu0 %4177  ;;  %v14528_v6 = vld [vmem:[#allocation386_spill] sm:$0xff] }
 0x639   :  { %14519 = vst [vmem:[#allocation368_spill] sm:$0xff] %v10720_v41  ;;  %14520 = vst [vmem:[#allocation373_spill] sm:$0xff] %v10722_v25  ;;  %4363 = vperm.xlu0 %7161, %v3168_v24   ;;  %v3169_v37 = vmul.f32 %v14528_v6, %v1785_v7  ;;  %v3172_v25 = vmul.f32 %v14529_v54, %v1788_v29  ;;  %v1787_v24 = vmul.f32 0.015625, %v14530_v19  ;;  %v14539_v29 = vld [vmem:[#allocation198_spill] sm:$0xff]  ;;  %v14541_v19 = vld [vmem:[#allocation395_spill] sm:$0xff] }
 0x63a   :  { %v1792_v6 = vmul.f32 0.015625, %v14539_v29  ;;  %v14548_v29 = vld [vmem:[#allocation201_spill] sm:$0xff] }
 0x63c   :  { %v10728_v5 = vpop.permute.xlu1 %4174  ;;  %4360 = vperm.xlu1 %7162, %v3167_v16   ;;  %v10730_v17 = vpop.permute.xlu0 %4183  ;;  %v14534_v16 = vld [vmem:[#allocation388_spill] sm:$0xff] }
 0x63d   :  { %14525 = vst [vmem:[#allocation177_spill] sm:$0xff] %v10728_v5  ;;  %14526 = vst [vmem:[#allocation178_spill] sm:$0xff] %v10730_v17  ;;  %4369 = vperm.xlu0 %7161, %v3170_v23   ;;  %v3171_v40 = vmul.f32 %v14534_v16, %v1787_v24  ;;  %v3174_v17 = vmul.f32 %v14535_v11, %v1790_v43  ;;  %v1789_v23 = vmul.f32 0.015625, %v14536_v0  ;;  %v14545_v43 = vld [vmem:[#allocation200_spill] sm:$0xff]  ;;  %v14547_v0 = vld [vmem:[#allocation397_spill] sm:$0xff] }
 0x63e   :  { %v1794_v16 = vmul.f32 0.015625, %v14545_v43  ;;  %v14554_v43 = vld [vmem:[#allocation203_spill] sm:$0xff] }
 0x640   :  { %v10736_v41 = vpop.permute.xlu1 %4180  ;;  %4366 = vperm.xlu1 %7162, %v3169_v37   ;;  %v10738_v31 = vpop.permute.xlu0 %4189  ;;  %v14540_v37 = vld [vmem:[#allocation390_spill] sm:$0xff] }
 0x641   :  { %14531 = vst [vmem:[#allocation370_spill] sm:$0xff] %v10736_v41  ;;  %14532 = vst [vmem:[#allocation375_spill] sm:$0xff] %v10738_v31  ;;  %4375 = vperm.xlu0 %7161, %v3172_v25   ;;  %v3173_v54 = vmul.f32 %v14540_v37, %v1789_v23  ;;  %v3176_v31 = vmul.f32 %v14541_v19, %v1792_v6  ;;  %v1791_v25 = vmul.f32 0.015625, %v14542_v13  ;;  %v14551_v6 = vld [vmem:[#allocation202_spill] sm:$0xff]  ;;  %v14553_v13 = vld [vmem:[#allocation399_spill] sm:$0xff] }
 0x642   :  { %v1796_v37 = vmul.f32 0.015625, %v14551_v6  ;;  %v14560_v6 = vld [vmem:[#allocation205_spill] sm:$0xff] }
 0x644   :  { %v10744_v5 = vpop.permute.xlu1 %4186  ;;  %4372 = vperm.xlu1 %7162, %v3171_v40   ;;  %v10746_v7 = vpop.permute.xlu0 %4195  ;;  %v14546_v40 = vld [vmem:[#allocation392_spill] sm:$0xff] }
 0x645   :  { %14537 = vst [vmem:[#allocation179_spill] sm:$0xff] %v10744_v5  ;;  %14538 = vst [vmem:[#allocation180_spill] sm:$0xff] %v10746_v7  ;;  %4381 = vperm.xlu0 %7161, %v3174_v17   ;;  %v3175_v11 = vmul.f32 %v14546_v40, %v1791_v25  ;;  %v3178_v7 = vmul.f32 %v14547_v0, %v1794_v16  ;;  %v1793_v17 = vmul.f32 0.015625, %v14548_v29  ;;  %v14557_v16 = vld [vmem:[#allocation204_spill] sm:$0xff]  ;;  %v14559_v29 = vld [vmem:[#allocation401_spill] sm:$0xff] }
 0x646   :  { %v1798_v40 = vmul.f32 0.015625, %v14557_v16  ;;  %v14566_v16 = vld [vmem:[#allocation207_spill] sm:$0xff] }
 0x648   :  { %v10752_v41 = vpop.permute.xlu1 %4192  ;;  %4378 = vperm.xlu1 %7162, %v3173_v54   ;;  %v10754_v24 = vpop.permute.xlu0 %4201  ;;  %v14552_v54 = vld [vmem:[#allocation394_spill] sm:$0xff] }
 0x649   :  { %14543 = vst [vmem:[#allocation372_spill] sm:$0xff] %v10752_v41  ;;  %14544 = vst [vmem:[#allocation377_spill] sm:$0xff] %v10754_v24  ;;  %4387 = vperm.xlu0 %7161, %v3176_v31   ;;  %v3177_v19 = vmul.f32 %v14552_v54, %v1793_v17  ;;  %v3180_v24 = vmul.f32 %v14553_v13, %v1796_v37  ;;  %v1795_v31 = vmul.f32 0.015625, %v14554_v43  ;;  %v14563_v37 = vld [vmem:[#allocation206_spill] sm:$0xff]  ;;  %v14565_v43 = vld [vmem:[#allocation403_spill] sm:$0xff] }
 0x64a   :  { %v1800_v54 = vmul.f32 0.015625, %v14563_v37  ;;  %v14572_v37 = vld [vmem:[#allocation209_spill] sm:$0xff] }
 0x64c   :  { %v10760_v5 = vpop.permute.xlu1 %4198  ;;  %4384 = vperm.xlu1 %7162, %v3175_v11   ;;  %v10762_v23 = vpop.permute.xlu0 %4207  ;;  %v14558_v11 = vld [vmem:[#allocation396_spill] sm:$0xff] }
 0x64d   :  { %14549 = vst [vmem:[#allocation181_spill] sm:$0xff] %v10760_v5  ;;  %14550 = vst [vmem:[#allocation182_spill] sm:$0xff] %v10762_v23  ;;  %4393 = vperm.xlu0 %7161, %v3178_v7   ;;  %v3179_v0 = vmul.f32 %v14558_v11, %v1795_v31  ;;  %v3182_v5 = vmul.f32 %v14559_v29, %v1798_v40  ;;  %v1797_v7 = vmul.f32 0.015625, %v14560_v6  ;;  %v14569_v40 = vld [vmem:[#allocation208_spill] sm:$0xff]  ;;  %v14571_v6 = vld [vmem:[#allocation405_spill] sm:$0xff] }
 0x64e   :  { %v1802_v11 = vmul.f32 0.015625, %v14569_v40  ;;  %v14578_v40 = vld [vmem:[#allocation211_spill] sm:$0xff] }
 0x650   :  { %v10768_v41 = vpop.permute.xlu1 %4204  ;;  %4390 = vperm.xlu1 %7162, %v3177_v19   ;;  %v10770_v25 = vpop.permute.xlu0 %4213  ;;  %v14564_v19 = vld [vmem:[#allocation398_spill] sm:$0xff] }
 0x651   :  { %14555 = vst [vmem:[#allocation374_spill] sm:$0xff] %v10768_v41  ;;  %14556 = vst [vmem:[#allocation379_spill] sm:$0xff] %v10770_v25  ;;  %4399 = vperm.xlu0 %7161, %v3180_v24   ;;  %v3181_v13 = vmul.f32 %v14564_v19, %v1797_v7  ;;  %v3184_v25 = vmul.f32 %v14565_v43, %v1800_v54  ;;  %v1799_v24 = vmul.f32 0.015625, %v14566_v16  ;;  %v14575_v54 = vld [vmem:[#allocation210_spill] sm:$0xff]  ;;  %v14577_v16 = vld [vmem:[#allocation407_spill] sm:$0xff] }
 0x652   :  { %v1804_v19 = vmul.f32 0.015625, %v14575_v54  ;;  %v14584_v54 = vld [vmem:[#allocation213_spill] sm:$0xff] }
 0x654   :  { %v10776_v23 = vpop.permute.xlu1 %4210  ;;  %4396 = vperm.xlu1 %7162, %v3179_v0   ;;  %v10778_v17 = vpop.permute.xlu0 %4219  ;;  %v14570_v0 = vld [vmem:[#allocation400_spill] sm:$0xff] }
 0x655   :  { %14561 = vst [vmem:[#allocation183_spill] sm:$0xff] %v10776_v23  ;;  %14562 = vst [vmem:[#allocation184_spill] sm:$0xff] %v10778_v17  ;;  %4405 = vperm.xlu0 %7161, %v3182_v5   ;;  %v3183_v29 = vmul.f32 %v14570_v0, %v1799_v24  ;;  %v3186_v17 = vmul.f32 %v14571_v6, %v1802_v11  ;;  %v1801_v5 = vmul.f32 0.015625, %v14572_v37  ;;  %v14581_v11 = vld [vmem:[#allocation212_spill] sm:$0xff]  ;;  %v14583_v37 = vld [vmem:[#allocation409_spill] sm:$0xff] }
 0x656   :  { %v1806_v0 = vmul.f32 0.015625, %v14581_v11  ;;  %v14590_v11 = vld [vmem:[#allocation215_spill] sm:$0xff] }
 0x658   :  { %v10784_v41 = vpop.permute.xlu1 %4216  ;;  %4402 = vperm.xlu1 %7162, %v3181_v13   ;;  %v10786_v31 = vpop.permute.xlu0 %4225  ;;  %v14576_v13 = vld [vmem:[#allocation402_spill] sm:$0xff] }
 0x659   :  { %14567 = vst [vmem:[#allocation376_spill] sm:$0xff] %v10784_v41  ;;  %14568 = vst [vmem:[#allocation381_spill] sm:$0xff] %v10786_v31  ;;  %4411 = vperm.xlu0 %7161, %v3184_v25   ;;  %v3185_v43 = vmul.f32 %v14576_v13, %v1801_v5  ;;  %v3188_v31 = vmul.f32 %v14577_v16, %v1804_v19  ;;  %v1803_v25 = vmul.f32 0.015625, %v14578_v40  ;;  %v14587_v19 = vld [vmem:[#allocation214_spill] sm:$0xff]  ;;  %v14589_v40 = vld [vmem:[#allocation411_spill] sm:$0xff] }
 0x65a   :  { %v1808_v13 = vmul.f32 0.015625, %v14587_v19  ;;  %v14596_v19 = vld [vmem:[#allocation217_spill] sm:$0xff] }
 0x65c   :  { %v10792_v23 = vpop.permute.xlu1 %4222  ;;  %4408 = vperm.xlu1 %7162, %v3183_v29   ;;  %v10794_v7 = vpop.permute.xlu0 %4231  ;;  %v14582_v29 = vld [vmem:[#allocation404_spill] sm:$0xff] }
 0x65d   :  { %14573 = vst [vmem:[#allocation185_spill] sm:$0xff] %v10792_v23  ;;  %14574 = vst [vmem:[#allocation186_spill] sm:$0xff] %v10794_v7  ;;  %4417 = vperm.xlu0 %7161, %v3186_v17   ;;  %v3187_v6 = vmul.f32 %v14582_v29, %v1803_v25  ;;  %v3190_v7 = vmul.f32 %v14583_v37, %v1806_v0  ;;  %v1805_v17 = vmul.f32 0.015625, %v14584_v54  ;;  %v14593_v0 = vld [vmem:[#allocation216_spill] sm:$0xff]  ;;  %v14595_v54 = vld [vmem:[#allocation413_spill] sm:$0xff] }
 0x65e   :  { %v1810_v29 = vmul.f32 0.015625, %v14593_v0  ;;  %v14602_v0 = vld [vmem:[#allocation219_spill] sm:$0xff] }
 0x660   :  { %v10800_v41 = vpop.permute.xlu1 %4228  ;;  %4414 = vperm.xlu1 %7162, %v3185_v43   ;;  %v10802_v24 = vpop.permute.xlu0 %4237  ;;  %v14588_v43 = vld [vmem:[#allocation406_spill] sm:$0xff] }
 0x661   :  { %14579 = vst [vmem:[#allocation378_spill] sm:$0xff] %v10800_v41  ;;  %14580 = vst [vmem:[#allocation383_spill] sm:$0xff] %v10802_v24  ;;  %4423 = vperm.xlu0 %7161, %v3188_v31   ;;  %v3189_v16 = vmul.f32 %v14588_v43, %v1805_v17  ;;  %v3192_v24 = vmul.f32 %v14589_v40, %v1808_v13  ;;  %v1807_v31 = vmul.f32 0.015625, %v14590_v11  ;;  %v14599_v13 = vld [vmem:[#allocation218_spill] sm:$0xff]  ;;  %v14601_v11 = vld [vmem:[#allocation415_spill] sm:$0xff] }
 0x662   :  { %v1812_v43 = vmul.f32 0.015625, %v14599_v13  ;;  %v14608_v13 = vld [vmem:[#allocation221_spill] sm:$0xff] }
 0x664   :  { %v10808_v23 = vpop.permute.xlu1 %4234  ;;  %4420 = vperm.xlu1 %7162, %v3187_v6   ;;  %v10810_v5 = vpop.permute.xlu0 %4243  ;;  %v14594_v6 = vld [vmem:[#allocation408_spill] sm:$0xff] }
 0x665   :  { %14585 = vst [vmem:[#allocation187_spill] sm:$0xff] %v10808_v23  ;;  %14586 = vst [vmem:[#allocation188_spill] sm:$0xff] %v10810_v5  ;;  %4429 = vperm.xlu0 %7161, %v3190_v7   ;;  %v3191_v37 = vmul.f32 %v14594_v6, %v1807_v31  ;;  %v3194_v5 = vmul.f32 %v14595_v54, %v1810_v29  ;;  %v1809_v7 = vmul.f32 0.015625, %v14596_v19  ;;  %v14605_v29 = vld [vmem:[#allocation220_spill] sm:$0xff]  ;;  %v14607_v19 = vld [vmem:[#allocation417_spill] sm:$0xff] }
 0x666   :  { %v1814_v6 = vmul.f32 0.015625, %v14605_v29  ;;  %v14614_v29 = vld [vmem:[#allocation223_spill] sm:$0xff] }
 0x668   :  { %v10816_v41 = vpop.permute.xlu1 %4240  ;;  %4426 = vperm.xlu1 %7162, %v3189_v16   ;;  %v10818_v25 = vpop.permute.xlu0 %4249  ;;  %v14600_v16 = vld [vmem:[#allocation410_spill] sm:$0xff] }
 0x669   :  { %14591 = vst [vmem:[#allocation380_spill] sm:$0xff] %v10816_v41  ;;  %14592 = vst [vmem:[#allocation385_spill] sm:$0xff] %v10818_v25  ;;  %4435 = vperm.xlu0 %7161, %v3192_v24   ;;  %v3193_v40 = vmul.f32 %v14600_v16, %v1809_v7  ;;  %v3196_v25 = vmul.f32 %v14601_v11, %v1812_v43  ;;  %v1811_v24 = vmul.f32 0.015625, %v14602_v0  ;;  %v14611_v43 = vld [vmem:[#allocation222_spill] sm:$0xff]  ;;  %v14613_v0 = vld [vmem:[#allocation419_spill] sm:$0xff] }
 0x66a   :  { %v1816_v16 = vmul.f32 0.015625, %v14611_v43  ;;  %v14620_v43 = vld [vmem:[#allocation225_spill] sm:$0xff] }
 0x66c   :  { %v10824_v23 = vpop.permute.xlu1 %4246  ;;  %4432 = vperm.xlu1 %7162, %v3191_v37   ;;  %v10826_v17 = vpop.permute.xlu0 %4255  ;;  %v14606_v37 = vld [vmem:[#allocation412_spill] sm:$0xff] }
 0x66d   :  { %14597 = vst [vmem:[#allocation189_spill] sm:$0xff] %v10824_v23  ;;  %14598 = vst [vmem:[#allocation190_spill] sm:$0xff] %v10826_v17  ;;  %4441 = vperm.xlu0 %7161, %v3194_v5   ;;  %v3195_v54 = vmul.f32 %v14606_v37, %v1811_v24  ;;  %v3198_v23 = vmul.f32 %v14607_v19, %v1814_v6  ;;  %v1813_v5 = vmul.f32 0.015625, %v14608_v13  ;;  %v14617_v6 = vld [vmem:[#allocation224_spill] sm:$0xff]  ;;  %v14619_v13 = vld [vmem:[#allocation421_spill] sm:$0xff] }
 0x66e   :  { %v1818_v37 = vmul.f32 0.015625, %v14617_v6  ;;  %v14626_v6 = vld [vmem:[#allocation227_spill] sm:$0xff] }
 0x670   :  { %v10832_v41 = vpop.permute.xlu1 %4252  ;;  %4438 = vperm.xlu1 %7162, %v3193_v40   ;;  %v10834_v31 = vpop.permute.xlu0 %4261  ;;  %v14612_v40 = vld [vmem:[#allocation414_spill] sm:$0xff] }
 0x671   :  { %14603 = vst [vmem:[#allocation382_spill] sm:$0xff] %v10832_v41  ;;  %14604 = vst [vmem:[#allocation387_spill] sm:$0xff] %v10834_v31  ;;  %4447 = vperm.xlu0 %7161, %v3196_v25   ;;  %v3197_v11 = vmul.f32 %v14612_v40, %v1813_v5  ;;  %v3200_v31 = vmul.f32 %v14613_v0, %v1816_v16  ;;  %v1815_v25 = vmul.f32 0.015625, %v14614_v29  ;;  %v14623_v16 = vld [vmem:[#allocation226_spill] sm:$0xff]  ;;  %v14625_v29 = vld [vmem:[#allocation423_spill] sm:$0xff] }
 0x672   :  { %v1820_v40 = vmul.f32 0.015625, %v14623_v16 }
 0x674   :  { %v10840_v17 = vpop.permute.xlu1 %4258  ;;  %4444 = vperm.xlu1 %7162, %v3195_v54   ;;  %v10842_v7 = vpop.permute.xlu0 %4267  ;;  %v14618_v54 = vld [vmem:[#allocation416_spill] sm:$0xff] }
 0x675   :  { %14609 = vst [vmem:[#allocation191_spill] sm:$0xff] %v10840_v17  ;;  %14610 = vst [vmem:[#allocation192_spill] sm:$0xff] %v10842_v7  ;;  %4453 = vperm.xlu0 %7161, %v3198_v23   ;;  %v3199_v19 = vmul.f32 %v14618_v54, %v1815_v25  ;;  %v3202_v7 = vmul.f32 %v14619_v13, %v1818_v37  ;;  %v1817_v23 = vmul.f32 0.015625, %v14620_v43  ;;  %v14629_v37 = vld [vmem:[#allocation228_spill] sm:$0xff]  ;;  %v14631_v43 = vld [vmem:[#allocation425_spill] sm:$0xff] }
 0x676   :  { %v1822_v54 = vmul.f32 0.015625, %v14629_v37 }
 0x678   :  { %v10848_v41 = vpop.permute.xlu1 %4264  ;;  %4450 = vperm.xlu1 %7162, %v3197_v11   ;;  %v10850_v24 = vpop.permute.xlu0 %4273  ;;  %v14624_v11 = vld [vmem:[#allocation418_spill] sm:$0xff] }
 0x679   :  { %14615 = vst [vmem:[#allocation384_spill] sm:$0xff] %v10848_v41  ;;  %14616 = vst [vmem:[#allocation389_spill] sm:$0xff] %v10850_v24  ;;  %4459 = vperm.xlu0 %7161, %v3200_v31   ;;  %v3201_v0 = vmul.f32 %v14624_v11, %v1817_v23  ;;  %v3204_v24 = vmul.f32 %v14625_v29, %v1820_v40  ;;  %v1819_v31 = vmul.f32 0.015625, %v14626_v6  ;;  %v14632_v23 = vld [vmem:[#allocation229_spill] sm:$0xff]  ;;  %v6992_v6 = vld [vmem:[%s13284_s4 + $0xe8] sm:$0xff] }
 0x67a   :  { %v1821_v16 = vmul.f32 0.015625, %v14632_v23 }
 0x67c   :  { %v10856_v17 = vpop.permute.xlu1 %4270  ;;  %4456 = vperm.xlu1 %7162, %v3199_v19   ;;  %v10858_v5 = vpop.permute.xlu0 %4279  ;;  %v14630_v19 = vld [vmem:[#allocation420_spill] sm:$0xff] }
 0x67d   :  { %14621 = vst [vmem:[#allocation193_spill] sm:$0xff] %v10856_v17  ;;  %14622 = vst [vmem:[#allocation194_spill] sm:$0xff] %v10858_v5  ;;  %4465 = vperm.xlu0 %7161, %v3202_v7   ;;  %v3203_v13 = vmul.f32 %v14630_v19, %v1819_v31  ;;  %v3206_v5 = vmul.f32 %v14631_v43, %v1822_v54  ;;  %v6994_v7 = vld [vmem:[%s13284_s4 + $0xf8] sm:$0xff]  ;;  %v6991_v54 = vld [vmem:[%s13284_s4 + $0xe0] sm:$0xff] }
 0x67e   :  { %7039 = vmatprep.subr.mxu1 %v6994_v7  ;;  %v14636_v31 = vld [vmem:[#allocation422_spill] sm:$0xff]  ;;  %v14637_v19 = vld [vmem:[#allocation427_spill] sm:$0xff] }
 0x67f   :  { %v3205_v37 = vmul.f32 %v14636_v31, %v1821_v16  ;;  %v6990_v43 = vld [vmem:[%s13284_s4 + $0xd8] sm:$0xff]  ;;  %v6989_v16 = vld [vmem:[%s13284_s4 + $0xd0] sm:$0xff] }
 0x680   :  { %v10864_v41 = vpop.permute.xlu1 %4276  ;;  %4462 = vperm.xlu1 %7162, %v3201_v0   ;;  %v10866_v25 = vpop.permute.xlu0 %4285  ;;  %v14635_v0 = vld [vmem:[#allocation230_spill] sm:$0xff]  ;;  %v14642_v31 = vld [vmem:[#allocation424_spill] sm:$0xff] }
 0x681   :  { %14627 = vst [vmem:[#allocation386_spill] sm:$0xff] %v10864_v41  ;;  %14628 = vst [vmem:[#allocation391_spill] sm:$0xff] %v10866_v25  ;;  %4471 = vperm.xlu0 %7161, %v3204_v24   ;;  %v6993_v24 = vld [vmem:[%s13284_s4 + $0xf0] sm:$0xff]  ;;  %v1824_v29 = vmul.f32 0.015625, %v14635_v0 }
 0x682   :  { %7040 = vmatpush1.msra.mxu1 %v6993_v24  ;;  %v14641_v0 = vld [vmem:[#allocation232_spill] sm:$0xff] }
 0x683   :  { %7041 = vmatprep.subr.mxu1 %v6992_v6  ;;  %v1826_v6 = vmul.f32 0.015625, %v14641_v0 }
 0x684   :  { %v10875_v40 = vpop.permute.xlu1 %4282  ;;  %4468 = vperm.xlu1 %7162, %v3203_v13   ;;  %v10877_v11 = vpop.permute.xlu0 %4291  ;;  %v3208_v13 = vmul.f32 %v14637_v19, %v1824_v29  ;;  %7042 = vmatpush1.msra.mxu1 %v6991_v54  ;;  %v6988_v29 = vld [vmem:[%s13284_s4 + $0xc8] sm:$0xff]  ;;  %v14643_v19 = vld [vmem:[#allocation429_spill] sm:$0xff] }
 0x685   :  { %14633 = vst [vmem:[#allocation195_spill] sm:$0xff] %v10875_v40  ;;  %14634 = vst [vmem:[#allocation196_spill] sm:$0xff] %v10877_v11  ;;  %4477 = vperm.xlu0 %7161, %v3206_v5   ;;  %v14638_v5 = vld [vmem:[#allocation231_spill] sm:$0xff]  ;;  %7043 = vmatprep.subr.mxu1 %v6990_v43  ;;  %v3210_v43 = vmul.f32 %v14643_v19, %v1826_v6 }
 0x686   :  { %v1823_v7 = vmul.f32 0.015625, %v14638_v5  ;;  %7044 = vmatpush1.msra.mxu1 %v6989_v16  ;;  %v6986_v5 = vld [vmem:[%s13284_s4 + $0xb8] sm:$0xff]  ;;  %v6984_v6 = vld [vmem:[%s13284_s4 + $0xa8] sm:$0xff] }
 0x687   :  { %7045 = vmatprep.subr.mxu1 %v6988_v29  ;;  %v14647_v29 = vld [vmem:[#allocation234_spill] sm:$0xff] }
 0x688   :  { %v10895_v23 = vpop.permute.xlu1 %4288  ;;  %4474 = vperm.xlu1 %7162, %v3205_v37   ;;  %v10897_v24 = vpop.permute.xlu0 %4297  ;;  %v3207_v54 = vmul.f32 %v14642_v31, %v1823_v7  ;;  %v6987_v37 = vld [vmem:[%s13284_s4 + $0xc0] sm:$0xff]  ;;  %v6985_v7 = vld [vmem:[%s13284_s4 + $0xb0] sm:$0xff]  ;;  %v1828_v31 = vmul.f32 0.015625, %v14647_v29  ;;  %v6982_v29 = vld [vmem:[%s13284_s4 + $0x98] sm:$0xff] }
 0x689   :  { %14639 = vst [vmem:[#allocation388_spill] sm:$0xff] %v10895_v23  ;;  %14640 = vst [vmem:[#allocation393_spill] sm:$0xff] %v10897_v24  ;;  %4483 = vperm.xlu0 %7161, %v3208_v13   ;;  %7046 = vmatpush1.msra.mxu1 %v6987_v37  ;;  %v14644_v13 = vld [vmem:[#allocation233_spill] sm:$0xff]  ;;  %v14648_v37 = vld [vmem:[#allocation426_spill] sm:$0xff] }
 0x68a   :  { %v1825_v16 = vmul.f32 0.015625, %v14644_v13  ;;  %7047 = vmatprep.subr.mxu1 %v6986_v5  ;;  %v14649_v5 = vld [vmem:[#allocation431_spill] sm:$0xff] }
 0x68b   :  { %7048 = vmatpush1.msra.mxu1 %v6985_v7  ;;  %v3212_v13 = vmul.f32 %v14649_v5, %v1828_v31  ;;  %v6980_v31 = vld [vmem:[%s13284_s4 + $0x88] sm:$0xff] }
 0x68c   :  { %4480 = vperm.xlu1 %7162, %v3207_v54   ;;  %v10915_v0 = vpop.permute.xlu1 %4294  ;;  %v10917_v24 = vpop.permute.xlu0 %4303  ;;  %v3209_v19 = vmul.f32 %v14648_v37, %v1825_v16  ;;  %7049 = vmatprep.subr.mxu1 %v6984_v6  ;;  %v6983_v54 = vld [vmem:[%s13284_s4 + $0xa0] sm:$0xff]  ;;  %v6981_v16 = vld [vmem:[%s13284_s4 + $0x90] sm:$0xff] }
 0x68d   :  { %14645 = vst [vmem:[#allocation197_spill] sm:$0xff] %v10915_v0  ;;  %14646 = vst [vmem:[#allocation198_spill] sm:$0xff] %v10917_v24  ;;  %4489 = vperm.xlu0 %7161, %v3210_v43   ;;  %7050 = vmatpush1.msra.mxu1 %v6983_v54  ;;  %v14650_v43 = vld [vmem:[#allocation235_spill] sm:$0xff]  ;;  %v14653_v6 = vld [vmem:[#allocation236_spill] sm:$0xff] }
 0x68e   :  { %v1827_v7 = vmul.f32 0.015625, %v14650_v43  ;;  %7051 = vmatprep.subr.mxu1 %v6982_v29  ;;  %v1830_v37 = vmul.f32 0.015625, %v14653_v6  ;;  %v14654_v54 = vld [vmem:[#allocation428_spill] sm:$0xff]  ;;  %v14655_v29 = vld [vmem:[#allocation433_spill] sm:$0xff] }
 0x68f   :  { %7052 = vmatpush1.msra.mxu1 %v6981_v16  ;;  %v6978_v6 = vld [vmem:[%s13284_s4 + $0x78] sm:$0xff] }
 0x690   :  { %4486 = vperm.xlu1 %7162, %v3209_v19   ;;  %v10935_v11 = vpop.permute.xlu1 %4300  ;;  %v10937_v0 = vpop.permute.xlu0 %4309  ;;  %v3211_v5 = vmul.f32 %v14654_v54, %v1827_v7  ;;  %7053 = vmatprep.subr.mxu1 %v6980_v31  ;;  %v6979_v19 = vld [vmem:[%s13284_s4 + $0x80] sm:$0xff]  ;;  %v3214_v43 = vmul.f32 %v14655_v29, %v1830_v37  ;;  %v6977_v7 = vld [vmem:[%s13284_s4 + $0x70] sm:$0xff]  ;;  %v6976_v37 = vld [vmem:[%s13284_s4 + $0x68] sm:$0xff] }
 0x691   :  { %14651 = vst [vmem:[#allocation390_spill] sm:$0xff] %v10935_v11  ;;  %14652 = vst [vmem:[#allocation395_spill] sm:$0xff] %v10937_v0  ;;  %4495 = vperm.xlu0 %7161, %v3212_v13   ;;  %7054 = vmatpush1.msra.mxu1 %v6979_v19  ;;  %v14656_v13 = vld [vmem:[#allocation237_spill] sm:$0xff]  ;;  %v14659_v31 = vld [vmem:[#allocation238_spill] sm:$0xff] }
 0x692   :  { %v1829_v16 = vmul.f32 0.015625, %v14656_v13  ;;  %7055 = vmatprep.subr.mxu1 %v6978_v6  ;;  %v1832_v54 = vmul.f32 0.015625, %v14659_v31  ;;  %v14660_v29 = vld [vmem:[#allocation435_spill] sm:$0xff]  ;;  %v6974_v13 = vld [vmem:[%s13284_s4 + $0x58] sm:$0xff] }
 0x693   :  { %7056 = vmatpush1.msra.mxu1 %v6977_v7 }
 0x694   :  { %4492 = vperm.xlu1 %7162, %v3211_v5   ;;  %v10955_v23 = vpop.permute.xlu1 %4306  ;;  %v10957_v25 = vpop.permute.xlu0 %4315  ;;  %v3213_v19 = vmul.f32 %v14129_v28, %v1829_v16  ;;  %7057 = vmatprep.subr.mxu1 %v6976_v37  ;;  %v6975_v5 = vld [vmem:[%s13284_s4 + $0x60] sm:$0xff]  ;;  %v3216_v6 = vmul.f32 %v14660_v29, %v1832_v54  ;;  %v6973_v28 = vld [vmem:[%s13284_s4 + $0x50] sm:$0xff]  ;;  %v6972_v54 = vld [vmem:[%s13284_s4 + $0x48] sm:$0xff] }
 0x695   :  { %14657 = vst [vmem:[#allocation199_spill] sm:$0xff] %v10955_v23  ;;  %14658 = vst [vmem:[#allocation200_spill] sm:$0xff] %v10957_v25  ;;  %4501 = vperm.xlu0 %7161, %v3214_v43   ;;  %7058 = vmatpush1.msra.mxu1 %v6975_v5  ;;  %v14661_v43 = vld [vmem:[#allocation239_spill] sm:$0xff]  ;;  %v14664_v16 = vld [vmem:[#allocation240_spill] sm:$0xff] }
 0x696   :  { %v1831_v7 = vmul.f32 0.015625, %v14661_v43  ;;  %7059 = vmatprep.subr.mxu1 %v6974_v13  ;;  %v1834_v37 = vmul.f32 0.015625, %v14664_v16  ;;  %v14665_v5 = vld [vmem:[#allocation432_spill] sm:$0xff]  ;;  %v14666_v13 = vld [vmem:[#allocation437_spill] sm:$0xff] }
 0x697   :  { %7060 = vmatpush1.msra.mxu1 %v6973_v28  ;;  %v6970_v16 = vld [vmem:[%s13284_s4 + $0x38] sm:$0xff] }
 0x698   :  { %4498 = vperm.xlu1 %7162, %v3213_v19   ;;  %v10975_v31 = vpop.permute.xlu1 %4312  ;;  %v10977_v40 = vpop.permute.xlu0 %4321  ;;  %v3215_v29 = vmul.f32 %v14665_v5, %v1831_v7  ;;  %7061 = vmatprep.subr.mxu1 %v6972_v54  ;;  %v6971_v19 = vld [vmem:[%s13284_s4 + $0x40] sm:$0xff]  ;;  %v3218_v43 = vmul.f32 %v14666_v13, %v1834_v37  ;;  %v6969_v7 = vld [vmem:[%s13284_s4 + $0x30] sm:$0xff]  ;;  %v6968_v37 = vld [vmem:[%s13284_s4 + $0x28] sm:$0xff] }
 0x699   :  { %14662 = vst [vmem:[#allocation392_spill] sm:$0xff] %v10975_v31  ;;  %14663 = vst [vmem:[#allocation397_spill] sm:$0xff] %v10977_v40  ;;  %4507 = vperm.xlu0 %7161, %v3216_v6   ;;  %7062 = vmatpush1.msra.mxu1 %v6971_v19  ;;  %v14667_v6 = vld [vmem:[#allocation241_spill] sm:$0xff]  ;;  %v14670_v54 = vld [vmem:[#allocation242_spill] sm:$0xff] }
 0x69a   :  { %v1833_v28 = vmul.f32 0.015625, %v14667_v6  ;;  %7063 = vmatprep.subr.mxu1 %v6970_v16  ;;  %v1836_v5 = vmul.f32 0.015625, %v14670_v54  ;;  %v14671_v19 = vld [vmem:[#allocation434_spill] sm:$0xff]  ;;  %v14672_v16 = vld [vmem:[#allocation439_spill] sm:$0xff] }
 0x69b   :  { %7064 = vmatpush1.msra.mxu1 %v6969_v7  ;;  %v6966_v54 = vld [vmem:[%s13284_s4 + $0x18] sm:$0xff] }
 0x69c   :  { %4504 = vperm.xlu1 %7162, %v3215_v29   ;;  %v10995_v41 = vpop.permute.xlu1 %4318  ;;  %v10997_v17 = vpop.permute.xlu0 %4327  ;;  %v3217_v13 = vmul.f32 %v14671_v19, %v1833_v28  ;;  %7065 = vmatprep.subr.mxu1 %v6968_v37  ;;  %v6967_v29 = vld [vmem:[%s13284_s4 + $0x20] sm:$0xff]  ;;  %v3220_v6 = vmul.f32 %v14672_v16, %v1836_v5  ;;  %v6965_v28 = vld [vmem:[%s13284_s4 + $0x10] sm:$0xff]  ;;  %v6964_v5 = vld [vmem:[%s13284_s4 + $0x8] sm:$0xff] }
 0x69d   :  { %14668 = vst [vmem:[#allocation201_spill] sm:$0xff] %v10995_v41  ;;  %14669 = vst [vmem:[#allocation202_spill] sm:$0xff] %v10997_v17  ;;  %4513 = vperm.xlu0 %7161, %v3218_v43   ;;  %7066 = vmatpush1.msra.mxu1 %v6967_v29  ;;  %v14673_v43 = vld [vmem:[#allocation243_spill] sm:$0xff]  ;;  %v14676_v37 = vld [vmem:[#allocation244_spill] sm:$0xff] }
 0x69e   :  { %v1835_v7 = vmul.f32 0.015625, %v14673_v43  ;;  %7067 = vmatprep.subr.mxu1 %v6966_v54  ;;  %v1838_v19 = vmul.f32 0.015625, %v14676_v37  ;;  %v14677_v29 = vld [vmem:[#allocation436_spill] sm:$0xff]  ;;  %v14678_v54 = vld [vmem:[#allocation441_spill] sm:$0xff] }
 0x69f   :  { %7068 = vmatpush1.msra.mxu1 %v6965_v28  ;;  %v7026_v37 = vld [vmem:[%s13284_s4 + $0x1f8] sm:$0xff] }
 0x6a0   :  { %4510 = vperm.xlu1 %7162, %v3217_v13   ;;  %v11015_v17 = vpop.permute.xlu1 %4324  ;;  %v11017_v40 = vpop.permute.xlu0 %4333  ;;  %v3219_v16 = vmul.f32 %v14677_v29, %v1835_v7  ;;  %7069 = vmatprep.subr.mxu1 %v6964_v5  ;;  %v6963_v13 = vld [vmem:[%s13284_s4] sm:$0xff]  ;;  %v3222_v43 = vmul.f32 %v14678_v54, %v1838_v19  ;;  %v7025_v7 = vld [vmem:[%s13284_s4 + $0x1f0] sm:$0xff]  ;;  %v7024_v19 = vld [vmem:[%s13284_s4 + $0x1e8] sm:$0xff] }
 0x6a1   :  { %14674 = vst [vmem:[#allocation394_spill] sm:$0xff] %v11015_v17  ;;  %14675 = vst [vmem:[#allocation399_spill] sm:$0xff] %v11017_v40  ;;  %4519 = vperm.xlu0 %7161, %v3220_v6   ;;  %7070 = vmatpush1.msra.mxu1 %v6963_v13  ;;  %v14679_v6 = vld [vmem:[#allocation245_spill] sm:$0xff]  ;;  %v14682_v5 = vld [vmem:[#allocation246_spill] sm:$0xff] }
 0x6a2   :  { %v1837_v28 = vmul.f32 0.015625, %v14679_v6  ;;  %7071 = vmatprep.subr.mxu1 %v7026_v37  ;;  %v1840_v29 = vmul.f32 0.015625, %v14682_v5  ;;  %v14683_v13 = vld [vmem:[#allocation438_spill] sm:$0xff]  ;;  %v14684_v37 = vld [vmem:[#allocation443_spill] sm:$0xff] }
 0x6a3   :  { %7072 = vmatpush2.msra.mxu1 %v7025_v7  ;;  %v7022_v5 = vld [vmem:[%s13284_s4 + $0x1d8] sm:$0xff] }
 0x6a4   :  { %4516 = vperm.xlu1 %7162, %v3219_v16   ;;  %v11035_v40 = vpop.permute.xlu1 %4330  ;;  %v11037_v17 = vpop.permute.xlu0 %4339  ;;  %v3221_v54 = vmul.f32 %v14683_v13, %v1837_v28  ;;  %7073 = vmatprep.subr.mxu1 %v7024_v19  ;;  %v7023_v16 = vld [vmem:[%s13284_s4 + $0x1e0] sm:$0xff]  ;;  %v3224_v6 = vmul.f32 %v14684_v37, %v1840_v29  ;;  %v7021_v28 = vld [vmem:[%s13284_s4 + $0x1d0] sm:$0xff]  ;;  %v7020_v29 = vld [vmem:[%s13284_s4 + $0x1c8] sm:$0xff] }
 0x6a5   :  { %14680 = vst [vmem:[#allocation203_spill] sm:$0xff] %v11035_v40  ;;  %14681 = vst [vmem:[#allocation204_spill] sm:$0xff] %v11037_v17  ;;  %4525 = vperm.xlu0 %7161, %v3222_v43   ;;  %7074 = vmatpush2.msra.mxu1 %v7023_v16  ;;  %v14685_v43 = vld [vmem:[#allocation247_spill] sm:$0xff]  ;;  %v14688_v19 = vld [vmem:[#allocation248_spill] sm:$0xff] }
 0x6a6   :  { %v1839_v7 = vmul.f32 0.015625, %v14685_v43  ;;  %7075 = vmatprep.subr.mxu1 %v7022_v5  ;;  %v1842_v13 = vmul.f32 0.015625, %v14688_v19  ;;  %v14689_v16 = vld [vmem:[#allocation440_spill] sm:$0xff]  ;;  %v14690_v5 = vld [vmem:[#allocation445_spill] sm:$0xff] }
 0x6a7   :  { %7076 = vmatpush2.msra.mxu1 %v7021_v28  ;;  %v7018_v19 = vld [vmem:[%s13284_s4 + $0x1b8] sm:$0xff] }
 0x6a8   :  { %4522 = vperm.xlu1 %7162, %v3221_v54   ;;  %v11055_v17 = vpop.permute.xlu1 %4336  ;;  %v11057_v40 = vpop.permute.xlu0 %4345  ;;  %v3223_v37 = vmul.f32 %v14689_v16, %v1839_v7  ;;  %7077 = vmatprep.subr.mxu1 %v7020_v29  ;;  %v7019_v54 = vld [vmem:[%s13284_s4 + $0x1c0] sm:$0xff]  ;;  %v3226_v43 = vmul.f32 %v14690_v5, %v1842_v13  ;;  %v7017_v7 = vld [vmem:[%s13284_s4 + $0x1b0] sm:$0xff]  ;;  %v7016_v13 = vld [vmem:[%s13284_s4 + $0x1a8] sm:$0xff] }
 0x6a9   :  { %14686 = vst [vmem:[#allocation396_spill] sm:$0xff] %v11055_v17  ;;  %14687 = vst [vmem:[#allocation401_spill] sm:$0xff] %v11057_v40  ;;  %4531 = vperm.xlu0 %7161, %v3224_v6   ;;  %7078 = vmatpush2.msra.mxu1 %v7019_v54  ;;  %v14691_v6 = vld [vmem:[#allocation249_spill] sm:$0xff]  ;;  %v14694_v29 = vld [vmem:[#allocation250_spill] sm:$0xff] }
 0x6aa   :  { %v1841_v28 = vmul.f32 0.015625, %v14691_v6  ;;  %7079 = vmatprep.subr.mxu1 %v7018_v19  ;;  %v1844_v16 = vmul.f32 0.015625, %v14694_v29  ;;  %v14695_v54 = vld [vmem:[#allocation442_spill] sm:$0xff]  ;;  %v14696_v19 = vld [vmem:[#allocation447_spill] sm:$0xff] }
 0x6ab   :  { %7080 = vmatpush2.msra.mxu1 %v7017_v7  ;;  %v7014_v29 = vld [vmem:[%s13284_s4 + $0x198] sm:$0xff] }
 0x6ac   :  { %4528 = vperm.xlu1 %7162, %v3223_v37   ;;  %v11075_v40 = vpop.permute.xlu1 %4342  ;;  %v11077_v17 = vpop.permute.xlu0 %4351  ;;  %v3225_v5 = vmul.f32 %v14695_v54, %v1841_v28  ;;  %7081 = vmatprep.subr.mxu1 %v7016_v13  ;;  %v7015_v37 = vld [vmem:[%s13284_s4 + $0x1a0] sm:$0xff]  ;;  %v3228_v6 = vmul.f32 %v14696_v19, %v1844_v16  ;;  %v7013_v28 = vld [vmem:[%s13284_s4 + $0x190] sm:$0xff]  ;;  %v7012_v16 = vld [vmem:[%s13284_s4 + $0x188] sm:$0xff] }
 0x6ad   :  { %14692 = vst [vmem:[#allocation205_spill] sm:$0xff] %v11075_v40  ;;  %14693 = vst [vmem:[#allocation206_spill] sm:$0xff] %v11077_v17  ;;  %4537 = vperm.xlu0 %7161, %v3226_v43   ;;  %7082 = vmatpush2.msra.mxu1 %v7015_v37  ;;  %v14697_v43 = vld [vmem:[#allocation251_spill] sm:$0xff]  ;;  %v14700_v13 = vld [vmem:[#allocation252_spill] sm:$0xff] }
 0x6ae   :  { %v1843_v7 = vmul.f32 0.015625, %v14697_v43  ;;  %7083 = vmatprep.subr.mxu1 %v7014_v29  ;;  %v1846_v54 = vmul.f32 0.015625, %v14700_v13  ;;  %v14701_v37 = vld [vmem:[#allocation444_spill] sm:$0xff]  ;;  %v14702_v29 = vld [vmem:[#allocation449_spill] sm:$0xff] }
 0x6af   :  { %7084 = vmatpush2.msra.mxu1 %v7013_v28  ;;  %v7010_v13 = vld [vmem:[%s13284_s4 + $0x178] sm:$0xff] }
 0x6b0   :  { %4534 = vperm.xlu1 %7162, %v3225_v5   ;;  %v11095_v40 = vpop.permute.xlu1 %4348  ;;  %v11097_v25 = vpop.permute.xlu0 %4357  ;;  %v3227_v19 = vmul.f32 %v14701_v37, %v1843_v7  ;;  %7085 = vmatprep.subr.mxu1 %v7012_v16  ;;  %v7011_v5 = vld [vmem:[%s13284_s4 + $0x180] sm:$0xff]  ;;  %v3230_v43 = vmul.f32 %v14702_v29, %v1846_v54  ;;  %v7009_v7 = vld [vmem:[%s13284_s4 + $0x170] sm:$0xff]  ;;  %v7008_v54 = vld [vmem:[%s13284_s4 + $0x168] sm:$0xff] }
 0x6b1   :  { %14698 = vst [vmem:[#allocation398_spill] sm:$0xff] %v11095_v40  ;;  %14699 = vst [vmem:[#allocation403_spill] sm:$0xff] %v11097_v25  ;;  %4543 = vperm.xlu0 %7161, %v3228_v6   ;;  %7086 = vmatpush2.msra.mxu1 %v7011_v5  ;;  %v14703_v6 = vld [vmem:[#allocation253_spill] sm:$0xff]  ;;  %v14706_v16 = vld [vmem:[#allocation254_spill] sm:$0xff] }
 0x6b2   :  { %v1845_v28 = vmul.f32 0.015625, %v14703_v6  ;;  %7087 = vmatprep.subr.mxu1 %v7010_v13  ;;  %v1848_v37 = vmul.f32 0.015625, %v14706_v16  ;;  %v14707_v5 = vld [vmem:[#allocation446_spill] sm:$0xff]  ;;  %v14708_v13 = vld [vmem:[#allocation451_spill] sm:$0xff] }
 0x6b3   :  { %7088 = vmatpush2.msra.mxu1 %v7009_v7  ;;  %v7006_v16 = vld [vmem:[%s13284_s4 + $0x158] sm:$0xff]  ;;  %v14722_v40 = vld [vmem:[#allocation455_spill] sm:$0xff] }
 0x6b4   :  { %4540 = vperm.xlu1 %7162, %v3227_v19   ;;  %v11115_v25 = vpop.permute.xlu1 %4354  ;;  %v11117_v41 = vpop.permute.xlu0 %4363  ;;  %v3229_v29 = vmul.f32 %v14707_v5, %v1845_v28  ;;  %7089 = vmatprep.subr.mxu1 %v7008_v54  ;;  %v7007_v19 = vld [vmem:[%s13284_s4 + $0x160] sm:$0xff]  ;;  %v3232_v6 = vmul.f32 %v14708_v13, %v1848_v37  ;;  %v7005_v28 = vld [vmem:[%s13284_s4 + $0x150] sm:$0xff]  ;;  %v7004_v37 = vld [vmem:[%s13284_s4 + $0x148] sm:$0xff] }
 0x6b5   :  { %14704 = vst [vmem:[#allocation207_spill] sm:$0xff] %v11115_v25  ;;  %14705 = vst [vmem:[#allocation208_spill] sm:$0xff] %v11117_v41  ;;  %4549 = vperm.xlu0 %7161, %v3230_v43   ;;  %7090 = vmatpush2.msra.mxu1 %v7007_v19  ;;  %v14709_v43 = vld [vmem:[#allocation255_spill] sm:$0xff]  ;;  %v14712_v54 = vld [vmem:[#allocation256_spill] sm:$0xff] }
 0x6b6   :  { %v1847_v7 = vmul.f32 0.015625, %v14709_v43  ;;  %7091 = vmatprep.subr.mxu1 %v7006_v16  ;;  %v1850_v5 = vmul.f32 0.015625, %v14712_v54  ;;  %v14713_v19 = vld [vmem:[#allocation448_spill] sm:$0xff]  ;;  %v14714_v16 = vld [vmem:[#allocation453_spill] sm:$0xff] }
 0x6b7   :  { %7092 = vmatpush2.msra.mxu1 %v7005_v28  ;;  %v7002_v54 = vld [vmem:[%s13284_s4 + $0x138] sm:$0xff]  ;;  %v14721_v25 = vld [vmem:[#allocation316_spill] sm:$0xff] }
 0x6b8   :  { %4546 = vperm.xlu1 %7162, %v3229_v29   ;;  %v11135_v41 = vpop.permute.xlu1 %4360  ;;  %v11137_v17 = vpop.permute.xlu0 %4369  ;;  %v3231_v13 = vmul.f32 %v14713_v19, %v1847_v7  ;;  %7093 = vmatprep.subr.mxu1 %v7004_v37  ;;  %v7003_v29 = vld [vmem:[%s13284_s4 + $0x140] sm:$0xff]  ;;  %v3234_v43 = vmul.f32 %v14714_v16, %v1850_v5  ;;  %v7001_v5 = vld [vmem:[%s13284_s4 + $0x130] sm:$0xff] }
 0x6b9   :  { %14710 = vst [vmem:[#allocation400_spill] sm:$0xff] %v11135_v41  ;;  %14711 = vst [vmem:[#allocation405_spill] sm:$0xff] %v11137_v17  ;;  %4555 = vperm.xlu0 %7161, %v3232_v6   ;;  %7094 = vmatpush2.msra.mxu1 %v7003_v29  ;;  %v14715_v6 = vld [vmem:[#allocation257_spill] sm:$0xff]  ;;  %v6867_v7 = vld [vmem:[%s13285_s3] sm:$0x3] }
 0x6ba   :  { %v1849_v28 = vmul.f32 0.015625, %v14715_v6  ;;  %7095 = vmatprep.subr.mxu1 %v7002_v54  ;;  %v14718_v37 = vld [vmem:[#allocation258_spill] sm:$0xff]  ;;  %v14719_v29 = vld [vmem:[#allocation299_spill] sm:$0xff]  ;;  %v6876_v0 = vrot.slane %v6867_v7, %v14721_v25  ;;  %v14728_v25 = vld [vmem:[#allocation457_spill] sm:$0xff] }
 0x6bb   :  { %v1852_v19 = vmul.f32 0.015625, %v14718_v37  ;;  %v6872_v16 = vrot.slane %v6867_v7, %v14719_v29  ;;  %v6956_v6 = vpop.f32.mrf.mxu0  ;;  %7096 = vmatpush2.msra.mxu1 %v7001_v5  ;;  %v6999_v54 = vld [vmem:[%s13284_s4 + $0x120] sm:$0xff]  ;;  %v6998_v5 = vld [vmem:[%s13284_s4 + $0x118] sm:$0xff]  ;;  %v6997_v7 = vld [vmem:[%s13284_s4 + $0x110] sm:$0xff] }
 0x6bc   :  { %4552 = vperm.xlu1 %7162, %v3231_v13   ;;  %v11155_v17 = vpop.permute.xlu1 %4366  ;;  %v11157_v41 = vpop.permute.xlu0 %4375  ;;  %v7000_v13 = vld [vmem:[%s13284_s4 + $0x128] sm:$0xff] }
 0x6bd   :  { %14716 = vst [vmem:[#allocation209_spill] sm:$0xff] %v11155_v17  ;;  %14717 = vst [vmem:[#allocation210_spill] sm:$0xff] %v11157_v41  ;;  %4561 = vperm.xlu0 %7161, %v3234_v43   ;;  %v14720_v41 = vld [vmem:[#allocation450_spill] sm:$0xff]  ;;  %7097 = vmatprep.subr.mxu1 %v7000_v13  ;;  %v3236_v37 = vmul.f32 %v14722_v40, %v1852_v19  ;;  %v6957_v43 = vadd.f32 %v6956_v6, %v6872_v16  ;;  %v6958_v31 = vpop.f32.mrf.mxu0  ;;  %v14723_v29 = vld [vmem:[#allocation259_spill] sm:$0xff] }
 0x6be   :  { %v3233_v17 = vmul.f32 %v14720_v41, %v1849_v28  ;;  %7098 = vmatpush2.msra.mxu1 %v6999_v54  ;;  %v1851_v24 = vmul.f32 0.015625, %v14723_v29  ;;  %v6959_v40 = vadd.f32 %v6958_v31, %v6876_v0  ;;  %v14726_v19 = vld [vmem:[#allocation260_spill] sm:$0xff]  ;;  %v6995_v54 = vld [vmem:[%s13284_s4 + $0x100] sm:$0xff]  ;;  %v14729_v0 = vld [vmem:[#allocation261_spill] sm:$0xff] }
 0x6bf   :  { %7099 = vmatprep.subr.mxu1 %v6998_v5  ;;  %v1854_v16 = vmul.f32 0.015625, %v14726_v19  ;;  %v6961_v6 = vmax.f32 %v6957_v43, 0.0  ;;  %v6996_v29 = vld [vmem:[%s13284_s4 + $0x108] sm:$0xff]  ;;  %v1853_v31 = vmul.f32 0.015625, %v14729_v0 }
 0x6c0   :  { %4558 = vperm.xlu1 %7162, %v3233_v17   ;;  %v11180_v41 = vpop.permute.xlu1 %4372  ;;  %v11182_v28 = vpop.permute.xlu0 %4381  ;;  %7100 = vmatpush2.msra.mxu1 %v6997_v7  ;;  %v14727_v17 = vld [vmem:[#allocation452_spill] sm:$0xff]  ;;  %v6962_v5 = vmax.f32 %v6959_v40, 0.0  ;;  %v14732_v7 = vld [vmem:[#allocation262_spill] sm:$0xff]  ;;  %v14735_v40 = vld [vmem:[#allocation263_spill] sm:$0xff] }
 0x6c1   :  { %14724 = vst [vmem:[#allocation402_spill] sm:$0xff] %v11180_v41  ;;  %14725 = vst [vmem:[#allocation407_spill] sm:$0xff] %v11182_v28  ;;  %4567 = vperm.xlu0 %7161, %v3236_v37   ;;  %v3235_v13 = vmul.f32 %v14727_v17, %v1851_v24  ;;  %7101 = vmatprep.subr.mxu1 %v6996_v29  ;;  %v3238_v28 = vmul.f32 %v14728_v25, %v1854_v16  ;;  %v1856_v19 = vmul.f32 0.015625, %v14732_v7  ;;  %v14733_v24 = vld [vmem:[#allocation454_spill] sm:$0xff]  ;;  %v14734_v17 = vld [vmem:[#allocation459_spill] sm:$0xff] }
 0x6c2   :  { %7102 = vmatpush2.msra.mxu1 %v6995_v54  ;;  %7103 = vmatprep.mubr.f32.mxu1 %v6962_v5  ;;  %v3237_v29 = vmul.f32 %v14733_v24, %v1853_v31  ;;  %v1855_v23 = vmul.f32 0.015625, %v14735_v40  ;;  %v14739_v0 = vld [vmem:[#allocation456_spill] sm:$0xff]  ;;  %v14744_v24 = vld [vmem:[#allocation266_spill] sm:$0xff] }
 0x6c3   :  { %7104 = vmatmul.mubr.f32.vlgmr.msra.gmra.mxu1 %v6961_v6  ;;  %v3240_v41 = vmul.f32 %v14734_v17, %v1856_v19  ;;  %v14745_v17 = vld [vmem:[#allocation458_spill] sm:$0xff] }
 0x6c4   :  { %4564 = vperm.xlu1 %7162, %v3235_v13   ;;  %v11197_v37 = vpop.permute.xlu1 %4378  ;;  %v11199_v43 = vpop.permute.xlu0 %4387  ;;  %v14738_v13 = vld [vmem:[#allocation264_spill] sm:$0xff]  ;;  %v3239_v5 = vmul.f32 %v14739_v0, %v1855_v23 }
 0x6c5   :  { %14730 = vst [vmem:[#allocation211_spill] sm:$0xff] %v11197_v37  ;;  %14731 = vst [vmem:[#allocation212_spill] sm:$0xff] %v11199_v43  ;;  %4573 = vperm.xlu0 %7161, %v3238_v28   ;;  %v1858_v54 = vmul.f32 0.015625, %v14738_v13  ;;  %v14740_v43 = vld [vmem:[#allocation461_spill] sm:$0xff]  ;;  %v14747_v13 = vld [vmem:[#allocation267_spill] sm:$0xff] }
 0x6c6   :  { %v14741_v28 = vld [vmem:[#allocation265_spill] sm:$0xff] }
 0x6c7   :  { %v3242_v7 = vmul.f32 %v14740_v43, %v1858_v54  ;;  %v1857_v6 = vmul.f32 0.015625, %v14741_v28  ;;  %v14750_v54 = vld [vmem:[#allocation268_spill] sm:$0xff] }
 0x6c8   :  { %4570 = vperm.xlu1 %7162, %v3237_v29   ;;  %v11205_v25 = vpop.permute.xlu1 %4384  ;;  %v11207_v16 = vpop.permute.xlu0 %4393  ;;  %v1860_v29 = vmul.f32 0.015625, %v14744_v24  ;;  %v1862_v0 = vmul.f32 0.015625, %v14750_v54  ;;  %v14753_v24 = vld [vmem:[#allocation269_spill] sm:$0xff]  ;;  %v14759_v54 = vld [vmem:[#allocation271_spill] sm:$0xff] }
 0x6c9   :  { %14736 = vst [vmem:[#allocation404_spill] sm:$0xff] %v11205_v25  ;;  %14737 = vst [vmem:[#allocation409_spill] sm:$0xff] %v11207_v16  ;;  %4579 = vperm.xlu0 %7161, %v3240_v41   ;;  %v3241_v40 = vmul.f32 %v14745_v17, %v1857_v6  ;;  %v14746_v16 = vld [vmem:[#allocation463_spill] sm:$0xff]  ;;  %v1859_v41 = vmul.f32 0.015625, %v14747_v13 }
 0x6ca   :  { %v3244_v25 = vmul.f32 %v14746_v16, %v1860_v29  ;;  %v14756_v29 = vld [vmem:[#allocation270_spill] sm:$0xff] }
 0x6cb   :  { %v1864_v17 = vmul.f32 0.015625, %v14756_v29  ;;  %v14765_v29 = vld [vmem:[#allocation275_spill] sm:$0xff] }
 0x6cc   :  { %4576 = vperm.xlu1 %7162, %v3239_v5   ;;  %v11213_v31 = vpop.permute.xlu1 %4390  ;;  %v11215_v19 = vpop.permute.xlu0 %4399  ;;  %v14751_v5 = vld [vmem:[#allocation460_spill] sm:$0xff] }
 0x6cd   :  { %14742 = vst [vmem:[#allocation213_spill] sm:$0xff] %v11213_v31  ;;  %14743 = vst [vmem:[#allocation214_spill] sm:$0xff] %v11215_v19  ;;  %4585 = vperm.xlu0 %7161, %v3242_v7   ;;  %v3243_v28 = vmul.f32 %v14751_v5, %v1859_v41  ;;  %v14752_v31 = vld [vmem:[#allocation465_spill] sm:$0xff]  ;;  %v1861_v7 = vmul.f32 0.015625, %v14753_v24 }
 0x6ce   :  { %v3246_v37 = vmul.f32 %v14752_v31, %v1862_v0  ;;  %v14762_v0 = vld [vmem:[#allocation272_spill] sm:$0xff] }
 0x6cf   :  { %v1866_v5 = vmul.f32 0.015625, %v14762_v0 }
 0x6d0   :  { %4582 = vperm.xlu1 %7162, %v3241_v40   ;;  %v11221_v23 = vpop.permute.xlu1 %4396  ;;  %v11223_v43 = vpop.permute.xlu0 %4405  ;;  %v14757_v40 = vld [vmem:[#allocation462_spill] sm:$0xff] }
 0x6d1   :  { %14748 = vst [vmem:[#allocation406_spill] sm:$0xff] %v11221_v23  ;;  %14749 = vst [vmem:[#allocation411_spill] sm:$0xff] %v11223_v43  ;;  %4591 = vperm.xlu0 %7161, %v3244_v25   ;;  %v3245_v13 = vmul.f32 %v14757_v40, %v1861_v7  ;;  %v14758_v43 = vld [vmem:[#allocation467_spill] sm:$0xff]  ;;  %v1863_v25 = vmul.f32 0.015625, %v14759_v54  ;;  %v14766_v23 = vld [vmem:[#allocation276_spill] sm:$0xff] }
 0x6d2   :  { %v3248_v19 = vmul.f32 %v14758_v43, %v1864_v17  ;;  %v1870_v7 = vmul.f32 0.015625, %v14766_v23  ;;  %v14767_v40 = vld [vmem:[#allocation464_spill] sm:$0xff]  ;;  %v14768_v17 = vld [vmem:[#allocation277_spill] sm:$0xff]  ;;  %v14775_v23 = vld [vmem:[#allocation283_spill] sm:$0xff] }
 0x6d3   :  { %v3247_v43 = vmul.f32 %v14767_v40, %v1863_v25  ;;  %v1869_v54 = vmul.f32 0.015625, %v14768_v17  ;;  %v11263_v25 = vmul.f32 0.015625, %v14775_v23  ;;  %v14782_v23 = vld [vmem:[#allocation288_spill] sm:$0xff] }
 0x6d4   :  { %4588 = vperm.xlu1 %7162, %v3243_v28   ;;  %v11229_v6 = vpop.permute.xlu1 %4402  ;;  %v11231_v16 = vpop.permute.xlu0 %4411  ;;  %v14763_v28 = vld [vmem:[#allocation273_spill] sm:$0xff]  ;;  %v11282_v30 = vmul.f32 0.015625, %v14782_v23 }
 0x6d5   :  { %14754 = vst [vmem:[#allocation215_spill] sm:$0xff] %v11229_v6  ;;  %14755 = vst [vmem:[#allocation216_spill] sm:$0xff] %v11231_v16  ;;  %4597 = vperm.xlu0 %7161, %v3246_v37   ;;  %v1865_v24 = vmul.f32 0.015625, %v14763_v28  ;;  %v14764_v16 = vld [vmem:[#allocation274_spill] sm:$0xff]  ;;  %v1867_v37 = vmul.f32 0.015625, %v14765_v29  ;;  %v11254_v28 = vmul.f32 0.015625, %v14772_v61 }
 0x6d6   :  { %v1868_v6 = vmul.f32 0.015625, %v14764_v16  ;;  %v14774_v29 = vld [vmem:[#allocation282_spill] sm:$0xff] }
 0x6d7   :  { %v11260_v52 = vmul.f32 0.015625, %v14774_v29  ;;  %v11279_v29 = vmul.f32 0.015625, %v14781_v48  ;;  %v14788_v48 = vld [vmem:[#allocation293_spill] sm:$0xff] }
 0x6d8   :  { %4594 = vperm.xlu1 %7162, %v3245_v13   ;;  %v11237_v41 = vpop.permute.xlu1 %4408  ;;  %v11239_v31 = vpop.permute.xlu0 %4417  ;;  %v14769_v13 = vld [vmem:[#allocation278_spill] sm:$0xff]  ;;  %v11298_v39 = vmul.f32 0.015625, %v14788_v48  ;;  %v14796_v48 = vld [vmem:[#allocation300_spill] sm:$0xff] }
 0x6d9   :  { %14760 = vst [vmem:[#allocation408_spill] sm:$0xff] %v11237_v41  ;;  %14761 = vst [vmem:[#allocation413_spill] sm:$0xff] %v11239_v31  ;;  %4603 = vperm.xlu0 %7161, %v3248_v19   ;;  %v1872_v11 = vmul.f32 0.015625, %v14769_v13  ;;  %v14770_v41 = vld [vmem:[#allocation279_spill] sm:$0xff]  ;;  %v14771_v31 = vld [vmem:[#allocation469_spill] sm:$0xff]  ;;  %v11318_v8 = vmul.f32 0.015625, %v14796_v48 }
 0x6da   :  { %v11250_v36 = vmul.f32 0.015625, %v14770_v41  ;;  %v3250_v0 = vmul.f32 %v14771_v31, %v1866_v5  ;;  %v14773_v19 = vld [vmem:[#allocation281_spill] sm:$0xff]  ;;  %v14778_v41 = vld [vmem:[#allocation284_spill] sm:$0xff]  ;;  %v14780_v5 = vld [vmem:[#allocation286_spill] sm:$0xff] }
 0x6db   :  { %v11257_v16 = vmul.f32 0.015625, %v14773_v19  ;;  %v11270_v13 = vmul.f32 0.015625, %v14778_v41  ;;  %v14779_v31 = vld [vmem:[#allocation285_spill] sm:$0xff]  ;;  %v11276_v19 = vmul.f32 0.015625, %v14780_v5  ;;  %v14785_v41 = vld [vmem:[#allocation466_spill] sm:$0xff]  ;;  %v14787_v5 = vld [vmem:[#allocation292_spill] sm:$0xff] }
 0x6dc   :  { %4600 = vperm.xlu1 %7162, %v3247_v43   ;;  %v11265_v40 = vpop.permute.xlu1 %4414  ;;  %v11267_v17 = vpop.permute.xlu0 %4423  ;;  %v11273_v61 = vmul.f32 0.015625, %v14779_v31  ;;  %v14783_v43 = vld [vmem:[#allocation289_spill] sm:$0xff]  ;;  %v3249_v12 = vmul.f32 %v14785_v41, %v1865_v24  ;;  %v14786_v31 = vld [vmem:[#allocation291_spill] sm:$0xff]  ;;  %v11295_v49 = vmul.f32 0.015625, %v14787_v5  ;;  %v14793_v24 = vld [vmem:[#allocation298_spill] sm:$0xff] }
 0x6dd   :  { %14776 = vst [vmem:[#allocation217_spill] sm:$0xff] %v11265_v40  ;;  %14777 = vst [vmem:[#allocation218_spill] sm:$0xff] %v11267_v17  ;;  %4609 = vperm.xlu0 %7161, %v3250_v0   ;;  %v11285_v40 = vmul.f32 0.015625, %v14783_v43  ;;  %v14784_v17 = vld [vmem:[#allocation290_spill] sm:$0xff]  ;;  %v11292_v45 = vmul.f32 0.015625, %v14786_v31  ;;  %v14789_v0 = vld [vmem:[#allocation471_spill] sm:$0xff] }
 0x6de   :  { %v11288_v51 = vmul.f32 0.015625, %v14784_v17  ;;  %v3252_v23 = vmul.f32 %v14789_v0, %v1868_v6  ;;  %v14791_v43 = vld [vmem:[#allocation295_spill] sm:$0xff]  ;;  %v14792_v17 = vld [vmem:[#allocation297_spill] sm:$0xff]  ;;  %v11311_v41 = vmul.f32 0.015625, %v14793_v24  ;;  %v14798_v0 = vld [vmem:[#allocation302_spill] sm:$0xff] }
 0x6df   :  { %v11305_v22 = vmul.f32 0.015625, %v14791_v43  ;;  %v11308_v4 = vmul.f32 0.015625, %v14792_v17  ;;  %v14797_v6 = vld [vmem:[#allocation301_spill] sm:$0xff]  ;;  %v11324_v43 = vmul.f32 0.015625, %v14798_v0  ;;  %v11327_v17 = vmul.f32 0.015625, %v14799_v62  ;;  %v14800_v24 = vld [vmem:[#allocation304_spill] sm:$0xff] }
 0x6e0   :  { %4606 = vperm.xlu1 %7162, %v3249_v12   ;;  %v11313_v31 = vpop.permute.xlu1 %4420  ;;  %v11315_v5 = vpop.permute.xlu0 %4429  ;;  %v11321_v34 = vmul.f32 0.015625, %v14797_v6  ;;  %v11330_v33 = vmul.f32 0.015625, %v14800_v24  ;;  %v14801_v12 = vld [vmem:[#allocation305_spill] sm:$0xff]  ;;  %v14803_v48 = vld [vmem:[#allocation468_spill] sm:$0xff]  ;;  %v14804_v6 = vld [vmem:[#allocation307_spill] sm:$0xff] }
 0x6e1   :  { %14794 = vst [vmem:[#allocation410_spill] sm:$0xff] %v11313_v31  ;;  %14795 = vst [vmem:[#allocation415_spill] sm:$0xff] %v11315_v5  ;;  %4615 = vperm.xlu0 %7161, %v3252_v23   ;;  %v11333_v31 = vmul.f32 0.015625, %v14801_v12  ;;  %v14802_v5 = vld [vmem:[#allocation306_spill] sm:$0xff]  ;;  %v3251_v27 = vmul.f32 %v14803_v48, %v1867_v37  ;;  %v11340_v50 = vmul.f32 0.015625, %v14804_v6  ;;  %v14805_v0 = vld [vmem:[#allocation308_spill] sm:$0xff] }
 0x6e2   :  { %v11336_v56 = vmul.f32 0.015625, %v14802_v5  ;;  %v11343_v14 = vmul.f32 0.015625, %v14805_v0  ;;  %v14806_v62 = vld [vmem:[#allocation309_spill] sm:$0xff]  ;;  %v14809_v12 = vld [vmem:[#allocation311_spill] sm:$0xff]  ;;  %v14810_v5 = vld [vmem:[#allocation312_spill] sm:$0xff] }
 0x6e3   :  { %v11346_v44 = vmul.f32 0.015625, %v14806_v62  ;;  %v14807_v23 = vld [vmem:[#allocation473_spill] sm:$0xff]  ;;  %v11353_v1 = vmul.f32 0.015625, %v14809_v12  ;;  %v11356_v32 = vmul.f32 0.015625, %v14810_v5  ;;  %v14815_v62 = vld [vmem:[#allocation314_spill] sm:$0xff]  ;;  %v11375_v5 = vmul.f32 0.015625, %v14821_v26 }
 0x6e4   :  { %v3254_v24 = vmul.f32 %v14807_v23, %v1870_v7  ;;  %v14812_v37 = vld [vmem:[#allocation313_spill] sm:$0xff]  ;;  %4612 = vperm.xlu1 %7162, %v3251_v27   ;;  %v11361_v6 = vpop.permute.xlu1 %4426  ;;  %v11363_v0 = vpop.permute.xlu0 %4435  ;;  %v11366_v46 = vmul.f32 0.015625, %v14815_v62  ;;  %v14817_v7 = vld [vmem:[#allocation315_spill] sm:$0xff]  ;;  %v14825_v27 = vld [vmem:[#allocation320_spill] sm:$0xff]  ;;  %v3253_v62 = vmul.f32 %v14248_v53, %v1869_v54 }
 0x6e5   :  { %14811 = vst [vmem:[#allocation219_spill] sm:$0xff] %v11356_v32  ;;  %v11359_v48 = vmul.f32 0.015625, %v14812_v37  ;;  %14813 = vst [vmem:[#allocation220_spill] sm:$0xff] %v11361_v6  ;;  %v11369_v21 = vmul.f32 0.015625, %v14817_v7  ;;  %v14819_v23 = vld [vmem:[#allocation317_spill] sm:$0xff]  ;;  %v14823_v37 = vld [vmem:[#allocation319_spill] sm:$0xff] }
 0x6e6   :  { %14814 = vst [vmem:[#allocation412_spill] sm:$0xff] %v11363_v0  ;;  %14816 = vst [vmem:[#allocation417_spill] sm:$0xff] %v11366_v46  ;;  %v11372_v12 = vmul.f32 0.015625, %v14819_v23  ;;  %4621 = vperm.xlu0 %7161, %v3254_v24   ;;  %v11378_v32 = vmul.f32 0.015625, %v14823_v37  ;;  %v11381_v6 = vmul.f32 0.015625, %v14825_v27  ;;  %v14827_v0 = vld [vmem:[#allocation321_spill] sm:$0xff] }
 0x6e7   :  { %14818 = vst [vmem:[#allocation221_spill] sm:$0xff] %v11369_v21  ;;  %14822 = vst [vmem:[#allocation414_spill] sm:$0xff] %v11375_v5  ;;  %v11384_v3 = vmul.f32 0.015625, %v14827_v0  ;;  %v14829_v7 = vld [vmem:[#allocation322_spill] sm:$0xff]  ;;  %v14830_v23 = vld [vmem:[#allocation323_spill] sm:$0xff] }
 0x6e8   :  { %14820 = vst [vmem:[#allocation222_spill] sm:$0xff] %v11372_v12  ;;  %14824 = vst [vmem:[#allocation419_spill] sm:$0xff] %v11378_v32  ;;  %v11388_v46 = vmul.f32 0.015625, %v14829_v7  ;;  %v11391_v12 = vmul.f32 0.015625, %v14830_v23  ;;  %v14832_v26 = vld [vmem:[#allocation324_spill] sm:$0xff]  ;;  %v14833_v24 = vld [vmem:[#allocation475_spill] sm:$0xff]  ;;  %4618 = vperm.xlu1 %7162, %v3253_v62   ;;  %v11409_v7 = vpop.permute.xlu1 %4432  ;;  %v11411_v23 = vpop.permute.xlu0 %4441 }
 0x6e9   :  { %14826 = vst [vmem:[#allocation223_spill] sm:$0xff] %v11381_v6  ;;  %14828 = vst [vmem:[#allocation224_spill] sm:$0xff] %v11384_v3  ;;  %v11394_v5 = vmul.f32 0.015625, %v14832_v26  ;;  %v3256_v37 = vmul.f32 %v14833_v24, %v1872_v11  ;;  %v14834_v32 = vld [vmem:[#allocation325_spill] sm:$0xff]  ;;  %v14836_v27 = vld [vmem:[#allocation326_spill] sm:$0xff] }
 0x6ea   :  { %14831 = vst [vmem:[#allocation416_spill] sm:$0xff] %v11391_v12  ;;  %v11398_v21 = vmul.f32 0.015625, %v14834_v32  ;;  %v11401_v6 = vmul.f32 0.015625, %v14836_v27  ;;  %v14837_v0 = vld [vmem:[#allocation327_spill] sm:$0xff]  ;;  %v14839_v53 = vld [vmem:[#allocation328_spill] sm:$0xff]  ;;  %14841 = vst [vmem:[#allocation418_spill] sm:$0xff] %v11409_v7 }
 0x6eb   :  { %v11404_v3 = vmul.f32 0.015625, %v14837_v0  ;;  %v11407_v54 = vmul.f32 0.015625, %v14839_v53  ;;  %14842 = vst [vmem:[#allocation423_spill] sm:$0xff] %v11411_v23  ;;  %v14843_v26 = vld [vmem:[#allocation329_spill] sm:$0xff]  ;;  %v14845_v11 = vld [vmem:[#allocation330_spill] sm:$0xff]  ;;  %v14847_v24 = vld [vmem:[#allocation331_spill] sm:$0xff]  ;;  %4627 = vperm.xlu0 %7161, %v3256_v37  }
 0x6ec   :  { %14835 = vst [vmem:[#allocation421_spill] sm:$0xff] %v11398_v21  ;;  %v11414_v12 = vmul.f32 0.015625, %v14843_v26  ;;  %v11417_v32 = vmul.f32 0.015625, %v14845_v11  ;;  %v11420_v27 = vmul.f32 0.015625, %v14847_v24  ;;  %v14849_v21 = vld [vmem:[#allocation332_spill] sm:$0xff]  ;;  %v14851_v53 = vld [vmem:[#allocation333_spill] sm:$0xff] }
 0x6ed   :  { %14838 = vst [vmem:[#allocation225_spill] sm:$0xff] %v11404_v3  ;;  %14840 = vst [vmem:[#allocation226_spill] sm:$0xff] %v11407_v54  ;;  %v11423_v0 = vmul.f32 0.015625, %v14849_v21  ;;  %v11426_v3 = vmul.f32 0.015625, %v14851_v53  ;;  %v14853_v62 = vld [vmem:[#allocation334_spill] sm:$0xff]  ;;  %v14855_v23 = vld [vmem:[#allocation335_spill] sm:$0xff] }
 0x6ee   :  { %14844 = vst [vmem:[#allocation227_spill] sm:$0xff] %v11414_v12  ;;  %14846 = vst [vmem:[#allocation228_spill] sm:$0xff] %v11417_v32  ;;  %v11429_v7 = vmul.f32 0.015625, %v14853_v62  ;;  %v11432_v54 = vmul.f32 0.015625, %v14855_v23  ;;  %v14857_v26 = vld [vmem:[#allocation472_spill] sm:$0xff]  ;;  %v14859_v24 = vld [vmem:[#allocation337_spill] sm:$0xff] }
 0x6ef   :  { %14848 = vst [vmem:[#allocation420_spill] sm:$0xff] %v11420_v27  ;;  %14850 = vst [vmem:[#allocation425_spill] sm:$0xff] %v11423_v0  ;;  %v3255_v11 = vmul.f32 %v14857_v26, %v11250_v36  ;;  %v14858_v12 = vld [vmem:[#allocation336_spill] sm:$0xff]  ;;  %v11440_v27 = vmul.f32 0.015625, %v14859_v24  ;;  %v14861_v21 = vld [vmem:[#allocation338_spill] sm:$0xff]  ;;  %v11459_v24 = vpop.permute.xlu1 %4438 }
 0x6f0   :  { %14852 = vst [vmem:[#allocation229_spill] sm:$0xff] %v11426_v3  ;;  %14854 = vst [vmem:[#allocation230_spill] sm:$0xff] %v11429_v7  ;;  %v11437_v32 = vmul.f32 0.015625, %v14858_v12  ;;  %v11443_v37 = vmul.f32 0.015625, %v14861_v21  ;;  %v14863_v53 = vld [vmem:[#allocation477_spill] sm:$0xff]  ;;  %v14864_v62 = vld [vmem:[#allocation339_spill] sm:$0xff]  ;;  %v11461_v21 = vpop.permute.xlu0 %4447 }
 0x6f1   :  { %14856 = vst [vmem:[#allocation422_spill] sm:$0xff] %v11432_v54  ;;  %14860 = vst [vmem:[#allocation427_spill] sm:$0xff] %v11440_v27  ;;  %v3258_v3 = vmul.f32 %v14863_v53, %v11254_v28  ;;  %v11448_v7 = vmul.f32 0.015625, %v14864_v62  ;;  %v14866_v23 = vld [vmem:[#allocation340_spill] sm:$0xff]  ;;  %v14867_v0 = vld [vmem:[#allocation341_spill] sm:$0xff]  ;;  %4624 = vperm.xlu1 %7162, %v3255_v11  }
 0x6f2   :  { %14862 = vst [vmem:[#allocation231_spill] sm:$0xff] %v11443_v37  ;;  %v11451_v54 = vmul.f32 0.015625, %v14866_v23  ;;  %v11454_v36 = vmul.f32 0.015625, %v14867_v0  ;;  %v14869_v12 = vld [vmem:[#allocation342_spill] sm:$0xff]  ;;  %14871 = vst [vmem:[#allocation233_spill] sm:$0xff] %v11459_v24  ;;  %v14873_v27 = vld [vmem:[#allocation343_spill] sm:$0xff] }
 0x6f3   :  { %14865 = vst [vmem:[#allocation232_spill] sm:$0xff] %v11448_v7  ;;  %v11457_v26 = vmul.f32 0.015625, %v14869_v12  ;;  %14872 = vst [vmem:[#allocation234_spill] sm:$0xff] %v11461_v21  ;;  %v11464_v37 = vmul.f32 0.015625, %v14873_v27  ;;  %v14875_v28 = vld [vmem:[#allocation344_spill] sm:$0xff]  ;;  %v14877_v62 = vld [vmem:[#allocation345_spill] sm:$0xff]  ;;  %4633 = vperm.xlu0 %7161, %v3258_v3  }
 0x6f4   :  { %14868 = vst [vmem:[#allocation424_spill] sm:$0xff] %v11454_v36  ;;  %v11467_v53 = vmul.f32 0.015625, %v14875_v28  ;;  %v11470_v23 = vmul.f32 0.015625, %v14877_v62  ;;  %v14879_v7 = vld [vmem:[#allocation346_spill] sm:$0xff]  ;;  %v14881_v12 = vld [vmem:[#allocation347_spill] sm:$0xff]  ;;  %v14883_v11 = vld [vmem:[#allocation348_spill] sm:$0xff] }
 0x6f5   :  { %14870 = vst [vmem:[#allocation429_spill] sm:$0xff] %v11457_v26  ;;  %14874 = vst [vmem:[#allocation426_spill] sm:$0xff] %v11464_v37  ;;  %v11473_v0 = vmul.f32 0.015625, %v14879_v7  ;;  %v11476_v36 = vmul.f32 0.015625, %v14881_v12  ;;  %v11479_v24 = vmul.f32 0.015625, %v14883_v11  ;;  %v14885_v21 = vld [vmem:[#allocation349_spill] sm:$0xff] }
 0x6f6   :  { %14876 = vst [vmem:[#allocation431_spill] sm:$0xff] %v11467_v53  ;;  %14878 = vst [vmem:[#allocation235_spill] sm:$0xff] %v11470_v23  ;;  %v11482_v26 = vmul.f32 0.015625, %v14885_v21  ;;  %v14887_v27 = vld [vmem:[#allocation474_spill] sm:$0xff]  ;;  %v14889_v62 = vld [vmem:[#allocation351_spill] sm:$0xff] }
 0x6f7   :  { %14880 = vst [vmem:[#allocation236_spill] sm:$0xff] %v11473_v0  ;;  %14882 = vst [vmem:[#allocation428_spill] sm:$0xff] %v11476_v36  ;;  %v3257_v28 = vmul.f32 %v14887_v27, %v11257_v16  ;;  %v14888_v37 = vld [vmem:[#allocation350_spill] sm:$0xff]  ;;  %v11490_v23 = vmul.f32 0.015625, %v14889_v62  ;;  %v14891_v7 = vld [vmem:[#allocation352_spill] sm:$0xff]  ;;  %v11509_v62 = vpop.permute.xlu1 %4444 }
 0x6f8   :  { %14884 = vst [vmem:[#allocation433_spill] sm:$0xff] %v11479_v24  ;;  %14886 = vst [vmem:[#allocation237_spill] sm:$0xff] %v11482_v26  ;;  %v11487_v53 = vmul.f32 0.015625, %v14888_v37  ;;  %v11493_v3 = vmul.f32 0.015625, %v14891_v7  ;;  %v14893_v12 = vld [vmem:[#allocation479_spill] sm:$0xff]  ;;  %v14894_v11 = vld [vmem:[#allocation353_spill] sm:$0xff]  ;;  %v11511_v7 = vpop.permute.xlu0 %4453 }
 0x6f9   :  { %14890 = vst [vmem:[#allocation238_spill] sm:$0xff] %v11490_v23  ;;  %v3260_v36 = vmul.f32 %v14893_v12, %v11260_v52  ;;  %v11498_v24 = vmul.f32 0.015625, %v14894_v11  ;;  %v14896_v21 = vld [vmem:[#allocation354_spill] sm:$0xff]  ;;  %v14897_v0 = vld [vmem:[#allocation355_spill] sm:$0xff]  ;;  %v14899_v37 = vld [vmem:[#allocation356_spill] sm:$0xff]  ;;  %4630 = vperm.xlu1 %7162, %v3257_v28  }
 0x6fa   :  { %14892 = vst [vmem:[#allocation435_spill] sm:$0xff] %v11493_v3  ;;  %v11501_v26 = vmul.f32 0.015625, %v14896_v21  ;;  %v11504_v16 = vmul.f32 0.015625, %v14897_v0  ;;  %v11507_v27 = vmul.f32 0.015625, %v14899_v37  ;;  %14901 = vst [vmem:[#allocation437_spill] sm:$0xff] %v11509_v62  ;;  %v14903_v23 = vld [vmem:[#allocation357_spill] sm:$0xff] }
 0x6fb   :  { %14895 = vst [vmem:[#allocation239_spill] sm:$0xff] %v11498_v24  ;;  %14902 = vst [vmem:[#allocation241_spill] sm:$0xff] %v11511_v7  ;;  %v11514_v3 = vmul.f32 0.015625, %v14903_v23  ;;  %v14905_v52 = vld [vmem:[#allocation358_spill] sm:$0xff]  ;;  %v14906_v11 = vld [vmem:[#allocation359_spill] sm:$0xff]  ;;  %4639 = vperm.xlu0 %7161, %v3260_v36  }
 0x6fc   :  { %14898 = vst [vmem:[#allocation240_spill] sm:$0xff] %v11504_v16  ;;  %14900 = vst [vmem:[#allocation432_spill] sm:$0xff] %v11507_v27  ;;  %v11517_v12 = vmul.f32 0.015625, %v14905_v52  ;;  %v11520_v21 = vmul.f32 0.015625, %v14906_v11  ;;  %v14908_v24 = vld [vmem:[#allocation360_spill] sm:$0xff]  ;;  %v14910_v37 = vld [vmem:[#allocation361_spill] sm:$0xff] }
 0x6fd   :  { %14904 = vst [vmem:[#allocation242_spill] sm:$0xff] %v11514_v3  ;;  %v11523_v0 = vmul.f32 0.015625, %v14908_v24  ;;  %v11526_v16 = vmul.f32 0.015625, %v14910_v37  ;;  %v14912_v28 = vld [vmem:[#allocation362_spill] sm:$0xff]  ;;  %v14914_v7 = vld [vmem:[#allocation363_spill] sm:$0xff]  ;;  %v14916_v23 = vld [vmem:[#allocation476_spill] sm:$0xff]  ;;  %v14920_v37 = vlaneseq }
 0x6fe   :  { %14907 = vst [vmem:[#allocation434_spill] sm:$0xff] %v11520_v21  ;;  %v11529_v62 = vmul.f32 0.015625, %v14912_v28  ;;  %v11532_v27 = vmul.f32 0.015625, %v14914_v7  ;;  %v3259_v52 = vmul.f32 %v14916_v23, %v11263_v25  ;;  %v14917_v3 = vld [vmem:[#allocation478_spill] sm:$0xff]  ;;  %v14918_v21 = vld [vmem:[#allocation480_spill] sm:$0xff]  ;;  %v14919_v36 = vld [vmem:[#allocation481_spill] sm:$0xff] }
 0x6ff   :  { %14909 = vst [vmem:[#allocation439_spill] sm:$0xff] %v11523_v0  ;;  %14911 = vst [vmem:[#allocation243_spill] sm:$0xff] %v11526_v16  ;;  %v3261_v11 = vmul.f32 %v14917_v3, %v11273_v61  ;;  %v3263_v24 = vmul.f32 %v14918_v21, %v11279_v29  ;;  %v3262_v0 = vmul.f32 %v14919_v36, %v11270_v13  ;;  %v4876_v16 = vand.u32 127, %v14920_v37  ;;  %v14921_v28 = vld [vmem:[#allocation482_spill] sm:$0xff]  ;;  %v14922_v7 = vld [vmem:[#allocation483_spill] sm:$0xff]  ;;  %v11555_v29 = vpop.permute.xlu1 %4450  ;;  %v11557_v13 = vpop.permute.xlu0 %4459 }
 0x700   :  { %14913 = vst [vmem:[#allocation244_spill] sm:$0xff] %v11529_v62  ;;  %14915 = vst [vmem:[#allocation436_spill] sm:$0xff] %v11532_v27  ;;  %v11545_v62 = vmul.f32 %v14921_v28, %v11285_v40  ;;  %v3264_v27 = vmul.f32 %v14922_v7, %v11276_v19  ;;  %v14923_v25 = vld [vmem:[#allocation484_spill] sm:$0xff]  ;;  %v14924_v61 = vld [vmem:[#allocation485_spill] sm:$0xff]  ;;  %4636 = vperm.xlu1 %7162, %v3259_v52   ;;  %v11561_v21 = vmul.f32 %v14295_v9, %v11298_v39 }
 0x701   :  { %v11551_v23 = vmul.f32 %v14923_v25, %v11292_v45  ;;  %v3266_v3 = vmul.f32 %v14924_v61, %v11282_v30  ;;  %14925 = vst [vmem:[#allocation441_spill] sm:$0xff] %v11555_v29  ;;  %14926 = vst [vmem:[#allocation245_spill] sm:$0xff] %v11557_v13  ;;  %v14927_v40 = vld [vmem:[#allocation487_spill] sm:$0xff]  ;;  %v4881_v19 = vadd.s32 4294967288, %v4876_v16  ;;  %v4895_v37 = vadd.s32 4294967272, %v4876_v16  ;;  %4645 = vperm.xlu0 %7161, %v3262_v0   ;;  %v14928_v30 = vld [vmem:[#allocation489_spill] sm:$0xff] }
 0x702   :  { %v11565_v36 = vmul.f32 %v14927_v40, %v11288_v51  ;;  %v11569_v45 = vmul.f32 %v14301_v18, %v11305_v22  ;;  %v11573_v52 = vmul.f32 %v14928_v30, %v11295_v49  ;;  %v4888_v28 = vadd.s32 4294967280, %v4876_v16  ;;  %v14929_v51 = vld [vmem:[#allocation491_spill] sm:$0xff]  ;;  %v14930_v22 = vld [vmem:[#allocation296_spill] sm:$0xff]  ;;  %v14931_v49 = vld [vmem:[#allocation493_spill] sm:$0xff] }
 0x703   :  { %v4909_v7 = vadd.s32 4294967256, %v4876_v16  ;;  %v11577_v39 = vmul.f32 %v14307_v60, %v11311_v41  ;;  %v11581_v9 = vmul.f32 %v14929_v51, %v11302_v10  ;;  %v11585_v0 = vmul.f32 %v14312_v57, %v11321_v34  ;;  %v11598_v10 = vpop.permute.xlu1 %4456  ;;  %v11600_v40 = vpop.permute.xlu0 %4465  ;;  %v14934_v57 = vld [vmem:[#allocation495_spill] sm:$0xff]  ;;  %v14951_v13 = vld [vmem:[#allocation501_spill] sm:$0xff]  ;;  %v14959_v29 = vld [vmem:[#allocation504_spill] sm:$0xff] }
 0x704   :  { %v11588_v18 = vsub.s32 %v4876_v16, %v14930_v22  ;;  %v11592_v25 = vmul.f32 %v14931_v49, %v11308_v4  ;;  %v11596_v61 = vmul.f32 %v14317_v63, %v11327_v17  ;;  %v4902_v60 = vadd.s32 4294967264, %v4876_v16  ;;  %4642 = vperm.xlu1 %7162, %v3261_v11   ;;  %14932 = vst [vmem:[#allocation246_spill] sm:$0xff] %v11598_v10 }
 0x705   :  { %v4923_v41 = vadd.s32 4294967240, %v4876_v16  ;;  %14933 = vst [vmem:[#allocation438_spill] sm:$0xff] %v11600_v40  ;;  %v11604_v34 = vmul.f32 %v14934_v57, %v11318_v8  ;;  %v11608_v30 = vmul.f32 %v9837_v58, %v11333_v31  ;;  %v11611_v4 = vsub.s32 %v4881_v19, %v14930_v22  ;;  %4651 = vperm.xlu0 %7161, %v3264_v27  }
 0x706   :  { %v11614_v63 = vsub.s32 %v4895_v37, %v14930_v22  ;;  %v11617_v17 = vsub.s32 %v4888_v28, %v14930_v22  ;;  %v11620_v11 = vsub.s32 %v4909_v7, %v14930_v22  ;;  %v4916_v8 = vadd.s32 4294967248, %v4876_v16 }
 0x707   :  { %v4937_v51 = vadd.s32 4294967224, %v4876_v16  ;;  %v11624_v58 = vmul.f32 %v9843_v15, %v11324_v43  ;;  %v11628_v31 = vmul.f32 %v9845_v2, %v11340_v50  ;;  %v4930_v19 = vadd.s32 4294967232, %v4876_v16  ;;  %v11636_v57 = vpop.permute.xlu1 %4462  ;;  %v11638_v15 = vpop.permute.xlu0 %4471 }
 0x708   :  { %v4951_v27 = vadd.s32 4294967208, %v4876_v16  ;;  %v11631_v37 = vsub.s32 %v4902_v60, %v14930_v22  ;;  %v11634_v28 = vsub.s32 %v4923_v41, %v14930_v22  ;;  %v4944_v7 = vadd.s32 4294967216, %v4876_v16  ;;  %4648 = vperm.xlu1 %7162, %v3263_v24   ;;  %14935 = vst [vmem:[#allocation443_spill] sm:$0xff] %v11636_v57  ;;  %14936 = vst [vmem:[#allocation247_spill] sm:$0xff] %v11638_v15 }
 0x709   :  { %v4965_v49 = vadd.s32 4294967192, %v4876_v16  ;;  %v11642_v2 = vmul.f32 %v9851_v35, %v11330_v33  ;;  %v11646_v50 = vmul.f32 %v9853_v47, %v11346_v44  ;;  %v4958_v43 = vadd.s32 4294967200, %v4876_v16  ;;  %4657 = vperm.xlu0 %7161, %v3266_v3  }
 0x70a   :  { %v4979_v60 = vadd.s32 4294967176, %v4876_v16  ;;  %v11650_v41 = vmul.f32 %v9859_v42, %v11336_v56  ;;  %v11653_v24 = vsub.s32 %v4916_v8, %v14930_v22  ;;  %v11656_v15 = vsub.s32 %v4937_v51, %v14930_v22  ;;  %v14940_v8 = vld [vmem:[#allocation221_spill] sm:$0xff] }
 0x70b   :  { %v4972_v35 = vadd.s32 4294967184, %v4876_v16  ;;  %v11660_v33 = vmul.f32 %v9861_v55, %v11353_v1  ;;  %v11664_v47 = vmul.f32 %v9867_v59, %v11343_v14  ;;  %v11667_v42 = vsub.s32 %v4930_v19, %v14930_v22  ;;  %v14937_v16 = vld [vmem:[#allocation496_spill] sm:$0xff]  ;;  %v11687_v1 = vpop.permute.xlu1 %4468  ;;  %v11689_v14 = vpop.permute.xlu0 %4477  ;;  %v14941_v51 = vld [vmem:[#allocation497_spill] sm:$0xff] }
 0x70c   :  { %v11670_v44 = vsub.s32 %v4951_v27, %v14930_v22  ;;  %v11674_v56 = vmul.f32 %v9869_v20, %v11359_v48  ;;  %v11678_v3 = vmul.f32 %v14937_v16, %v11350_v38  ;;  %v11681_v55 = vsub.s32 %v4944_v7, %v14930_v22  ;;  %4654 = vperm.xlu1 %7162, %v11545_v62   ;;  %v14942_v48 = vld [vmem:[#allocation41_spill] sm:$0xff]  ;;  %v14943_v62 = vld [vmem:[#allocation219_spill] sm:$0xff]  ;;  %v14944_v7 = vld [vmem:[#allocation498_spill] sm:$0xff] }
 0x70d   :  { %v11684_v59 = vsub.s32 %v4965_v49, %v14930_v22  ;;  %14938 = vst [vmem:[#allocation248_spill] sm:$0xff] %v11687_v1  ;;  %14939 = vst [vmem:[#allocation440_spill] sm:$0xff] %v11689_v14  ;;  %v11693_v20 = vmul.f32 %v14941_v51, %v14940_v8  ;;  %v4885_v38 = vrot.slane %v14942_v48, %v11611_v4  ;;  %4663 = vperm.xlu0 %7161, %v11565_v36   ;;  %v14945_v16 = vld [vmem:[#allocation414_spill] sm:$0xff]  ;;  %v14946_v14 = vld [vmem:[#allocation499_spill] sm:$0xff] }
 0x70e   :  { %v11698_v19 = vsub.s32 %v4958_v43, %v14930_v22  ;;  %v11701_v27 = vsub.s32 %v4979_v60, %v14930_v22  ;;  %v11706_v49 = vmul.f32 %v14944_v7, %v14943_v62  ;;  %v11710_v40 = vmul.f32 %v14946_v14, %v14945_v16  ;;  %v14947_v8 = vld [vmem:[#allocation43_spill] sm:$0xff]  ;;  %v14948_v48 = vld [vmem:[#allocation417_spill] sm:$0xff]  ;;  %v14949_v60 = vld [vmem:[#allocation500_spill] sm:$0xff] }
 0x70f   :  { %v4892_v51 = vrot.slane %v14947_v8, %v11617_v17  ;;  %v11715_v43 = vsub.s32 %v4972_v35, %v14930_v22  ;;  %v11719_v1 = vmul.f32 %v14949_v60, %v14948_v48  ;;  %v14950_v36 = vld [vmem:[#allocation223_spill] sm:$0xff]  ;;  %v14953_v62 = vld [vmem:[#allocation222_spill] sm:$0xff]  ;;  %v14955_v14 = vld [vmem:[#allocation40_spill] sm:$0xff] }
 0x710   :  { %v11723_v57 = vmul.f32 %v14951_v13, %v14950_v36  ;;  %v14954_v7 = vld [vmem:[#allocation502_spill] sm:$0xff]  ;;  %v4880_v16 = vrot.slane %v14955_v14, %v11588_v18  ;;  %v14956_v8 = vld [vmem:[#allocation503_spill] sm:$0xff]  ;;  %v14960_v60 = vld [vmem:[#allocation505_spill] sm:$0xff]  ;;  %4660 = vperm.xlu1 %7162, %v11551_v23   ;;  %v11750_v14 = vpop.permute.xlu0 %4483 }
 0x711   :  { %v11727_v10 = vmul.f32 %v14954_v7, %v14953_v62  ;;  %v11733_v22 = vmul.f32 %v14956_v8, %v11388_v46  ;;  %v14958_v35 = vld [vmem:[#allocation419_spill] sm:$0xff]  ;;  %v11741_v13 = vmul.f32 %v14960_v60, %v11394_v5  ;;  %v14962_v36 = vld [vmem:[#allocation224_spill] sm:$0xff]  ;;  %v11748_v7 = vpop.permute.xlu1 %4474  ;;  %14966 = vst [vmem:[#allocation251_spill] sm:$0xff] %v11750_v14  ;;  %v14972_v5 = vld [vmem:[#allocation226_spill] sm:$0xff]  ;;  %4669 = vperm.xlu0 %7161, %v11573_v52  }
 0x712   :  { %14952 = vst [vmem:[#allocation445_spill] sm:$0xff] %v11723_v57  ;;  %v11737_v48 = vmul.f32 %v14959_v29, %v14958_v35  ;;  %v14963_v57 = vld [vmem:[#allocation506_spill] sm:$0xff]  ;;  %14965 = vst [vmem:[#allocation447_spill] sm:$0xff] %v11748_v7  ;;  %v14967_v46 = vld [vmem:[#allocation507_spill] sm:$0xff] }
 0x713   :  { %14957 = vst [vmem:[#allocation249_spill] sm:$0xff] %v11733_v22  ;;  %14961 = vst [vmem:[#allocation250_spill] sm:$0xff] %v11741_v13  ;;  %v11745_v62 = vmul.f32 %v14963_v57, %v14962_v36  ;;  %v11754_v8 = vmul.f32 %v14967_v46, %v11401_v6  ;;  %v14969_v29 = vld [vmem:[#allocation416_spill] sm:$0xff]  ;;  %v14973_v60 = vld [vmem:[#allocation509_spill] sm:$0xff]  ;;  %v4887_v57 = vsel %vm4886_vm3, %v4885_v38, %v4880_v16 }
 0x714   :  { %v14970_v35 = vld [vmem:[#allocation508_spill] sm:$0xff]  ;;  %v11762_v13 = vmul.f32 %v14973_v60, %v14972_v5  ;;  %v14975_v23 = vld [vmem:[#allocation421_spill] sm:$0xff]  ;;  %v14976_v36 = vld [vmem:[#allocation3_spill] sm:$0xff]  ;;  %v4894_v14 = vsel %vm13490_vm4, %v4892_v51, %v4887_v57  ;;  %4666 = vperm.xlu1 %7162, %v11561_v21  }
 0x715   :  { %14964 = vst [vmem:[#allocation442_spill] sm:$0xff] %v11745_v62  ;;  %14968 = vst [vmem:[#allocation252_spill] sm:$0xff] %v11754_v8  ;;  %v11758_v22 = vmul.f32 %v14970_v35, %v14969_v29  ;;  %v11768_v7 = vmul.f32 %v14976_v36, %v14975_v23  ;;  %v14978_v6 = vld [vmem:[#allocation45_spill] sm:$0xff]  ;;  %v14979_v29 = vld [vmem:[#allocation56_spill] sm:$0xff]  ;;  %4675 = vperm.xlu0 %7161, %v11581_v9  }
 0x716   :  { %14974 = vst [vmem:[#allocation449_spill] sm:$0xff] %v11762_v13  ;;  %v4906_v46 = vrot.slane %v14978_v6, %v11631_v37  ;;  %v4989_v35 = vrot.slane %v14979_v29, %v11588_v18  ;;  %v14980_v8 = vld [vmem:[#allocation228_spill] sm:$0xff]  ;;  %v14981_v5 = vld [vmem:[#allocation510_spill] sm:$0xff]  ;;  %v14983_v38 = vld [vmem:[#allocation225_spill] sm:$0xff] }
 0x717   :  { %14971 = vst [vmem:[#allocation444_spill] sm:$0xff] %v11758_v22  ;;  %14977 = vst [vmem:[#allocation253_spill] sm:$0xff] %v11768_v7  ;;  %v11777_v60 = vmul.f32 %v14981_v5, %v14980_v8  ;;  %v14984_v16 = vld [vmem:[#allocation4_spill] sm:$0xff]  ;;  %v14986_v23 = vld [vmem:[#allocation42_spill] sm:$0xff] }
 0x718   :  { %v11781_v52 = vmul.f32 %v14984_v16, %v14983_v38  ;;  %v4899_v36 = vrot.slane %v14986_v23, %v11614_v63  ;;  %v14987_v51 = vld [vmem:[#allocation58_spill] sm:$0xff]  ;;  %v14988_v6 = vld [vmem:[#allocation425_spill] sm:$0xff]  ;;  %v14991_v29 = vld [vmem:[#allocation227_spill] sm:$0xff]  ;;  %v11802_v23 = vpop.permute.xlu1 %4480  ;;  %4672 = vperm.xlu1 %7162, %v11569_v45  }
 0x719   :  { %14982 = vst [vmem:[#allocation254_spill] sm:$0xff] %v11777_v60  ;;  %v4998_v57 = vrot.slane %v14987_v51, %v11617_v17  ;;  %v14989_v13 = vld [vmem:[#allocation5_spill] sm:$0xff]  ;;  %v14992_v22 = vld [vmem:[#allocation6_spill] sm:$0xff]  ;;  %v14995_v5 = vld [vmem:[#allocation7_spill] sm:$0xff]  ;;  %v11804_v51 = vpop.permute.xlu0 %4489  ;;  %4681 = vperm.xlu0 %7161, %v11592_v25  }
 0x71a   :  { %14985 = vst [vmem:[#allocation446_spill] sm:$0xff] %v11781_v52  ;;  %v11789_v7 = vmul.f32 %v14989_v13, %v14988_v6  ;;  %v11793_v62 = vmul.f32 %v14992_v22, %v14991_v29  ;;  %v14994_v8 = vld [vmem:[#allocation230_spill] sm:$0xff]  ;;  %v14996_v38 = vld [vmem:[#allocation55_spill] sm:$0xff]  ;;  %14997 = vst [vmem:[#allocation256_spill] sm:$0xff] %v11802_v23 }
 0x71b   :  { %v11797_v60 = vmul.f32 %v14995_v5, %v14994_v8  ;;  %v4993_v16 = vrot.slane %v14996_v38, %v11611_v4  ;;  %14998 = vst [vmem:[#allocation448_spill] sm:$0xff] %v11804_v51  ;;  %v14999_v52 = vld [vmem:[#allocation420_spill] sm:$0xff]  ;;  %v15002_v22 = vld [vmem:[#allocation9_spill] sm:$0xff]  ;;  %v15004_v8 = vld [vmem:[#allocation10_spill] sm:$0xff]  ;;  %v4901_v38 = vsel %vm13491_vm5, %v4899_v36, %v4894_v14 }
 0x71c   :  { %14990 = vst [vmem:[#allocation451_spill] sm:$0xff] %v11789_v7  ;;  %14993 = vst [vmem:[#allocation255_spill] sm:$0xff] %v11793_v62  ;;  %v15000_v13 = vld [vmem:[#allocation8_spill] sm:$0xff]  ;;  %v11812_v29 = vmul.f32 %v15002_v22, %v11437_v32  ;;  %v15003_v7 = vld [vmem:[#allocation229_spill] sm:$0xff]  ;;  %v4908_v51 = vsel %vm4907_vm6, %v4906_v46, %v4901_v38  ;;  %4678 = vperm.xlu1 %7162, %v11577_v39  }
 0x71d   :  { %v11808_v6 = vmul.f32 %v15000_v13, %v14999_v52  ;;  %v11816_v5 = vmul.f32 %v15004_v8, %v15003_v7  ;;  %v15005_v21 = vld [vmem:[#allocation231_spill] sm:$0xff]  ;;  %v15008_v52 = vld [vmem:[#allocation430_spill] sm:$0xff]  ;;  %v4994_v32 = vsel %vm4886_vm3, %v4993_v16, %v4989_v35  ;;  %v15011_v14 = vld [vmem:[#allocation44_spill] sm:$0xff]  ;;  %4687 = vperm.xlu0 %7161, %v11604_v34  }
 0x71e   :  { %v15006_v23 = vld [vmem:[#allocation11_spill] sm:$0xff]  ;;  %v4920_v13 = vrot.slane %v15008_v52, %v11653_v24  ;;  %v15009_v22 = vld [vmem:[#allocation422_spill] sm:$0xff]  ;;  %v4913_v36 = vrot.slane %v15011_v14, %v11620_v11  ;;  %v4999_v9 = vsel %vm13490_vm4, %v4998_v57, %v4994_v32  ;;  %v15013_v46 = vld [vmem:[#allocation13_spill] sm:$0xff]  ;;  %v11852_v57 = vpop.permute.xlu1 %4486  ;;  %v11854_v32 = vpop.permute.xlu0 %4495 }
 0x71f   :  { %15001 = vst [vmem:[#allocation453_spill] sm:$0xff] %v11808_v6  ;;  %v11822_v62 = vmul.f32 %v15006_v23, %v15005_v21  ;;  %v15010_v6 = vld [vmem:[#allocation12_spill] sm:$0xff]  ;;  %v11839_v38 = vmul.f32 %v15013_v46, %v11451_v54  ;;  %v15015_v21 = vld [vmem:[#allocation427_spill] sm:$0xff]  ;;  %v15016_v52 = vld [vmem:[#allocation14_spill] sm:$0xff] }
 0x720   :  { %v11830_v7 = vmul.f32 %v15010_v6, %v15009_v22  ;;  %v15012_v23 = vld [vmem:[#allocation60_spill] sm:$0xff]  ;;  %v11843_v35 = vmul.f32 %v15016_v52, %v15015_v21  ;;  %v15018_v16 = vld [vmem:[#allocation429_spill] sm:$0xff]  ;;  %v15019_v6 = vld [vmem:[#allocation15_spill] sm:$0xff]  ;;  %15022 = vst [vmem:[#allocation259_spill] sm:$0xff] %v11852_v57  ;;  %4684 = vperm.xlu1 %7162, %v11585_v0  }
 0x721   :  { %15007 = vst [vmem:[#allocation257_spill] sm:$0xff] %v11822_v62  ;;  %v5008_v8 = vrot.slane %v15012_v23, %v11631_v37  ;;  %15014 = vst [vmem:[#allocation258_spill] sm:$0xff] %v11839_v38  ;;  %v11847_v22 = vmul.f32 %v15019_v6, %v15018_v16  ;;  %v15021_v14 = vld [vmem:[#allocation57_spill] sm:$0xff]  ;;  %v15024_v23 = vld [vmem:[#allocation232_spill] sm:$0xff]  ;;  %4693 = vperm.xlu0 %7161, %v11624_v58  }
 0x722   :  { %15017 = vst [vmem:[#allocation450_spill] sm:$0xff] %v11843_v35  ;;  %v5003_v62 = vrot.slane %v15021_v14, %v11614_v63  ;;  %15023 = vst [vmem:[#allocation260_spill] sm:$0xff] %v11854_v32  ;;  %v15025_v54 = vld [vmem:[#allocation16_spill] sm:$0xff]  ;;  %v15027_v38 = vld [vmem:[#allocation431_spill] sm:$0xff]  ;;  %v4915_v14 = vsel %vm13489_vm7, %v4913_v36, %v4908_v51 }
 0x723   :  { %15020 = vst [vmem:[#allocation455_spill] sm:$0xff] %v11847_v22  ;;  %v11858_v46 = vmul.f32 %v15025_v54, %v15024_v23  ;;  %v15028_v21 = vld [vmem:[#allocation17_spill] sm:$0xff]  ;;  %v15030_v35 = vld [vmem:[#allocation424_spill] sm:$0xff]  ;;  %v15031_v16 = vld [vmem:[#allocation18_spill] sm:$0xff]  ;;  %v4922_v32 = vsel %vm4921_vm8, %v4920_v13, %v4915_v14 }
 0x724   :  { %v11862_v52 = vmul.f32 %v15028_v21, %v15027_v38  ;;  %v11866_v6 = vmul.f32 %v15031_v16, %v15030_v35  ;;  %v15033_v45 = vld [vmem:[#allocation236_spill] sm:$0xff]  ;;  %v15034_v57 = vld [vmem:[#allocation19_spill] sm:$0xff]  ;;  %v5004_v38 = vsel %vm13491_vm5, %v5003_v62, %v4999_v9  ;;  %v15037_v21 = vld [vmem:[#allocation426_spill] sm:$0xff]  ;;  %4690 = vperm.xlu1 %7162, %v11596_v61  }
 0x725   :  { %15026 = vst [vmem:[#allocation452_spill] sm:$0xff] %v11858_v46  ;;  %v11872_v22 = vmul.f32 %v15034_v57, %v15033_v45  ;;  %v15036_v23 = vld [vmem:[#allocation48_spill] sm:$0xff]  ;;  %v15040_v35 = vld [vmem:[#allocation46_spill] sm:$0xff]  ;;  %v5009_v25 = vsel %vm4907_vm6, %v5008_v8, %v5004_v38  ;;  %v15042_v16 = vld [vmem:[#allocation433_spill] sm:$0xff]  ;;  %v11902_v8 = vpop.permute.xlu1 %4492  ;;  %v11904_v38 = vpop.permute.xlu0 %4501  ;;  %4699 = vperm.xlu0 %7161, %v11642_v2  }
 0x726   :  { %15029 = vst [vmem:[#allocation457_spill] sm:$0xff] %v11862_v52  ;;  %15032 = vst [vmem:[#allocation261_spill] sm:$0xff] %v11866_v6  ;;  %v4934_v54 = vrot.slane %v15036_v23, %v11667_v42  ;;  %v15038_v52 = vld [vmem:[#allocation20_spill] sm:$0xff]  ;;  %v4927_v51 = vrot.slane %v15040_v35, %v11634_v28  ;;  %v15041_v36 = vld [vmem:[#allocation62_spill] sm:$0xff] }
 0x727   :  { %15035 = vst [vmem:[#allocation262_spill] sm:$0xff] %v11872_v22  ;;  %v11880_v46 = vmul.f32 %v15038_v52, %v15037_v21  ;;  %v5018_v57 = vrot.slane %v15041_v36, %v11653_v24  ;;  %v15043_v13 = vld [vmem:[#allocation21_spill] sm:$0xff]  ;;  %v15045_v45 = vld [vmem:[#allocation235_spill] sm:$0xff]  ;;  %v15046_v23 = vld [vmem:[#allocation22_spill] sm:$0xff] }
 0x728   :  { %v11889_v14 = vmul.f32 %v15043_v13, %v15042_v16  ;;  %v11893_v62 = vmul.f32 %v15046_v23, %v15045_v45  ;;  %v15048_v9 = vld [vmem:[#allocation23_spill] sm:$0xff]  ;;  %15050 = vst [vmem:[#allocation264_spill] sm:$0xff] %v11902_v8  ;;  %15051 = vst [vmem:[#allocation456_spill] sm:$0xff] %v11904_v38  ;;  %v15052_v36 = vld [vmem:[#allocation428_spill] sm:$0xff]  ;;  %4696 = vperm.xlu1 %7162, %v11608_v30  }
 0x729   :  { %15039 = vst [vmem:[#allocation454_spill] sm:$0xff] %v11880_v46  ;;  %v11897_v52 = vmul.f32 %v15048_v9, %v11487_v53  ;;  %v15049_v21 = vld [vmem:[#allocation59_spill] sm:$0xff]  ;;  %v15053_v16 = vld [vmem:[#allocation24_spill] sm:$0xff]  ;;  %v15056_v23 = vld [vmem:[#allocation25_spill] sm:$0xff]  ;;  %4705 = vperm.xlu0 %7161, %v11650_v41  }
 0x72a   :  { %15044 = vst [vmem:[#allocation459_spill] sm:$0xff] %v11889_v14  ;;  %15047 = vst [vmem:[#allocation263_spill] sm:$0xff] %v11893_v62  ;;  %v5013_v35 = vrot.slane %v15049_v21, %v11620_v11  ;;  %v11908_v13 = vmul.f32 %v15053_v16, %v15052_v36  ;;  %v15055_v45 = vld [vmem:[#allocation435_spill] sm:$0xff]  ;;  %v15057_v53 = vld [vmem:[#allocation237_spill] sm:$0xff]  ;;  %v4929_v21 = vsel %vm4928_vm9, %v4927_v51, %v4922_v32 }
 0x72b   :  { %v11912_v14 = vmul.f32 %v15056_v23, %v15055_v45  ;;  %v15058_v9 = vld [vmem:[#allocation26_spill] sm:$0xff]  ;;  %v15059_v39 = vld [vmem:[#allocation27_spill] sm:$0xff]  ;;  %v4936_v46 = vsel %vm4935_vm10, %v4934_v54, %v4929_v21  ;;  %v15063_v32 = vld [vmem:[#allocation64_spill] sm:$0xff] }
 0x72c   :  { %15054 = vst [vmem:[#allocation461_spill] sm:$0xff] %v11908_v13  ;;  %v11916_v62 = vmul.f32 %v15058_v9, %v15057_v53  ;;  %v11922_v22 = vmul.f32 %v15059_v39, %v11501_v26  ;;  %v15061_v36 = vld [vmem:[#allocation50_spill] sm:$0xff]  ;;  %v5014_v45 = vsel %vm13489_vm7, %v5013_v35, %v5009_v25  ;;  %v15062_v23 = vld [vmem:[#allocation47_spill] sm:$0xff]  ;;  %v5028_v34 = vrot.slane %v15063_v32, %v11667_v42  ;;  %v15064_v51 = vld [vmem:[#allocation72_spill] sm:$0xff]  ;;  %v11950_v32 = vpop.permute.xlu0 %4507 }
 0x72d   :  { %v4948_v16 = vrot.slane %v15061_v36, %v11681_v55  ;;  %v4941_v13 = vrot.slane %v15062_v23, %v11656_v15  ;;  %v5019_v53 = vsel %vm4921_vm8, %v5018_v57, %v5014_v45  ;;  %v5068_v26 = vrot.slane %v15064_v51, %v11588_v18  ;;  %v15065_v9 = vld [vmem:[#allocation238_spill] sm:$0xff]  ;;  %v15066_v39 = vld [vmem:[#allocation28_spill] sm:$0xff]  ;;  %v15068_v36 = vld [vmem:[#allocation29_spill] sm:$0xff]  ;;  %v11948_v23 = vpop.permute.xlu1 %4498  ;;  %15073 = vst [vmem:[#allocation463_spill] sm:$0xff] %v11950_v32 }
 0x72e   :  { %15060 = vst [vmem:[#allocation265_spill] sm:$0xff] %v11922_v22  ;;  %v11937_v54 = vmul.f32 %v15066_v39, %v15065_v9  ;;  %v15067_v21 = vld [vmem:[#allocation432_spill] sm:$0xff]  ;;  %v15070_v25 = vld [vmem:[#allocation61_spill] sm:$0xff]  ;;  %v15071_v57 = vld [vmem:[#allocation74_spill] sm:$0xff]  ;;  %4702 = vperm.xlu1 %7162, %v11628_v31   ;;  %4711 = vperm.xlu0 %7161, %v11664_v47  }
 0x72f   :  { %v11941_v6 = vmul.f32 %v15068_v36, %v15067_v21  ;;  %v5023_v35 = vrot.slane %v15070_v25, %v11634_v28  ;;  %v5077_v45 = vrot.slane %v15071_v57, %v11617_v17  ;;  %15072 = vst [vmem:[#allocation458_spill] sm:$0xff] %v11948_v23  ;;  %v15074_v51 = vld [vmem:[#allocation239_spill] sm:$0xff]  ;;  %v15075_v9 = vld [vmem:[#allocation30_spill] sm:$0xff]  ;;  %v4943_v38 = vsel %vm4942_vm11, %v4941_v13, %v4936_v46  ;;  %v15079_v0 = vld [vmem:[#allocation240_spill] sm:$0xff] }
 0x730   :  { %v11954_v39 = vmul.f32 %v15075_v9, %v15074_v51  ;;  %v15076_v21 = vld [vmem:[#allocation31_spill] sm:$0xff]  ;;  %v15080_v57 = vld [vmem:[#allocation32_spill] sm:$0xff]  ;;  %v15082_v8 = vld [vmem:[#allocation33_spill] sm:$0xff]  ;;  %v4950_v51 = vsel %vm4949_vm12, %v4948_v16, %v4943_v38 }
 0x731   :  { %15069 = vst [vmem:[#allocation266_spill] sm:$0xff] %v11941_v6  ;;  %v11958_v36 = vmul.f32 %v15076_v21, %v11517_v12  ;;  %v15078_v25 = vld [vmem:[#allocation71_spill] sm:$0xff]  ;;  %v11966_v23 = vmul.f32 %v15080_v57, %v15079_v0  ;;  %v5024_v12 = vsel %vm4928_vm9, %v5023_v35, %v5019_v53  ;;  %v15084_v9 = vld [vmem:[#allocation52_spill] sm:$0xff]  ;;  %v15085_v21 = vld [vmem:[#allocation66_spill] sm:$0xff]  ;;  %v11990_v35 = vpop.permute.xlu0 %4513 }
 0x732   :  { %v5072_v6 = vrot.slane %v15078_v25, %v11611_v4  ;;  %v15081_v32 = vld [vmem:[#allocation439_spill] sm:$0xff]  ;;  %v4962_v46 = vrot.slane %v15084_v9, %v11698_v19  ;;  %v5029_v13 = vsel %vm4935_vm10, %v5028_v34, %v5024_v12  ;;  %v5038_v58 = vrot.slane %v15085_v21, %v11681_v55  ;;  %v15086_v0 = vld [vmem:[#allocation49_spill] sm:$0xff]  ;;  %v15088_v16 = vld [vmem:[#allocation76_spill] sm:$0xff]  ;;  %v11988_v34 = vpop.permute.xlu1 %4504  ;;  %15089 = vst [vmem:[#allocation460_spill] sm:$0xff] %v11990_v35 }
 0x733   :  { %15077 = vst [vmem:[#allocation267_spill] sm:$0xff] %v11958_v36  ;;  %v11970_v22 = vmul.f32 %v15082_v8, %v15081_v32  ;;  %v4955_v57 = vrot.slane %v15086_v0, %v11670_v44  ;;  %v15087_v8 = vld [vmem:[#allocation63_spill] sm:$0xff]  ;;  %v5087_v53 = vrot.slane %v15088_v16, %v11631_v37  ;;  %v15090_v12 = vld [vmem:[#allocation242_spill] sm:$0xff]  ;;  %v15093_v9 = vld [vmem:[#allocation244_spill] sm:$0xff]  ;;  %4708 = vperm.xlu1 %7162, %v11646_v50  }
 0x734   :  { %v5073_v25 = vsel %vm4886_vm3, %v5072_v6, %v5068_v26  ;;  %v5033_v32 = vrot.slane %v15087_v8, %v11656_v15  ;;  %v15091_v6 = vld [vmem:[#allocation34_spill] sm:$0xff]  ;;  %v15094_v21 = vld [vmem:[#allocation35_spill] sm:$0xff]  ;;  %v15114_v30 = vld [vmem:[#allocation53_spill] sm:$0xff]  ;;  %4717 = vperm.xlu0 %7161, %v11678_v3  }
 0x735   :  { %15083 = vst [vmem:[#allocation268_spill] sm:$0xff] %v11970_v22  ;;  %v5078_v38 = vsel %vm13490_vm4, %v5077_v45, %v5073_v25  ;;  %v11994_v26 = vmul.f32 %v15091_v6, %v15090_v12  ;;  %v11998_v0 = vmul.f32 %v15094_v21, %v15093_v9  ;;  %v15096_v8 = vld [vmem:[#allocation434_spill] sm:$0xff]  ;;  %v15097_v22 = vld [vmem:[#allocation36_spill] sm:$0xff]  ;;  %v15099_v25 = vld [vmem:[#allocation73_spill] sm:$0xff] }
 0x736   :  { %v12002_v45 = vmul.f32 %v15097_v22, %v15096_v8  ;;  %v5082_v16 = vrot.slane %v15099_v25, %v11614_v63  ;;  %v15100_v61 = vld [vmem:[#allocation243_spill] sm:$0xff]  ;;  %v15101_v36 = vld [vmem:[#allocation38_spill] sm:$0xff]  ;;  %v5034_v9 = vsel %vm4942_vm11, %v5033_v32, %v5029_v13  ;;  %v15123_v31 = vld [vmem:[#allocation88_spill] sm:$0xff] }
 0x737   :  { %15092 = vst [vmem:[#allocation465_spill] sm:$0xff] %v11994_v26  ;;  %15095 = vst [vmem:[#allocation269_spill] sm:$0xff] %v11998_v0  ;;  %v12009_v35 = vmul.f32 %v15101_v36, %v15100_v61  ;;  %v15103_v12 = vld [vmem:[#allocation51_spill] sm:$0xff]  ;;  %v4957_v26 = vsel %vm4956_vm13, %v4955_v57, %v4950_v51  ;;  %v15104_v22 = vld [vmem:[#allocation54_spill] sm:$0xff]  ;;  %v5039_v25 = vsel %vm4949_vm12, %v5038_v58, %v5034_v9  ;;  %v12030_v57 = vpop.permute.xlu0 %4519  ;;  %4714 = vperm.xlu1 %7162, %v11660_v33  }
 0x738   :  { %15098 = vst [vmem:[#allocation270_spill] sm:$0xff] %v12002_v45  ;;  %v4969_v6 = vrot.slane %v15103_v12, %v11684_v59  ;;  %v4964_v21 = vsel %vm4963_vm14, %v4962_v46, %v4957_v26  ;;  %v4976_v8 = vrot.slane %v15104_v22, %v11715_v43  ;;  %v5083_v2 = vsel %vm13491_vm5, %v5082_v16, %v5078_v38  ;;  %v15105_v0 = vld [vmem:[#allocation68_spill] sm:$0xff]  ;;  %v15106_v12 = vld [vmem:[#allocation78_spill] sm:$0xff]  ;;  %v15107_v51 = vld [vmem:[#allocation87_spill] sm:$0xff]  ;;  %v12028_v46 = vpop.permute.xlu1 %4510 }
 0x739   :  { %15102 = vst [vmem:[#allocation462_spill] sm:$0xff] %v12009_v35  ;;  %v5048_v36 = vrot.slane %v15105_v0, %v11698_v19  ;;  %v5088_v61 = vsel %vm4907_vm6, %v5087_v53, %v5083_v2  ;;  %v5097_v35 = vrot.slane %v15106_v12, %v11653_v24  ;;  %v5147_v13 = vrot.slane %v15107_v51, %v11588_v18  ;;  %v15110_v58 = vld [vmem:[#allocation65_spill] sm:$0xff]  ;;  %v15111_v38 = vld [vmem:[#allocation75_spill] sm:$0xff]  ;;  %v15113_v16 = vld [vmem:[#allocation486_spill] sm:$0xff] }
 0x73a   :  { %15108 = vst [vmem:[#allocation467_spill] sm:$0xff] %v12028_v46  ;;  %15109 = vst [vmem:[#allocation271_spill] sm:$0xff] %v12030_v57  ;;  %v5043_v32 = vrot.slane %v15110_v58, %v11670_v44  ;;  %v5092_v26 = vrot.slane %v15111_v38, %v11620_v11  ;;  %v15112_v53 = vld [vmem:[#allocation89_spill] sm:$0xff]  ;;  %v5226_v9 = vrot.slane %v15113_v16, %v11588_v18  ;;  %v15115_v12 = vld [vmem:[#allocation470_spill] sm:$0xff]  ;;  %4723 = vperm.xlu0 %7161, %v11706_v49  }
 0x73b   :  { %v5156_v0 = vrot.slane %v15112_v53, %v11617_v17  ;;  %v4983_v22 = vrot.slane %v15114_v30, %v11701_v27  ;;  %v4971_v2 = vsel %vm4970_vm15, %v4969_v6, %v4964_v21  ;;  %v5151_v51 = vrot.slane %v15115_v12, %v11611_v4  ;;  %v15116_v58 = vld [vmem:[#allocation104_spill] sm:$0xff]  ;;  %v15117_v16 = vld [vmem:[#allocation102_spill] sm:$0xff]  ;;  %v15127_v47 = vld [vmem:[#allocation103_spill] sm:$0xff]  ;;  %4720 = vperm.xlu1 %7162, %v11674_v56  }
 0x73c   :  { %v5235_v45 = vrot.slane %v15116_v58, %v11617_v17  ;;  %v4978_v38 = vsel %vm4977_vm0, %v4976_v8, %v4971_v2  ;;  %v5044_v53 = vsel %vm4956_vm13, %v5043_v32, %v5039_v25  ;;  %v5093_v57 = vsel %vm13489_vm7, %v5092_v26, %v5088_v61  ;;  %v15118_v6 = vld [vmem:[#allocation80_spill] sm:$0xff]  ;;  %v12059_v58 = vpop.permute.xlu1 %4516  ;;  %v12061_v8 = vpop.permute.xlu0 %4525  ;;  %v15120_v25 = vld [vmem:[#allocation77_spill] sm:$0xff]  ;;  %v15148_v49 = vld [vmem:[#allocation118_spill] sm:$0xff] }
 0x73d   :  { %v5230_v41 = vrot.slane %v15117_v16, %v11611_v4  ;;  %v5049_v46 = vsel %vm4963_vm14, %v5048_v36, %v5044_v53  ;;  %v5098_v30 = vsel %vm4921_vm8, %v5097_v35, %v5093_v57  ;;  %v5107_v21 = vrot.slane %v15118_v6, %v11667_v42  ;;  %15119 = vst [vmem:[#allocation272_spill] sm:$0xff] %v12061_v8  ;;  %v15121_v36 = vld [vmem:[#allocation91_spill] sm:$0xff]  ;;  %v15124_v53 = vld [vmem:[#allocation105_spill] sm:$0xff]  ;;  %v15126_v6 = vld [vmem:[#allocation70_spill] sm:$0xff] }
 0x73e   :  { %v5152_v12 = vsel %vm4886_vm3, %v5151_v51, %v5147_v13  ;;  %v5102_v61 = vrot.slane %v15120_v25, %v11634_v28  ;;  %v5166_v26 = vrot.slane %v15121_v36, %v11631_v37  ;;  %v15122_v13 = vld [vmem:[#allocation67_spill] sm:$0xff]  ;;  %v5161_v2 = vrot.slane %v15123_v31, %v11614_v63  ;;  %v15138_v3 = vld [vmem:[#allocation116_spill] sm:$0xff]  ;;  %4729 = vperm.xlu0 %7161, %v11719_v1   ;;  %v15205_v8 = vld [vmem:[#allocation398_spill] sm:$0xff] }
 0x73f   :  { %v5157_v32 = vsel %vm13490_vm4, %v5156_v0, %v5152_v12  ;;  %v5231_v35 = vsel %vm4886_vm3, %v5230_v41, %v5226_v9  ;;  %v5053_v57 = vrot.slane %v15122_v13, %v11684_v59  ;;  %v5245_v16 = vrot.slane %v15124_v53, %v11631_v37  ;;  %v15128_v36 = vld [vmem:[#allocation79_spill] sm:$0xff]  ;;  %4726 = vperm.xlu1 %7162, %v11693_v20  }
 0x740   :  { %v5236_v51 = vsel %vm13490_vm4, %v5235_v45, %v5231_v35  ;;  %v12078_v0 = vsel %vm4984_vm1, %v4983_v22, %v4978_v38  ;;  %v5058_v12 = vrot.slane %v15126_v6, %v11715_v43  ;;  %v5103_v9 = vsel %vm4928_vm9, %v5102_v61, %v5098_v30  ;;  %v12091_v22 = vpop.permute.xlu1 %4522  ;;  %v12093_v38 = vpop.permute.xlu0 %4531  ;;  %v15131_v30 = vld [vmem:[#allocation82_spill] sm:$0xff]  ;;  %v15164_v20 = vld [vmem:[#allocation99_spill] sm:$0xff] }
 0x741   :  { %15125 = vst [vmem:[#allocation273_spill] sm:$0xff] %v12078_v0  ;;  %v5240_v41 = vrot.slane %v15127_v47, %v11614_v63  ;;  %v5054_v25 = vsel %vm4970_vm15, %v5053_v57, %v5049_v46  ;;  %v5112_v13 = vrot.slane %v15128_v36, %v11656_v15  ;;  %v5108_v45 = vsel %vm4935_vm10, %v5107_v21, %v5103_v9  ;;  %v15132_v46 = vld [vmem:[#allocation93_spill] sm:$0xff]  ;;  %v15133_v21 = vld [vmem:[#allocation90_spill] sm:$0xff] }
 0x742   :  { %v5162_v35 = vsel %vm13491_vm5, %v5161_v2, %v5157_v32  ;;  %15129 = vst [vmem:[#allocation274_spill] sm:$0xff] %v12091_v22  ;;  %15130 = vst [vmem:[#allocation275_spill] sm:$0xff] %v12093_v38  ;;  %v5117_v61 = vrot.slane %v15131_v30, %v11681_v55  ;;  %v5176_v57 = vrot.slane %v15132_v46, %v11653_v24  ;;  %v15134_v2 = vld [vmem:[#allocation490_spill] sm:$0xff]  ;;  %v15139_v46 = vld [vmem:[#allocation81_spill] sm:$0xff]  ;;  %4735 = vperm.xlu0 %7161, %v11727_v10  }
 0x743   :  { %v5167_v31 = vsel %vm4907_vm6, %v5166_v26, %v5162_v35  ;;  %v5241_v53 = vsel %vm13491_vm5, %v5240_v41, %v5236_v51  ;;  %v5171_v32 = vrot.slane %v15133_v21, %v11620_v11  ;;  %v5255_v6 = vrot.slane %v15134_v2, %v11653_v24  ;;  %v15135_v9 = vld [vmem:[#allocation114_spill] sm:$0xff]  ;;  %v15136_v26 = vld [vmem:[#allocation69_spill] sm:$0xff]  ;;  %v15137_v51 = vld [vmem:[#allocation488_spill] sm:$0xff]  ;;  %4732 = vperm.xlu1 %7162, %v11710_v40  }
 0x744   :  { %v5246_v50 = vsel %vm4907_vm6, %v5245_v16, %v5241_v53  ;;  %v5305_v47 = vrot.slane %v15135_v9, %v11588_v18  ;;  %v5063_v36 = vrot.slane %v15136_v26, %v11701_v27  ;;  %v5059_v35 = vsel %vm4977_vm0, %v5058_v12, %v5054_v25  ;;  %v15140_v2 = vld [vmem:[#allocation113_spill] sm:$0xff]  ;;  %v12123_v26 = vpop.permute.xlu1 %4528  ;;  %v12125_v12 = vpop.permute.xlu0 %4537  ;;  %v15166_v10 = vld [vmem:[#allocation494_spill] sm:$0xff] }
 0x745   :  { %v5250_v41 = vrot.slane %v15137_v51, %v11620_v11  ;;  %v5314_v30 = vrot.slane %v15138_v3, %v11617_v17  ;;  %v5122_v16 = vrot.slane %v15139_v46, %v11670_v44  ;;  %v5113_v53 = vsel %vm4942_vm11, %v5112_v13, %v5108_v45  ;;  %15141 = vst [vmem:[#allocation276_spill] sm:$0xff] %v12123_v26  ;;  %v15143_v51 = vld [vmem:[#allocation84_spill] sm:$0xff]  ;;  %v15144_v45 = vld [vmem:[#allocation95_spill] sm:$0xff] }
 0x746   :  { %v5172_v21 = vsel %vm13489_vm7, %v5171_v32, %v5167_v31  ;;  %v5309_v9 = vrot.slane %v15140_v2, %v11611_v4  ;;  %15142 = vst [vmem:[#allocation464_spill] sm:$0xff] %v12125_v12  ;;  %v5118_v25 = vsel %vm4949_vm12, %v5117_v61, %v5113_v53  ;;  %v5127_v3 = vrot.slane %v15143_v51, %v11698_v19  ;;  %v15145_v32 = vld [vmem:[#allocation108_spill] sm:$0xff]  ;;  %v15147_v51 = vld [vmem:[#allocation106_spill] sm:$0xff] }
 0x747   :  { %v5177_v46 = vsel %vm4921_vm8, %v5176_v57, %v5172_v21  ;;  %v5251_v13 = vsel %vm13489_vm7, %v5250_v41, %v5246_v50  ;;  %v5186_v31 = vrot.slane %v15144_v45, %v11667_v42  ;;  %v5265_v2 = vrot.slane %v15145_v32, %v11667_v42  ;;  %v15146_v61 = vld [vmem:[#allocation92_spill] sm:$0xff]  ;;  %4741 = vperm.xlu0 %7161, %v11737_v48  }
 0x748   :  { %v5256_v33 = vsel %vm4921_vm8, %v5255_v6, %v5251_v13  ;;  %v5310_v0 = vsel %vm4886_vm3, %v5309_v9, %v5305_v47  ;;  %v5181_v53 = vrot.slane %v15146_v61, %v11634_v28  ;;  %v5260_v57 = vrot.slane %v15147_v51, %v11634_v28  ;;  %v15150_v6 = vld [vmem:[#allocation83_spill] sm:$0xff]  ;;  %v12155_v32 = vpop.permute.xlu1 %4534  ;;  %v12157_v61 = vpop.permute.xlu0 %4543  ;;  %v15197_v26 = vld [vmem:[#allocation140_spill] sm:$0xff] }
 0x749   :  { %v5315_v50 = vsel %vm13490_vm4, %v5314_v30, %v5310_v0  ;;  %v5324_v41 = vrot.slane %v15148_v49, %v11631_v37  ;;  %v12147_v21 = vsel %vm4984_vm1, %v5063_v36, %v5059_v35  ;;  %v5132_v13 = vrot.slane %v15150_v6, %v11684_v59  ;;  %v15151_v47 = vld [vmem:[#allocation115_spill] sm:$0xff]  ;;  %15152 = vst [vmem:[#allocation278_spill] sm:$0xff] %v12155_v32  ;;  %v15153_v30 = vld [vmem:[#allocation94_spill] sm:$0xff] }
 0x74a   :  { %15149 = vst [vmem:[#allocation277_spill] sm:$0xff] %v12147_v21  ;;  %v5123_v45 = vsel %vm4956_vm13, %v5122_v16, %v5118_v25  ;;  %v5319_v9 = vrot.slane %v15151_v47, %v11614_v63  ;;  %v5191_v36 = vrot.slane %v15153_v30, %v11656_v15  ;;  %v5182_v35 = vsel %vm4928_vm9, %v5181_v53, %v5177_v46  ;;  %v15154_v25 = vld [vmem:[#allocation97_spill] sm:$0xff]  ;;  %v15156_v46 = vld [vmem:[#allocation120_spill] sm:$0xff]  ;;  %v15159_v30 = vld [vmem:[#allocation107_spill] sm:$0xff] }
 0x74b   :  { %v5128_v0 = vsel %vm4963_vm14, %v5127_v3, %v5123_v45  ;;  %v5261_v51 = vsel %vm4928_vm9, %v5260_v57, %v5256_v33  ;;  %v5187_v16 = vsel %vm4935_vm10, %v5186_v31, %v5182_v35  ;;  %v5196_v56 = vrot.slane %v15154_v25, %v11681_v55  ;;  %v15155_v3 = vld [vmem:[#allocation109_spill] sm:$0xff]  ;;  %v15157_v33 = vld [vmem:[#allocation130_spill] sm:$0xff]  ;;  %4783 = vperm.xlu0 %7161, %v11816_v5  }
 0x74c   :  { %v5266_v49 = vsel %vm4935_vm10, %v5265_v2, %v5261_v51  ;;  %v5320_v6 = vsel %vm13491_vm5, %v5319_v9, %v5315_v50  ;;  %v5275_v45 = vrot.slane %v15155_v3, %v11681_v55  ;;  %v5334_v53 = vrot.slane %v15156_v46, %v11653_v24  ;;  %v15158_v31 = vld [vmem:[#allocation85_spill] sm:$0xff]  ;;  %v15161_v9 = vld [vmem:[#allocation132_spill] sm:$0xff]  ;;  %v12188_v25 = vpop.permute.xlu0 %4549 }
 0x74d   :  { %v5325_v47 = vsel %vm4907_vm6, %v5324_v41, %v5320_v6  ;;  %v5384_v1 = vrot.slane %v15157_v33, %v11588_v18  ;;  %v5270_v35 = vrot.slane %v15159_v30, %v11656_v15  ;;  %v15160_v2 = vld [vmem:[#allocation117_spill] sm:$0xff]  ;;  %v5393_v51 = vrot.slane %v15161_v9, %v11617_v17  ;;  %v12186_v41 = vpop.permute.xlu1 %4540  ;;  %v15162_v3 = vld [vmem:[#allocation96_spill] sm:$0xff] }
 0x74e   :  { %v5329_v50 = vrot.slane %v15160_v2, %v11620_v11  ;;  %v5133_v6 = vsel %vm4970_vm15, %v5132_v13, %v5128_v0  ;;  %v5201_v46 = vrot.slane %v15162_v3, %v11670_v44  ;;  %v5192_v33 = vsel %vm4942_vm11, %v5191_v36, %v5187_v16  ;;  %v15163_v30 = vld [vmem:[#allocation129_spill] sm:$0xff]  ;;  %v15165_v36 = vld [vmem:[#allocation122_spill] sm:$0xff] }
 0x74f   :  { %v5388_v57 = vrot.slane %v15163_v30, %v11611_v4  ;;  %v5197_v2 = vsel %vm4949_vm12, %v5196_v56, %v5192_v33  ;;  %v5206_v9 = vrot.slane %v15164_v20, %v11698_v19  ;;  %v5271_v12 = vsel %vm4942_vm11, %v5270_v35, %v5266_v49  ;;  %v15167_v56 = vld [vmem:[#allocation119_spill] sm:$0xff]  ;;  %v15168_v49 = vld [vmem:[#allocation134_spill] sm:$0xff]  ;;  %4786 = vperm.xlu0 %7161, %v11812_v29  }
 0x750   :  { %v5330_v21 = vsel %vm13489_vm7, %v5329_v50, %v5325_v47  ;;  %v5276_v13 = vsel %vm4949_vm12, %v5275_v45, %v5271_v12  ;;  %v5344_v16 = vrot.slane %v15165_v36, %v11667_v42  ;;  %v5285_v30 = vrot.slane %v15166_v10, %v11698_v19  ;;  %v15169_v45 = vld [vmem:[#allocation86_spill] sm:$0xff]  ;;  %v15171_v50 = vld [vmem:[#allocation131_spill] sm:$0xff]  ;;  %v15173_v10 = vld [vmem:[#allocation101_spill] sm:$0xff] }
 0x751   :  { %v5335_v0 = vsel %vm4921_vm8, %v5334_v53, %v5330_v21  ;;  %v5389_v3 = vsel %vm4886_vm3, %v5388_v57, %v5384_v1  ;;  %v5339_v33 = vrot.slane %v15167_v56, %v11634_v28  ;;  %v5403_v47 = vrot.slane %v15168_v49, %v11631_v37  ;;  %v12215_v12 = vpop.permute.xlu1 %4546  ;;  %v12217_v21 = vpop.permute.xlu0 %4555  ;;  %v15170_v57 = vld [vmem:[#allocation492_spill] sm:$0xff]  ;;  %v15172_v36 = vld [vmem:[#allocation98_spill] sm:$0xff] }
 0x752   :  { %v5394_v20 = vsel %vm13490_vm4, %v5393_v51, %v5389_v3  ;;  %v5137_v53 = vrot.slane %v15169_v45, %v11715_v43  ;;  %v5202_v1 = vsel %vm4956_vm13, %v5201_v46, %v5197_v2  ;;  %v5280_v35 = vrot.slane %v15170_v57, %v11670_v44  ;;  %v15174_v45 = vld [vmem:[#allocation124_spill] sm:$0xff]  ;;  %v15196_v29 = vld [vmem:[#allocation198_spill] sm:$0xff] }
 0x753   :  { %v5398_v51 = vrot.slane %v15171_v50, %v11614_v63  ;;  %v5211_v40 = vrot.slane %v15172_v36, %v11684_v59  ;;  %v5207_v3 = vsel %vm4963_vm14, %v5206_v9, %v5202_v1  ;;  %v5216_v56 = vrot.slane %v15173_v10, %v11715_v43  ;;  %v15175_v36 = vld [vmem:[#allocation121_spill] sm:$0xff]  ;;  %v15176_v1 = vld [vmem:[#allocation136_spill] sm:$0xff]  ;;  %4789 = vperm.xlu0 %7161, %v11830_v7   ;;  %v15208_v7 = vld [vmem:[#allocation207_spill] sm:$0xff] }
 0x754   :  { %v5340_v49 = vsel %vm4928_vm9, %v5339_v33, %v5335_v0  ;;  %v5281_v46 = vsel %vm4956_vm13, %v5280_v35, %v5276_v13  ;;  %v5354_v57 = vrot.slane %v15174_v45, %v11681_v55  ;;  %v5349_v38 = vrot.slane %v15175_v36, %v11656_v15  ;;  %v15177_v0 = vld [vmem:[#allocation445_spill] sm:$0xff] }
 0x755   :  { %v5345_v2 = vsel %vm4935_vm10, %v5344_v16, %v5340_v49  ;;  %v5399_v50 = vsel %vm13491_vm5, %v5398_v51, %v5394_v20  ;;  %v5286_v48 = vsel %vm4963_vm14, %v5285_v30, %v5281_v46  ;;  %v5413_v10 = vrot.slane %v15176_v1, %v11653_v24  ;;  %4738 = vperm.xlu1 %7162, %v15177_v0   ;;  %v12245_v13 = vpop.permute.xlu1 %4552  ;;  %v12247_v16 = vpop.permute.xlu0 %4561  ;;  %v15179_v30 = vld [vmem:[#allocation110_spill] sm:$0xff]  ;;  %v15180_v51 = vld [vmem:[#allocation133_spill] sm:$0xff]  ;;  %v15181_v49 = vld [vmem:[#allocation100_spill] sm:$0xff] }
 0x756   :  { %v5404_v9 = vsel %vm4907_vm6, %v5403_v47, %v5399_v50  ;;  %15178 = vst [vmem:[#allocation279_spill] sm:$0xff] %v12247_v16  ;;  %v12250_v33 = vsel %vm4977_vm0, %v5137_v53, %v5133_v6  ;;  %v5212_v20 = vsel %vm4970_vm15, %v5211_v40, %v5207_v3  ;;  %v5290_v35 = vrot.slane %v15179_v30, %v11684_v59  ;;  %v15182_v50 = vld [vmem:[#allocation112_spill] sm:$0xff]  ;;  %v15183_v40 = vld [vmem:[#allocation111_spill] sm:$0xff]  ;;  %v15184_v0 = vld [vmem:[#allocation126_spill] sm:$0xff] }
 0x757   :  { %v5408_v47 = vrot.slane %v15180_v51, %v11620_v11  ;;  %v12261_v45 = vsel %vm4977_vm0, %v5216_v56, %v5212_v20  ;;  %v5295_v6 = vrot.slane %v15182_v50, %v11715_v43  ;;  %v5350_v53 = vsel %vm4942_vm11, %v5349_v38, %v5345_v2  ;;  %v15185_v20 = vld [vmem:[#allocation138_spill] sm:$0xff]  ;;  %v15193_v3 = vld [vmem:[#allocation145_spill] sm:$0xff]  ;;  %v15194_v46 = vld [vmem:[#allocation199_spill] sm:$0xff]  ;;  %4831 = vperm.xlu0 %7161, %v11916_v62  }
 0x758   :  { %v5291_v36 = vsel %vm4970_vm15, %v5290_v35, %v5286_v48  ;;  %v5355_v1 = vsel %vm4949_vm12, %v5354_v57, %v5350_v53  ;;  %v5364_v30 = vrot.slane %v15184_v0, %v11698_v19  ;;  %v5423_v51 = vrot.slane %v15185_v20, %v11667_v42  ;;  %v15186_v50 = vld [vmem:[#allocation146_spill] sm:$0xff]  ;;  %v15188_v57 = vld [vmem:[#allocation123_spill] sm:$0xff]  ;;  %v15192_v20 = vld [vmem:[#allocation125_spill] sm:$0xff] }
 0x759   :  { %v5409_v5 = vsel %vm13489_vm7, %v5408_v47, %v5404_v9  ;;  %v5463_v38 = vrot.slane %v15186_v50, %v11588_v18  ;;  %4780 = vperm.xlu1 %7162, %v11797_v60   ;;  %v12279_v2 = vpop.permute.xlu1 %4558  ;;  %v12281_v48 = vpop.permute.xlu0 %4567  ;;  %v5359_v9 = vrot.slane %v15188_v57, %v11670_v44  ;;  %v15189_v35 = vld [vmem:[#allocation135_spill] sm:$0xff]  ;;  %v12293_v60 = vsel %vm4977_vm0, %v5295_v6, %v5291_v36  ;;  %v15211_v16 = vld [vmem:[#allocation442_spill] sm:$0xff] }
 0x75a   :  { %v5414_v56 = vsel %vm4921_vm8, %v5413_v10, %v5409_v5  ;;  %15187 = vst [vmem:[#allocation469_spill] sm:$0xff] %v12281_v48  ;;  %v5418_v47 = vrot.slane %v15189_v35, %v11634_v28  ;;  %v15190_v10 = vld [vmem:[#allocation148_spill] sm:$0xff]  ;;  %v15191_v5 = vld [vmem:[#allocation390_spill] sm:$0xff]  ;;  %v5369_v50 = vrot.slane %v15192_v20, %v11684_v59  ;;  %v5467_v57 = vrot.slane %v15193_v3, %v11611_v4 }
 0x75b   :  { %v5472_v53 = vrot.slane %v15190_v10, %v11617_v17  ;;  %v5858_v0 = vrot.slane %v15191_v5, %v11588_v18  ;;  %v5867_v35 = vrot.slane %v15194_v46, %v11617_v17  ;;  %v5360_v32 = vsel %vm4956_vm13, %v5359_v9, %v5355_v1  ;;  %v15195_v10 = vld [vmem:[#allocation127_spill] sm:$0xff]  ;;  %v15198_v46 = vld [vmem:[#allocation249_spill] sm:$0xff] }
 0x75c   :  { %v5419_v5 = vsel %vm4928_vm9, %v5418_v47, %v5414_v56  ;;  %v5862_v6 = vrot.slane %v15196_v29, %v11611_v4  ;;  %v5365_v36 = vsel %vm4963_vm14, %v5364_v30, %v5360_v32  ;;  %v5433_v3 = vrot.slane %v15197_v26, %v11681_v55  ;;  %v15201_v56 = vld [vmem:[#allocation137_spill] sm:$0xff]  ;;  %v15202_v32 = vld [vmem:[#allocation150_spill] sm:$0xff]  ;;  %v15203_v26 = vld [vmem:[#allocation147_spill] sm:$0xff] }
 0x75d   :  { %v5424_v20 = vsel %vm4935_vm10, %v5423_v51, %v5419_v5  ;;  %v5468_v48 = vsel %vm4886_vm3, %v5467_v57, %v5463_v38  ;;  %4744 = vperm.xlu1 %7162, %v15198_v46   ;;  %v12313_v1 = vpop.permute.xlu1 %4564  ;;  %v12315_v9 = vpop.permute.xlu0 %4573  ;;  %v5428_v47 = vrot.slane %v15201_v56, %v11656_v15  ;;  %v5482_v30 = vrot.slane %v15202_v32, %v11631_v37  ;;  %v15204_v5 = vld [vmem:[#allocation392_spill] sm:$0xff] }
 0x75e   :  { %15199 = vst [vmem:[#allocation280_spill] sm:$0xff] %v12313_v1  ;;  %15200 = vst [vmem:[#allocation281_spill] sm:$0xff] %v12315_v9  ;;  %v5473_v29 = vsel %vm13490_vm4, %v5472_v53, %v5468_v48  ;;  %v5863_v51 = vsel %vm4886_vm3, %v5862_v6, %v5858_v0  ;;  %v5477_v38 = vrot.slane %v15203_v26, %v11614_v63  ;;  %v15206_v48 = vld [vmem:[#allocation128_spill] sm:$0xff]  ;;  %v15207_v0 = vld [vmem:[#allocation395_spill] sm:$0xff] }
 0x75f   :  { %v5868_v57 = vsel %vm13490_vm4, %v5867_v35, %v5863_v51  ;;  %v5877_v46 = vrot.slane %v15204_v5, %v11631_v37  ;;  %v5937_v56 = vrot.slane %v15205_v8, %v11588_v18  ;;  %v5374_v53 = vrot.slane %v15206_v48, %v11715_v43  ;;  %v15209_v26 = vld [vmem:[#allocation139_spill] sm:$0xff]  ;;  %v15210_v8 = vld [vmem:[#allocation206_spill] sm:$0xff] }
 0x760   :  { %v5429_v32 = vsel %vm4942_vm11, %v5428_v47, %v5424_v20  ;;  %v5872_v6 = vrot.slane %v15207_v0, %v11614_v63  ;;  %v5946_v9 = vrot.slane %v15208_v7, %v11617_v17  ;;  %v5438_v35 = vrot.slane %v15209_v26, %v11670_v44  ;;  %v15213_v47 = vld [vmem:[#allocation142_spill] sm:$0xff]  ;;  %v15214_v26 = vld [vmem:[#allocation152_spill] sm:$0xff] }
 0x761   :  { %v5434_v51 = vsel %vm4949_vm12, %v5433_v3, %v5429_v32  ;;  %v5478_v5 = vsel %vm13491_vm5, %v5477_v38, %v5473_v29  ;;  %v5941_v22 = vrot.slane %v15210_v8, %v11611_v4  ;;  %4747 = vperm.xlu1 %7162, %v15211_v16   ;;  %v12345_v48 = vpop.permute.xlu1 %4570  ;;  %v12347_v20 = vpop.permute.xlu0 %4579  ;;  %v5443_v0 = vrot.slane %v15213_v47, %v11698_v19  ;;  %v15215_v29 = vld [vmem:[#allocation149_spill] sm:$0xff] }
 0x762   :  { %15212 = vst [vmem:[#allocation282_spill] sm:$0xff] %v12347_v20  ;;  %v5483_v7 = vsel %vm4907_vm6, %v5482_v30, %v5478_v5  ;;  %v5492_v1 = vrot.slane %v15214_v26, %v11653_v24  ;;  %v5873_v3 = vsel %vm13491_vm5, %v5872_v6, %v5868_v57  ;;  %v5487_v38 = vrot.slane %v15215_v29, %v11620_v11  ;;  %v15216_v32 = vld [vmem:[#allocation201_spill] sm:$0xff]  ;;  %v15217_v30 = vld [vmem:[#allocation200_spill] sm:$0xff] }
 0x763   :  { %v5878_v16 = vsel %vm4907_vm6, %v5877_v46, %v5873_v3  ;;  %v5887_v8 = vrot.slane %v15216_v32, %v11653_v24  ;;  %v5942_v20 = vsel %vm4886_vm3, %v5941_v22, %v5937_v56  ;;  %v5370_v47 = vsel %vm4970_vm15, %v5369_v50, %v5365_v36  ;;  %v15218_v57 = vld [vmem:[#allocation400_spill] sm:$0xff]  ;;  %v15219_v3 = vld [vmem:[#allocation403_spill] sm:$0xff]  ;;  %v15220_v36 = vld [vmem:[#allocation141_spill] sm:$0xff] }
 0x764   :  { %v5882_v5 = vrot.slane %v15217_v30, %v11620_v11  ;;  %v5947_v26 = vsel %vm13490_vm4, %v5946_v9, %v5942_v20  ;;  %v5956_v62 = vrot.slane %v15218_v57, %v11631_v37  ;;  %v5375_v6 = vsel %vm4977_vm0, %v5374_v53, %v5370_v47  ;;  %v15222_v20 = vld [vmem:[#allocation154_spill] sm:$0xff]  ;;  %v15224_v57 = vld [vmem:[#allocation151_spill] sm:$0xff] }
 0x765   :  { %v5439_v29 = vsel %vm4956_vm13, %v5438_v35, %v5434_v51  ;;  %v5488_v46 = vsel %vm13489_vm7, %v5487_v38, %v5483_v7  ;;  %v5951_v32 = vrot.slane %v15219_v3, %v11614_v63  ;;  %4828 = vperm.xlu1 %7162, %v11897_v52   ;;  %v12374_v22 = vpop.permute.xlu1 %4576  ;;  %v12376_v50 = vpop.permute.xlu0 %4585  ;;  %v5448_v9 = vrot.slane %v15220_v36, %v11684_v59  ;;  %v15221_v51 = vld [vmem:[#allocation257_spill] sm:$0xff]  ;;  %v15223_v38 = vld [vmem:[#allocation394_spill] sm:$0xff] }
 0x766   :  { %v5444_v56 = vsel %vm4963_vm14, %v5443_v0, %v5439_v29  ;;  %v5493_v53 = vsel %vm4921_vm8, %v5492_v1, %v5488_v46  ;;  %v5883_v35 = vsel %vm13489_vm7, %v5882_v5, %v5878_v16  ;;  %4792 = vperm.xlu0 %7161, %v15221_v51   ;;  %v5502_v7 = vrot.slane %v15222_v20, %v11667_v42  ;;  %v15225_v0 = vld [vmem:[#allocation397_spill] sm:$0xff]  ;;  %v15231_v51 = vld [vmem:[#allocation250_spill] sm:$0xff] }
 0x767   :  { %v5888_v52 = vsel %vm4921_vm8, %v5887_v8, %v5883_v35  ;;  %v5897_v47 = vrot.slane %v15223_v38, %v11667_v42  ;;  %v5952_v30 = vsel %vm13491_vm5, %v5951_v32, %v5947_v26  ;;  %v5497_v3 = vrot.slane %v15224_v57, %v11634_v28  ;;  %v15226_v5 = vld [vmem:[#allocation209_spill] sm:$0xff]  ;;  %v15230_v35 = vld [vmem:[#allocation208_spill] sm:$0xff] }
 0x768   :  { %v5892_v1 = vrot.slane %v15225_v0, %v11634_v28  ;;  %v5957_v16 = vsel %vm4907_vm6, %v5956_v62, %v5952_v30  ;;  %v5966_v29 = vrot.slane %v15226_v5, %v11653_v24  ;;  %v15227_v8 = vrot.slane %v15158_v31, %v11701_v27  ;;  %v15234_v30 = vld [vmem:[#allocation444_spill] sm:$0xff]  ;;  %v15235_v5 = vld [vmem:[#allocation203_spill] sm:$0xff] }
 0x769   :  { %v15228_v26 = vrot.slane %v15181_v49, %v11701_v27  ;;  %v15229_v62 = vrot.slane %v15183_v40, %v11701_v27  ;;  %v5961_v31 = vrot.slane %v15230_v35, %v11620_v11  ;;  %4750 = vperm.xlu1 %7162, %v15231_v51   ;;  %v4592_v20 = vpop.permute.xlu0 %4591  ;;  %v15232_v49 = vrot.slane %v15195_v10, %v11701_v27  ;;  %v15241_v35 = vld [vmem:[#allocation405_spill] sm:$0xff] }
 0x76a   :  { %v12402_v46 = vsel %vm4984_vm1, %v15227_v8, %v12250_v33  ;;  %v12421_v33 = vpop.permute.xlu1 %4582  ;;  %v12430_v38 = vsel %vm4970_vm15, %v5448_v9, %v5444_v56  ;;  %v5498_v40 = vsel %vm4928_vm9, %v5497_v3, %v5493_v53  ;;  %4753 = vperm.xlu0 %7161, %v15234_v30   ;;  %v5907_v8 = vrot.slane %v15235_v5, %v11681_v55  ;;  %v15237_v56 = vld [vmem:[#allocation402_spill] sm:$0xff] }
 0x76b   :  { %v12409_v32 = vsel %vm4984_vm1, %v15228_v26, %v12261_v45  ;;  %v12416_v36 = vsel %vm4984_vm1, %v15229_v62, %v12293_v60  ;;  %v12427_v45 = vsel %vm4984_vm1, %v15232_v49, %v5375_v6  ;;  %v5893_v60 = vsel %vm4928_vm9, %v5892_v1, %v5888_v52  ;;  %v15236_v6 = vld [vmem:[#allocation202_spill] sm:$0xff] }
 0x76c   :  { %15233 = vst [vmem:[#allocation283_spill] sm:$0xff] %v12427_v45  ;;  %v5503_v57 = vsel %vm4935_vm10, %v5502_v7, %v5498_v40  ;;  %v5898_v0 = vsel %vm4935_vm10, %v5897_v47, %v5893_v60  ;;  %v5962_v10 = vsel %vm13489_vm7, %v5961_v31, %v5957_v16  ;;  %v5902_v26 = vrot.slane %v15236_v6, %v11656_v15  ;;  %v15238_v52 = vld [vmem:[#allocation406_spill] sm:$0xff]  ;;  %v15239_v7 = vld [vmem:[#allocation153_spill] sm:$0xff]  ;;  %v15240_v47 = vld [vmem:[#allocation156_spill] sm:$0xff] }
 0x76d   :  { %v5967_v9 = vsel %vm4921_vm8, %v5966_v29, %v5962_v10  ;;  %v5976_v53 = vrot.slane %v15237_v56, %v11667_v42  ;;  %v6016_v3 = vrot.slane %v15238_v52, %v11588_v18  ;;  %v5507_v1 = vrot.slane %v15239_v7, %v11656_v15  ;;  %v15242_v31 = vld [vmem:[#allocation215_spill] sm:$0xff]  ;;  %4834 = vperm.xlu1 %7162, %v11912_v14   ;;  %v4598_v49 = vpop.permute.xlu0 %4597  ;;  %v15243_v60 = vld [vmem:[#allocation214_spill] sm:$0xff]  ;;  %v15244_v6 = vld [vmem:[#allocation144_spill] sm:$0xff] }
 0x76e   :  { %v5512_v62 = vrot.slane %v15240_v47, %v11681_v55  ;;  %v5971_v16 = vrot.slane %v15241_v35, %v11634_v28  ;;  %v6025_v51 = vrot.slane %v15242_v31, %v11617_v17  ;;  %v4589_v29 = vpop.permute.xlu1 %4588  ;;  %v5903_v40 = vsel %vm4942_vm11, %v5902_v26, %v5898_v0  ;;  %4837 = vperm.xlu0 %7161, %v11937_v54   ;;  %v15245_v26 = vld [vmem:[#allocation211_spill] sm:$0xff] }
 0x76f   :  { %v6020_v30 = vrot.slane %v15243_v60, %v11611_v4  ;;  %v6336_v5 = vrot.slane %v4592_v20, %v11611_v4  ;;  %v6332_v10 = vrot.slane %v4589_v29, %v11588_v18  ;;  %v5508_v52 = vsel %vm4942_vm11, %v5507_v1, %v5503_v57  ;;  %v15246_v54 = vld [vmem:[#allocation399_spill] sm:$0xff]  ;;  %v15247_v29 = vld [vmem:[#allocation210_spill] sm:$0xff] }
 0x770   :  { %v5908_v14 = vsel %vm4949_vm12, %v5907_v8, %v5903_v40  ;;  %v5972_v7 = vsel %vm4928_vm9, %v5971_v16, %v5967_v9  ;;  %v5986_v47 = vrot.slane %v15245_v26, %v11681_v55  ;;  %v5912_v31 = vrot.slane %v15246_v54, %v11670_v44  ;;  %v15248_v8 = vld [vmem:[#allocation408_spill] sm:$0xff]  ;;  %v15249_v1 = vld [vmem:[#allocation450_spill] sm:$0xff] }
 0x771   :  { %v5977_v0 = vsel %vm4935_vm10, %v5976_v53, %v5972_v7  ;;  %v6021_v20 = vsel %vm4886_vm3, %v6020_v30, %v6016_v3  ;;  %v6337_v35 = vsel %vm4886_vm3, %v6336_v5, %v6332_v10  ;;  %v5981_v60 = vrot.slane %v15247_v29, %v11656_v15  ;;  %4795 = vperm.xlu1 %7162, %v15249_v1   ;;  %v4604_v16 = vpop.permute.xlu0 %4603  ;;  %v15250_v3 = vld [vmem:[#allocation396_spill] sm:$0xff]  ;;  %v15251_v5 = vld [vmem:[#allocation411_spill] sm:$0xff]  ;;  %v15252_v26 = vld [vmem:[#allocation258_spill] sm:$0xff] }
 0x772   :  { %v6026_v57 = vsel %vm13490_vm4, %v6025_v51, %v6021_v20  ;;  %v6035_v9 = vrot.slane %v15248_v8, %v11631_v37  ;;  %v4595_v53 = vpop.permute.xlu1 %4594  ;;  %v12481_v40 = vsel %vm4949_vm12, %v5512_v62, %v5508_v52  ;;  %v5917_v30 = vrot.slane %v15250_v3, %v11698_v19  ;;  %4798 = vperm.xlu0 %7161, %v15252_v26   ;;  %v15253_v51 = vld [vmem:[#allocation204_spill] sm:$0xff] }
 0x773   :  { %v6030_v10 = vrot.slane %v15251_v5, %v11614_v63  ;;  %v6341_v7 = vrot.slane %v4595_v53, %v11617_v17  ;;  %v5922_v20 = vrot.slane %v15253_v51, %v11684_v59  ;;  %v5913_v54 = vsel %vm4956_vm13, %v5912_v31, %v5908_v14  ;;  %v15254_v8 = vld [vmem:[#allocation404_spill] sm:$0xff]  ;;  %v15255_v5 = vld [vmem:[#allocation407_spill] sm:$0xff]  ;;  %v15256_v14 = vld [vmem:[#allocation217_spill] sm:$0xff] }
 0x774   :  { %v5982_v29 = vsel %vm4942_vm11, %v5981_v60, %v5977_v0  ;;  %v6346_v62 = vrot.slane %v4598_v49, %v11614_v63  ;;  %v5996_v1 = vrot.slane %v15254_v8, %v11698_v19  ;;  %v5991_v26 = vrot.slane %v15255_v5, %v11670_v44  ;;  %v15257_v0 = vld [vmem:[#allocation252_spill] sm:$0xff] }
 0x775   :  { %v5987_v52 = vsel %vm4949_vm12, %v5986_v47, %v5982_v29  ;;  %v6031_v3 = vsel %vm13491_vm5, %v6030_v10, %v6026_v57  ;;  %v6342_v53 = vsel %vm13490_vm4, %v6341_v7, %v6337_v35  ;;  %v6045_v31 = vrot.slane %v15256_v14, %v11653_v24  ;;  %4756 = vperm.xlu1 %7162, %v15257_v0   ;;  %v4610_v60 = vpop.permute.xlu0 %4609  ;;  %v15258_v57 = vld [vmem:[#allocation401_spill] sm:$0xff]  ;;  %v15259_v35 = vld [vmem:[#allocation216_spill] sm:$0xff] }
 0x776   :  { %v6036_v51 = vsel %vm4907_vm6, %v6035_v9, %v6031_v3  ;;  %v4601_v49 = vpop.permute.xlu1 %4600  ;;  %v6347_v47 = vsel %vm13491_vm5, %v6346_v62, %v6342_v53  ;;  %v5918_v29 = vsel %vm4963_vm14, %v5917_v30, %v5913_v54  ;;  %v5932_v10 = vrot.slane %v15258_v57, %v11701_v27  ;;  %v15260_v9 = vld [vmem:[#allocation253_spill] sm:$0xff]  ;;  %v15262_v14 = vld [vmem:[#allocation212_spill] sm:$0xff] }
 0x777   :  { %v6040_v7 = vrot.slane %v15259_v35, %v11620_v11  ;;  %v6351_v8 = vrot.slane %v4601_v49, %v11631_v37  ;;  %4759 = vperm.xlu0 %7161, %v15260_v9   ;;  %v15261_v3 = vld [vmem:[#allocation205_spill] sm:$0xff]  ;;  %v6001_v0 = vrot.slane %v15262_v14, %v11684_v59  ;;  %v5992_v62 = vsel %vm4956_vm13, %v5991_v26, %v5987_v52 }
 0x778   :  { %v5927_v5 = vrot.slane %v15261_v3, %v11715_v43  ;;  %v6356_v30 = vrot.slane %v4604_v16, %v11620_v11  ;;  %v5997_v54 = vsel %vm4963_vm14, %v5996_v1, %v5992_v62  ;;  %v15263_v53 = vld [vmem:[#allocation213_spill] sm:$0xff]  ;;  %v15264_v3 = vld [vmem:[#allocation410_spill] sm:$0xff]  ;;  %v5923_v62 = vsel %vm4970_vm15, %v5922_v20, %v5918_v29 }
 0x779   :  { %v6006_v57 = vrot.slane %v15263_v53, %v11715_v43  ;;  %v6041_v35 = vsel %vm13489_vm7, %v6040_v7, %v6036_v51  ;;  %v6352_v49 = vsel %vm4907_vm6, %v6351_v8, %v6347_v47  ;;  %v6055_v56 = vrot.slane %v15264_v3, %v11667_v42  ;;  %v15265_v14 = vld [vmem:[#allocation437_spill] sm:$0xff]  ;;  %v4616_v26 = vpop.permute.xlu0 %4615  ;;  %v15269_v3 = vld [vmem:[#allocation234_spill] sm:$0xff] }
 0x77a   :  { %v6046_v9 = vsel %vm4921_vm8, %v6045_v31, %v6041_v35  ;;  %v6095_v45 = vrot.slane %v15265_v14, %v11588_v18  ;;  %v15266_v52 = vld [vmem:[#allocation265_spill] sm:$0xff]  ;;  %v4607_v16 = vpop.permute.xlu1 %4606  ;;  %v6357_v1 = vsel %vm13489_vm7, %v6356_v30, %v6352_v49  ;;  %v5928_v53 = vsel %vm4977_vm0, %v5927_v5, %v5923_v62  ;;  %v15271_v5 = vld [vmem:[#allocation220_spill] sm:$0xff] }
 0x77b   :  { %4840 = vperm.xlu1 %7162, %v15266_v52   ;;  %v15267_v51 = vld [vmem:[#allocation413_spill] sm:$0xff]  ;;  %v6361_v8 = vrot.slane %v4607_v16, %v11653_v24  ;;  %4843 = vperm.xlu0 %7161, %v11954_v39   ;;  %v6002_v35 = vsel %vm4970_vm15, %v6001_v0, %v5997_v54  ;;  %v6099_v30 = vrot.slane %v15269_v3, %v11611_v4  ;;  %v15272_v54 = vld [vmem:[#allocation452_spill] sm:$0xff]  ;;  %v15273_v3 = vld [vmem:[#allocation218_spill] sm:$0xff] }
 0x77c   :  { %v6050_v7 = vrot.slane %v15267_v51, %v11634_v28  ;;  %v15268_v47 = vld [vmem:[#allocation441_spill] sm:$0xff]  ;;  %v6366_v49 = vrot.slane %v4610_v60, %v11634_v28  ;;  %v6007_v14 = vsel %vm4977_vm0, %v6006_v57, %v6002_v35  ;;  %v6065_v62 = vrot.slane %v15271_v5, %v11681_v55 }
 0x77d   :  { %v6104_v31 = vrot.slane %v15268_v47, %v11617_v17  ;;  %v15270_v20 = vld [vmem:[#allocation409_spill] sm:$0xff]  ;;  %v6362_v16 = vsel %vm4921_vm8, %v6361_v8, %v6357_v1  ;;  %v6100_v0 = vsel %vm4886_vm3, %v6099_v30, %v6095_v45  ;;  %v4622_v47 = vpop.permute.xlu0 %4621  ;;  %v6060_v57 = vrot.slane %v15273_v3, %v11656_v15  ;;  %v15274_v1 = vld [vmem:[#allocation246_spill] sm:$0xff]  ;;  %v15275_v8 = vld [vmem:[#allocation455_spill] sm:$0xff] }
 0x77e   :  { %v6011_v29 = vrot.slane %v15270_v20, %v11701_v27  ;;  %v6051_v52 = vsel %vm4928_vm9, %v6050_v7, %v6046_v9  ;;  %v4613_v51 = vpop.permute.xlu1 %4612  ;;  %v6367_v60 = vsel %vm4928_vm9, %v6366_v49, %v6362_v16  ;;  %v6114_v7 = vrot.slane %v15274_v1, %v11631_v37  ;;  %v15276_v45 = vld [vmem:[#allocation158_spill] sm:$0xff]  ;;  %v15277_v49 = vld [vmem:[#allocation241_spill] sm:$0xff]  ;;  %v15278_v16 = vld [vmem:[#allocation415_spill] sm:$0xff] }
 0x77f   :  { %v6056_v39 = vsel %vm4935_vm10, %v6055_v56, %v6051_v52  ;;  %4801 = vperm.xlu1 %7162, %v15272_v54   ;;  %v6105_v9 = vsel %vm13490_vm4, %v6104_v31, %v6100_v0  ;;  %v6371_v56 = vrot.slane %v4613_v51, %v11667_v42  ;;  %4804 = vperm.xlu0 %7161, %v15275_v8   ;;  %v15280_v1 = vld [vmem:[#allocation449_spill] sm:$0xff]  ;;  %v15281_v8 = vld [vmem:[#allocation412_spill] sm:$0xff] }
 0x780   :  { %v5522_v35 = vrot.slane %v15276_v45, %v11698_v19  ;;  %v12564_v30 = vsel %vm4984_vm1, %v5932_v10, %v5928_v53  ;;  %v6109_v20 = vrot.slane %v15277_v49, %v11614_v63  ;;  %v6376_v52 = vrot.slane %v4616_v26, %v11656_v15  ;;  %v15279_v53 = vld [vmem:[#allocation264_spill] sm:$0xff]  ;;  %v15338_v45 = vld [vmem:[#allocation462_spill] sm:$0xff] }
 0x781   :  { %v12570_v31 = vsel %vm4984_vm1, %v6011_v29, %v6007_v14  ;;  %v6070_v5 = vrot.slane %v15278_v16, %v11670_v44  ;;  %v6061_v0 = vsel %vm4942_vm11, %v6060_v57, %v6056_v39  ;;  %v6372_v54 = vsel %vm4935_vm10, %v6371_v56, %v6367_v60  ;;  %v4628_v14 = vpop.permute.xlu0 %4627  ;;  %v15282_v60 = vld [vmem:[#allocation458_spill] sm:$0xff]  ;;  %v15284_v56 = vld [vmem:[#allocation443_spill] sm:$0xff]  ;;  %v15285_v16 = vld [vmem:[#allocation260_spill] sm:$0xff] }
 0x782   :  { %v6066_v51 = vsel %vm4949_vm12, %v6065_v62, %v6061_v0  ;;  %v6110_v10 = vsel %vm13491_vm5, %v6109_v20, %v6105_v9  ;;  %v6174_v3 = vrot.slane %v15279_v53, %v11588_v18  ;;  %v4619_v26 = vpop.permute.xlu1 %4618  ;;  %v6377_v29 = vsel %vm4942_vm11, %v6376_v52, %v6372_v54  ;;  %v15283_v9 = vld [vmem:[#allocation446_spill] sm:$0xff] }
 0x783   :  { %4762 = vperm.xlu1 %7162, %v15280_v1   ;;  %v6080_v49 = vrot.slane %v15281_v8, %v11684_v59  ;;  %v6115_v39 = vsel %vm4907_vm6, %v6114_v7, %v6110_v10  ;;  %v6183_v57 = vrot.slane %v15282_v60, %v11617_v17  ;;  %v6381_v62 = vrot.slane %v4619_v26, %v11681_v55  ;;  %v15286_v10 = vld [vmem:[#allocation245_spill] sm:$0xff]  ;;  %v15287_v60 = vld [vmem:[#allocation418_spill] sm:$0xff]  ;;  %v15305_v8 = vld [vmem:[#allocation267_spill] sm:$0xff] }
 0x784   :  { %4765 = vperm.xlu0 %7161, %v15283_v9   ;;  %v6124_v20 = vrot.slane %v15284_v56, %v11653_v24  ;;  %v6178_v0 = vrot.slane %v15285_v16, %v11611_v4  ;;  %v6253_v52 = vrot.slane %v12186_v41, %v11588_v18  ;;  %v6386_v54 = vrot.slane %v4622_v47, %v11670_v44  ;;  %v15288_v16 = vld [vmem:[#allocation266_spill] sm:$0xff] }
 0x785   :  { %v6071_v7 = vsel %vm4956_vm13, %v6070_v5, %v6066_v51  ;;  %v6119_v53 = vrot.slane %v15286_v10, %v11620_v11  ;;  %v6262_v1 = vrot.slane %v12215_v12, %v11617_v17  ;;  %v6382_v26 = vsel %vm4949_vm12, %v6381_v62, %v6377_v29  ;;  %v4634_v51 = vpop.permute.xlu0 %4633 }
 0x786   :  { %v6075_v9 = vrot.slane %v15287_v60, %v11698_v19  ;;  %v6179_v56 = vsel %vm4886_vm3, %v6178_v0, %v6174_v3  ;;  %v6257_v41 = vrot.slane %v12157_v61, %v11611_v4  ;;  %v4625_v47 = vpop.permute.xlu1 %4624  ;;  %v6387_v5 = vsel %vm4956_vm13, %v6386_v54, %v6382_v26  ;;  %v15289_v61 = vld [vmem:[#allocation456_spill] sm:$0xff] }
 0x787   :  { %4846 = vperm.xlu1 %7162, %v15288_v16   ;;  %v6120_v10 = vsel %vm13489_vm7, %v6119_v53, %v6115_v39  ;;  %v6184_v12 = vsel %vm13490_vm4, %v6183_v57, %v6179_v56  ;;  %v6193_v29 = vrot.slane %v11988_v34, %v11631_v37  ;;  %v6391_v62 = vrot.slane %v4625_v47, %v11698_v19  ;;  %v15290_v39 = vld [vmem:[#allocation248_spill] sm:$0xff] }
 0x788   :  { %4849 = vperm.xlu0 %7161, %v11966_v23   ;;  %v6125_v3 = vsel %vm4921_vm8, %v6124_v20, %v6120_v10  ;;  %v6188_v0 = vrot.slane %v15289_v61, %v11614_v63  ;;  %v6258_v60 = vsel %vm4886_vm3, %v6257_v41, %v6253_v52  ;;  %v6396_v54 = vrot.slane %v4628_v14, %v11684_v59  ;;  %v15291_v23 = vld [vmem:[#allocation438_spill] sm:$0xff]  ;;  %v15292_v41 = vld [vmem:[#allocation261_spill] sm:$0xff] }
 0x789   :  { %v6134_v53 = vrot.slane %v15290_v39, %v11667_v42  ;;  %v6263_v57 = vsel %vm13490_vm4, %v6262_v1, %v6258_v60  ;;  %v6272_v34 = vrot.slane %v12245_v13, %v11631_v37  ;;  %v6392_v26 = vsel %vm4963_vm14, %v6391_v62, %v6387_v5  ;;  %v4640_v47 = vpop.permute.xlu0 %4639  ;;  %v15293_v5 = vld [vmem:[#allocation467_spill] sm:$0xff]  ;;  %v15294_v61 = vld [vmem:[#allocation457_spill] sm:$0xff] }
 0x78a   :  { %v6129_v20 = vrot.slane %v15291_v23, %v11634_v28  ;;  %v6189_v56 = vsel %vm13491_vm5, %v6188_v0, %v6184_v12  ;;  %v6267_v52 = vrot.slane %v12188_v25, %v11614_v63  ;;  %v4631_v14 = vpop.permute.xlu1 %4630  ;;  %v6397_v16 = vsel %vm4970_vm15, %v6396_v54, %v6392_v26  ;;  %v15295_v25 = vld [vmem:[#allocation463_spill] sm:$0xff] }
 0x78b   :  { %4807 = vperm.xlu1 %7162, %v15292_v41   ;;  %v6076_v1 = vsel %vm4963_vm14, %v6075_v9, %v6071_v7  ;;  %v6194_v13 = vsel %vm4907_vm6, %v6193_v29, %v6189_v56  ;;  %v6203_v10 = vrot.slane %v15293_v5, %v11653_v24  ;;  %v6401_v62 = vrot.slane %v4631_v14, %v11715_v43  ;;  %v15296_v26 = vld [vmem:[#allocation447_spill] sm:$0xff] }
 0x78c   :  { %4810 = vperm.xlu0 %7161, %v15294_v61   ;;  %v6130_v12 = vsel %vm4928_vm9, %v6129_v20, %v6125_v3  ;;  %v6198_v0 = vrot.slane %v15295_v25, %v11620_v11  ;;  %v6268_v60 = vsel %vm13491_vm5, %v6267_v52, %v6263_v57  ;;  %v6406_v54 = vrot.slane %v4634_v51, %v11701_v27  ;;  %v15297_v51 = vld [vmem:[#allocation254_spill] sm:$0xff]  ;;  %v15298_v14 = vld [vmem:[#allocation255_spill] sm:$0xff] }
 0x78d   :  { %v6135_v7 = vsel %vm4935_vm10, %v6134_v53, %v6130_v12  ;;  %v6273_v9 = vsel %vm4907_vm6, %v6272_v34, %v6268_v60  ;;  %v6282_v29 = vrot.slane %v12279_v2, %v11653_v24  ;;  %v6402_v39 = vsel %vm4977_vm0, %v6401_v62, %v6397_v16  ;;  %v4646_v34 = vpop.permute.xlu0 %4645  ;;  %v15301_v62 = vld [vmem:[#allocation460_spill] sm:$0xff]  ;;  %v15303_v60 = vld [vmem:[#allocation233_spill] sm:$0xff] }
 0x78e   :  { %v6144_v23 = vrot.slane %v15296_v26, %v11681_v55  ;;  %v6199_v3 = vsel %vm13489_vm7, %v6198_v0, %v6194_v13  ;;  %v6277_v20 = vrot.slane %v12217_v21, %v11620_v11  ;;  %v12655_v57 = vsel %vm4984_vm1, %v6406_v54, %v6402_v39  ;;  %v4637_v53 = vpop.permute.xlu1 %4636  ;;  %v15299_v21 = vld [vmem:[#allocation423_spill] sm:$0xff]  ;;  %v15302_v12 = vld [vmem:[#allocation280_spill] sm:$0xff] }
 0x78f   :  { %4768 = vperm.xlu1 %7162, %v15297_v51   ;;  %v6204_v56 = vsel %vm4921_vm8, %v6203_v10, %v6199_v3  ;;  %v6213_v2 = vrot.slane %v12059_v58, %v11667_v42  ;;  %v6415_v52 = vrot.slane %v4640_v47, %v11611_v4  ;;  %v6411_v41 = vrot.slane %v4637_v53, %v11588_v18  ;;  %v15300_v13 = vld [vmem:[#allocation247_spill] sm:$0xff]  ;;  %v15306_v51 = vld [vmem:[#allocation274_spill] sm:$0xff] }
 0x790   :  { %4771 = vperm.xlu0 %7161, %v15298_v14   ;;  %v6090_v16 = vrot.slane %v15299_v21, %v11701_v27  ;;  %v6139_v5 = vrot.slane %v15300_v13, %v11656_v15  ;;  %v6208_v61 = vrot.slane %v15301_v62, %v11634_v28  ;;  %v6278_v10 = vsel %vm13489_vm7, %v6277_v20, %v6273_v9  ;;  %v15304_v9 = vld [vmem:[#allocation279_spill] sm:$0xff] }
 0x791   :  { %v6081_v58 = vsel %vm4970_vm15, %v6080_v49, %v6076_v1  ;;  %v6283_v47 = vsel %vm4921_vm8, %v6282_v29, %v6278_v10  ;;  %v6292_v25 = vrot.slane %v15302_v12, %v11667_v42  ;;  %v6416_v0 = vsel %vm4886_vm3, %v6415_v52, %v6411_v41  ;;  %v4652_v1 = vpop.permute.xlu0 %4651  ;;  %v15307_v41 = vld [vmem:[#allocation465_spill] sm:$0xff]  ;;  %v15309_v14 = vld [vmem:[#allocation271_spill] sm:$0xff] }
 0x792   :  { %v6085_v54 = vrot.slane %v15303_v60, %v11715_v43  ;;  %v6140_v39 = vsel %vm4942_vm11, %v6139_v5, %v6135_v7  ;;  %v6209_v26 = vsel %vm4928_vm9, %v6208_v61, %v6204_v56  ;;  %v6287_v3 = vrot.slane %v15304_v9, %v11634_v28  ;;  %v4643_v49 = vpop.permute.xlu1 %4642  ;;  %v15308_v7 = vld [vmem:[#allocation256_spill] sm:$0xff] }
 0x793   :  { %4852 = vperm.xlu1 %7162, %v15305_v8   ;;  %v6145_v29 = vsel %vm4949_vm12, %v6144_v23, %v6140_v39  ;;  %v6214_v20 = vsel %vm4935_vm10, %v6213_v2, %v6209_v26  ;;  %v6223_v53 = vrot.slane %v15306_v51, %v11681_v55  ;;  %v6420_v52 = vrot.slane %v4643_v49, %v11617_v17  ;;  %v15310_v23 = vld [vmem:[#allocation440_spill] sm:$0xff]  ;;  %v15311_v39 = vld [vmem:[#allocation469_spill] sm:$0xff]  ;;  %v15312_v26 = vld [vmem:[#allocation454_spill] sm:$0xff] }
 0x794   :  { %4855 = vperm.xlu0 %7161, %v15307_v41   ;;  %v6154_v56 = vrot.slane %v15308_v7, %v11698_v19  ;;  %v6218_v21 = vrot.slane %v15309_v14, %v11656_v15  ;;  %v6288_v13 = vsel %vm4928_vm9, %v6287_v3, %v6283_v47  ;;  %v6425_v5 = vrot.slane %v4646_v34, %v11614_v63 }
 0x795   :  { %v6149_v2 = vrot.slane %v15310_v23, %v11670_v44  ;;  %v6293_v62 = vsel %vm4935_vm10, %v6292_v25, %v6288_v13  ;;  %v6302_v61 = vrot.slane %v12345_v48, %v11681_v55  ;;  %v6421_v10 = vsel %vm13490_vm4, %v6420_v52, %v6416_v0  ;;  %v4658_v3 = vpop.permute.xlu0 %4657  ;;  %v15313_v0 = vld [vmem:[#allocation276_spill] sm:$0xff]  ;;  %v15317_v13 = vld [vmem:[#allocation251_spill] sm:$0xff]  ;;  %v15318_v23 = vld [vmem:[#allocation281_spill] sm:$0xff] }
 0x796   :  { %v6086_v12 = vsel %vm4977_vm0, %v6085_v54, %v6081_v58  ;;  %v6219_v60 = vsel %vm4942_vm11, %v6218_v21, %v6214_v20  ;;  %v6297_v47 = vrot.slane %v15311_v39, %v11656_v15  ;;  %v4649_v34 = vpop.permute.xlu1 %4648  ;;  %v6426_v9 = vsel %vm13491_vm5, %v6425_v5, %v6421_v10  ;;  %v15314_v54 = vld [vmem:[#allocation262_spill] sm:$0xff]  ;;  %v15315_v20 = vld [vmem:[#allocation272_spill] sm:$0xff] }
 0x797   :  { %4813 = vperm.xlu1 %7162, %v15312_v26   ;;  %v6150_v25 = vsel %vm4956_vm13, %v6149_v2, %v6145_v29  ;;  %v6224_v48 = vsel %vm4949_vm12, %v6223_v53, %v6219_v60  ;;  %v6233_v8 = vrot.slane %v15313_v0, %v11698_v19  ;;  %v6430_v58 = vrot.slane %v4649_v34, %v11631_v37  ;;  %v15316_v29 = vld [vmem:[#allocation259_spill] sm:$0xff]  ;;  %v15320_v39 = vld [vmem:[#allocation278_spill] sm:$0xff]  ;;  %v15321_v34 = vld [vmem:[#allocation453_spill] sm:$0xff] }
 0x798   :  { %4816 = vperm.xlu0 %7161, %v15314_v54   ;;  %v6155_v49 = vsel %vm4963_vm14, %v6154_v56, %v6150_v25  ;;  %v6228_v51 = vrot.slane %v15315_v20, %v11670_v44  ;;  %v6298_v52 = vsel %vm4942_vm11, %v6297_v47, %v6293_v62  ;;  %v6435_v41 = vrot.slane %v4652_v1, %v11620_v11  ;;  %v15319_v62 = vld [vmem:[#allocation451_spill] sm:$0xff]  ;;  %v15323_v20 = vld [vmem:[#allocation448_spill] sm:$0xff] }
 0x799   :  { %v6164_v7 = vrot.slane %v15316_v29, %v11715_v43  ;;  %v6303_v53 = vsel %vm4949_vm12, %v6302_v61, %v6298_v52  ;;  %v6312_v14 = vrot.slane %v12374_v22, %v11698_v19  ;;  %v6431_v21 = vsel %vm4907_vm6, %v6430_v58, %v6426_v9  ;;  %v4664_v60 = vpop.permute.xlu0 %4663  ;;  %v15322_v25 = vld [vmem:[#allocation275_spill] sm:$0xff]  ;;  %v15324_v52 = vld [vmem:[#allocation282_spill] sm:$0xff]  ;;  %v15325_v29 = vld [vmem:[#allocation268_spill] sm:$0xff] }
 0x79a   :  { %v6159_v56 = vrot.slane %v15317_v13, %v11684_v59  ;;  %v6229_v5 = vsel %vm4956_vm13, %v6228_v51, %v6224_v48  ;;  %v6307_v2 = vrot.slane %v15318_v23, %v11670_v44  ;;  %v4655_v1 = vpop.permute.xlu1 %4654  ;;  %v6436_v10 = vsel %vm13489_vm7, %v6435_v41, %v6431_v21  ;;  %v15328_v23 = vld [vmem:[#allocation464_spill] sm:$0xff] }
 0x79b   :  { %4774 = vperm.xlu1 %7162, %v15319_v62   ;;  %v6091_v61 = vsel %vm4984_vm1, %v6090_v16, %v6086_v12  ;;  %v6234_v22 = vsel %vm4963_vm14, %v6233_v8, %v6229_v5  ;;  %v6243_v47 = vrot.slane %v15320_v39, %v11715_v43  ;;  %v6440_v26 = vrot.slane %v4655_v1, %v11653_v24 }
 0x79c   :  { %4777 = vperm.xlu0 %7161, %v15321_v34   ;;  %v6160_v9 = vsel %vm4970_vm15, %v6159_v56, %v6155_v49  ;;  %v6238_v48 = vrot.slane %v15322_v25, %v11684_v59  ;;  %v6308_v0 = vsel %vm4956_vm13, %v6307_v2, %v6303_v53  ;;  %v6445_v58 = vrot.slane %v4658_v3, %v11634_v28  ;;  %v15327_v56 = vld [vmem:[#allocation270_spill] sm:$0xff]  ;;  %v15330_v25 = vld [vmem:[#allocation263_spill] sm:$0xff] }
 0x79d   :  { %v6165_v16 = vsel %vm4977_vm0, %v6164_v7, %v6160_v9  ;;  %v6313_v12 = vsel %vm4963_vm14, %v6312_v14, %v6308_v0  ;;  %v6322_v8 = vrot.slane %v12421_v33, %v11715_v43  ;;  %v6441_v54 = vsel %vm4921_vm8, %v6440_v26, %v6436_v10  ;;  %v4670_v53 = vpop.permute.xlu0 %4669  ;;  %v15326_v14 = vld [vmem:[#allocation277_spill] sm:$0xff]  ;;  %v15332_v0 = vld [vmem:[#allocation155_spill] sm:$0xff] }
 0x79e   :  { %v6169_v51 = vrot.slane %v15323_v20, %v11701_v27  ;;  %v6239_v49 = vsel %vm4970_vm15, %v6238_v48, %v6234_v22  ;;  %v6317_v41 = vrot.slane %v15324_v52, %v11684_v59  ;;  %v4661_v3 = vpop.permute.xlu1 %4660  ;;  %v6446_v7 = vsel %vm4928_vm9, %v6445_v58, %v6441_v54  ;;  %v15329_v10 = vld [vmem:[#allocation273_spill] sm:$0xff]  ;;  %v15334_v52 = vld [vmem:[#allocation143_spill] sm:$0xff] }
 0x79f   :  { %4858 = vperm.xlu1 %7162, %v15325_v29   ;;  %vm13492_vm7 = vcmask 1041408   ;;  %v6805_v33 = vsel %vm6803_vm2, %v12570_v31, %v15326_v14  ;;  %v6244_v21 = vsel %vm4977_vm0, %v6243_v47, %v6239_v49  ;;  %v6450_v13 = vrot.slane %v4661_v3, %v11667_v42 }
 0x7a0   :  { %4861 = vperm.xlu0 %7161, %v15327_v56   ;;  %v6170_v5 = vsel %vm4984_vm1, %v6169_v51, %v6165_v16  ;;  %v6248_v2 = vrot.slane %v15328_v23, %v11701_v27  ;;  %v6318_v62 = vsel %vm4970_vm15, %v6317_v41, %v6313_v12  ;;  %v6455_v1 = vrot.slane %v4664_v60, %v11656_v15  ;;  %v15333_v12 = vld [vmem:[#allocation269_spill] sm:$0xff] }
 0x7a1   :  { %v6804_v22 = vsel %vm6803_vm2, %v12564_v30, %v15329_v10  ;;  %v6806_v31 = vsel %vm6803_vm2, %v6091_v61, %v12402_v46  ;;  %v6323_v39 = vsel %vm4977_vm0, %v6322_v8, %v6318_v62  ;;  %v6451_v47 = vsel %vm4935_vm10, %v6450_v13, %v6446_v7  ;;  %v4676_v30 = vpop.permute.xlu0 %4675  ;;  %v15335_v7 = vld [vmem:[#allocation459_spill] sm:$0xff]  ;;  %v15339_v23 = vld [vmem:[#allocation157_spill] sm:$0xff]  ;;  %v15340_v10 = vld [vmem:[#allocation436_spill] sm:$0xff] }
 0x7a2   :  { %v6830_v26 = vsel %vm13492_vm7, %v6805_v33, 0.0  ;;  %v6249_v34 = vsel %vm4984_vm1, %v6248_v2, %v6244_v21  ;;  %v6327_v9 = vrot.slane %v12376_v50, %v11701_v27  ;;  %v4667_v60 = vpop.permute.xlu1 %4666  ;;  %v6456_v48 = vsel %vm4942_vm11, %v6455_v1, %v6451_v47  ;;  %v15337_v13 = vld [vmem:[#allocation283_spill] sm:$0xff] }
 0x7a3   :  { %4819 = vperm.xlu1 %7162, %v15330_v25   ;;  %v15331_v46 = vrot.slane %v15244_v6, %v11715_v43  ;;  %v5517_v58 = vrot.slane %v15332_v0, %v11670_v44  ;;  %v6807_v16 = vsel %vm6803_vm2, %v6170_v5, %v12409_v32  ;;  %v6460_v50 = vrot.slane %v4667_v60, %v11681_v55 }
 0x7a4   :  { %4864 = vperm.xlu0 %7161, %v15333_v12   ;;  %v6829_v8 = vsel %vm13492_vm7, %v6804_v22, 0.0  ;;  %v6832_v54 = vsel %vm13492_vm7, %v6806_v31, 0.0  ;;  %v6328_v20 = vsel %vm4984_vm1, %v6327_v9, %v6323_v39  ;;  %v6465_v6 = vrot.slane %v4670_v53, %v11670_v44  ;;  %v15341_v22 = vld [vmem:[#allocation39_spill] sm:$0xff] }
 0x7a5   :  { %v5454_v61 = vsel %vm4977_vm0, %v15331_v46, %v12430_v38  ;;  %v5518_v38 = vsel %vm4956_vm13, %v5517_v58, %v12481_v40  ;;  %v6831_v51 = vadd.f32 %v6830_v26, %v6829_v8  ;;  %v6808_v49 = vsel %vm6803_vm2, %v6249_v34, %v12416_v36  ;;  %v4682_v14 = vpop.permute.xlu0 %4681  ;;  %v15336_v36 = vld [vmem:[#allocation160_spill] sm:$0xff]  ;;  %v15345_v12 = vld [vmem:[#allocation159_spill] sm:$0xff] }
 0x7a6   :  { %v6461_v32 = vsel %vm4949_vm12, %v6460_v50, %v6456_v48  ;;  %v5458_v41 = vrot.slane %v15334_v52, %v11701_v27  ;;  %v5523_v29 = vsel %vm4963_vm14, %v5522_v35, %v5518_v38  ;;  %v6834_v3 = vsel %vm13492_vm7, %v6807_v16, 0.0  ;;  %v4673_v53 = vpop.permute.xlu1 %4672  ;;  %v15342_v34 = vld [vmem:[#allocation364_spill] sm:$0xff]  ;;  %v15343_v48 = vld [vmem:[#allocation461_spill] sm:$0xff] }
 0x7a7   :  { %4822 = vperm.xlu1 %7162, %v15335_v7   ;;  %v6466_v40 = vsel %vm4956_vm13, %v6465_v6, %v6461_v32  ;;  %v5532_v33 = vrot.slane %v15336_v36, %v11715_v43  ;;  %v6833_v21 = vadd.f32 %v6832_v54, %v6831_v51  ;;  %v6809_v56 = vsel %vm6803_vm2, %v6328_v20, %v15337_v13  ;;  %v15346_v6 = vld [vmem:[#allocation162_spill] sm:$0xff]  ;;  %v15347_v52 = vld [vmem:[#allocation161_spill] sm:$0xff] }
 0x7a8   :  { %v6470_v5 = vrot.slane %v4673_v53, %v11698_v19  ;;  %4867 = vperm.xlu0 %7161, %v15338_v45   ;;  %v5459_v35 = vsel %vm4984_vm1, %v5458_v41, %v5454_v61  ;;  %v5527_v2 = vrot.slane %v15339_v23, %v11684_v59  ;;  %v6836_v62 = vsel %vm13492_vm7, %v6808_v49, 0.0 }
 0x7a9   :  { %v6475_v1 = vrot.slane %v4676_v30, %v11684_v59  ;;  %v3338_v31 = vmul.f32 %v15341_v22, %v15340_v10  ;;  %v6835_v39 = vadd.f32 %v6834_v3, %v6833_v21  ;;  %v6810_v47 = vsel %vm6803_vm2, %v12655_v57, %v5459_v35  ;;  %v4688_v61 = vpop.permute.xlu0 %4687  ;;  %v15344_v57 = vld [vmem:[#allocation37_spill] sm:$0xff] }
 0x7aa   :  { %v6471_v26 = vsel %vm4963_vm14, %v6470_v5, %v6466_v40  ;;  %v1953_v9 = vmul.f32 0.015625, %v15342_v34  ;;  %v5528_v25 = vsel %vm4970_vm15, %v5527_v2, %v5523_v29  ;;  %v6838_v60 = vsel %vm13492_vm7, %v6809_v56, 0.0  ;;  %v4679_v46 = vpop.permute.xlu1 %4678  ;;  %v15348_v29 = vld [vmem:[#allocation164_spill] sm:$0xff]  ;;  %v7027_v56 = vld [vmem:[%s13286_s5] sm:$0x3]  ;;  %v7105_v5 = vpop.f32.mrf.mxu1 }
 0x7ab   :  { %4825 = vperm.xlu1 %7162, %v15343_v48   ;;  %v6476_v30 = vsel %vm4970_vm15, %v6475_v1, %v6471_v26  ;;  %v5533_v0 = vsel %vm4977_vm0, %v5532_v33, %v5528_v25  ;;  %v6837_v58 = vadd.f32 %v6836_v62, %v6835_v39  ;;  %v6480_v16 = vrot.slane %v4679_v46, %v11715_v43  ;;  %v15349_v62 = vld [vmem:[#allocation166_spill] sm:$0xff]  ;;  %v15351_v26 = vld [vmem:[#allocation299_spill] sm:$0xff] }
 0x7ac   :  { %4873 = vperm.xlu0 %7161, %v3338_v31   ;;  %v3337_v50 = vmul.f32 %v15344_v57, %v1953_v9  ;;  %v5537_v8 = vrot.slane %v15345_v12, %v11701_v27  ;;  %v6840_v54 = vsel %vm13492_vm7, %v6810_v47, 0.0  ;;  %v6485_v20 = vrot.slane %v4682_v14, %v11701_v27  ;;  %v15350_v31 = vld [vmem:[#allocation163_spill] sm:$0xff]  ;;  %v15352_v9 = vld [vmem:[#allocation316_spill] sm:$0xff]  ;;  %v7107_v48 = vpop.f32.mrf.mxu1  ;;  %v15354_v12 = vld [vmem:[#allocation165_spill] sm:$0xff] }
 0x7ad   :  { %v5542_v38 = vrot.slane %v15346_v6, %v11588_v18  ;;  %v6839_v51 = vadd.f32 %v6838_v60, %v6837_v58  ;;  %v6481_v49 = vsel %vm4977_vm0, %v6480_v16, %v6476_v30  ;;  %v5546_v41 = vrot.slane %v15347_v52, %v11611_v4  ;;  %v4694_v40 = vpop.permute.xlu0 %4693  ;;  %v7112_v6 = vld [vmem:[%s13287_s7] sm:$0x3] }
 0x7ae   :  { %v5538_v32 = vsel %vm4984_vm1, %v5537_v8, %v5533_v0  ;;  %v5551_v3 = vrot.slane %v15348_v29, %v11617_v17  ;;  %v6486_v7 = vsel %vm4984_vm1, %v6485_v20, %v6481_v49  ;;  %v4685_v53 = vpop.permute.xlu1 %4684  ;;  %v6494_v33 = vrot.slane %v4688_v61, %v11611_v4  ;;  %v15353_v0 = vld [vmem:[#allocation168_spill] sm:$0xff]  ;;  %v15355_v49 = vld [vmem:[#allocation167_spill] sm:$0xff] }
 0x7af   :  { %4870 = vperm.xlu1 %7162, %v3337_v50   ;;  %v6841_v14 = vadd.f32 %v6840_v54, %v6839_v51  ;;  %v6811_v36 = vsel %vm6803_vm2, %v6486_v7, %v5538_v32  ;;  %v6490_v21 = vrot.slane %v4685_v53, %v11588_v18  ;;  %v5547_v45 = vsel %vm4886_vm3, %v5546_v41, %v5542_v38 }
 0x7b0   :  { %v6842_v13 = vsel %vm13492_vm7, %v6811_v36, 0.0  ;;  %v5552_v2 = vsel %vm13490_vm4, %v5551_v3, %v5547_v45  ;;  %v5561_v1 = vrot.slane %v15349_v62, %v11631_v37  ;;  %v5556_v39 = vrot.slane %v15350_v31, %v11614_v63  ;;  %v15357_v3 = vld [vmem:[#allocation170_spill] sm:$0xff]  ;;  %v15359_v62 = vld [vmem:[#allocation171_spill] sm:$0xff] }
 0x7b1   :  { %v12855_v35 = vadd.f32 %v6842_v13, %v6841_v14  ;;  %v6495_v23 = vsel %vm4886_vm3, %v6494_v33, %v6490_v21  ;;  %v4700_v22 = vpop.permute.xlu0 %4699  ;;  %v7032_v34 = vrot.slane %v7027_v56, %v15351_v26  ;;  %v7036_v25 = vrot.slane %v7027_v56, %v15352_v9 }
 0x7b2   :  { %v4691_v10 = vpop.permute.xlu1 %4690  ;;  %v6504_v60 = vrot.slane %v4694_v40, %v11614_v63  ;;  %v5557_v46 = vsel %vm13491_vm5, %v5556_v39, %v5552_v2  ;;  %v5571_v58 = vrot.slane %v15353_v0, %v11653_v24  ;;  %v5566_v8 = vrot.slane %v15354_v12, %v11620_v11  ;;  %v15360_v39 = vld [vmem:[#allocation169_spill] sm:$0xff] }
 0x7b3   :  { %v6499_v47 = vrot.slane %v4691_v10, %v11617_v17  ;;  %v5562_v61 = vsel %vm4907_vm6, %v5561_v1, %v5557_v46  ;;  %v7106_v20 = vadd.f32 %v7105_v5, %v7032_v34  ;;  %v7108_v38 = vadd.f32 %v7107_v48, %v7036_v25 }
 0x7b4   :  { %v6514_v51 = vrot.slane %v4700_v22, %v11620_v11  ;;  %v5576_v32 = vrot.slane %v15355_v49, %v11634_v28  ;;  %v5581_v7 = vrot.slane %v15357_v3, %v11667_v42  ;;  %v7117_v36 = vrot.slane %v7112_v6, %v15351_v26 }
 0x7b5   :  { %v6500_v30 = vsel %vm13490_vm4, %v6499_v47, %v6495_v23  ;;  %v4706_v50 = vpop.permute.xlu0 %4705  ;;  %vm15356_vm4 = vcmask 392512   ;;  %v7110_v21 = vmax.f32 %v7106_v20, 0.0  ;;  %v7111_v13 = vmax.f32 %v7108_v38, 0.0 }
 0x7b6   :  { %v4697_v16 = vpop.permute.xlu1 %4696  ;;  %v6505_v57 = vsel %vm13491_vm5, %v6504_v60, %v6500_v30  ;;  %v5567_v52 = vsel %vm15356_vm4, %v5566_v8, %v5562_v61  ;;  %vm15358_vm5 = vmmov %vm15356_vm4  ;;  %v7121_v56 = vrot.slane %v7112_v6, %v15352_v9  ;;  %v6524_v5 = vrot.slane %v4706_v50, %v11634_v28  ;;  %v15362_v8 = vld [vmem:[#allocation365_spill] sm:$0xff] }
 0x7b7   :  { %v6509_v54 = vrot.slane %v4697_v16, %v11631_v37  ;;  %v5572_v29 = vsel %vm4921_vm8, %v5571_v58, %v5567_v52  ;;  %v5591_v1 = vrot.slane %v15359_v62, %v11681_v55  ;;  %v5586_v47 = vrot.slane %v15360_v39, %v11656_v15  ;;  %v15361_v58 = vld [vmem:[#allocation366_spill] sm:$0xff] }
 0x7b8   :  { %v5577_v45 = vsel %vm4928_vm9, %v5576_v32, %v5572_v29  ;;  %v7124_v34 = vmul.f32 %v7117_v36, %v7110_v21  ;;  %v7125_v9 = vmul.f32 %v7121_v56, %v7111_v13  ;;  %v5601_v16 = vrot.slane %v15361_v58, %v11698_v19  ;;  %v15363_v29 = vld [vmem:[#allocation173_spill] sm:$0xff] }
 0x7b9   :  { %v6510_v41 = vsel %vm4907_vm6, %v6509_v54, %v6505_v57  ;;  %v4712_v14 = vpop.permute.xlu0 %4711  ;;  %v5582_v2 = vsel %vm4935_vm10, %v5581_v7, %v5577_v45  ;;  %v5596_v54 = vrot.slane %v15362_v8, %v11670_v44  ;;  %v5611_v3 = vrot.slane %v15363_v29, %v11715_v43 }
 0x7ba   :  { %v4703_v53 = vpop.permute.xlu1 %4702  ;;  %v6515_v40 = vsel %vm15358_vm5, %v6514_v51, %v6510_v41  ;;  %v6534_v25 = vrot.slane %v4712_v14, %v11656_v15  ;;  %v5587_v60 = vsel %vm4942_vm11, %v5586_v47, %v5582_v2  ;;  %v7126_v50 = vsel %vm13492_vm7, %v7124_v34, 0.0 }
 0x7bb   :  { %v6519_v33 = vrot.slane %v4703_v53, %v11653_v24  ;;  %v5592_v46 = vsel %vm4949_vm12, %v5591_v1, %v5587_v60  ;;  %v7127_v12 = vsel %vm13492_vm7, %v7125_v9, 0.0  ;;  %v15364_v53 = vld [vmem:[#allocation172_spill] sm:$0xff]  ;;  %vm15366_vm4 = vcmask 195712  }
 0x7bc   :  { %v5597_v38 = vsel %vm4956_vm13, %v5596_v54, %v5592_v46  ;;  %v7128_v52 = vadd.f32 %v7127_v12, %v7126_v50  ;;  %vm15367_vm5 = vcmask 261312  }
 0x7bd   :  { %v6520_v23 = vsel %vm4921_vm8, %v6519_v33, %v6515_v40  ;;  %v4718_v31 = vpop.permute.xlu0 %4717  ;;  %v5602_v41 = vsel %vm4963_vm14, %v5601_v16, %v5597_v38  ;;  %v5606_v40 = vrot.slane %v15364_v53, %v11684_v59 }
 0x7be   :  { %v4709_v10 = vpop.permute.xlu1 %4708  ;;  %v6525_v22 = vsel %vm4928_vm9, %v6524_v5, %v6520_v23  ;;  %v6544_v20 = vrot.slane %v4718_v31, %v11670_v44  ;;  %v15365_v23 = vld [vmem:[#allocation369_spill] sm:$0xff] }
 0x7bf   :  { %v6529_v26 = vrot.slane %v4709_v10, %v11667_v42  ;;  %v5607_v33 = vsel %vm4970_vm15, %v5606_v40, %v5602_v41  ;;  %v5616_v2 = vrot.slane %v15365_v23, %v11701_v27 }
 0x7c0   :  { %v5612_v5 = vsel %vm4977_vm0, %v5611_v3, %v5607_v33 }
 0x7c1   :  { %v6530_v48 = vsel %vm4935_vm10, %v6529_v26, %v6525_v22  ;;  %v4724_v0 = vpop.permute.xlu0 %4723  ;;  %v5617_v10 = vsel %vm4984_vm1, %v5616_v2, %v5612_v5  ;;  %v15371_v5 = vld [vmem:[#allocation174_spill] sm:$0xff] }
 0x7c2   :  { %v4715_v30 = vpop.permute.xlu1 %4714  ;;  %v6535_v61 = vsel %vm4942_vm11, %v6534_v25, %v6530_v48  ;;  %v6554_v14 = vrot.slane %v4724_v0, %v11684_v59  ;;  %v14_v0 = vstv %s13288_s8 }
 0x7c3   :  { %v6539_v57 = vrot.slane %v4715_v30, %v11681_v55  ;;  %15 = vst [vmem:[#allocation2] sm:$0x1] %v14_v0 }
 0x7c5   :  { %v6540_v6 = vsel %vm4949_vm12, %v6539_v57, %v6535_v61  ;;  %v4730_v32 = vpop.permute.xlu0 %4729 }
 0x7c6   :  { %v4721_v51 = vpop.permute.xlu1 %4720  ;;  %v6545_v49 = vsel %vm4956_vm13, %v6544_v20, %v6540_v6  ;;  %v6564_v62 = vrot.slane %v4730_v32, %v11701_v27 }
 0x7c7   :  { %v6549_v7 = vrot.slane %v4721_v51, %v11698_v19 }
 0x7c9   :  { %v6550_v36 = vsel %vm4963_vm14, %v6549_v7, %v6545_v49  ;;  %v4736_v56 = vpop.permute.xlu0 %4735 }
 0x7ca   :  { %v4727_v21 = vpop.permute.xlu1 %4726  ;;  %v6555_v13 = vsel %vm4970_vm15, %v6554_v14, %v6550_v36  ;;  %v6573_v26 = vrot.slane %v4736_v56, %v11611_v4  ;;  %v15369_v14 = vld [vmem:[#allocation367_spill] sm:$0xff] }
 0x7cb   :  { %7129 = vadd.xlane.f32.xlu0 %v7128_v52  ;;  %v6559_v45 = vrot.slane %v4727_v21, %v11715_v43  ;;  %v5621_v36 = vrot.slane %v15369_v14, %v11588_v18 }
 0x7cd   :  { %v6560_v1 = vsel %vm4977_vm0, %v6559_v45, %v6555_v13  ;;  %v4742_v39 = vpop.permute.xlu0 %4741  ;;  %v15370_v13 = vld [vmem:[#allocation175_spill] sm:$0xff]  ;;  %v5625_v45 = vrot.slane %v15371_v5, %v11611_v4 }
 0x7ce   :  { %v6565_v22 = vsel %vm4984_vm1, %v6564_v62, %v6560_v1  ;;  %v4733_v31 = vpop.permute.xlu1 %4732  ;;  %v6583_v61 = vrot.slane %v4742_v39, %v11614_v63  ;;  %v5630_v56 = vrot.slane %v15370_v13, %v11617_v17  ;;  %v15382_v13 = vld [vmem:[#allocation179_spill] sm:$0xff] }
 0x7cf   :  { %v6812_v47 = vsel %vm6803_vm2, %v6565_v22, %v5617_v10  ;;  %v6569_v34 = vrot.slane %v4733_v31, %v11588_v18  ;;  %v5626_v23 = vsel %vm4886_vm3, %v5625_v45, %v5621_v36  ;;  %v15373_v10 = vld [vmem:[#allocation368_spill] sm:$0xff]  ;;  %v15374_v31 = vld [vmem:[#allocation371_spill] sm:$0xff] }
 0x7d0   :  { %v6844_v9 = vsel %vm13492_vm7, %v6812_v47, 0.0  ;;  %vm15368_vm7 = vmmov %vm15366_vm4  ;;  %v5640_v22 = vrot.slane %v15373_v10, %v11631_v37  ;;  %v5635_v39 = vrot.slane %v15374_v31, %v11614_v63  ;;  %v15383_v5 = vld [vmem:[#allocation183_spill] sm:$0xff]  ;;  %v15385_v10 = vld [vmem:[#allocation182_spill] sm:$0xff] }
 0x7d1   :  { %v6574_v25 = vsel %vm4886_vm3, %v6573_v26, %v6569_v34  ;;  %v12941_v60 = vadd.f32 %v6844_v9, %v12855_v35  ;;  %v4784_v46 = vpop.permute.xlu0 %4783  ;;  %v5709_v45 = vrot.slane %v15383_v5, %v11617_v17 }
 0x7d2   :  { %v4739_v48 = vpop.permute.xlu1 %4738  ;;  %v6652_v35 = vrot.slane %v4784_v46, %v11611_v4  ;;  %v15377_v46 = vld [vmem:[#allocation176_spill] sm:$0xff] }
 0x7d3   :  { %v6578_v30 = vrot.slane %v4739_v48, %v11617_v17 }
 0x7d5   :  { %v6579_v58 = vsel %vm15366_vm4, %v6578_v30, %v6574_v25  ;;  %v4787_v57 = vpop.permute.xlu0 %4786  ;;  %v15376_v25 = vld [vmem:[#allocation177_spill] sm:$0xff]  ;;  %v5645_v30 = vrot.slane %v15377_v46, %v11620_v11 }
 0x7d6   :  { %v4781_v16 = vpop.permute.xlu1 %4780  ;;  %v6584_v50 = vsel %vm15367_vm5, %v6583_v61, %v6579_v58  ;;  %v6657_v8 = vrot.slane %v4787_v57, %v11617_v17  ;;  %v5650_v48 = vrot.slane %v15376_v25, %v11653_v24  ;;  %v15379_v57 = vld [vmem:[#allocation370_spill] sm:$0xff] }
 0x7d7   :  { %v6648_v12 = vrot.slane %v4781_v16, %v11588_v18 }
 0x7d9   :  { %v6653_v54 = vsel %vm4886_vm3, %v6652_v35, %v6648_v12  ;;  %v12957_v38 = vpop.permute.xlu0 %4789  ;;  %v15380_v35 = vld [vmem:[#allocation373_spill] sm:$0xff] }
 0x7da   :  { %v12955_v20 = vsel %vm15368_vm7, %v6657_v8, %v6653_v54  ;;  %v4745_v6 = vpop.permute.xlu1 %4744  ;;  %vm15372_vm7 = vmmov %vm15366_vm4  ;;  %v5655_v12 = vrot.slane %v15380_v35, %v11634_v28  ;;  %v15381_v54 = vld [vmem:[#allocation374_spill] sm:$0xff]  ;;  %v15389_v35 = vld [vmem:[#allocation379_spill] sm:$0xff] }
 0x7db   :  { %v6588_v51 = vrot.slane %v4745_v6, %v11631_v37  ;;  %v5631_v1 = vsel %vm15372_vm7, %v5630_v56, %v5626_v23  ;;  %vm15375_vm4 = vmmov %vm15367_vm5  ;;  %vm15378_vm5 = vcmask 392512   ;;  %v5700_v6 = vrot.slane %v15381_v54, %v11588_v18  ;;  %v15384_v23 = vld [vmem:[#allocation178_spill] sm:$0xff] }
 0x7dc   :  { %v5636_v47 = vsel %vm15375_vm4, %v5635_v39, %v5631_v1  ;;  %v5670_v56 = vrot.slane %v15382_v13, %v11681_v55  ;;  %v5665_v1 = vrot.slane %v15384_v23, %v11656_v15 }
 0x7dd   :  { %v12961_v49 = vsel %vm4907_vm6, %v6588_v51, %v6584_v50  ;;  %v12965_v52 = vpop.permute.xlu0 %4831  ;;  %v5641_v9 = vsel %vm4907_vm6, %v5640_v22, %v5636_v47  ;;  %v5660_v50 = vrot.slane %v15379_v57, %v11667_v42  ;;  %v5704_v22 = vrot.slane %v15385_v10, %v11611_v4  ;;  %v15388_v57 = vld [vmem:[#allocation375_spill] sm:$0xff]  ;;  %v15391_v10 = vld [vmem:[#allocation185_spill] sm:$0xff] }
 0x7de   :  { %v12963_v32 = vpop.permute.xlu1 %4747  ;;  %v5646_v61 = vsel %vm15378_vm5, %v5645_v30, %v5641_v9 }
 0x7df   :  { %v5651_v16 = vsel %vm4921_vm8, %v5650_v48, %v5646_v61  ;;  %v5705_v39 = vsel %vm4886_vm3, %v5704_v22, %v5700_v6  ;;  %v15386_v48 = vld [vmem:[#allocation372_spill] sm:$0xff] }
 0x7e0   :  { %v5656_v8 = vsel %vm4928_vm9, %v5655_v12, %v5651_v16  ;;  %v5680_v46 = vrot.slane %v15386_v48, %v11698_v19  ;;  %v5710_v30 = vsel %vm15372_vm7, %v5709_v45, %v5705_v39  ;;  %v15387_v61 = vld [vmem:[#allocation376_spill] sm:$0xff]  ;;  %v5714_v12 = vrot.slane %v15389_v35, %v11614_v63  ;;  %v15390_v45 = vld [vmem:[#allocation181_spill] sm:$0xff]  ;;  %vm15394_vm7 = vmmov %vm15378_vm5 }
 0x7e1   :  { %v12969_v29 = vpop.permute.xlu0 %4792  ;;  %v5661_v36 = vsel %vm4935_vm10, %v5660_v50, %v5656_v8  ;;  %v5719_v16 = vrot.slane %v15387_v61, %v11631_v37  ;;  %v5675_v50 = vrot.slane %v15388_v57, %v11670_v44  ;;  %v6593_v8 = vrot.slane %v12963_v32, %v11620_v11  ;;  %v15395_v57 = vld [vmem:[#allocation382_spill] sm:$0xff] }
 0x7e2   :  { %v12967_v41 = vpop.permute.xlu1 %4828  ;;  %v5666_v31 = vsel %vm4942_vm11, %v5665_v1, %v5661_v36  ;;  %v5715_v36 = vsel %vm15375_vm4, %v5714_v12, %v5710_v30  ;;  %v5690_v23 = vrot.slane %v15390_v45, %v11715_v43  ;;  %v5729_v32 = vrot.slane %v15391_v10, %v11653_v24  ;;  %v15399_v45 = vld [vmem:[#allocation190_spill] sm:$0xff] }
 0x7e3   :  { %v5671_v25 = vsel %vm4949_vm12, %v5670_v56, %v5666_v31  ;;  %v5720_v1 = vsel %vm4907_vm6, %v5719_v16, %v5715_v36  ;;  %v15393_v31 = vld [vmem:[#allocation184_spill] sm:$0xff]  ;;  %v15398_v36 = vld [vmem:[#allocation381_spill] sm:$0xff]  ;;  %vm15404_vm4 = vcmask 195712  }
 0x7e4   :  { %v5676_v6 = vsel %vm4956_vm13, %v5675_v50, %v5671_v25  ;;  %v5724_v39 = vrot.slane %v15393_v31, %v11620_v11  ;;  %v6594_v25 = vsel %vm15378_vm5, %v6593_v8, %v12961_v49  ;;  %v5779_v50 = vrot.slane %v15395_v57, %v11588_v18  ;;  %v15396_v49 = vld [vmem:[#allocation377_spill] sm:$0xff]  ;;  %v15402_v57 = vld [vmem:[#allocation383_spill] sm:$0xff] }
 0x7e5   :  { %v12971_v7 = vpop.permute.xlu0 %4753  ;;  %v5681_v5 = vsel %vm4963_vm14, %v5680_v46, %v5676_v6  ;;  %v5695_v8 = vrot.slane %v15396_v49, %v11701_v27  ;;  %v15397_v6 = vld [vmem:[#allocation191_spill] sm:$0xff]  ;;  %vm15406_vm5 = vcmask 261312  }
 0x7e6   :  { %v4751_v3 = vpop.permute.xlu1 %4750  ;;  %v6603_v48 = vrot.slane %v12971_v7, %v11634_v28  ;;  %v5725_v16 = vsel %vm15394_vm7, %v5724_v39, %v5720_v1  ;;  %v5783_v1 = vrot.slane %v15399_v45, %v11611_v4  ;;  %v15403_v49 = vld [vmem:[#allocation387_spill] sm:$0xff]  ;;  %vm15410_vm7 = vmmov %vm15406_vm5 }
 0x7e7   :  { %v6598_v54 = vrot.slane %v4751_v3, %v11653_v24  ;;  %v15392_v3 = vld [vmem:[#allocation180_spill] sm:$0xff] }
 0x7e8   :  { %v5685_v22 = vrot.slane %v15392_v3, %v11684_v59 }
 0x7e9   :  { %v12975_v40 = vpop.permute.xlu0 %4837  ;;  %v6599_v46 = vsel %vm4921_vm8, %v6598_v54, %v6594_v25  ;;  %v5730_v54 = vsel %vm4921_vm8, %v5729_v32, %v5725_v16  ;;  %v15401_v25 = vld [vmem:[#allocation186_spill] sm:$0xff] }
 0x7ea   :  { %v12973_v53 = vpop.permute.xlu1 %4834  ;;  %v5686_v61 = vsel %vm4970_vm15, %v5685_v22, %v5681_v5  ;;  %v5734_v5 = vrot.slane %v15398_v36, %v11634_v28  ;;  %v6604_v10 = vsel %vm4928_vm9, %v6603_v48, %v6599_v46  ;;  %v15400_v22 = vld [vmem:[#allocation378_spill] sm:$0xff]  ;;  %v5784_v48 = vsel %vm4886_vm3, %v5783_v1, %v5779_v50 }
 0x7eb   :  { %v5691_v7 = vsel %vm4977_vm0, %v5690_v23, %v5686_v61  ;;  %v5739_v31 = vrot.slane %v15400_v22, %v11667_v42  ;;  %v5744_v61 = vrot.slane %v15401_v25, %v11656_v15  ;;  %v6727_v50 = vrot.slane %v12967_v41, %v11588_v18 }
 0x7ec   :  { %v13100_v39 = vsel %vm4984_vm1, %v5695_v8, %v5691_v7  ;;  %v5735_v16 = vsel %vm4928_vm9, %v5734_v5, %v5730_v54  ;;  %v15405_v7 = vld [vmem:[#allocation384_spill] sm:$0xff]  ;;  %v6662_v54 = vrot.slane %v12957_v38, %v11614_v63  ;;  %v6667_v1 = vrot.slane %v12969_v29, %v11631_v37  ;;  %v15407_v29 = vld [vmem:[#allocation187_spill] sm:$0xff] }
 0x7ed   :  { %v12981_v21 = vpop.permute.xlu0 %4798  ;;  %v5740_v45 = vsel %vm4935_vm10, %v5739_v31, %v5735_v16  ;;  %v6731_v38 = vrot.slane %v12965_v52, %v11611_v4  ;;  %v6736_v18 = vrot.slane %v12973_v53, %v11617_v17  ;;  %v5749_v31 = vrot.slane %v15407_v29, %v11681_v55  ;;  %v15409_v4 = vld [vmem:[#allocation193_spill] sm:$0xff] }
 0x7ee   :  { %v12979_v33 = vpop.permute.xlu1 %4795  ;;  %v5808_v52 = vrot.slane %v15409_v4, %v11653_v24 }
 0x7ef   :  { %v6672_v41 = vrot.slane %v12979_v33, %v11620_v11  ;;  %v6732_v53 = vsel %vm4886_vm3, %v6731_v38, %v6727_v50  ;;  %vm15411_vm3 = vcmask 392512   ;;  %v15413_v50 = vld [vmem:[#allocation389_spill] sm:$0xff] }
 0x7f2   :  { %v12988_v2 = vpop.permute.xlu1 %4756  ;;  %v12990_v62 = vpop.permute.xlu0 %4759 }
 0x7f3   :  { %v6608_v30 = vrot.slane %v12988_v2, %v11667_v42  ;;  %v5788_v2 = vrot.slane %v15397_v6, %v11617_v17  ;;  %v6613_v3 = vrot.slane %v12990_v62, %v11656_v15  ;;  %v5798_v6 = vrot.slane %v15405_v7, %v11631_v37 }
 0x7f4   :  { %v6663_v17 = vsel %vm15410_vm7, %v6662_v54, %v12955_v20  ;;  %v6737_v20 = vsel %vm15404_vm4, %v6736_v18, %v6732_v53 }
 0x7f5   :  { %v6609_v23 = vsel %vm4935_vm10, %v6608_v30, %v6604_v10  ;;  %v5754_v30 = vrot.slane %v15402_v57, %v11670_v44  ;;  %v5789_v8 = vsel %vm15404_vm4, %v5788_v2, %v5784_v48  ;;  %v6668_v16 = vsel %vm4907_vm6, %v6667_v1, %v6663_v17  ;;  %v15417_v17 = vld [vmem:[#allocation194_spill] sm:$0xff]  ;;  %vm15419_vm4 = vmmov %vm15411_vm3 }
 0x7f6   :  { %v12998_v26 = vpop.permute.xlu1 %4840  ;;  %v13000_v34 = vpop.permute.xlu0 %4843  ;;  %v6614_v36 = vsel %vm4942_vm11, %v6613_v3, %v6609_v23  ;;  %v6741_v48 = vrot.slane %v12975_v40, %v11614_v63  ;;  %v6677_v57 = vrot.slane %v12981_v21, %v11653_v24  ;;  %v5823_v53 = vrot.slane %v15417_v17, %v11656_v15 }
 0x7f7   :  { %v6746_v7 = vrot.slane %v12998_v26, %v11631_v37  ;;  %v15414_v26 = vld [vmem:[#allocation386_spill] sm:$0xff] }
 0x7f8   :  { %v6742_v1 = vsel %vm15410_vm7, %v6741_v48, %v6737_v20 }
 0x7fa   :  { %v13008_v0 = vpop.permute.xlu1 %4801  ;;  %v13010_v58 = vpop.permute.xlu0 %4804 }
 0x7fb   :  { %v6687_v38 = vrot.slane %v13010_v58, %v11667_v42 }
 0x7fe   :  { %v13020_v51 = vpop.permute.xlu1 %4762 }
 0x7ff   :  { %v13022_v14 = vpop.permute.xlu0 %4765  ;;  %v6618_v32 = vrot.slane %v13020_v51, %v11681_v55  ;;  %v5793_v51 = vrot.slane %v15403_v49, %v11614_v63  ;;  %v6682_v63 = vrot.slane %v13008_v0, %v11634_v28 }
 0x800   :  { %v6623_v5 = vrot.slane %v13022_v14, %v11670_v44 }
 0x801   :  { %v6619_v2 = vsel %vm4949_vm12, %v6618_v32, %v6614_v36  ;;  %v5794_v22 = vsel %vm15406_vm5, %v5793_v51, %v5789_v8  ;;  %v5745_v51 = vsel %vm4942_vm11, %v5744_v61, %v5740_v45  ;;  %v6673_v8 = vsel %vm15411_vm3, %v6672_v41, %v6668_v16  ;;  %vm15412_vm5 = vmmov %vm15411_vm3 }
 0x802   :  { %v13035_v47 = vpop.permute.xlu1 %4846  ;;  %v5799_v32 = vsel %vm4907_vm6, %v5798_v6, %v5794_v22  ;;  %v6624_v33 = vsel %vm4956_vm13, %v6623_v5, %v6619_v2  ;;  %v5750_v61 = vsel %vm4949_vm12, %v5749_v31, %v5745_v51  ;;  %v5813_v36 = vrot.slane %v15413_v50, %v11634_v28 }
 0x803   :  { %v13037_v9 = vpop.permute.xlu0 %4849  ;;  %v5818_v45 = vrot.slane %v15414_v26, %v11667_v42  ;;  %v6678_v0 = vsel %vm4921_vm8, %v6677_v57, %v6673_v8  ;;  %v6751_v22 = vrot.slane %v13000_v34, %v11620_v11  ;;  %v15415_v34 = vld [vmem:[#allocation380_spill] sm:$0xff] }
 0x804   :  { %v6683_v31 = vsel %vm4928_vm9, %v6682_v63, %v6678_v0  ;;  %v5759_v58 = vrot.slane %v15415_v34, %v11698_v19  ;;  %v15420_v8 = vld [vmem:[#allocation188_spill] sm:$0xff] }
 0x805   :  { %v15426_v34 = vld [vmem:[#allocation196_spill] sm:$0xff] }
 0x806   :  { %v13054_v13 = vpop.permute.xlu1 %4807 }
 0x807   :  { %v13056_v56 = vpop.permute.xlu0 %4810 }
 0x808   :  { %v6697_v16 = vrot.slane %v13056_v56, %v11681_v55  ;;  %v15421_v56 = vld [vmem:[#allocation189_spill] sm:$0xff] }
 0x80a   :  { %v4769_v35 = vpop.permute.xlu1 %4768 }
 0x80b   :  { %v13079_v12 = vpop.permute.xlu0 %4771  ;;  %v6628_v10 = vrot.slane %v4769_v35, %v11698_v19  ;;  %v15408_v35 = vld [vmem:[#allocation192_spill] sm:$0xff] }
 0x80c   :  { %v5803_v23 = vrot.slane %v15408_v35, %v11620_v11  ;;  %v6633_v25 = vrot.slane %v13079_v12, %v11684_v59  ;;  %v6756_v35 = vrot.slane %v13035_v47, %v11653_v24  ;;  %v5755_v11 = vsel %vm4956_vm13, %v5754_v30, %v5750_v61  ;;  %v15418_v47 = vld [vmem:[#allocation195_spill] sm:$0xff] }
 0x80d   :  { %v6629_v49 = vsel %vm4963_vm14, %v6628_v10, %v6624_v33  ;;  %v6747_v10 = vsel %vm4907_vm6, %v6746_v7, %v6742_v1  ;;  %vm15416_vm6 = vcmask 1041408   ;;  %v6688_v30 = vsel %vm4935_vm10, %v6687_v38, %v6683_v31 }
 0x80e   :  { %v13106_v46 = vpop.permute.xlu1 %4852  ;;  %v5804_v54 = vsel %vm15412_vm5, %v5803_v23, %v5799_v32  ;;  %v6634_v37 = vsel %vm4970_vm15, %v6633_v25, %v6629_v49  ;;  %v6692_v23 = vrot.slane %v13054_v13, %v11656_v15  ;;  %v5828_v13 = vrot.slane %v15418_v47, %v11681_v55 }
 0x80f   :  { %v13108_v62 = vpop.permute.xlu0 %4855  ;;  %v5809_v5 = vsel %vm4921_vm8, %v5808_v52, %v5804_v54  ;;  %v6761_v25 = vrot.slane %v13037_v9, %v11634_v28  ;;  %v6766_v20 = vrot.slane %v13106_v46, %v11667_v42  ;;  %v5764_v7 = vrot.slane %v15420_v8, %v11684_v59  ;;  %v15423_v42 = vld [vmem:[#allocation388_spill] sm:$0xff] }
 0x810   :  { %v5814_v4 = vsel %vm4928_vm9, %v5813_v36, %v5809_v5  ;;  %v6693_v51 = vsel %vm4942_vm11, %v6692_v23, %v6688_v30  ;;  %v5760_v28 = vsel %vm4963_vm14, %v5759_v58, %v5755_v11  ;;  %v5838_v46 = vrot.slane %v15423_v42, %v11698_v19 }
 0x811   :  { %v5819_v24 = vsel %vm4935_vm10, %v5818_v45, %v5814_v4  ;;  %v5765_v1 = vsel %vm4970_vm15, %v5764_v7, %v5760_v28  ;;  %v5843_v58 = vrot.slane %v15426_v34, %v11684_v59 }
 0x812   :  { %v13136_v14 = vpop.permute.xlu1 %4813  ;;  %v5824_v9 = vsel %vm4942_vm11, %v5823_v53, %v5819_v24 }
 0x813   :  { %v13138_v3 = vpop.permute.xlu0 %4816  ;;  %v5829_v63 = vsel %vm4949_vm12, %v5828_v13, %v5824_v9  ;;  %v7158_v9 = vld [vmem:[#allocation2] ss:$0 sm:$0xff] }
 0x814   :  { %v6707_v61 = vrot.slane %v13138_v3, %v11698_v19 }
 0x816   :  { %v4775_v12 = vpop.permute.xlu1 %4774 }
 0x817   :  { %v4778_v6 = vpop.permute.xlu0 %4777  ;;  %v6638_v40 = vrot.slane %v4775_v12, %v11715_v43  ;;  %v5769_v12 = vrot.slane %v15421_v56, %v11715_v43 }
 0x818   :  { %v6643_v21 = vrot.slane %v4778_v6, %v11701_v27  ;;  %v15422_v6 = vld [vmem:[#allocation391_spill] sm:$0xff] }
 0x819   :  { %v6639_v2 = vsel %vm4977_vm0, %v6638_v40, %v6634_v37  ;;  %v5833_v54 = vrot.slane %v15422_v6, %v11670_v44  ;;  %v6698_v40 = vsel %vm4949_vm12, %v6697_v16, %v6693_v51  ;;  %v5770_v3 = vsel %vm4977_vm0, %v5769_v12, %v5765_v1 }
 0x81a   :  { %v6644_v18 = vsel %vm4984_vm1, %v6643_v21, %v6639_v2  ;;  %v4859_v41 = vpop.permute.xlu1 %4858  ;;  %v6771_v21 = vrot.slane %v13108_v62, %v11656_v15  ;;  %v15424_v15 = vld [vmem:[#allocation385_spill] sm:$0xff] }
 0x81b   :  { %v13185_v29 = vpop.permute.xlu0 %4861  ;;  %v6813_v32 = vsel %vm6803_vm2, %v6644_v18, %v13100_v39  ;;  %v6752_v39 = vsel %vm15419_vm4, %v6751_v22, %v6747_v10  ;;  %v6776_v37 = vrot.slane %v4859_v41, %v11681_v55  ;;  %v5834_v0 = vsel %vm4956_vm13, %v5833_v54, %v5829_v63  ;;  %v15425_v22 = vld [vmem:[#allocation197_spill] sm:$0xff] }
 0x81c   :  { %v6846_v52 = vsel %vm15416_vm6, %v6813_v32, 0.0  ;;  %v6757_v49 = vsel %vm4921_vm8, %v6756_v35, %v6752_v39  ;;  %v5774_v62 = vrot.slane %v15424_v15, %v11701_v27  ;;  %v5839_v10 = vsel %vm4963_vm14, %v5838_v46, %v5834_v0  ;;  %vm15427_vm8 = vmmov %vm15416_vm6 }
 0x81d   :  { %v6847_v33 = vadd.f32 %v6846_v52, %v12941_v60  ;;  %v6702_v60 = vrot.slane %v13136_v14, %v11670_v44  ;;  %v6762_v14 = vsel %vm4928_vm9, %v6761_v25, %v6757_v49  ;;  %v5848_v38 = vrot.slane %v15425_v22, %v11715_v43  ;;  %v15428_v25 = vld [vmem:[#allocation393_spill] sm:$0xff]  ;;  %vm15429_vm9 = vmmov %vm15416_vm6 }
 0x81e   :  { %v4820_v48 = vpop.permute.xlu1 %4819  ;;  %v6767_v36 = vsel %vm4935_vm10, %v6766_v20, %v6762_v14  ;;  %v6781_v41 = vrot.slane %v13185_v29, %v11670_v44  ;;  %v5775_v17 = vsel %vm4984_vm1, %v5774_v62, %v5770_v3  ;;  %v5844_v53 = vsel %vm4970_vm15, %v5843_v58, %v5839_v10 }
 0x81f   :  { %v4865_v57 = vpop.permute.xlu0 %4864  ;;  %v6703_v5 = vsel %vm4956_vm13, %v6702_v60, %v6698_v40  ;;  %v6712_v26 = vrot.slane %v4820_v48, %v11684_v59  ;;  %v6772_v55 = vsel %vm4942_vm11, %v6771_v21, %v6767_v36  ;;  %v5849_v13 = vsel %vm4977_vm0, %v5848_v38, %v5844_v53 }
 0x820   :  { %v6708_v18 = vsel %vm4963_vm14, %v6707_v61, %v6703_v5  ;;  %v6777_v35 = vsel %vm4949_vm12, %v6776_v37, %v6772_v55  ;;  %v6786_v32 = vrot.slane %v4865_v57, %v11698_v19  ;;  %v5853_v16 = vrot.slane %v15428_v25, %v11701_v27 }
 0x821   :  { %v6713_v23 = vsel %vm4970_vm15, %v6712_v26, %v6708_v18  ;;  %v6782_v24 = vsel %vm4956_vm13, %v6781_v41, %v6777_v35  ;;  %vm7149_vm10 = vcmask 1024  }
 0x822   :  { %v4823_v50 = vpop.permute.xlu1 %4822  ;;  %v6787_v39 = vsel %vm4963_vm14, %v6786_v32, %v6782_v24  ;;  %v5854_v60 = vsel %vm4984_vm1, %v5853_v16, %v5849_v13 }
 0x823   :  { %v4868_v45 = vpop.permute.xlu0 %4867  ;;  %v6717_v2 = vrot.slane %v4823_v50, %v11715_v43 }
 0x824   :  { %v6791_v52 = vrot.slane %v4868_v45, %v11684_v59 }
 0x825   :  { %v6718_v4 = vsel %vm4977_vm0, %v6717_v2, %v6713_v23 }
 0x826   :  { %v4826_v31 = vpop.permute.xlu1 %4825  ;;  %v6792_v48 = vsel %vm4970_vm15, %v6791_v52, %v6787_v39 }
 0x827   :  { %v6722_v11 = vrot.slane %v4826_v31, %v11701_v27  ;;  %v4874_v29 = vpop.permute.xlu0 %4873 }
 0x828   :  { %v6801_v57 = vrot.slane %v4874_v29, %v11701_v27 }
 0x829   :  { %v6723_v44 = vsel %vm4984_vm1, %v6722_v11, %v6718_v4 }
 0x82a   :  { %v6814_v19 = vsel %vm6803_vm2, %v6723_v44, %v5775_v17  ;;  %v4871_v47 = vpop.permute.xlu1 %4870 }
 0x82b   :  { %v6796_v30 = vrot.slane %v4871_v47, %v11715_v43  ;;  %v6848_v59 = vsel %vm15427_vm8, %v6814_v19, 0.0 }
 0x82c   :  { %v6849_v49 = vadd.f32 %v6848_v59, %v6847_v33 }
 0x82d   :  { %v6797_v51 = vsel %vm4977_vm0, %v6796_v30, %v6792_v48 }
 0x82e   :  { %v6802_v20 = vsel %vm4984_vm1, %v6801_v57, %v6797_v51 }
 0x82f   :  { %v6815_v8 = vsel %vm6803_vm2, %v6802_v20, %v5854_v60 }
 0x830   :  { %v6850_v43 = vsel %vm15429_vm9, %v6815_v8, 0.0 }
 0x831   :  { %v6851_v7 = vadd.f32 %v6850_v43, %v6849_v49 }
 0x833   :  { %6852 = vadd.xlane.f32.xlu1 %v6851_v7 }
 0x854   :  { %v7130_v28 = vpop.xlane.xlu0 %7129 }
 0x8bc   :  { %v6853_v56 = vpop.xlane.xlu1 %6852 }
 0x8bd   :  { %v7131_v12 = vadd.f32 %v7130_v28, %v6853_v56 }
 0x8bf   :  { %v7139_v6 = vadd.f32 %v7158_v9, %v7131_v12 }
 0x8c1   :  { %v7141_v54 = vand.u32 2147483647, %v7139_v6  ;;  %v7140_v14 = vmax.f32 %v7139_v6, 0.0 }
 0x8c3   :  { %v7142_v27 = vsub.f32 0.0, %v7141_v54 }
 0x8c5   :  { %v7143_v33 = vmul.f32 1.442695, %v7142_v27 }
 0x8c7   :  { %7163 = vpow2.f32 %v7143_v33 }
 0x8d4   :  { %v7164_v63 = vpop.eup %7163 }
 0x8d5   :  { %v7145_v42 = vadd.f32 1.0, %v7164_v63 }
 0x8d7   :  { %7165 = vlog2.f32 %v7145_v42 }
 0x8e4   :  { %v7166_v46 = vpop.eup %7165 }
 0x8e5   :  { %v7147_v40 = vmul.f32 0.6931472, %v7166_v46 }
 0x8e7   :  { %v7148_v21 = vadd.f32 %v7147_v40, %v7140_v14 }
 0x8e9   :  { %7150 = vst.msk [vmem:[%s13289_s9] sm:$0x3] %vm7149_vm10, %v7148_v21 }

</bundles_post_ra>
